<compile_context>
chip_gen: v7x
topology: tpu7x:2x2x1
jax: 0.10.0
libtpu: 0.0.40
codegen_flags: <defaults>
</compile_context>

<pallas_src>
import functools

import numpy as np
import jax
import jax.numpy as jnp
from jax import lax
from jax.experimental import pallas as pl
from jax.experimental.pallas import tpu as pltpu


def _round_up(n, m):
    return ((n + m - 1) // m) * m


def _smooth_attention_kernel(threshold, H, W, Cp,
                             x_ref, wqkv_ref, bqkv_ref, gamma_ref, out_ref):
    HW = H * W
    x = x_ref[0]                                                    # (Cp, HW)

    # Fused 1x1 convs: one (3Cp, Cp) @ (Cp, HW) MXU pass, 8-aligned row slices.
    qkv = jnp.dot(wqkv_ref[...], x,
                  preferred_element_type=jnp.float32) + bqkv_ref[...]
    q = qkv[0 * Cp:1 * Cp]                                          # (Cp, HW)
    k = qkv[1 * Cp:2 * Cp]
    v = qkv[2 * Cp:3 * Cp]

    # Transposed attention: energy_t[q', p] = energy[p, q'].  Only the small
    # (Cp, HW) k is transposed internally; the (HW, HW) tiles never are, and
    # the softmax / Chebyshev reductions run along sublanes (axis 0).
    energy_t = lax.dot_general(k, q, (((0,), (0,)), ((), ())),
                               preferred_element_type=jnp.float32)  # (HWq, HWp)

    m = jnp.max(energy_t, axis=0, keepdims=True)                    # (1, HWp)
    e = jnp.exp(energy_t - m)
    attn_t = e * pl.reciprocal(jnp.sum(e, axis=0, keepdims=True), approx=False)

    # Boundary masks over the query position p (lane axis), built once each.
    col = lax.broadcasted_iota(jnp.int32, (1, HW), 1)               # (1, HW)
    w_idx = col % W
    is_w0 = w_idx == 0
    is_wlast = w_idx == (W - 1)
    is_h0 = col < W
    is_hlast = col >= (H - 1) * W

    # Three full-tile lane rolls of attn_t, shared by the mean and Chebyshev.
    r_l = pltpu.roll(attn_t, 1, axis=1)        # col p <- attn[:, p-1]
    r_r = pltpu.roll(attn_t, HW - 1, axis=1)   # col p <- attn[:, p+1]
    r_u = pltpu.roll(attn_t, W, axis=1)        # col p <- attn[:, p-W]

    # ---- separable replicate-pad 3x3 mean (exact: clamping is per-axis) ----
    a_l = jnp.where(is_w0, attn_t, r_l)                   # (0,-1) neighbor
    a_r = jnp.where(is_wlast, attn_t, r_r)                # (0,+1) neighbor
    sum_h = a_l + attn_t + a_r
    s_u = jnp.where(is_h0, sum_h, pltpu.roll(sum_h, W, axis=1))
    s_d = jnp.where(is_hlast, sum_h, pltpu.roll(sum_h, HW - W, axis=1))
    smoothed = (s_u + sum_h + s_d - attn_t) * 0.125       # mean of 8 neighbors

    # ---- Chebyshev: 4 full-tile diffs cover all 8 directions ----
    # D(p,p-1), D(p,p-W), D(p-W,p-1), D(p-W,p+1) as (1, HW) sublane-maxes;
    # opposite directions are rolls of these tiny vectors.  Clamped boundary
    # contributions are replaced by 0 (max-only trick).
    c_1 = jnp.max(jnp.abs(r_l - attn_t), axis=0, keepdims=True)   # D(p, p-1)
    c_w = jnp.max(jnp.abs(r_u - attn_t), axis=0, keepdims=True)   # D(p, p-W)
    d_a = jnp.max(jnp.abs(r_u - r_l), axis=0, keepdims=True)      # D(p-W, p-1)
    d_b = jnp.max(jnp.abs(r_u - r_r), axis=0, keepdims=True)      # D(p-W, p+1)
    c_wm1 = pltpu.roll(d_a, HW - 1, axis=1)                       # D(p, p-(W-1))
    c_wp1 = pltpu.roll(d_b, 1, axis=1)                            # D(p, p-(W+1))

    def fold(acc, clamped, vec):
        return jnp.maximum(acc, jnp.where(clamped, 0.0, vec))

    max_cheb = jnp.where(is_w0, 0.0, c_1)                                   # (0,-1)
    max_cheb = fold(max_cheb, is_wlast, pltpu.roll(c_1, HW - 1, axis=1))    # (0,+1)
    max_cheb = fold(max_cheb, is_h0, c_w)                                   # (-1,0)
    max_cheb = fold(max_cheb, is_hlast, pltpu.roll(c_w, HW - W, axis=1))    # (+1,0)
    max_cheb = fold(max_cheb, is_h0 | is_w0, c_wp1)                         # (-1,-1)
    max_cheb = fold(max_cheb, is_hlast | is_wlast,
                    pltpu.roll(c_wp1, HW - (W + 1), axis=1))                # (+1,+1)
    max_cheb = fold(max_cheb, is_h0 | is_wlast, c_wm1)                      # (-1,+1)
    max_cheb = fold(max_cheb, is_hlast | is_w0,
                    pltpu.roll(c_wm1, HW - (W - 1), axis=1))                # (+1,-1)

    final_t = jnp.where(max_cheb > threshold, smoothed, attn_t)     # (HWq, HWp)

    # out[c, p] = sum_q V[c, q] * final[p, q] — no (HW, HW) transpose needed.
    out = lax.dot_general(v, final_t, (((1,), (0,)), ((), ())),
                          preferred_element_type=jnp.float32)       # (Cp, HW)
    out_ref[0] = gamma_ref[0] * out + x


def smooth_attention(x, wq, bq, wk, bk, wv, bv, gamma, threshold=0.4):
    B, C, H, W = x.shape
    HW = H * W
    Cp = _round_up(max(C, 8), 8)       # pad channels to a multiple of 8 sublanes

    xf = jnp.zeros((B, Cp, HW), jnp.float32).at[:, :C, :].set(
        x.reshape(B, C, HW).astype(jnp.float32))

    def pad_w(w):
        return jnp.zeros((Cp, Cp), jnp.float32).at[:C, :C].set(
            w.astype(jnp.float32))

    def pad_b(b):
        return jnp.zeros((Cp, 1), jnp.float32).at[:C, 0].set(
            b.astype(jnp.float32))

    wqkv = jnp.concatenate([pad_w(wq), pad_w(wk), pad_w(wv)], axis=0)  # (3Cp, Cp)
    bqkv = jnp.concatenate([pad_b(bq), pad_b(bk), pad_b(bv)], axis=0)  # (3Cp, 1)
    gamma1 = jnp.reshape(gamma, (1,)).astype(jnp.float32)

    # Live set ~<= 10 (HW, HW) f32 tiles + double-buffered (Cp, HW) I/O.
    # v5e's scoped-VMEM default is 16 MiB; v7x has only 64 MiB physical.
    tile = HW * HW * 4
    io = 4 * Cp * HW * 4 + (3 * Cp * Cp + 3 * Cp) * 4
    vmem_bytes = int(min(60 * 2**20, max(32 * 2**20, 10 * tile + io)))
    # TODO(synk): for HW >~ 1000 add query-column tiling (second "parallel"
    # grid axis over HW with a +-(W+1)-column halo) so the (HW, HW) tiles fit
    # v7x's 64 MiB VMEM and keep both of its TensorCores busy even for B == 1.

    kernel = functools.partial(_smooth_attention_kernel,
                               float(threshold), H, W, Cp)
    out = pl.pallas_call(
        kernel,
        out_shape=jax.ShapeDtypeStruct((B, Cp, HW), jnp.float32),
        grid_spec=pltpu.PrefetchScalarGridSpec(
            num_scalar_prefetch=0,
            grid=(B,),
            in_specs=[
                pl.BlockSpec((1, Cp, HW), lambda b: (b, 0, 0)),       # x (padded)
                pl.BlockSpec((3 * Cp, Cp), lambda b: (0, 0)),         # fused Wqkv
                pl.BlockSpec((3 * Cp, 1), lambda b: (0, 0)),          # fused bias
                pl.BlockSpec(memory_space=pltpu.MemorySpace.SMEM),    # gamma
            ],
            out_specs=pl.BlockSpec((1, Cp, HW), lambda b: (b, 0, 0)),
        ),
        compiler_params=pltpu.CompilerParams(
            dimension_semantics=("parallel",),
            vmem_limit_bytes=vmem_bytes),
    )(xf, wqkv, bqkv, gamma1)
    return out[:, :C, :].reshape(B, C, H, W)


def smooth_attention_ref(x, wq, bq, wk, bk, wv, bv, gamma, threshold=0.4):
    """Pure-JAX reference mirroring the PyTorch forward exactly."""
    B, C, H, W = x.shape
    HW = H * W
    xf = x.reshape(B, C, HW)
    q = jnp.einsum('oc,bcp->bop', wq, xf) + bq[None, :, None]
    k = jnp.einsum('oc,bcp->bop', wk, xf) + bk[None, :, None]
    v = jnp.einsum('oc,bcp->bop', wv, xf) + bv[None, :, None]
    energy = jnp.einsum('bcp,bcq->bpq', q, k)
    attn = jax.nn.softmax(energy, axis=-1)
    a3 = attn.reshape(B, H, W, HW)
    pad = jnp.pad(a3, ((0, 0), (1, 1), (1, 1), (0, 0)), mode='edge')
    nbs = [pad[:, i:i + H, j:j + W, :]
           for i in range(3) for j in range(3) if not (i == 1 and j == 1)]
    nbs = jnp.stack(nbs, axis=0)                                   # (8, B, H, W, HW)
    cheb = jnp.max(jnp.abs(nbs - a3[None]), axis=-1)
    max_cheb = jnp.max(cheb, axis=0)
    mask = (max_cheb > threshold).astype(jnp.float32)[..., None]
    smoothed = jnp.mean(nbs, axis=0)
    final = ((1.0 - mask) * a3 + mask * smoothed).reshape(B, HW, HW)
    out = jnp.einsum('bcq,bpq->bcp', v, final).reshape(B, C, H, W)
    return gamma * out + x


if __name__ == "__main__":
    B, C, H, W = 2, 4, 16, 16        # in_channels == out_channels so the final
                                     # view back to (B, C, H, W) is valid.
    key = jax.random.PRNGKey(0)
    kx, kq, kk_, kv, kbq, kbk, kbv = jax.random.split(key, 7)
    x = jax.random.normal(kx, (B, C, H, W), jnp.float32)
    wq = jax.random.normal(kq, (C, C), jnp.float32) * 0.1
    wk = jax.random.normal(kk_, (C, C), jnp.float32) * 0.1
    wv = jax.random.normal(kv, (C, C), jnp.float32) * 0.1
    bq = jax.random.normal(kbq, (C,), jnp.float32) * 0.1
    bk = jax.random.normal(kbk, (C,), jnp.float32) * 0.1
    bv = jax.random.normal(kbv, (C,), jnp.float32) * 0.1
    # PyTorch __init__ has gamma = zeros(1); use a nonzero deterministic value
    # so the attention path actually contributes to the output.
    gamma = jnp.array([0.5], jnp.float32)

    out = smooth_attention(x, wq, bq, wk, bk, wv, bv, gamma, threshold=0.4)
    out = jax.block_until_ready(out)

    ref = smooth_attention_ref(x, wq, bq, wk, bk, wv, bv, gamma, threshold=0.4)
    np.testing.assert_allclose(np.asarray(out), np.asarray(ref),
                               rtol=1e-4, atol=1e-5)
    print("KERNEL_OK")
</pallas_src>

<mosaic_0001>
module attributes {stable_mosaic.version = 11 : i64} {
  func.func @_smooth_attention_kernel(%arg0: i32, %arg1: memref<1x8x256xf32, #tpu.memory_space<vmem>>, %arg2: memref<24x8xf32, #tpu.memory_space<vmem>>, %arg3: memref<24x1xf32, #tpu.memory_space<vmem>>, %arg4: memref<1xf32, #tpu.memory_space<smem>>, %arg5: memref<1x8x256xf32, #tpu.memory_space<vmem>>) attributes {dimension_semantics = [#tpu.dimension_semantics<parallel>], iteration_bounds = array<i64: 2>, scalar_prefetch = 0 : i64, scratch_operands = 0 : i64, tpu.core_type = #tpu.core_type<tc>, window_params = [{transform_indices = @transform_0, window_bounds = array<i64: 1, 8, 256>}, {pipeline_mode = #tpu.pipeline_mode<synchronous>, transform_indices = @transform_1, window_bounds = array<i64: 24, 8>}, {pipeline_mode = #tpu.pipeline_mode<synchronous>, transform_indices = @transform_2, window_bounds = array<i64: 24, 1>}, {transform_indices = @transform_3, window_bounds = array<i64: 1>}, {transform_indices = @transform_4, window_bounds = array<i64: 1, 8, 256>}]} {
    %c0 = arith.constant 0 : index
    %c0_0 = arith.constant 0 : index
    %c0_1 = arith.constant 0 : index
    %0 = vector.load %arg1[%c0, %c0_0, %c0_1] : memref<1x8x256xf32, #tpu.memory_space<vmem>>, vector<1x8x256xf32>
    %1 = vector.shape_cast %0 : vector<1x8x256xf32> to vector<8x256xf32>
    %c0_2 = arith.constant 0 : index
    %c0_3 = arith.constant 0 : index
    %2 = vector.load %arg2[%c0_2, %c0_3] : memref<24x8xf32, #tpu.memory_space<vmem>>, vector<24x8xf32>
    %cst = arith.constant dense<0.000000e+00> : vector<24x256xf32>
    %3 = tpu.matmul %2, %1, %cst {dimension_numbers = #tpu.dot_dimension_numbers<[1], [0], [0], [1], [0, 0, 1, 1], [], []>} : vector<24x8xf32>, vector<8x256xf32>, vector<24x256xf32> -> vector<24x256xf32>
    %c0_4 = arith.constant 0 : index
    %c0_5 = arith.constant 0 : index
    %4 = vector.load %arg3[%c0_4, %c0_5] : memref<24x1xf32, #tpu.memory_space<vmem>>, vector<24x1xf32>
    %5 = vector.broadcast %4 : vector<24x1xf32> to vector<24x256xf32>
    %6 = arith.addf %3, %5 : vector<24x256xf32>
    %7 = vector.extract_strided_slice %6 {offsets = [0, 0], sizes = [8, 256], strides = [1, 1]} : vector<24x256xf32> to vector<8x256xf32>
    %8 = vector.extract_strided_slice %6 {offsets = [8, 0], sizes = [8, 256], strides = [1, 1]} : vector<24x256xf32> to vector<8x256xf32>
    %9 = vector.extract_strided_slice %6 {offsets = [16, 0], sizes = [8, 256], strides = [1, 1]} : vector<24x256xf32> to vector<8x256xf32>
    %cst_6 = arith.constant dense<0.000000e+00> : vector<256x256xf32>
    %10 = tpu.matmul %8, %7, %cst_6 {dimension_numbers = #tpu.dot_dimension_numbers<[0], [0], [1], [1], [0, 1, 1, 1], [], []>} : vector<8x256xf32>, vector<8x256xf32>, vector<256x256xf32> -> vector<256x256xf32>
    %cst_7 = arith.constant dense<0xFF800000> : vector<256xf32>
    %11 = vector.multi_reduction <maximumf>, %10, %cst_7 [0] : vector<256x256xf32> to vector<256xf32>
    %12 = vector.shape_cast %11 : vector<256xf32> to vector<1x256xf32>
    %13 = vector.broadcast %12 : vector<1x256xf32> to vector<256x256xf32>
    %14 = arith.subf %10, %13 : vector<256x256xf32>
    %15 = math.exp %14 : vector<256x256xf32>
    %cst_8 = arith.constant dense<0.000000e+00> : vector<256xf32>
    %16 = vector.multi_reduction <add>, %15, %cst_8 [0] : vector<256x256xf32> to vector<256xf32>
    %17 = vector.shape_cast %16 : vector<256xf32> to vector<1x256xf32>
    %18 = tpu.reciprocal %17 : vector<1x256xf32> -> vector<1x256xf32>
    %19 = vector.broadcast %18 : vector<1x256xf32> to vector<256x256xf32>
    %20 = arith.mulf %15, %19 : vector<256x256xf32>
    %21 = tpu.iota {dimensions = array<i32: 1>} : vector<1x256xi32>
    %c16_i32 = arith.constant 16 : i32
    %c0_i32 = arith.constant 0 : i32
    %22 = arith.cmpi eq, %c16_i32, %c0_i32 : i32
    %c1_i32 = arith.constant 1 : i32
    %23 = arith.select %22, %c1_i32, %c16_i32 : i32
    %24 = vector.broadcast %23 : i32 to vector<1x256xi32>
    %25 = arith.remsi %21, %24 : vector<1x256xi32>
    %c0_i32_9 = arith.constant 0 : i32
    %26 = vector.broadcast %c0_i32_9 : i32 to vector<1x256xi32>
    %27 = arith.cmpi ne, %25, %26 : vector<1x256xi32>
    %c0_i32_10 = arith.constant 0 : i32
    %28 = vector.broadcast %c0_i32_10 : i32 to vector<1x256xi32>
    %29 = arith.cmpi slt, %25, %28 : vector<1x256xi32>
    %c0_i32_11 = arith.constant 0 : i32
    %30 = arith.cmpi slt, %23, %c0_i32_11 : i32
    %31 = vector.broadcast %30 : i1 to vector<1x256xi1>
    %32 = vector.broadcast %31 : vector<1x256xi1> to vector<1x256xi1>
    %33 = arith.xori %29, %32 : vector<1x256xi1>
    %34 = arith.andi %33, %27 : vector<1x256xi1>
    %35 = vector.broadcast %23 : i32 to vector<1x256xi32>
    %36 = arith.addi %25, %35 : vector<1x256xi32>
    %37 = arith.select %34, %36, %25 : vector<1x256xi1>, vector<1x256xi32>
    %c0_i32_12 = arith.constant 0 : i32
    %38 = vector.broadcast %c0_i32_12 : i32 to vector<1x256xi32>
    %39 = arith.cmpi eq, %37, %38 : vector<1x256xi32>
    %c15_i32 = arith.constant 15 : i32
    %40 = vector.broadcast %c15_i32 : i32 to vector<1x256xi32>
    %41 = arith.cmpi eq, %37, %40 : vector<1x256xi32>
    %c16_i32_13 = arith.constant 16 : i32
    %42 = vector.broadcast %c16_i32_13 : i32 to vector<1x256xi32>
    %43 = arith.cmpi slt, %21, %42 : vector<1x256xi32>
    %c240_i32 = arith.constant 240 : i32
    %44 = vector.broadcast %c240_i32 : i32 to vector<1x256xi32>
    %45 = arith.cmpi sge, %21, %44 : vector<1x256xi32>
    %c1_i32_14 = arith.constant 1 : i32
    %46 = tpu.dynamic_rotate %20 by %c1_i32_14 dim 1 : vector<256x256xf32>, i32 -> vector<256x256xf32>
    %c255_i32 = arith.constant 255 : i32
    %47 = tpu.dynamic_rotate %20 by %c255_i32 dim 1 : vector<256x256xf32>, i32 -> vector<256x256xf32>
    %c16_i32_15 = arith.constant 16 : i32
    %48 = tpu.dynamic_rotate %20 by %c16_i32_15 dim 1 : vector<256x256xf32>, i32 -> vector<256x256xf32>
    %49 = vector.shape_cast %39 : vector<1x256xi1> to vector<1x256xi1>
    %50 = vector.broadcast %49 : vector<1x256xi1> to vector<256x256xi1>
    %51 = arith.select %50, %20, %46 : vector<256x256xi1>, vector<256x256xf32>
    %52 = vector.shape_cast %41 : vector<1x256xi1> to vector<1x256xi1>
    %53 = vector.broadcast %52 : vector<1x256xi1> to vector<256x256xi1>
    %54 = arith.select %53, %20, %47 : vector<256x256xi1>, vector<256x256xf32>
    %55 = arith.addf %51, %20 : vector<256x256xf32>
    %56 = arith.addf %55, %54 : vector<256x256xf32>
    %c16_i32_16 = arith.constant 16 : i32
    %57 = tpu.dynamic_rotate %56 by %c16_i32_16 dim 1 : vector<256x256xf32>, i32 -> vector<256x256xf32>
    %58 = vector.shape_cast %43 : vector<1x256xi1> to vector<1x256xi1>
    %59 = vector.broadcast %58 : vector<1x256xi1> to vector<256x256xi1>
    %60 = arith.select %59, %56, %57 : vector<256x256xi1>, vector<256x256xf32>
    %c240_i32_17 = arith.constant 240 : i32
    %61 = tpu.dynamic_rotate %56 by %c240_i32_17 dim 1 : vector<256x256xf32>, i32 -> vector<256x256xf32>
    %62 = vector.shape_cast %45 : vector<1x256xi1> to vector<1x256xi1>
    %63 = vector.broadcast %62 : vector<1x256xi1> to vector<256x256xi1>
    %64 = arith.select %63, %56, %61 : vector<256x256xi1>, vector<256x256xf32>
    %65 = arith.addf %60, %56 : vector<256x256xf32>
    %66 = arith.addf %65, %64 : vector<256x256xf32>
    %67 = arith.subf %66, %20 : vector<256x256xf32>
    %cst_18 = arith.constant 1.250000e-01 : f32
    %68 = vector.broadcast %cst_18 : f32 to vector<256x256xf32>
    %69 = arith.mulf %67, %68 : vector<256x256xf32>
    %70 = arith.subf %46, %20 : vector<256x256xf32>
    %71 = math.absf %70 : vector<256x256xf32>
    %cst_19 = arith.constant dense<0xFF800000> : vector<256xf32>
    %72 = vector.multi_reduction <maximumf>, %71, %cst_19 [0] : vector<256x256xf32> to vector<256xf32>
    %73 = vector.shape_cast %72 : vector<256xf32> to vector<1x256xf32>
    %74 = arith.subf %48, %20 : vector<256x256xf32>
    %75 = math.absf %74 : vector<256x256xf32>
    %cst_20 = arith.constant dense<0xFF800000> : vector<256xf32>
    %76 = vector.multi_reduction <maximumf>, %75, %cst_20 [0] : vector<256x256xf32> to vector<256xf32>
    %77 = vector.shape_cast %76 : vector<256xf32> to vector<1x256xf32>
    %78 = arith.subf %48, %46 : vector<256x256xf32>
    %79 = math.absf %78 : vector<256x256xf32>
    %cst_21 = arith.constant dense<0xFF800000> : vector<256xf32>
    %80 = vector.multi_reduction <maximumf>, %79, %cst_21 [0] : vector<256x256xf32> to vector<256xf32>
    %81 = vector.shape_cast %80 : vector<256xf32> to vector<1x256xf32>
    %82 = arith.subf %48, %47 : vector<256x256xf32>
    %83 = math.absf %82 : vector<256x256xf32>
    %cst_22 = arith.constant dense<0xFF800000> : vector<256xf32>
    %84 = vector.multi_reduction <maximumf>, %83, %cst_22 [0] : vector<256x256xf32> to vector<256xf32>
    %85 = vector.shape_cast %84 : vector<256xf32> to vector<1x256xf32>
    %c255_i32_23 = arith.constant 255 : i32
    %86 = tpu.dynamic_rotate %81 by %c255_i32_23 dim 1 : vector<1x256xf32>, i32 -> vector<1x256xf32>
    %c1_i32_24 = arith.constant 1 : i32
    %87 = tpu.dynamic_rotate %85 by %c1_i32_24 dim 1 : vector<1x256xf32>, i32 -> vector<1x256xf32>
    %cst_25 = arith.constant 0.000000e+00 : f32
    %88 = vector.broadcast %cst_25 : f32 to vector<1x256xf32>
    %89 = arith.select %39, %88, %73 : vector<1x256xi1>, vector<1x256xf32>
    %c255_i32_26 = arith.constant 255 : i32
    %90 = tpu.dynamic_rotate %73 by %c255_i32_26 dim 1 : vector<1x256xf32>, i32 -> vector<1x256xf32>
    %cst_27 = arith.constant 0.000000e+00 : f32
    %91 = vector.broadcast %cst_27 : f32 to vector<1x256xf32>
    %92 = arith.select %41, %91, %90 : vector<1x256xi1>, vector<1x256xf32>
    %93 = arith.maximumf %89, %92 : vector<1x256xf32>
    %cst_28 = arith.constant 0.000000e+00 : f32
    %94 = vector.broadcast %cst_28 : f32 to vector<1x256xf32>
    %95 = arith.select %43, %94, %77 : vector<1x256xi1>, vector<1x256xf32>
    %96 = arith.maximumf %93, %95 : vector<1x256xf32>
    %c240_i32_29 = arith.constant 240 : i32
    %97 = tpu.dynamic_rotate %77 by %c240_i32_29 dim 1 : vector<1x256xf32>, i32 -> vector<1x256xf32>
    %cst_30 = arith.constant 0.000000e+00 : f32
    %98 = vector.broadcast %cst_30 : f32 to vector<1x256xf32>
    %99 = arith.select %45, %98, %97 : vector<1x256xi1>, vector<1x256xf32>
    %100 = arith.maximumf %96, %99 : vector<1x256xf32>
    %101 = arith.ori %43, %39 : vector<1x256xi1>
    %cst_31 = arith.constant 0.000000e+00 : f32
    %102 = vector.broadcast %cst_31 : f32 to vector<1x256xf32>
    %103 = arith.select %101, %102, %87 : vector<1x256xi1>, vector<1x256xf32>
    %104 = arith.maximumf %100, %103 : vector<1x256xf32>
    %105 = arith.ori %45, %41 : vector<1x256xi1>
    %c239_i32 = arith.constant 239 : i32
    %106 = tpu.dynamic_rotate %87 by %c239_i32 dim 1 : vector<1x256xf32>, i32 -> vector<1x256xf32>
    %cst_32 = arith.constant 0.000000e+00 : f32
    %107 = vector.broadcast %cst_32 : f32 to vector<1x256xf32>
    %108 = arith.select %105, %107, %106 : vector<1x256xi1>, vector<1x256xf32>
    %109 = arith.maximumf %104, %108 : vector<1x256xf32>
    %110 = arith.ori %43, %41 : vector<1x256xi1>
    %cst_33 = arith.constant 0.000000e+00 : f32
    %111 = vector.broadcast %cst_33 : f32 to vector<1x256xf32>
    %112 = arith.select %110, %111, %86 : vector<1x256xi1>, vector<1x256xf32>
    %113 = arith.maximumf %109, %112 : vector<1x256xf32>
    %114 = arith.ori %45, %39 : vector<1x256xi1>
    %c241_i32 = arith.constant 241 : i32
    %115 = tpu.dynamic_rotate %86 by %c241_i32 dim 1 : vector<1x256xf32>, i32 -> vector<1x256xf32>
    %cst_34 = arith.constant 0.000000e+00 : f32
    %116 = vector.broadcast %cst_34 : f32 to vector<1x256xf32>
    %117 = arith.select %114, %116, %115 : vector<1x256xi1>, vector<1x256xf32>
    %118 = arith.maximumf %113, %117 : vector<1x256xf32>
    %cst_35 = arith.constant 4.000000e-01 : f32
    %119 = vector.broadcast %cst_35 : f32 to vector<1x256xf32>
    %120 = arith.cmpf ogt, %118, %119 : vector<1x256xf32>
    %121 = vector.shape_cast %120 : vector<1x256xi1> to vector<1x256xi1>
    %122 = vector.broadcast %121 : vector<1x256xi1> to vector<256x256xi1>
    %123 = arith.select %122, %69, %20 : vector<256x256xi1>, vector<256x256xf32>
    %cst_36 = arith.constant dense<0.000000e+00> : vector<8x256xf32>
    %124 = tpu.matmul %9, %123, %cst_36 {dimension_numbers = #tpu.dot_dimension_numbers<[1], [0], [0], [1], [0, 0, 1, 1], [], []>} : vector<8x256xf32>, vector<256x256xf32>, vector<8x256xf32> -> vector<8x256xf32>
    %c0_37 = arith.constant 0 : index
    %125 = memref.load %arg4[%c0_37] : memref<1xf32, #tpu.memory_space<smem>>
    %126 = vector.broadcast %125 : f32 to vector<8x256xf32>
    %127 = arith.mulf %126, %124 : vector<8x256xf32>
    %128 = arith.addf %127, %1 : vector<8x256xf32>
    %c0_38 = arith.constant 0 : index
    %c0_39 = arith.constant 0 : index
    %c0_40 = arith.constant 0 : index
    %129 = vector.load %arg5[%c0_38, %c0_39, %c0_40] : memref<1x8x256xf32, #tpu.memory_space<vmem>>, vector<1x8x256xf32>
    %130 = vector.shape_cast %129 : vector<1x8x256xf32> to vector<8x256xf32>
    %131 = vector.shape_cast %128 : vector<8x256xf32> to vector<1x8x256xf32>
    tpu.vector_store %arg5[%c0_38, %c0_39, %c0_40], %131 {strides = array<i32>} : memref<1x8x256xf32, #tpu.memory_space<vmem>>, vector<1x8x256xf32>,
    return
  }
  func.func @transform_0(%arg0: i32) -> (i32, i32, i32) {
    %c0_i32 = arith.constant 0 : i32
    %c0_i32_0 = arith.constant 0 : i32
    %c0_i32_1 = arith.constant 0 : i32
    return %arg0, %c0_i32, %c0_i32_0 : i32, i32, i32
  }
  func.func @transform_1(%arg0: i32) -> (i32, i32) {
    %c0_i32 = arith.constant 0 : i32
    %c0_i32_0 = arith.constant 0 : i32
    %c0_i32_1 = arith.constant 0 : i32
    return %c0_i32, %c0_i32_0 : i32, i32
  }
  func.func @transform_2(%arg0: i32) -> (i32, i32) {
    %c0_i32 = arith.constant 0 : i32
    %c0_i32_0 = arith.constant 0 : i32
    %c0_i32_1 = arith.constant 0 : i32
    return %c0_i32, %c0_i32_0 : i32, i32
  }
  func.func @transform_3(%arg0: i32) -> i32 {
    %c0_i32 = arith.constant 0 : i32
    %c0_i32_0 = arith.constant 0 : i32
    return %c0_i32 : i32
  }
  func.func @transform_4(%arg0: i32) -> (i32, i32, i32) {
    %c0_i32 = arith.constant 0 : i32
    %c0_i32_0 = arith.constant 0 : i32
    %c0_i32_1 = arith.constant 0 : i32
    return %arg0, %c0_i32, %c0_i32_0 : i32, i32, i32
  }
}

</mosaic_0001>

<bundles_post_ra>
// kernel: tpu_custom_call.1
= control target key start
LH: loop header
LB: loop body
LE: loop exit
PB: predicated region body
PF: predicated region fallthrough
CT: control target
= control target key end

     0   :  { %s10479_s0 = inlined_call_operand.vmem [shape: f32[2,8,256], index: 0, kind: input, shape index: {}]   ;;  %s10480_s1 = inlined_call_operand.vmem [shape: f32[24,8], index: 1, kind: input, shape index: {}]   ;;  %s10481_s2 = inlined_call_operand.vmem [shape: f32[24,1], index: 2, kind: input, shape index: {}]   ;;  %s10482_s3 = inlined_call_operand.<no memory space> [shape: f32[1], index: 3, kind: input, shape index: {}]   ;;  %s10483_s4 = inlined_call_operand.hbm [shape: f32[2,8,256], index: 4, kind: output, shape index: {}]  }
   0x1   :  { %9 = sst [smem:[#allocation2]] %s10482_s3 }
   0x2   :  { %10 = vsyncpa [#allocation4], 0 }
   0x3   :  { %12 = vsyncpa [#allocation4 + $0x1], 0  ;;  %s4369_s17 = smov 0   ;;  %s4371_s18 = smov 0  }
   0x4   :  { %s4373_s19 = smov 0   ;;  %s4375_s20 = smov 0  }
   0x5 LB: > { %s4390_s3 = sadd.s32 4294967295, %s4330_s20   ;;  %s3905_s21 = sadd.s32 4294967294, %s4330_s20   ;;  %s4330_s20 = sphi %s4375_s20, %s12474_s20   ;;  %s4326_s19 = sphi %s4373_s19, %s12473_s19   ;;  %s4322_s18 = sphi %s4371_s18, %s12472_s18   ;;  %s4318_s17 = sphi %s4369_s17, %s12471_s17  }
   0x6   : > { %s4394_s22 = sadd.s32 1, %s4330_s20   ;;  %s114_s23 = sadd.s32 1, %s4326_s19 }
   0x7   : > { %s111_s24 = ssub.s32 %s4330_s20, %s4394_s22  ;;  %p124_p0 = scmp.ne.s32.totalorder %s4326_s19, %s4322_s18 }
   0x8   : > { %p112_p1 = scmp.eq.s32.totalorder %s111_s24, 0  ;;  %p125_p2 = scmp.eq.s32.totalorder %s4390_s3, 1 }
   0x9   : > { %p130_p3 = scmp.ne.s32.totalorder %s4322_s18, %s4318_s17  ;;  %p131_p4 = scmp.eq.s32.totalorder %s3905_s21, 1 }
   0xa   : > { %s4405_s25 = scalar_select %p112_p1, %s4326_s19, %s114_s23  }
   0xb   : > { %p4407_p5 = por %p125_p2, %p124_p0  ;;  %p4411_p6 = por %p131_p4, %p130_p3 }
   0xc   : > { %p3908_p7 = scmp.ge.s32.totalorder %s4330_s20, 1  ;;  %p166_p8 = scmp.lt.s32.totalorder %s4330_s20, 3 }
   0xe   : > { %p167_p9 = pnand %p3908_p7, %p166_p8 }
  0x10   : > { %170 = sbr.rel (%p167_p9) target bundleno = 2015 (0x7df), region = 36 }
  0x17   : > { %p192_p10 = scmp.lt.s32.totalorder %s4390_s3, 1  ;;  %v4332_v0 = vmov 0.0   ;;  %v203_v1 = vld [vmem:[%s10481_s2 + $0x8] sm:$0xff]  ;;  %v10484_v2 = vmov 0   ;;  %v202_v3 = vld [vmem:[%s10481_s2] sm:$0xff]  ;;  %vm220_vm0 = vcmask 64512  }
  0x18   : > { %294 = vmatprep.mubr.f32.mxu0 %v4332_v0  ;;  %537 = vmatprep.mubr.f32.mxu1 %v4332_v0  ;;  %v199_v6 = vld [vmem:[%s10480_s1] sm:$0xff]  ;;  %v204_v7 = vld [vmem:[%s10481_s2 + $0x10] sm:$0xff]  ;;  %v200_v8 = vld [vmem:[%s10480_s1 + $0x8] sm:$0xff]  ;;  %s4334_s24 = smov 1   ;;  %s4335_s28 = smov 127  }
  0x19   : > { %s193_s30 = scalar_select %p192_p10, %s4390_s3, 1  ;;  %4065 = vset.pattern.permute.xlu0 %v10484_v2  ;;  %v201_v9 = vld [vmem:[%s10480_s1 + $0x10] sm:$0xff] }
  0x1a   : > { %212 = vperm.xlu0 %4065, %v203_v1   ;;  %s4336_s29 = smov 16   ;;  %s4339_s6 = smov 113  }
  0x1b   : > { %s3952_s5 = sshll.u32 %s193_s30, 4  ;;  %s4337_s30 = smov 112  }
  0x1c   : > { %s4431_s10 = scalar_lea.vmem %s10479_s0, %s3952_s5  ;;  %s4338_s5 = smov 111  }
  0x1d   : > { %v198_v4 = vld [vmem:[%s4431_s10 + $0x8] sm:$0xff]  ;;  %v197_v5 = vld [vmem:[%s4431_s10] sm:$0xff]  ;;  %s3823_s7 = sld [smem:[#allocation2]]  ;;  %s189_s8 = sand.u32 1, %s4322_s18  }
  0x1e   : > { %230 = vmatprep.subr.mxu0 %v198_v4  ;;  %207 = vperm.xlu0 %4065, %v202_v3   ;;  %s3909_s9 = sshll.u32 %s189_s8, 4  ;;  %s3953_s11 = sshll.u32 %s4390_s3, 8 }
  0x1f   : > { %231 = vmatpush1.msra.mxu0 %v197_v5  ;;  %s191_s12 = scalar_lea.vmem [#allocation3], %s3909_s9  ;;  %s10437_s16 = scalar_lea.hbm %s10483_s4, %s3953_s11 }
  0x20   : > { %3912 = vmatmul.mubr.msk.f32.vlgmr.msra.gmra.mrb[0].mxu0 %vm220_vm0, %v199_v6  ;;  %s3846_s13 = sshll.u32 %s191_s12, 4  ;;  %s3832_s3 = scalar_lea.sflag [#allocation4], %s189_s8  ;;  %s10439_s13 = int_to_ptr.vmem [resolvable:$true] %s3846_s13 }
  0x21   : > { %300 = vmatprep.mubr.f32.mxu0 %v4332_v0  ;;  %s4200_s21 = scalar_lea.vmem %s10439_s13, 256 }
  0x22   : > { %217 = vperm.xlu0 %4065, %v204_v7   ;;  %p4201_p11 = scmp.ne.s32.totalorder %s10439_s13, %s4200_s21 }
  0x24   : > { %3913 = vmatmul.mubr.msk.f32.gmra.mrb[2].mxu0 %vm220_vm0, %v200_v8  ;;  %p4202_p12 = pnand %p4201_p11, %p4407_p5 }
  0x25   : > { %306 = vmatprep.mubr.f32.mxu0 %v4332_v0 }
  0x26   : > { %p4203_p13 = pneg %p4202_p12 }
  0x28   : > { %3914 = vmatmul.mubr.msk.f32.gmra.mrb[4].mxu0 %vm220_vm0, %v201_v9 }
  0x99   : > { %v213_v10 = vpop.permute.xlu0 %212 }
  0x9d   : > { %v208_v11 = vpop.permute.xlu0 %207 }
  0xa1   : > { %v4454_v20 = vpop.permute.xlu0 %217 }
  0xa2   : > { %11190 = vst [vmem:[#allocation7_spill] sm:$0xff] %v4454_v20 }
  0xf3   : > { %v296_v12 = vpop.f32.mrb[0].mxu0 }
  0xf4   : > { %v298_v13 = vpop.f32.mrb[1].mxu0  ;;  %v297_v15 = vadd.f32 %v296_v12, %v208_v11 }
  0xf5   : > { %v299_v14 = vadd.f32 %v298_v13, %v208_v11 }
  0xf7   : > { %v302_v16 = vpop.f32.mrb[2].mxu0  ;;  %473 = vmatprep.subr.mxu1 %v299_v14 }
  0xf8   : > { %v304_v17 = vpop.f32.mrb[3].mxu0  ;;  %474 = vmatpush1.msra.mxu1 %v297_v15  ;;  %v303_v18 = vadd.f32 %v302_v16, %v213_v10 }
  0xf9   : > { %v305_v23 = vadd.f32 %v304_v17, %v213_v10 }
  0xfa   : > { %313 = vxpose.xlu1.b32.start.end [1/1] (short) %v303_v18, 128 }
  0xfb   : > { %v4452_v19 = vpop.f32.mrb[4].mxu0 }
  0xfc   : > { %11189 = vst [vmem:[#allocation6_spill] sm:$0xff] %v4452_v19  ;;  %v310_v21 = vpop.f32.mrb[5].mxu0 }
  0xfd   : > { %v311_v22 = vadd.f32 %v310_v21, %v4454_v20 }
  0xff   : > { %3816 = vmatprep.mubr.f32.mxu0 %v311_v22 }
 0x137   : > { %345 = vxpose.xlu1.b32.start.end [1/1] (short) %v305_v23, 128 }
 0x17a   : > { %v329_v24 = vpop.trf.xlu1 }
 0x17b   : > { %3915 = vmatmul.mubr.msk.f32.vlgmr.msra.gmra.mrb[0].mxu1 %vm220_vm0, %v329_v24 }
 0x17c   : > { %543 = vmatprep.mubr.f32.mxu1 %v4332_v0 }
 0x17e   : > { %v330_v25 = vpop.trf.xlu1 }
 0x17f   : > { %3916 = vmatmul.mubr.msk.f32.gmra.mrb[2].mxu1 %vm220_vm0, %v330_v25 }
 0x180   : > { %549 = vmatprep.mubr.f32.mxu1 %v4332_v0 }
 0x182   : > { %v331_v26 = vpop.trf.xlu1 }
 0x183   : > { %3917 = vmatmul.mubr.msk.f32.gmra.mrb[4].mxu1 %vm220_vm0, %v331_v26 }
 0x184   : > { %555 = vmatprep.mubr.f32.mxu1 %v4332_v0 }
 0x186   : > { %v332_v27 = vpop.trf.xlu1 }
 0x187   : > { %3918 = vmatmul.mubr.msk.f32.gmra.mrb[6].mxu1 %vm220_vm0, %v332_v27 }
 0x188   : > { %561 = vmatprep.mubr.f32.mxu1 %v4332_v0 }
 0x18a   : > { %v333_v28 = vpop.trf.xlu1 }
 0x18b   : > { %3919 = vmatmul.mubr.msk.f32.gmra.mrb[8].mxu1 %vm220_vm0, %v333_v28 }
 0x18c   : > { %567 = vmatprep.mubr.f32.mxu1 %v4332_v0 }
 0x18e   : > { %v334_v29 = vpop.trf.xlu1 }
 0x18f   : > { %3920 = vmatmul.mubr.msk.f32.gmra.mrb[10].mxu1 %vm220_vm0, %v334_v29 }
 0x190   : > { %573 = vmatprep.mubr.f32.mxu1 %v4332_v0 }
 0x192   : > { %v335_v30 = vpop.trf.xlu1 }
 0x193   : > { %3921 = vmatmul.mubr.msk.f32.gmra.mrb[12].mxu1 %vm220_vm0, %v335_v30 }
 0x194   : > { %579 = vmatprep.mubr.f32.mxu1 %v4332_v0 }
 0x196   : > { %v336_v31 = vpop.trf.xlu1 }
 0x197   : > { %3922 = vmatmul.mubr.msk.f32.gmra.mrb[14].mxu1 %vm220_vm0, %v336_v31 }
 0x198   : > { %585 = vmatprep.mubr.f32.mxu1 %v4332_v0 }
 0x19a   : > { %v337_v32 = vpop.trf.xlu1 }
 0x19b   : > { %3923 = vmatmul.mubr.msk.f32.gmra.mrb[16].mxu1 %vm220_vm0, %v337_v32 }
 0x19c   : > { %591 = vmatprep.mubr.f32.mxu1 %v4332_v0 }
 0x19e   : > { %v338_v33 = vpop.trf.xlu1 }
 0x19f   : > { %3924 = vmatmul.mubr.msk.f32.gmra.mrb[18].mxu1 %vm220_vm0, %v338_v33 }
 0x1a0   : > { %597 = vmatprep.mubr.f32.mxu1 %v4332_v0 }
 0x1a2   : > { %v339_v34 = vpop.trf.xlu1 }
 0x1a3   : > { %3925 = vmatmul.mubr.msk.f32.gmra.mrb[20].mxu1 %vm220_vm0, %v339_v34 }
 0x1a4   : > { %603 = vmatprep.mubr.f32.mxu1 %v4332_v0 }
 0x1a6   : > { %v340_v35 = vpop.trf.xlu1 }
 0x1a7   : > { %3926 = vmatmul.mubr.msk.f32.gmra.mrb[22].mxu1 %vm220_vm0, %v340_v35 }
 0x1a8   : > { %609 = vmatprep.mubr.f32.mxu1 %v4332_v0 }
 0x1aa   : > { %v341_v36 = vpop.trf.xlu1 }
 0x1ab   : > { %3927 = vmatmul.mubr.msk.f32.gmra.mrb[24].mxu1 %vm220_vm0, %v341_v36 }
 0x1ac   : > { %615 = vmatprep.mubr.f32.mxu1 %v4332_v0 }
 0x1ae   : > { %v342_v37 = vpop.trf.xlu1 }
 0x1af   : > { %3928 = vmatmul.mubr.msk.f32.gmra.mrb[26].mxu1 %vm220_vm0, %v342_v37 }
 0x1b0   : > { %621 = vmatprep.mubr.f32.mxu1 %v4332_v0 }
 0x1b2   : > { %v343_v38 = vpop.trf.xlu1 }
 0x1b3   : > { %3929 = vmatmul.mubr.msk.f32.gmra.mrb[28].mxu1 %vm220_vm0, %v343_v38 }
 0x1b4   : > { %627 = vmatprep.mubr.f32.mxu1 %v4332_v0 }
 0x1b6   : > { %v344_v39 = vpop.trf.xlu1 }
 0x1b7   : > { %3930 = vmatmul.mubr.msk.f32.gmra.mrb[30].mxu1 %vm220_vm0, %v344_v39 }
 0x1b8   : > { %633 = vmatprep.mubr.f32.mxu1 %v4332_v0 }
 0x1ba   : > { %v361_v40 = vpop.trf.xlu1 }
 0x1bb   : > { %3931 = vmatmul.mubr.msk.f32.gmra.mrb[32].mxu1 %vm220_vm0, %v361_v40 }
 0x1bc   : > { %639 = vmatprep.mubr.f32.mxu1 %v4332_v0 }
 0x1be   : > { %v362_v41 = vpop.trf.xlu1 }
 0x1bf   : > { %3932 = vmatmul.mubr.msk.f32.gmra.mrb[34].mxu1 %vm220_vm0, %v362_v41 }
 0x1c0   : > { %645 = vmatprep.mubr.f32.mxu1 %v4332_v0 }
 0x1c2   : > { %v363_v42 = vpop.trf.xlu1 }
 0x1c3   : > { %3933 = vmatmul.mubr.msk.f32.gmra.mrb[36].mxu1 %vm220_vm0, %v363_v42 }
 0x1c4   : > { %651 = vmatprep.mubr.f32.mxu1 %v4332_v0 }
 0x1c6   : > { %v364_v43 = vpop.trf.xlu1 }
 0x1c7   : > { %3934 = vmatmul.mubr.msk.f32.gmra.mrb[38].mxu1 %vm220_vm0, %v364_v43 }
 0x1c8   : > { %657 = vmatprep.mubr.f32.mxu1 %v4332_v0 }
 0x1ca   : > { %v365_v44 = vpop.trf.xlu1 }
 0x1cb   : > { %3935 = vmatmul.mubr.msk.f32.gmra.mrb[40].mxu1 %vm220_vm0, %v365_v44 }
 0x1cc   : > { %663 = vmatprep.mubr.f32.mxu1 %v4332_v0 }
 0x1ce   : > { %v366_v45 = vpop.trf.xlu1 }
 0x1cf   : > { %3936 = vmatmul.mubr.msk.f32.gmra.mrb[42].mxu1 %vm220_vm0, %v366_v45 }
 0x1d0   : > { %669 = vmatprep.mubr.f32.mxu1 %v4332_v0 }
 0x1d2   : > { %v367_v46 = vpop.trf.xlu1 }
 0x1d3   : > { %3937 = vmatmul.mubr.msk.f32.gmra.mrb[44].mxu1 %vm220_vm0, %v367_v46 }
 0x1d4   : > { %675 = vmatprep.mubr.f32.mxu1 %v4332_v0 }
 0x1d6   : > { %v368_v47 = vpop.trf.xlu1 }
 0x1d7   : > { %3938 = vmatmul.mubr.msk.f32.gmra.mrb[46].mxu1 %vm220_vm0, %v368_v47 }
 0x1d8   : > { %681 = vmatprep.mubr.f32.mxu1 %v4332_v0 }
 0x1da   : > { %v369_v48 = vpop.trf.xlu1 }
 0x1db   : > { %3939 = vmatmul.mubr.msk.f32.gmra.mrb[48].mxu1 %vm220_vm0, %v369_v48 }
 0x1dc   : > { %687 = vmatprep.mubr.f32.mxu1 %v4332_v0 }
 0x1de   : > { %v370_v49 = vpop.trf.xlu1 }
 0x1df   : > { %3940 = vmatmul.mubr.msk.f32.gmra.mrb[50].mxu1 %vm220_vm0, %v370_v49 }
 0x1e0   : > { %693 = vmatprep.mubr.f32.mxu1 %v4332_v0 }
 0x1e2   : > { %v371_v50 = vpop.trf.xlu1 }
 0x1e3   : > { %3941 = vmatmul.mubr.msk.f32.gmra.mrb[52].mxu1 %vm220_vm0, %v371_v50 }
 0x1e4   : > { %699 = vmatprep.mubr.f32.mxu1 %v4332_v0 }
 0x1e6   : > { %v372_v51 = vpop.trf.xlu1 }
 0x1e7   : > { %3942 = vmatmul.mubr.msk.f32.gmra.mrb[54].mxu1 %vm220_vm0, %v372_v51 }
 0x1e8   : > { %705 = vmatprep.mubr.f32.mxu1 %v4332_v0 }
 0x1ea   : > { %v373_v52 = vpop.trf.xlu1 }
 0x1eb   : > { %3943 = vmatmul.mubr.msk.f32.gmra.mrb[56].mxu1 %vm220_vm0, %v373_v52 }
 0x1ec   : > { %711 = vmatprep.mubr.f32.mxu1 %v4332_v0 }
 0x1ee   : > { %v374_v53 = vpop.trf.xlu1 }
 0x1ef   : > { %3944 = vmatmul.mubr.msk.f32.gmra.mrb[58].mxu1 %vm220_vm0, %v374_v53 }
 0x1f0   : > { %717 = vmatprep.mubr.f32.mxu1 %v4332_v0 }
 0x1f2   : > { %v375_v54 = vpop.trf.xlu1 }
 0x1f3   : > { %3945 = vmatmul.mubr.msk.f32.gmra.mrb[60].mxu1 %vm220_vm0, %v375_v54 }
 0x1f4   : > { %723 = vmatprep.mubr.f32.mxu1 %v4332_v0 }
 0x1f6   : > { %v376_v55 = vpop.trf.xlu1 }
 0x1f7   : > { %3946 = vmatmul.mubr.msk.f32.gmra.mrb[62].mxu1 %vm220_vm0, %v376_v55 }
 0x24e   : > { %v4520_v56 = vpop.f32.mrb[0].mxu1 }
 0x24f   : > { %v4522_v57 = vpop.f32.mrb[1].mxu1 }
 0x252   : > { %v4524_v58 = vpop.f32.mrb[2].mxu1 }
 0x253   : > { %v4526_v59 = vpop.f32.mrb[3].mxu1 }
 0x256   : > { %v4528_v60 = vpop.f32.mrb[4].mxu1 }
 0x257   : > { %v730_v61 = vmax.f32 %v4520_v56, %v4528_v60  ;;  %v4532_v62 = vpop.f32.mrb[5].mxu1 }
 0x258   : > { %v767_v63 = vmax.f32 %v4522_v57, %v4532_v62 }
 0x25a   : > { %v4536_v0 = vpop.f32.mrb[6].mxu1 }
 0x25b   : > { %v731_v1 = vmax.f32 %v4524_v58, %v4536_v0  ;;  %v4540_v3 = vpop.f32.mrb[7].mxu1 }
 0x25c   : > { %v768_v4 = vmax.f32 %v4526_v59, %v4540_v3 }
 0x25e   : > { %v4544_v5 = vpop.f32.mrb[8].mxu1 }
 0x25f   : > { %v732_v6 = vmax.f32 %v730_v61, %v4544_v5  ;;  %v4547_v7 = vpop.f32.mrb[9].mxu1 }
 0x260   : > { %v769_v8 = vmax.f32 %v767_v63, %v4547_v7 }
 0x262   : > { %v4550_v9 = vpop.f32.mrb[10].mxu1 }
 0x263   : > { %v733_v10 = vmax.f32 %v731_v1, %v4550_v9  ;;  %v4553_v11 = vpop.f32.mrb[11].mxu1 }
 0x264   : > { %v770_v12 = vmax.f32 %v768_v4, %v4553_v11 }
 0x266   : > { %v4556_v13 = vpop.f32.mrb[12].mxu1 }
 0x267   : > { %v734_v14 = vmax.f32 %v732_v6, %v4556_v13  ;;  %v4559_v15 = vpop.f32.mrb[13].mxu1 }
 0x268   : > { %v771_v16 = vmax.f32 %v769_v8, %v4559_v15 }
 0x26a   : > { %v4562_v17 = vpop.f32.mrb[14].mxu1 }
 0x26b   : > { %v735_v18 = vmax.f32 %v733_v10, %v4562_v17  ;;  %v4565_v21 = vpop.f32.mrb[15].mxu1 }
 0x26c   : > { %v772_v22 = vmax.f32 %v770_v12, %v4565_v21 }
 0x26e   : > { %v4568_v23 = vpop.f32.mrb[16].mxu1 }
 0x26f   : > { %v736_v24 = vmax.f32 %v734_v14, %v4568_v23  ;;  %v4571_v25 = vpop.f32.mrb[17].mxu1 }
 0x270   : > { %v773_v26 = vmax.f32 %v771_v16, %v4571_v25 }
 0x272   : > { %v4574_v27 = vpop.f32.mrb[18].mxu1 }
 0x273   : > { %v737_v28 = vmax.f32 %v735_v18, %v4574_v27  ;;  %v4577_v29 = vpop.f32.mrb[19].mxu1 }
 0x274   : > { %v774_v30 = vmax.f32 %v772_v22, %v4577_v29 }
 0x276   : > { %v4580_v31 = vpop.f32.mrb[20].mxu1 }
 0x277   : > { %v738_v32 = vmax.f32 %v736_v24, %v4580_v31  ;;  %v4583_v33 = vpop.f32.mrb[21].mxu1 }
 0x278   : > { %v775_v34 = vmax.f32 %v773_v26, %v4583_v33 }
 0x27a   : > { %v4586_v35 = vpop.f32.mrb[22].mxu1 }
 0x27b   : > { %v739_v36 = vmax.f32 %v737_v28, %v4586_v35  ;;  %v4589_v37 = vpop.f32.mrb[23].mxu1 }
 0x27c   : > { %11191 = vst [vmem:[#allocation8_spill] sm:$0xff] %v4589_v37  ;;  %v776_v38 = vmax.f32 %v774_v30, %v4589_v37 }
 0x27e   : > { %v4592_v39 = vpop.f32.mrb[24].mxu1 }
 0x27f   : > { %v740_v40 = vmax.f32 %v738_v32, %v4592_v39  ;;  %v4595_v41 = vpop.f32.mrb[25].mxu1 }
 0x280   : > { %11192 = vst [vmem:[#allocation9_spill] sm:$0xff] %v4595_v41  ;;  %v777_v42 = vmax.f32 %v775_v34, %v4595_v41 }
 0x282   : > { %v4598_v43 = vpop.f32.mrb[26].mxu1 }
 0x283   : > { %v741_v44 = vmax.f32 %v739_v36, %v4598_v43  ;;  %v4601_v45 = vpop.f32.mrb[27].mxu1 }
 0x284   : > { %11193 = vst [vmem:[#allocation10_spill] sm:$0xff] %v4601_v45  ;;  %v778_v46 = vmax.f32 %v776_v38, %v4601_v45 }
 0x286   : > { %v4604_v47 = vpop.f32.mrb[28].mxu1 }
 0x287   : > { %v742_v48 = vmax.f32 %v740_v40, %v4604_v47  ;;  %v4607_v49 = vpop.f32.mrb[29].mxu1 }
 0x288   : > { %11194 = vst [vmem:[#allocation11_spill] sm:$0xff] %v4607_v49  ;;  %v779_v50 = vmax.f32 %v777_v42, %v4607_v49 }
 0x28a   : > { %v4610_v51 = vpop.f32.mrb[30].mxu1 }
 0x28b   : > { %v743_v52 = vmax.f32 %v741_v44, %v4610_v51  ;;  %v4613_v53 = vpop.f32.mrb[31].mxu1 }
 0x28c   : > { %11195 = vst [vmem:[#allocation12_spill] sm:$0xff] %v4613_v53  ;;  %v780_v54 = vmax.f32 %v778_v46, %v4613_v53 }
 0x28e   : > { %v4616_v55 = vpop.f32.mrb[32].mxu1 }
 0x28f   : > { %v744_v61 = vmax.f32 %v742_v48, %v4616_v55  ;;  %v4619_v63 = vpop.f32.mrb[33].mxu1 }
 0x290   : > { %11196 = vst [vmem:[#allocation13_spill] sm:$0xff] %v4619_v63  ;;  %v781_v1 = vmax.f32 %v779_v50, %v4619_v63 }
 0x292   : > { %v4622_v4 = vpop.f32.mrb[34].mxu1 }
 0x293   : > { %v745_v6 = vmax.f32 %v743_v52, %v4622_v4  ;;  %v4625_v8 = vpop.f32.mrb[35].mxu1 }
 0x294   : > { %11197 = vst [vmem:[#allocation14_spill] sm:$0xff] %v4625_v8  ;;  %v782_v10 = vmax.f32 %v780_v54, %v4625_v8 }
 0x296   : > { %v4628_v12 = vpop.f32.mrb[36].mxu1 }
 0x297   : > { %v746_v14 = vmax.f32 %v744_v61, %v4628_v12  ;;  %v4631_v16 = vpop.f32.mrb[37].mxu1 }
 0x298   : > { %11198 = vst [vmem:[#allocation15_spill] sm:$0xff] %v4631_v16  ;;  %v783_v18 = vmax.f32 %v781_v1, %v4631_v16 }
 0x29a   : > { %v4634_v22 = vpop.f32.mrb[38].mxu1 }
 0x29b   : > { %v747_v24 = vmax.f32 %v745_v6, %v4634_v22  ;;  %v4637_v26 = vpop.f32.mrb[39].mxu1 }
 0x29c   : > { %11199 = vst [vmem:[#allocation16_spill] sm:$0xff] %v4637_v26  ;;  %v784_v28 = vmax.f32 %v782_v10, %v4637_v26 }
 0x29e   : > { %v4640_v30 = vpop.f32.mrb[40].mxu1 }
 0x29f   : > { %v748_v32 = vmax.f32 %v746_v14, %v4640_v30  ;;  %v4643_v34 = vpop.f32.mrb[41].mxu1 }
 0x2a0   : > { %11200 = vst [vmem:[#allocation17_spill] sm:$0xff] %v4643_v34  ;;  %v785_v36 = vmax.f32 %v783_v18, %v4643_v34 }
 0x2a2   : > { %v4646_v38 = vpop.f32.mrb[42].mxu1 }
 0x2a3   : > { %v749_v40 = vmax.f32 %v747_v24, %v4646_v38  ;;  %v4649_v42 = vpop.f32.mrb[43].mxu1 }
 0x2a4   : > { %11201 = vst [vmem:[#allocation18_spill] sm:$0xff] %v4649_v42  ;;  %v786_v44 = vmax.f32 %v784_v28, %v4649_v42 }
 0x2a6   : > { %v4652_v46 = vpop.f32.mrb[44].mxu1 }
 0x2a7   : > { %v750_v48 = vmax.f32 %v748_v32, %v4652_v46  ;;  %v4655_v50 = vpop.f32.mrb[45].mxu1 }
 0x2a8   : > { %11202 = vst [vmem:[#allocation19_spill] sm:$0xff] %v4655_v50  ;;  %v787_v52 = vmax.f32 %v785_v36, %v4655_v50 }
 0x2aa   : > { %v4658_v54 = vpop.f32.mrb[46].mxu1 }
 0x2ab   : > { %v751_v61 = vmax.f32 %v749_v40, %v4658_v54  ;;  %v4661_v1 = vpop.f32.mrb[47].mxu1 }
 0x2ac   : > { %11203 = vst [vmem:[#allocation20_spill] sm:$0xff] %v4661_v1  ;;  %v788_v6 = vmax.f32 %v786_v44, %v4661_v1 }
 0x2ae   : > { %v4664_v10 = vpop.f32.mrb[48].mxu1 }
 0x2af   : > { %v752_v14 = vmax.f32 %v750_v48, %v4664_v10  ;;  %v4667_v18 = vpop.f32.mrb[49].mxu1 }
 0x2b0   : > { %11204 = vst [vmem:[#allocation21_spill] sm:$0xff] %v4667_v18  ;;  %v789_v24 = vmax.f32 %v787_v52, %v4667_v18 }
 0x2b2   : > { %v4670_v28 = vpop.f32.mrb[50].mxu1 }
 0x2b3   : > { %v753_v32 = vmax.f32 %v751_v61, %v4670_v28  ;;  %v4673_v36 = vpop.f32.mrb[51].mxu1 }
 0x2b4   : > { %11205 = vst [vmem:[#allocation22_spill] sm:$0xff] %v4673_v36  ;;  %v790_v40 = vmax.f32 %v788_v6, %v4673_v36 }
 0x2b6   : > { %v4676_v2 = vpop.f32.mrb[52].mxu1 }
 0x2b7   : > { %v754_v44 = vmax.f32 %v752_v14, %v4676_v2  ;;  %v4679_v19 = vpop.f32.mrb[53].mxu1 }
 0x2b8   : > { %11206 = vst [vmem:[#allocation23_spill] sm:$0xff] %v4679_v19  ;;  %v791_v48 = vmax.f32 %v789_v24, %v4679_v19 }
 0x2ba   : > { %v4682_v20 = vpop.f32.mrb[54].mxu1 }
 0x2bb   : > { %v755_v52 = vmax.f32 %v753_v32, %v4682_v20  ;;  %v4685_v18 = vpop.f32.mrb[55].mxu1 }
 0x2bc   : > { %11207 = vst [vmem:[#allocation24_spill] sm:$0xff] %v4685_v18  ;;  %v792_v61 = vmax.f32 %v790_v40, %v4685_v18 }
 0x2be   : > { %v4688_v1 = vpop.f32.mrb[56].mxu1 }
 0x2bf   : > { %v756_v6 = vmax.f32 %v754_v44, %v4688_v1  ;;  %v4691_v36 = vpop.f32.mrb[57].mxu1 }
 0x2c0   : > { %11208 = vst [vmem:[#allocation25_spill] sm:$0xff] %v4691_v36  ;;  %v793_v14 = vmax.f32 %v791_v48, %v4691_v36 }
 0x2c2   : > { %v4694_v50 = vpop.f32.mrb[58].mxu1 }
 0x2c3   : > { %v757_v24 = vmax.f32 %v755_v52, %v4694_v50  ;;  %v4697_v19 = vpop.f32.mrb[59].mxu1 }
 0x2c4   : > { %11209 = vst [vmem:[#allocation26_spill] sm:$0xff] %v4697_v19  ;;  %v794_v32 = vmax.f32 %v792_v61, %v4697_v19 }
 0x2c6   : > { %v4700_v42 = vpop.f32.mrb[60].mxu1 }
 0x2c7   : > { %v758_v40 = vmax.f32 %v756_v6, %v4700_v42  ;;  %v4703_v18 = vpop.f32.mrb[61].mxu1 }
 0x2c8   : > { %11210 = vst [vmem:[#allocation27_spill] sm:$0xff] %v4703_v18  ;;  %v795_v44 = vmax.f32 %v793_v14, %v4703_v18 }
 0x2ca   : > { %v4706_v34 = vpop.f32.mrb[62].mxu1 }
 0x2cb   : > { %v759_v48 = vmax.f32 %v757_v24, %v4706_v34  ;;  %v4709_v36 = vpop.f32.mrb[63].mxu1 }
 0x2cc   : > { %11211 = vst [vmem:[#allocation28_spill] sm:$0xff] %v4709_v36  ;;  %v796_v52 = vmax.f32 %v794_v32, %v4709_v36 }
 0x2cd   : > { %v760_v26 = vmax.f32 %v758_v40, %v759_v48 }
 0x2ce   : > { %v797_v16 = vmax.f32 %v795_v44, %v796_v52 }
 0x2cf   : > { %v761_v8 = vrot.slane %v760_v26, 4 }
 0x2d0   : > { %v798_v61 = vrot.slane %v797_v16, 4 }
 0x2d1   : > { %v762_v19 = vmax.f32 %v760_v26, %v761_v8 }
 0x2d2   : > { %v799_v63 = vmax.f32 %v797_v16, %v798_v61 }
 0x2d3   : > { %v763_v53 = vrot.slane %v762_v19, 2 }
 0x2d4   : > { %v800_v6 = vrot.slane %v799_v63, 2 }
 0x2d5   : > { %v764_v49 = vmax.f32 %v762_v19, %v763_v53 }
 0x2d6   : > { %v801_v45 = vmax.f32 %v799_v63, %v800_v6 }
 0x2d7   : > { %v765_v41 = vrot.slane %v764_v49, 1 }
 0x2d8   : > { %v802_v14 = vrot.slane %v801_v45, 1 }
 0x2d9   : > { %v4712_v18 = vmax.f32 %v764_v49, %v765_v41 }
 0x2da   : > { %v4714_v37 = vmax.f32 %v801_v45, %v802_v14 }
 0x2db   : > { %v804_v24 = vsub.f32 %v4520_v56, %v4712_v18  ;;  %v806_v32 = vsub.f32 %v4524_v58, %v4712_v18  ;;  %v808_v8 = vsub.f32 %v4528_v60, %v4712_v18  ;;  %v810_v16 = vsub.f32 %v4536_v0, %v4712_v18 }
 0x2dc   : > { %v812_v19 = vsub.f32 %v4544_v5, %v4712_v18  ;;  %v814_v41 = vsub.f32 %v4550_v9, %v4712_v18  ;;  %v816_v45 = vsub.f32 %v4556_v13, %v4712_v18  ;;  %v818_v56 = vsub.f32 %v4562_v17, %v4712_v18  ;;  %v11234_v13 = vld [vmem:[#allocation24_spill] sm:$0xff] }
 0x2dd   : > { %v820_v58 = vsub.f32 %v4568_v23, %v4712_v18  ;;  %v822_v60 = vsub.f32 %v4574_v27, %v4712_v18  ;;  %v824_v0 = vsub.f32 %v4580_v31, %v4712_v18  ;;  %v826_v5 = vsub.f32 %v4586_v35, %v4712_v18  ;;  %v11227_v31 = vld [vmem:[#allocation19_spill] sm:$0xff]  ;;  %v11230_v23 = vld [vmem:[#allocation21_spill] sm:$0xff] }
 0x2de   : > { %v868_v26 = vmul.f32 1.442695, %v804_v24  ;;  %v872_v52 = vmul.f32 1.442695, %v806_v32  ;;  %v876_v63 = vmul.f32 1.442695, %v808_v8  ;;  %v11239_v35 = vsub.f32 %v4604_v47, %v4712_v18 }
 0x2df   : > { %v880_v14 = vmul.f32 1.442695, %v810_v16  ;;  %v884_v40 = vmul.f32 1.442695, %v812_v19  ;;  %v888_v53 = vmul.f32 1.442695, %v814_v41  ;;  %v11242_v47 = vsub.f32 %v4622_v4, %v4712_v18 }
 0x2e0   : > { %4066 = vpow2.f32 %v868_v26  ;;  %v892_v44 = vmul.f32 1.442695, %v816_v45  ;;  %v896_v49 = vmul.f32 1.442695, %v818_v56  ;;  %v900_v19 = vmul.f32 1.442695, %v820_v58 }
 0x2e1   : > { %4068 = vpow2.f32 %v872_v52  ;;  %v11214_v58 = vld [vmem:[#allocation8_spill] sm:$0xff]  ;;  %v11215_v45 = vld [vmem:[#allocation9_spill] sm:$0xff]  ;;  %v11216_v56 = vld [vmem:[#allocation10_spill] sm:$0xff]  ;;  %v908_v24 = vmul.f32 1.442695, %v824_v0 }
 0x2e2   : > { %4070 = vpow2.f32 %v876_v63  ;;  %v11218_v26 = vld [vmem:[#allocation11_spill] sm:$0xff]  ;;  %v11221_v41 = vld [vmem:[#allocation14_spill] sm:$0xff]  ;;  %v11225_v32 = vld [vmem:[#allocation17_spill] sm:$0xff]  ;;  %v924_v8 = vmul.f32 1.442695, %v11239_v35 }
 0x2e3   : > { %4072 = vpow2.f32 %v880_v14  ;;  %v904_v14 = vmul.f32 1.442695, %v822_v60  ;;  %v11220_v60 = vld [vmem:[#allocation13_spill] sm:$0xff]  ;;  %v11222_v16 = vld [vmem:[#allocation15_spill] sm:$0xff]  ;;  %v11226_v52 = vld [vmem:[#allocation18_spill] sm:$0xff] }
 0x2e4   : > { %4074 = vpow2.f32 %v884_v40  ;;  %v11219_v40 = vld [vmem:[#allocation12_spill] sm:$0xff]  ;;  %v11231_v0 = vld [vmem:[#allocation22_spill] sm:$0xff]  ;;  %v936_v35 = vmul.f32 1.442695, %v11242_v47 }
 0x2e5   : > { %4076 = vpow2.f32 %v888_v53 }
 0x2e6   : > { %4078 = vpow2.f32 %v892_v44 }
 0x2e7   : > { %4080 = vpow2.f32 %v896_v49  ;;  %v11224_v49 = vld [vmem:[#allocation16_spill] sm:$0xff] }
 0x2e8   : > { %4082 = vpow2.f32 %v900_v19 }
 0x2e9   : > { %4084 = vpow2.f32 %v904_v14  ;;  %v11235_v14 = vld [vmem:[#allocation25_spill] sm:$0xff] }
 0x2ea   : > { %v4792_v63 = vpop.eup %4066  ;;  %4086 = vpow2.f32 %v908_v24 }
 0x2eb   : > { %11212 = vst [vmem:[#allocation29_spill] sm:$0xff] %v4792_v63  ;;  %v4800_v53 = vpop.eup %4068 }
 0x2ec   : > { %11213 = vst [vmem:[#allocation30_spill] sm:$0xff] %v4800_v53  ;;  %v996_v48 = vadd.f32 %v4800_v53, %v4792_v63  ;;  %v4814_v44 = vpop.eup %4070  ;;  %v11238_v63 = vsub.f32 %v4598_v43, %v4712_v18  ;;  %v11241_v43 = vsub.f32 %v4616_v55, %v4712_v18  ;;  %v11244_v55 = vsub.f32 %v4526_v59, %v4714_v37 }
 0x2ed   : > { %11217 = vst [vmem:[#allocation8_spill] sm:$0xff] %v4814_v44  ;;  %v4827_v27 = vpop.eup %4072 }
 0x2ee   : > { %v997_v6 = vadd.f32 %v4814_v44, %v996_v48  ;;  %11223 = vst [vmem:[#allocation9_spill] sm:$0xff] %v4827_v27  ;;  %v912_v48 = vmul.f32 1.442695, %v826_v5  ;;  %v4843_v9 = vpop.eup %4074  ;;  %v11236_v44 = vld [vmem:[#allocation26_spill] sm:$0xff]  ;;  %v11237_v5 = vld [vmem:[#allocation27_spill] sm:$0xff] }
 0x2ef   : > { %11229 = vst [vmem:[#allocation10_spill] sm:$0xff] %v4843_v9  ;;  %v4859_v19 = vpop.eup %4076  ;;  %v920_v53 = vmul.f32 1.442695, %v11238_v63  ;;  %v932_v63 = vmul.f32 1.442695, %v11241_v43 }
 0x2f0   : > { %v998_v61 = vadd.f32 %v4827_v27, %v997_v6  ;;  %v11233_v6 = vsub.f32 %v4592_v39, %v4712_v18  ;;  %4088 = vpow2.f32 %v912_v48 }
 0x2f2   : > { %v916_v27 = vmul.f32 1.442695, %v11233_v6  ;;  %v999_v17 = vadd.f32 %v4843_v9, %v998_v61  ;;  %v4868_v6 = vpop.eup %4078 }
 0x2f3   : > { %v4874_v9 = vpop.eup %4080 }
 0x2f4   : > { %v1000_v61 = vadd.f32 %v4859_v19, %v999_v17  ;;  %4090 = vpow2.f32 %v916_v27  ;;  %v4880_v36 = vpop.eup %4082  ;;  %v11240_v17 = vsub.f32 %v4610_v51, %v4712_v18 }
 0x2f5   : > { %4092 = vpow2.f32 %v920_v53  ;;  %v4889_v27 = vpop.eup %4084  ;;  %v11243_v53 = vsub.f32 %v4522_v57, %v4714_v37  ;;  %v11246_v57 = vsub.f32 %v4532_v62, %v4714_v37 }
 0x2f6   : > { %v1001_v24 = vadd.f32 %v4868_v6, %v1000_v61  ;;  %v928_v48 = vmul.f32 1.442695, %v11240_v17  ;;  %4094 = vpow2.f32 %v924_v8  ;;  %v4898_v17 = vpop.eup %4086  ;;  %v11245_v8 = vsub.f32 %v4628_v12, %v4712_v18 }
 0x2f7   : > { %v870_v51 = vmul.f32 1.442695, %v11243_v53  ;;  %v11248_v12 = vsub.f32 %v4540_v3, %v4714_v37 }
 0x2f8   : > { %v1002_v39 = vadd.f32 %v4874_v9, %v1001_v24  ;;  %4096 = vpow2.f32 %v928_v48  ;;  %v940_v43 = vmul.f32 1.442695, %v11245_v8  ;;  %v11247_v48 = vsub.f32 %v4634_v22, %v4712_v18 }
 0x2f9   : > { %4098 = vpow2.f32 %v932_v63  ;;  %v11250_v22 = vsub.f32 %v4547_v7, %v4714_v37 }
 0x2fa   : > { %v1003_v61 = vadd.f32 %v4880_v36, %v1002_v39  ;;  %v874_v39 = vmul.f32 1.442695, %v11244_v55  ;;  %v4907_v47 = vpop.eup %4088  ;;  %4100 = vpow2.f32 %v936_v35  ;;  %v944_v53 = vmul.f32 1.442695, %v11247_v48 }
 0x2fb   : > { %4102 = vpow2.f32 %v870_v51  ;;  %v11249_v35 = vsub.f32 %v4640_v30, %v4712_v18  ;;  %v886_v51 = vmul.f32 1.442695, %v11250_v22  ;;  %v11252_v30 = vsub.f32 %v4553_v11, %v4714_v37 }
 0x2fc   : > { %v1004_v24 = vadd.f32 %v4889_v27, %v1003_v61  ;;  %v878_v61 = vmul.f32 1.442695, %v11246_v57  ;;  %4104 = vpow2.f32 %v874_v39  ;;  %v11251_v39 = vsub.f32 %v4646_v38, %v4712_v18 }
 0x2fd   : > { %4106 = vpow2.f32 %v940_v43  ;;  %v948_v62 = vmul.f32 1.442695, %v11249_v35  ;;  %v890_v57 = vmul.f32 1.442695, %v11252_v30  ;;  %v11254_v38 = vsub.f32 %v4559_v15, %v4714_v37 }
 0x2fe   : > { %v1005_v4 = vadd.f32 %v4898_v17, %v1004_v24  ;;  %v4916_v63 = vpop.eup %4090  ;;  %v882_v24 = vmul.f32 1.442695, %v11248_v12  ;;  %4108 = vpow2.f32 %v878_v61  ;;  %v952_v3 = vmul.f32 1.442695, %v11251_v39 }
 0x2ff   : > { %v4925_v8 = vpop.eup %4092  ;;  %4110 = vpow2.f32 %v944_v53  ;;  %v11253_v61 = vsub.f32 %v4652_v46, %v4712_v18  ;;  %v11255_v11 = vsub.f32 %v4658_v54, %v4712_v18  ;;  %v11257_v15 = vsub.f32 %v4664_v10, %v4712_v18 }
 0x300   : > { %v1006_v59 = vadd.f32 %v4907_v47, %v1005_v4  ;;  %v4934_v4 = vpop.eup %4094  ;;  %4112 = vpow2.f32 %v882_v24 }
 0x301   : > { %4114 = vpow2.f32 %v948_v62  ;;  %v956_v7 = vmul.f32 1.442695, %v11253_v61  ;;  %v960_v24 = vmul.f32 1.442695, %v11255_v11  ;;  %v11256_v62 = vsub.f32 %v4565_v21, %v4714_v37 }
 0x302   : > { %v1007_v55 = vadd.f32 %v4916_v63, %v1006_v59  ;;  %v4943_v53 = vpop.eup %4096  ;;  %4116 = vpow2.f32 %v886_v51  ;;  %v894_v59 = vmul.f32 1.442695, %v11254_v38  ;;  %v964_v51 = vmul.f32 1.442695, %v11257_v15 }
 0x303   : > { %v4948_v12 = vpop.eup %4098  ;;  %4118 = vpow2.f32 %v952_v3  ;;  %v11258_v3 = vsub.f32 %v4571_v25, %v4714_v37  ;;  %v11259_v21 = vsub.f32 %v4670_v28, %v4712_v18  ;;  %v11264_v15 = vsub.f32 %v4682_v20, %v4712_v18 }
 0x304   : > { %v1008_v43 = vadd.f32 %v4925_v8, %v1007_v55  ;;  %v4954_v46 = vpop.eup %4100  ;;  %4120 = vpow2.f32 %v890_v57  ;;  %v898_v55 = vmul.f32 1.442695, %v11256_v62  ;;  %v11263_v62 = vsub.f32 %v4583_v33, %v4714_v37 }
 0x305   : > { %v4959_v22 = vpop.eup %4102  ;;  %4122 = vpow2.f32 %v956_v7  ;;  %v968_v57 = vmul.f32 1.442695, %v11259_v21 }
 0x306   : > { %v1009_v48 = vadd.f32 %v4934_v4, %v1008_v43  ;;  %v4965_v54 = vpop.eup %4104  ;;  %4124 = vpow2.f32 %v894_v59  ;;  %v902_v43 = vmul.f32 1.442695, %v11258_v3  ;;  %v11262_v59 = vsub.f32 %v4676_v2, %v4712_v18 }
 0x307   : > { %v4970_v30 = vpop.eup %4106  ;;  %4126 = vpow2.f32 %v960_v24  ;;  %v1033_v10 = vadd.f32 %v4965_v54, %v4959_v22 }
 0x308   : > { %v1010_v35 = vadd.f32 %v4943_v53, %v1009_v48  ;;  %v4978_v7 = vpop.eup %4108  ;;  %4128 = vpow2.f32 %v898_v55  ;;  %v11261_v48 = vsub.f32 %v4577_v29, %v4714_v37  ;;  %v972_v28 = vmul.f32 1.442695, %v11262_v59 }
 0x309   : > { %11260 = vst [vmem:[#allocation11_spill] sm:$0xff] %v4978_v7  ;;  %v4983_v38 = vpop.eup %4110  ;;  %4130 = vpow2.f32 %v964_v51  ;;  %v1034_v24 = vadd.f32 %v4978_v7, %v1033_v10  ;;  %v910_v55 = vmul.f32 1.442695, %v11263_v62  ;;  %v976_v51 = vmul.f32 1.442695, %v11264_v15 }
 0x30a   : > { %v1011_v39 = vadd.f32 %v4948_v12, %v1010_v35  ;;  %v906_v25 = vmul.f32 1.442695, %v11261_v48  ;;  %v4990_v35 = vpop.eup %4112  ;;  %4132 = vpow2.f32 %v902_v43  ;;  %v11266_v43 = vsub.f32 %v11214_v58, %v4714_v37 }
 0x30b   : > { %v4995_v29 = vpop.eup %4114  ;;  %4134 = vpow2.f32 %v968_v57  ;;  %v11267_v57 = vsub.f32 %v4688_v1, %v4712_v18 }
 0x30c   : > { %v1012_v61 = vadd.f32 %v4954_v46, %v1011_v39  ;;  %v1035_v39 = vadd.f32 %v4990_v35, %v1034_v24  ;;  %v5002_v3 = vpop.eup %4116  ;;  %4136 = vpow2.f32 %v906_v25  ;;  %v914_v21 = vmul.f32 1.442695, %v11266_v43 }
 0x30d   : > { %11265 = vst [vmem:[#allocation12_spill] sm:$0xff] %v5002_v3  ;;  %v5007_v33 = vpop.eup %4118  ;;  %4138 = vpow2.f32 %v972_v28  ;;  %v11268_v25 = vsub.f32 %v11215_v45, %v4714_v37  ;;  %v11269_v28 = vsub.f32 %v4694_v50, %v4712_v18 }
 0x30e   : > { %v1013_v11 = vadd.f32 %v4970_v30, %v1012_v61  ;;  %v980_v61 = vmul.f32 1.442695, %v11267_v57  ;;  %v1036_v10 = vadd.f32 %v5002_v3, %v1035_v39  ;;  %v5014_v48 = vpop.eup %4120  ;;  %4140 = vpow2.f32 %v910_v55 }
 0x30f   : > { %v918_v59 = vmul.f32 1.442695, %v11268_v25  ;;  %v5019_v58 = vpop.eup %4122  ;;  %4142 = vpow2.f32 %v976_v51  ;;  %v11271_v55 = vsub.f32 %v11216_v56, %v4714_v37  ;;  %v11272_v51 = vsub.f32 %v4700_v42, %v4712_v18 }
 0x310   : > { %v1014_v2 = vadd.f32 %v4983_v38, %v1013_v11  ;;  %v984_v11 = vmul.f32 1.442695, %v11269_v28  ;;  %v1037_v24 = vadd.f32 %v5014_v48, %v1036_v10  ;;  %v5026_v62 = vpop.eup %4124  ;;  %4144 = vpow2.f32 %v914_v21 }
 0x311   : > { %11270 = vst [vmem:[#allocation13_spill] sm:$0xff] %v5026_v62  ;;  %v922_v15 = vmul.f32 1.442695, %v11271_v55  ;;  %v5031_v45 = vpop.eup %4126  ;;  %4146 = vpow2.f32 %v980_v61  ;;  %v11273_v21 = vsub.f32 %v11218_v26, %v4714_v37  ;;  %v11274_v61 = vsub.f32 %v4706_v34, %v4712_v18 }
 0x312   : > { %v1015_v20 = vadd.f32 %v4995_v29, %v1014_v2  ;;  %v988_v2 = vmul.f32 1.442695, %v11272_v51  ;;  %v1038_v39 = vadd.f32 %v5026_v62, %v1037_v24  ;;  %v5038_v43 = vpop.eup %4128  ;;  %4148 = vpow2.f32 %v918_v59 }
 0x313   : > { %v926_v57 = vmul.f32 1.442695, %v11273_v21  ;;  %v5043_v56 = vpop.eup %4130  ;;  %4150 = vpow2.f32 %v984_v11  ;;  %v11276_v59 = vsub.f32 %v11219_v40, %v4714_v37  ;;  %v11277_v18 = vsub.f32 %v11220_v60, %v4714_v37 }
 0x314   : > { %v1016_v1 = vadd.f32 %v5007_v33, %v1015_v20  ;;  %v992_v20 = vmul.f32 1.442695, %v11274_v61  ;;  %v1039_v10 = vadd.f32 %v5038_v43, %v1038_v39  ;;  %v5050_v25 = vpop.eup %4132  ;;  %4152 = vpow2.f32 %v922_v15 }
 0x315   : > { %11275 = vst [vmem:[#allocation14_spill] sm:$0xff] %v5050_v25  ;;  %v930_v28 = vmul.f32 1.442695, %v11276_v59  ;;  %v5055_v26 = vpop.eup %4134  ;;  %4154 = vpow2.f32 %v988_v2  ;;  %v934_v24 = vmul.f32 1.442695, %v11277_v18  ;;  %v11279_v2 = vsub.f32 %v11221_v41, %v4714_v37 }
 0x316   : > { %v1017_v50 = vadd.f32 %v5019_v58, %v1016_v1  ;;  %v1040_v1 = vadd.f32 %v5050_v25, %v1039_v10  ;;  %v5059_v34 = vpop.eup %4136  ;;  %4156 = vpow2.f32 %v926_v57  ;;  %v11280_v61 = vsub.f32 %v11222_v16, %v4714_v37 }
 0x317   : > { %v5064_v55 = vpop.eup %4138  ;;  %4158 = vpow2.f32 %v992_v20 }
 0x318   : > { %v1018_v42 = vadd.f32 %v5031_v45, %v1017_v50  ;;  %v1041_v15 = vadd.f32 %v5059_v34, %v1040_v1  ;;  %v5068_v51 = vpop.eup %4140  ;;  %4160 = vpow2.f32 %v930_v28  ;;  %v938_v50 = vmul.f32 1.442695, %v11279_v2 }
 0x319   : > { %11278 = vst [vmem:[#allocation15_spill] sm:$0xff] %v5068_v51  ;;  %v5073_v39 = vpop.eup %4142  ;;  %4162 = vpow2.f32 %v934_v24  ;;  %v942_v20 = vmul.f32 1.442695, %v11280_v61  ;;  %v11282_v28 = vsub.f32 %v11224_v49, %v4714_v37 }
 0x31a   : > { %v1019_v11 = vadd.f32 %v5043_v56, %v1018_v42  ;;  %v1042_v60 = vadd.f32 %v5068_v51, %v1041_v15  ;;  %v5077_v57 = vpop.eup %4144  ;;  %4164 = vpow2.f32 %v938_v50 }
 0x31b   : > { %v5082_v42 = vpop.eup %4146  ;;  %4166 = vpow2.f32 %v942_v20 }
 0x31c   : > { %v1020_v40 = vadd.f32 %v5055_v26, %v1019_v11  ;;  %v1043_v41 = vadd.f32 %v5077_v57, %v1042_v60  ;;  %v5086_v59 = vpop.eup %4148  ;;  %v946_v11 = vmul.f32 1.442695, %v11282_v28  ;;  %v11285_v60 = vsub.f32 %v11226_v52, %v4714_v37  ;;  %v11288_v52 = vld [vmem:[#allocation20_spill] sm:$0xff] }
 0x31d   : > { %11281 = vst [vmem:[#allocation16_spill] sm:$0xff] %v5086_v59  ;;  %v5091_v1 = vpop.eup %4150  ;;  %v11286_v28 = vsub.f32 %v11227_v31, %v4714_v37  ;;  %v11290_v31 = vsub.f32 %v11230_v23, %v4714_v37 }
 0x31e   : > { %v1021_v21 = vadd.f32 %v5064_v55, %v1020_v40  ;;  %v1044_v16 = vadd.f32 %v5086_v59, %v1043_v41  ;;  %v5095_v24 = vpop.eup %4152  ;;  %v11283_v40 = vsub.f32 %v11225_v32, %v4714_v37  ;;  %4168 = vpow2.f32 %v946_v11 }
 0x31f   : > { %v5100_v2 = vpop.eup %4154  ;;  %v954_v61 = vmul.f32 1.442695, %v11285_v60  ;;  %v11289_v60 = vsub.f32 %v11288_v52, %v4714_v37 }
 0x320   : > { %v1022_v10 = vadd.f32 %v5073_v39, %v1021_v21  ;;  %v950_v15 = vmul.f32 1.442695, %v11283_v40  ;;  %v1045_v49 = vadd.f32 %v5095_v24, %v1044_v16  ;;  %v5104_v21 = vpop.eup %4156 }
 0x321   : > { %11284 = vst [vmem:[#allocation17_spill] sm:$0xff] %v5104_v21  ;;  %v962_v59 = vmul.f32 1.442695, %v11289_v60 }
 0x322   : > { %v1023_v18 = vadd.f32 %v5082_v42, %v1022_v10  ;;  %v4159_v10 = vpop.eup %4158  ;;  %v1046_v41 = vadd.f32 %v5104_v21, %v1045_v49  ;;  %4170 = vpow2.f32 %v950_v15  ;;  %v966_v15 = vmul.f32 1.442695, %v11290_v31 }
 0x323   : > { %v5111_v32 = vpop.eup %4160  ;;  %4172 = vpow2.f32 %v954_v61  ;;  %v11291_v61 = vsub.f32 %v11231_v0, %v4714_v37  ;;  %v11294_v0 = vsub.f32 %v11234_v13, %v4714_v37 }
 0x324   : > { %v1024_v50 = vadd.f32 %v5091_v1, %v1023_v18  ;;  %v958_v18 = vmul.f32 1.442695, %v11286_v28  ;;  %v1047_v40 = vadd.f32 %v5111_v32, %v1046_v41  ;;  %v5117_v11 = vpop.eup %4162 }
 0x325   : > { %11287 = vst [vmem:[#allocation18_spill] sm:$0xff] %v5117_v11  ;;  %v5123_v21 = vpop.eup %4164  ;;  %v970_v52 = vmul.f32 1.442695, %v11291_v61 }
 0x326   : > { %v1025_v20 = vadd.f32 %v5100_v2, %v1024_v50  ;;  %v1048_v49 = vadd.f32 %v5117_v11, %v1047_v40  ;;  %4174 = vpow2.f32 %v958_v18  ;;  %v5129_v28 = vpop.eup %4166  ;;  %v11292_v18 = vld [vmem:[#allocation23_spill] sm:$0xff] }
 0x327   : > { %4176 = vpow2.f32 %v962_v59  ;;  %v11293_v23 = vsub.f32 %v11292_v18, %v4714_v37  ;;  %v978_v59 = vmul.f32 1.442695, %v11294_v0  ;;  %v11296_v0 = vsub.f32 %v11236_v44, %v4714_v37 }
 0x328   : > { %v1026_v16 = vadd.f32 %v4159_v10, %v1025_v20  ;;  %v1049_v41 = vadd.f32 %v5123_v21, %v1048_v49  ;;  %v5135_v11 = vpop.eup %4168  ;;  %4178 = vpow2.f32 %v966_v15 }
 0x329   : > { %v974_v31 = vmul.f32 1.442695, %v11293_v23  ;;  %4180 = vpow2.f32 %v970_v52 }
 0x32a   : > { %v1027_v50 = vrot.slane %v1026_v16, 4  ;;  %v1050_v40 = vadd.f32 %v5129_v28, %v1049_v41 }
 0x32b   : > { %4182 = vpow2.f32 %v974_v31 }
 0x32c   : > { %v1028_v20 = vadd.f32 %v1027_v50, %v1026_v16  ;;  %v1051_v50 = vadd.f32 %v5135_v11, %v1050_v40  ;;  %v5141_v49 = vpop.eup %4170  ;;  %4184 = vpow2.f32 %v978_v59  ;;  %v11295_v40 = vsub.f32 %v11235_v14, %v4714_v37 }
 0x32d   : > { %v5147_v51 = vpop.eup %4172  ;;  %v986_v59 = vmul.f32 1.442695, %v11296_v0 }
 0x32e   : > { %v1029_v60 = vrot.slane %v1028_v20, 2  ;;  %v1052_v41 = vadd.f32 %v5141_v49, %v1051_v50  ;;  %v982_v50 = vmul.f32 1.442695, %v11295_v40  ;;  %v11298_v40 = vld [vmem:[#allocation28_spill] sm:$0xff] }
 0x32f   : > { %v11299_v44 = vsub.f32 %v11298_v40, %v4714_v37  ;;  %v11323_v40 = vld [vmem:[#allocation8_spill] sm:$0xff] }
 0x330   : > { %v1030_v16 = vadd.f32 %v1029_v60, %v1028_v20  ;;  %v1053_v18 = vadd.f32 %v5147_v51, %v1052_v41  ;;  %v5150_v23 = vpop.eup %4174 }
 0x331   : > { %v5153_v52 = vpop.eup %4176  ;;  %v994_v0 = vmul.f32 1.442695, %v11299_v44 }
 0x332   : > { %v1031_v61 = vrot.slane %v1030_v16, 1  ;;  %v1054_v20 = vadd.f32 %v5150_v23, %v1053_v18  ;;  %v5156_v60 = vpop.eup %4178 }
 0x334   : > { %v1032_v15 = vadd.f32 %v1031_v61, %v1030_v16  ;;  %v1055_v13 = vadd.f32 %v5153_v52, %v1054_v20  ;;  %v5162_v16 = vpop.eup %4180 }
 0x335   : > { %v5168_v41 = vpop.eup %4182 }
 0x336   : > { %4186 = vrcp.f32 %v1032_v15  ;;  %v1056_v31 = vadd.f32 %v5156_v60, %v1055_v13  ;;  %v11297_v15 = vsub.f32 %v11237_v5, %v4714_v37  ;;  %v5174_v20 = vpop.eup %4184 }
 0x337   : > { %4188 = vpow2.f32 %v982_v50  ;;  %v11301_v50 = vld [vmem:[#allocation29_spill] sm:$0xff] }
 0x338   : > { %v1057_v61 = vadd.f32 %v5162_v16, %v1056_v31  ;;  %v990_v18 = vmul.f32 1.442695, %v11297_v15  ;;  %4190 = vpow2.f32 %v986_v59 }
 0x33a   : > { %v1058_v14 = vadd.f32 %v5168_v41, %v1057_v61  ;;  %4192 = vpow2.f32 %v990_v18  ;;  %v11303_v61 = vld [vmem:[#allocation30_spill] sm:$0xff] }
 0x33b   : > { %4194 = vpow2.f32 %v994_v0 }
 0x33c   : > { %v1059_v31 = vadd.f32 %v5174_v20, %v1058_v14 }
 0x340   : > { %v5176_v13 = vpop.eup %4186 }
 0x341   : > { %v5183_v25 = vmul.f32 %v5176_v13, %v4159_v10  ;;  %v5187_v5 = vmul.f32 %v5176_v13, %v11301_v50  ;;  %v5193_v59 = vmul.f32 %v5176_v13, %v11303_v61  ;;  %v5197_v37 = vmul.f32 %v5176_v13, %v4925_v8  ;;  %v11325_v50 = vld [vmem:[#allocation9_spill] sm:$0xff] }
 0x342   : > { %v5201_v10 = vmul.f32 %v5176_v13, %v4934_v4  ;;  %v5205_v15 = vmul.f32 %v5176_v13, %v4943_v53  ;;  %v5209_v18 = vmul.f32 %v5176_v13, %v4948_v12  ;;  %v5213_v14 = vmul.f32 %v5176_v13, %v4954_v46 }
 0x343   : > { %11300 = vst [vmem:[#allocation19_spill] sm:$0xff] %v5183_v25  ;;  %11302 = vst [vmem:[#allocation21_spill] sm:$0xff] %v5187_v5  ;;  %1171 = vrot.lane.b32.xlu0 %v5187_v5, %s4334_s24  ;;  %v5217_v8 = vmul.f32 %v5176_v13, %v4970_v30  ;;  %v5221_v4 = vmul.f32 %v5176_v13, %v4983_v38  ;;  %v5225_v53 = vmul.f32 %v5176_v13, %v4995_v29 }
 0x344   : > { %11304 = vst [vmem:[#allocation22_spill] sm:$0xff] %v5193_v59  ;;  %11305 = vst [vmem:[#allocation24_spill] sm:$0xff] %v5197_v37  ;;  %v5229_v12 = vmul.f32 %v5176_v13, %v5007_v33  ;;  %v5233_v46 = vmul.f32 %v5176_v13, %v5019_v58  ;;  %1199 = vrot.lane.b32.xlu1 %v5201_v10, %s4334_s24  ;;  %v5239_v30 = vmul.f32 %v5176_v13, %v5031_v45  ;;  %v5255_v58 = vpop.eup %4188 }
 0x345   : > { %11306 = vst [vmem:[#allocation25_spill] sm:$0xff] %v5201_v10  ;;  %11307 = vst [vmem:[#allocation26_spill] sm:$0xff] %v5205_v15  ;;  %v5243_v38 = vmul.f32 %v5176_v13, %v5043_v56  ;;  %v5247_v29 = vmul.f32 %v5176_v13, %v5055_v26  ;;  %v5251_v33 = vmul.f32 %v5176_v13, %v5064_v55 }
 0x346   : > { %11308 = vst [vmem:[#allocation27_spill] sm:$0xff] %v5209_v18  ;;  %11309 = vst [vmem:[#allocation20_spill] sm:$0xff] %v5213_v14  ;;  %v5259_v45 = vmul.f32 %v5176_v13, %v5073_v39  ;;  %v5263_v56 = vmul.f32 %v5176_v13, %v5082_v42  ;;  %v5267_v26 = vmul.f32 %v5176_v13, %v5091_v1  ;;  %v4191_v39 = vpop.eup %4190 }
 0x347   : > { %11310 = vst [vmem:[#allocation23_spill] sm:$0xff] %v5217_v8  ;;  %11311 = vst [vmem:[#allocation28_spill] sm:$0xff] %v5221_v4  ;;  %1173 = vrot.lane.b32.xlu0 %v5193_v59, %s4334_s24  ;;  %v5271_v55 = vmul.f32 %v5176_v13, %v5100_v2  ;;  %v5275_v44 = vmul.f32 %v5176_v13, %v11323_v40  ;;  %v1060_v0 = vadd.f32 %v5255_v58, %v1059_v31  ;;  %v4193_v1 = vpop.eup %4192 }
 0x348   : > { %11312 = vst [vmem:[#allocation29_spill] sm:$0xff] %v5225_v53  ;;  %11313 = vst [vmem:[#allocation30_spill] sm:$0xff] %v5229_v12  ;;  %1366 = vrot.lane.b32.xlu1 %v5193_v59, %s4335_s28  ;;  %v5284_v2 = vmul.f32 %v5176_v13, %v11325_v50  ;;  %v4195_v62 = vpop.eup %4194  ;;  %v5292_v40 = vmul.f32 %v5176_v13, %v4859_v19  ;;  %v5304_v50 = vmul.f32 %v5176_v13, %v4874_v9 }
 0x349   : > { %11314 = vst [vmem:[#allocation31_spill] sm:$0xff] %v5233_v46  ;;  %11315 = vst [vmem:[#allocation32_spill] sm:$0xff] %v5239_v30  ;;  %v1061_v42 = vadd.f32 %v4191_v39, %v1060_v0  ;;  %v11328_v0 = vld [vmem:[#allocation10_spill] sm:$0xff]  ;;  %v5324_v9 = vmul.f32 %v5176_v13, %v4880_v36 }
 0x34a   : > { %11316 = vst [vmem:[#allocation33_spill] sm:$0xff] %v5243_v38  ;;  %11317 = vst [vmem:[#allocation34_spill] sm:$0xff] %v5247_v29  ;;  %v5296_v3 = vmul.f32 %v5176_v13, %v11328_v0  ;;  %v5312_v0 = vmul.f32 %v5176_v13, %v4868_v6  ;;  %v5332_v6 = vmul.f32 %v5176_v13, %v4889_v27 }
 0x34b   : > { %11318 = vst [vmem:[#allocation35_spill] sm:$0xff] %v5251_v33  ;;  %11319 = vst [vmem:[#allocation36_spill] sm:$0xff] %v5259_v45  ;;  %1175 = vrot.lane.b32.xlu0 %v5275_v44, %s4334_s24  ;;  %v1062_v61 = vadd.f32 %v4193_v1, %v1061_v42  ;;  %v5353_v27 = vmul.f32 %v5176_v13, %v4907_v47 }
 0x34c   : > { %11320 = vst [vmem:[#allocation37_spill] sm:$0xff] %v5263_v56  ;;  %11321 = vst [vmem:[#allocation38_spill] sm:$0xff] %v5267_v26  ;;  %1370 = vrot.lane.b32.xlu1 %v5284_v2, %s4335_s28 }
 0x34d   : > { %11322 = vst [vmem:[#allocation39_spill] sm:$0xff] %v5271_v55  ;;  %11324 = vst [vmem:[#allocation8_spill] sm:$0xff] %v5275_v44  ;;  %v1063_v31 = vadd.f32 %v4195_v62, %v1062_v61 }
 0x34e   : > { %11326 = vst [vmem:[#allocation9_spill] sm:$0xff] %v5284_v2  ;;  %11327 = vst [vmem:[#allocation40_spill] sm:$0xff] %v5292_v40 }
 0x34f   : > { %1177 = vrot.lane.b32.xlu0 %v5284_v2, %s4334_s24  ;;  %11329 = vst [vmem:[#allocation10_spill] sm:$0xff] %v5296_v3  ;;  %v1064_v7 = vrot.slane %v1063_v31, 4  ;;  %11330 = vst [vmem:[#allocation41_spill] sm:$0xff] %v5304_v50 }
 0x350   : > { %1374 = vrot.lane.b32.xlu1 %v5292_v40, %s4335_s28  ;;  %11331 = vst [vmem:[#allocation42_spill] sm:$0xff] %v5312_v0  ;;  %11332 = vst [vmem:[#allocation43_spill] sm:$0xff] %v5324_v9 }
 0x351   : > { %v1065_v42 = vadd.f32 %v1064_v7, %v1063_v31  ;;  %11333 = vst [vmem:[#allocation44_spill] sm:$0xff] %v5332_v6  ;;  %11336 = vst [vmem:[#allocation47_spill] sm:$0xff] %v5353_v27 }
 0x353   : > { %1179 = vrot.lane.b32.xlu0 %v5296_v3, %s4334_s24  ;;  %v1066_v61 = vrot.slane %v1065_v42, 2 }
 0x354   : > { %1378 = vrot.lane.b32.xlu1 %v5304_v50, %s4335_s28 }
 0x355   : > { %v1067_v19 = vadd.f32 %v1066_v61, %v1065_v42  ;;  %v5345_v61 = vmul.f32 %v5176_v13, %v4898_v17 }
 0x357   : > { %1181 = vrot.lane.b32.xlu0 %v5292_v40, %s4334_s24  ;;  %v1068_v7 = vrot.slane %v1067_v19, 1  ;;  %11335 = vst [vmem:[#allocation46_spill] sm:$0xff] %v5345_v61 }
 0x358   : > { %1559 = vrot.lane.b32.xlu1 %v5193_v59, %s4336_s29 }
 0x359   : > { %v1069_v31 = vadd.f32 %v1068_v7, %v1067_v19 }
 0x35b   : > { %1183 = vrot.lane.b32.xlu0 %v5312_v0, %s4334_s24  ;;  %4196 = vrcp.f32 %v1069_v31 }
 0x35c   : > { %1563 = vrot.lane.b32.xlu1 %v5284_v2, %s4336_s29 }
 0x35f   : > { %1185 = vrot.lane.b32.xlu0 %v5304_v50, %s4334_s24 }
 0x360   : > { %1567 = vrot.lane.b32.xlu1 %v5292_v40, %s4336_s29 }
 0x363   : > { %1187 = vrot.lane.b32.xlu0 %v5324_v9, %s4334_s24 }
 0x364   : > { %1571 = vrot.lane.b32.xlu1 %v5304_v50, %s4336_s29 }
 0x365   : > { %v5336_v42 = vpop.eup %4196 }
 0x366   : > { %v5341_v36 = vmul.f32 %v5336_v42, %v4195_v62  ;;  %v5357_v19 = vmul.f32 %v5336_v42, %v5123_v21  ;;  %v5361_v62 = vmul.f32 %v5336_v42, %v5129_v28  ;;  %v5365_v17 = vmul.f32 %v5336_v42, %v5135_v11 }
 0x367   : > { %1189 = vrot.lane.b32.xlu0 %v5332_v6, %s4334_s24  ;;  %v5369_v7 = vmul.f32 %v5336_v42, %v5141_v49  ;;  %v5373_v47 = vmul.f32 %v5336_v42, %v5147_v51  ;;  %v5377_v21 = vmul.f32 %v5336_v42, %v5150_v23  ;;  %v5381_v28 = vmul.f32 %v5336_v42, %v5153_v52 }
 0x368   : > { %11334 = vst [vmem:[#allocation45_spill] sm:$0xff] %v5341_v36  ;;  %1382 = vrot.lane.b32.xlu1 %v5332_v6, %s4335_s28  ;;  %11337 = vst [vmem:[#allocation48_spill] sm:$0xff] %v5357_v19  ;;  %v5385_v11 = vmul.f32 %v5336_v42, %v5156_v60  ;;  %v5389_v49 = vmul.f32 %v5336_v42, %v5162_v16  ;;  %v5393_v51 = vmul.f32 %v5336_v42, %v5168_v41 }
 0x369   : > { %11338 = vst [vmem:[#allocation49_spill] sm:$0xff] %v5361_v62  ;;  %11339 = vst [vmem:[#allocation50_spill] sm:$0xff] %v5365_v17  ;;  %v5399_v23 = vmul.f32 %v5336_v42, %v5174_v20  ;;  %v5403_v52 = vmul.f32 %v5336_v42, %v5255_v58  ;;  %v5406_v60 = vmul.f32 %v5336_v42, %v4191_v39 }
 0x36a   : > { %11340 = vst [vmem:[#allocation51_spill] sm:$0xff] %v5369_v7  ;;  %11341 = vst [vmem:[#allocation52_spill] sm:$0xff] %v5373_v47  ;;  %v5409_v16 = vmul.f32 %v5336_v42, %v4193_v1  ;;  %v5415_v41 = vmul.f32 %v5176_v13, %v4916_v63  ;;  %v5661_v2 = vmul.f32 %v5336_v42, %v4965_v54 }
 0x36b   : > { %1191 = vrot.lane.b32.xlu0 %v5345_v61, %s4334_s24  ;;  %11342 = vst [vmem:[#allocation53_spill] sm:$0xff] %v5377_v21  ;;  %11343 = vst [vmem:[#allocation54_spill] sm:$0xff] %v5381_v28 }
 0x36c   : > { %11344 = vst [vmem:[#allocation55_spill] sm:$0xff] %v5385_v11  ;;  %11345 = vst [vmem:[#allocation56_spill] sm:$0xff] %v5389_v49  ;;  %1575 = vrot.lane.b32.xlu1 %v5332_v6, %s4336_s29 }
 0x36d   : > { %11346 = vst [vmem:[#allocation57_spill] sm:$0xff] %v5393_v51  ;;  %11347 = vst [vmem:[#allocation58_spill] sm:$0xff] %v5399_v23 }
 0x36e   : > { %11348 = vst [vmem:[#allocation59_spill] sm:$0xff] %v5403_v52  ;;  %11349 = vst [vmem:[#allocation60_spill] sm:$0xff] %v5406_v60 }
 0x36f   : > { %11350 = vst [vmem:[#allocation61_spill] sm:$0xff] %v5409_v16  ;;  %1193 = vrot.lane.b32.xlu0 %v5353_v27, %s4334_s24  ;;  %11351 = vst [vmem:[#allocation62_spill] sm:$0xff] %v5415_v41 }
 0x370   : > { %1386 = vrot.lane.b32.xlu1 %v5353_v27, %s4335_s28  ;;  %11373 = vst [vmem:[#allocation84_spill] sm:$0xff] %v5661_v2 }
 0x373   : > { %1195 = vrot.lane.b32.xlu0 %v5415_v41, %s4334_s24 }
 0x374   : > { %1579 = vrot.lane.b32.xlu1 %v5353_v27, %s4336_s29 }
 0x377   : > { %1197 = vrot.lane.b32.xlu0 %v5197_v37, %s4334_s24 }
 0x378   : > { %1390 = vrot.lane.b32.xlu1 %v5197_v37, %s4335_s28 }
 0x37b   : > { %1201 = vrot.lane.b32.xlu0 %v5205_v15, %s4334_s24 }
 0x37c   : > { %1583 = vrot.lane.b32.xlu1 %v5197_v37, %s4336_s29 }
 0x37f   : > { %1203 = vrot.lane.b32.xlu0 %v5209_v18, %s4334_s24 }
 0x380   : > { %1394 = vrot.lane.b32.xlu1 %v5205_v15, %s4335_s28 }
 0x383   : > { %1205 = vrot.lane.b32.xlu0 %v5213_v14, %s4334_s24 }
 0x384   : > { %1587 = vrot.lane.b32.xlu1 %v5205_v15, %s4336_s29 }
 0x387   : > { %1207 = vrot.lane.b32.xlu0 %v5217_v8, %s4334_s24 }
 0x388   : > { %1398 = vrot.lane.b32.xlu1 %v5213_v14, %s4335_s28 }
 0x38b   : > { %1209 = vrot.lane.b32.xlu0 %v5221_v4, %s4334_s24 }
 0x38c   : > { %1591 = vrot.lane.b32.xlu1 %v5213_v14, %s4336_s29 }
 0x38f   : > { %1211 = vrot.lane.b32.xlu0 %v5225_v53, %s4334_s24 }
 0x390   : > { %1402 = vrot.lane.b32.xlu1 %v5221_v4, %s4335_s28 }
 0x393   : > { %1213 = vrot.lane.b32.xlu0 %v5229_v12, %s4334_s24 }
 0x394   : > { %1595 = vrot.lane.b32.xlu1 %v5221_v4, %s4336_s29 }
 0x397   : > { %1215 = vrot.lane.b32.xlu0 %v5233_v46, %s4334_s24 }
 0x398   : > { %1406 = vrot.lane.b32.xlu1 %v5229_v12, %s4335_s28 }
 0x39b   : > { %1217 = vrot.lane.b32.xlu0 %v5239_v30, %s4334_s24 }
 0x39c   : > { %1599 = vrot.lane.b32.xlu1 %v5229_v12, %s4336_s29 }
 0x39f   : > { %1219 = vrot.lane.b32.xlu0 %v5243_v38, %s4334_s24 }
 0x3a0   : > { %1410 = vrot.lane.b32.xlu1 %v5239_v30, %s4335_s28 }
 0x3a3   : > { %1221 = vrot.lane.b32.xlu0 %v5247_v29, %s4334_s24 }
 0x3a4   : > { %1603 = vrot.lane.b32.xlu1 %v5239_v30, %s4336_s29 }
 0x3a7   : > { %1223 = vrot.lane.b32.xlu0 %v5251_v33, %s4334_s24 }
 0x3a8   : > { %1414 = vrot.lane.b32.xlu1 %v5247_v29, %s4335_s28 }
 0x3ab   : > { %1225 = vrot.lane.b32.xlu0 %v5259_v45, %s4334_s24 }
 0x3ac   : > { %1607 = vrot.lane.b32.xlu1 %v5247_v29, %s4336_s29 }
 0x3af   : > { %1227 = vrot.lane.b32.xlu0 %v5263_v56, %s4334_s24 }
 0x3b0   : > { %1418 = vrot.lane.b32.xlu1 %v5259_v45, %s4335_s28 }
 0x3b3   : > { %1229 = vrot.lane.b32.xlu0 %v5267_v26, %s4334_s24 }
 0x3b4   : > { %1611 = vrot.lane.b32.xlu1 %v5259_v45, %s4336_s29 }
 0x3b5   : > { %v5485_v63 = vpop.permute.xlu0 %1171 }
 0x3b6   : > { %11352 = vst [vmem:[#allocation63_spill] sm:$0xff] %v5485_v63  ;;  %v5491_v20 = vpop.permute.xlu1 %1199 }
 0x3b7   : > { %1231 = vrot.lane.b32.xlu0 %v5271_v55, %s4334_s24  ;;  %11353 = vst [vmem:[#allocation64_spill] sm:$0xff] %v5491_v20 }
 0x3b8   : > { %1422 = vrot.lane.b32.xlu1 %v5267_v26, %s4335_s28 }
 0x3b9   : > { %v5493_v13 = vpop.permute.xlu0 %1173 }
 0x3ba   : > { %11354 = vst [vmem:[#allocation65_spill] sm:$0xff] %v5493_v13  ;;  %v5499_v58 = vpop.permute.xlu1 %1366 }
 0x3bb   : > { %1233 = vrot.lane.b32.xlu0 %v5183_v25, %s4334_s24 }
 0x3bc   : > { %1615 = vrot.lane.b32.xlu1 %v5267_v26, %s4336_s29  ;;  %v5525_v26 = vmul.f32 %v5336_v42, %v5014_v48  ;;  %v5549_v48 = vmul.f32 %v5336_v42, %v5059_v34  ;;  %v5573_v34 = vmul.f32 %v5336_v42, %v5095_v24 }
 0x3bd   : > { %v5501_v39 = vpop.permute.xlu0 %1175 }
 0x3be   : > { %11355 = vst [vmem:[#allocation66_spill] sm:$0xff] %v5501_v39  ;;  %v5507_v1 = vpop.permute.xlu1 %1370  ;;  %11358 = vst [vmem:[#allocation69_spill] sm:$0xff] %v5525_v26 }
 0x3bf   : > { %1364 = vrot.lane.b32.xlu0 %v5187_v5, %s4335_s28  ;;  %11361 = vst [vmem:[#allocation72_spill] sm:$0xff] %v5549_v48  ;;  %11364 = vst [vmem:[#allocation75_spill] sm:$0xff] %v5573_v34 }
 0x3c0   : > { %1426 = vrot.lane.b32.xlu1 %v5183_v25, %s4335_s28 }
 0x3c1   : > { %v5509_v31 = vpop.permute.xlu0 %1177 }
 0x3c2   : > { %11356 = vst [vmem:[#allocation67_spill] sm:$0xff] %v5509_v31  ;;  %v5515_v20 = vpop.permute.xlu1 %1374 }
 0x3c3   : > { %1368 = vrot.lane.b32.xlu0 %v5275_v44, %s4335_s28 }
 0x3c4   : > { %1619 = vrot.lane.b32.xlu1 %v5183_v25, %s4336_s29  ;;  %v5537_v25 = vmul.f32 %v5336_v42, %v5038_v43  ;;  %v5561_v43 = vmul.f32 %v5336_v42, %v5077_v57  ;;  %v5585_v57 = vmul.f32 %v5336_v42, %v5111_v32 }
 0x3c5   : > { %v5517_v45 = vpop.permute.xlu0 %1179 }
 0x3c6   : > { %11357 = vst [vmem:[#allocation68_spill] sm:$0xff] %v5517_v45  ;;  %v5527_v29 = vpop.permute.xlu1 %1378  ;;  %11359 = vst [vmem:[#allocation70_spill] sm:$0xff] %v5537_v25 }
 0x3c7   : > { %1372 = vrot.lane.b32.xlu0 %v5296_v3, %s4335_s28  ;;  %11362 = vst [vmem:[#allocation73_spill] sm:$0xff] %v5561_v43  ;;  %11365 = vst [vmem:[#allocation76_spill] sm:$0xff] %v5585_v57 }
 0x3c8   : > { %1245 = vrot.lane.b32.xlu1 %v5525_v26, %s4334_s24 }
 0x3c9   : > { %v5529_v30 = vpop.permute.xlu0 %1181 }
 0x3ca   : > { %v5539_v12 = vpop.permute.xlu1 %1559 }
 0x3cb   : > { %1376 = vrot.lane.b32.xlu0 %v5312_v0, %s4335_s28 }
 0x3cc   : > { %1249 = vrot.lane.b32.xlu1 %v5537_v25, %s4334_s24 }
 0x3cd   : > { %v5541_v4 = vpop.permute.xlu0 %1183 }
 0x3ce   : > { %11360 = vst [vmem:[#allocation71_spill] sm:$0xff] %v5541_v4  ;;  %v5551_v14 = vpop.permute.xlu1 %1563 }
 0x3cf   : > { %1557 = vrot.lane.b32.xlu0 %v5187_v5, %s4336_s29 }
 0x3d0   : > { %1253 = vrot.lane.b32.xlu1 %v5549_v48, %s4334_s24 }
 0x3d1   : > { %v5553_v15 = vpop.permute.xlu0 %1185 }
 0x3d2   : > { %v5563_v37 = vpop.permute.xlu1 %1567 }
 0x3d3   : > { %1561 = vrot.lane.b32.xlu0 %v5275_v44, %s4336_s29 }
 0x3d4   : > { %1257 = vrot.lane.b32.xlu1 %v5561_v43, %s4334_s24 }
 0x3d5   : > { %v5565_v5 = vpop.permute.xlu0 %1187 }
 0x3d6   : > { %11363 = vst [vmem:[#allocation74_spill] sm:$0xff] %v5565_v5  ;;  %v5575_v27 = vpop.permute.xlu1 %1571 }
 0x3d7   : > { %1565 = vrot.lane.b32.xlu0 %v5296_v3, %s4336_s29 }
 0x3d8   : > { %1261 = vrot.lane.b32.xlu1 %v5573_v34, %s4334_s24 }
 0x3d9   : > { %v5577_v44 = vpop.permute.xlu0 %1189 }
 0x3da   : > { %v5587_v6 = vpop.permute.xlu1 %1382 }
 0x3db   : > { %1569 = vrot.lane.b32.xlu0 %v5312_v0, %s4336_s29 }
 0x3dc   : > { %1265 = vrot.lane.b32.xlu1 %v5585_v57, %s4334_s24 }
 0x3dd   : > { %v5589_v3 = vpop.permute.xlu0 %1191 }
 0x3de   : > { %11366 = vst [vmem:[#allocation77_spill] sm:$0xff] %v5589_v3  ;;  %v5595_v24 = vpop.permute.xlu1 %1575 }
 0x3df   : > { %1380 = vrot.lane.b32.xlu0 %v5324_v9, %s4335_s28 }
 0x3e0   : > { %1269 = vrot.lane.b32.xlu1 %v5357_v19, %s4334_s24 }
 0x3e1   : > { %v5597_v40 = vpop.permute.xlu0 %1193 }
 0x3e2   : > { %v5603_v32 = vpop.permute.xlu1 %1386 }
 0x3e3   : > { %1573 = vrot.lane.b32.xlu0 %v5324_v9, %s4336_s29 }
 0x3e4   : > { %1273 = vrot.lane.b32.xlu1 %v5365_v17, %s4334_s24 }
 0x3e5   : > { %v5605_v0 = vpop.permute.xlu0 %1195 }
 0x3e6   : > { %11367 = vst [vmem:[#allocation78_spill] sm:$0xff] %v5605_v0  ;;  %v5611_v3 = vpop.permute.xlu1 %1579 }
 0x3e7   : > { %1384 = vrot.lane.b32.xlu0 %v5345_v61, %s4335_s28 }
 0x3e8   : > { %1277 = vrot.lane.b32.xlu1 %v5373_v47, %s4334_s24 }
 0x3e9   : > { %v5613_v50 = vpop.permute.xlu0 %1197 }
 0x3ea   : > { %v5619_v9 = vpop.permute.xlu1 %1390 }
 0x3eb   : > { %1577 = vrot.lane.b32.xlu0 %v5345_v61, %s4336_s29 }
 0x3ec   : > { %1281 = vrot.lane.b32.xlu1 %v5381_v28, %s4334_s24 }
 0x3ed   : > { %v5621_v5 = vpop.permute.xlu0 %1201 }
 0x3ee   : > { %v5627_v0 = vpop.permute.xlu1 %1583 }
 0x3ef   : > { %1388 = vrot.lane.b32.xlu0 %v5415_v41, %s4335_s28 }
 0x3f0   : > { %1285 = vrot.lane.b32.xlu1 %v5389_v49, %s4334_s24 }
 0x3f1   : > { %v5629_v4 = vpop.permute.xlu0 %1203 }
 0x3f2   : > { %11368 = vst [vmem:[#allocation79_spill] sm:$0xff] %v5629_v4  ;;  %v5635_v61 = vpop.permute.xlu1 %1394 }
 0x3f3   : > { %1581 = vrot.lane.b32.xlu0 %v5415_v41, %s4336_s29  ;;  %11369 = vst [vmem:[#allocation80_spill] sm:$0xff] %v5635_v61 }
 0x3f4   : > { %1289 = vrot.lane.b32.xlu1 %v5399_v23, %s4334_s24 }
 0x3f5   : > { %v5637_v45 = vpop.permute.xlu0 %1205 }
 0x3f6   : > { %v5643_v63 = vpop.permute.xlu1 %1587 }
 0x3f7   : > { %1392 = vrot.lane.b32.xlu0 %v5201_v10, %s4335_s28 }
 0x3f8   : > { %1293 = vrot.lane.b32.xlu1 %v5406_v60, %s4334_s24 }
 0x3f9   : > { %v5645_v39 = vpop.permute.xlu0 %1207 }
 0x3fa   : > { %11370 = vst [vmem:[#allocation81_spill] sm:$0xff] %v5645_v39  ;;  %v5651_v4 = vpop.permute.xlu1 %1398 }
 0x3fb   : > { %1585 = vrot.lane.b32.xlu0 %v5201_v10, %s4336_s29  ;;  %11371 = vst [vmem:[#allocation82_spill] sm:$0xff] %v5651_v4  ;;  %v5673_v10 = vmul.f32 %v5336_v42, %v4990_v35 }
 0x3fc   : > { %1297 = vrot.lane.b32.xlu1 %v5341_v36, %s4334_s24 }
 0x3fd   : > { %v5653_v41 = vpop.permute.xlu0 %1209  ;;  %11375 = vst [vmem:[#allocation86_spill] sm:$0xff] %v5673_v10 }
 0x3fe   : > { %11372 = vst [vmem:[#allocation83_spill] sm:$0xff] %v5653_v41  ;;  %v5663_v39 = vpop.permute.xlu1 %1591 }
 0x3ff   : > { %1396 = vrot.lane.b32.xlu0 %v5209_v18, %s4335_s28 }
 0x400   : > { %1430 = vrot.lane.b32.xlu1 %v5661_v2, %s4335_s28 }
 0x401   : > { %v5665_v31 = vpop.permute.xlu0 %1211 }
 0x402   : > { %11374 = vst [vmem:[#allocation85_spill] sm:$0xff] %v5665_v31  ;;  %v5675_v41 = vpop.permute.xlu1 %1402 }
 0x403   : > { %1589 = vrot.lane.b32.xlu0 %v5209_v18, %s4336_s29  ;;  %11376 = vst [vmem:[#allocation87_spill] sm:$0xff] %v5675_v41 }
 0x404   : > { %1434 = vrot.lane.b32.xlu1 %v5673_v10, %s4335_s28 }
 0x405   : > { %v5677_v59 = vpop.permute.xlu0 %1213 }
 0x406   : > { %11377 = vst [vmem:[#allocation88_spill] sm:$0xff] %v5677_v59  ;;  %v5683_v54 = vpop.permute.xlu1 %1595 }
 0x407   : > { %1400 = vrot.lane.b32.xlu0 %v5217_v8, %s4335_s28  ;;  %11378 = vst [vmem:[#allocation89_spill] sm:$0xff] %v5683_v54 }
 0x408   : > { %1623 = vrot.lane.b32.xlu1 %v5661_v2, %s4336_s29 }
 0x409   : > { %v5685_v31 = vpop.permute.xlu0 %1215 }
 0x40a   : > { %11379 = vst [vmem:[#allocation90_spill] sm:$0xff] %v5685_v31  ;;  %v5691_v35 = vpop.permute.xlu1 %1406 }
 0x40b   : > { %1593 = vrot.lane.b32.xlu0 %v5217_v8, %s4336_s29  ;;  %11380 = vst [vmem:[#allocation91_spill] sm:$0xff] %v5691_v35 }
 0x40c   : > { %1627 = vrot.lane.b32.xlu1 %v5673_v10, %s4336_s29 }
 0x40d   : > { %v5693_v18 = vpop.permute.xlu0 %1217 }
 0x40e   : > { %11381 = vst [vmem:[#allocation92_spill] sm:$0xff] %v5693_v18  ;;  %v5699_v41 = vpop.permute.xlu1 %1599 }
 0x40f   : > { %1404 = vrot.lane.b32.xlu0 %v5225_v53, %s4335_s28  ;;  %11382 = vst [vmem:[#allocation93_spill] sm:$0xff] %v5699_v41 }
 0x410   : > { %1438 = vrot.lane.b32.xlu1 %v5525_v26, %s4335_s28 }
 0x411   : > { %v5701_v59 = vpop.permute.xlu0 %1219 }
 0x412   : > { %11383 = vst [vmem:[#allocation94_spill] sm:$0xff] %v5701_v59  ;;  %v5707_v31 = vpop.permute.xlu1 %1410 }
 0x413   : > { %1597 = vrot.lane.b32.xlu0 %v5225_v53, %s4336_s29  ;;  %11384 = vst [vmem:[#allocation95_spill] sm:$0xff] %v5707_v31 }
 0x414   : > { %1631 = vrot.lane.b32.xlu1 %v5525_v26, %s4336_s29 }
 0x415   : > { %v5709_v8 = vpop.permute.xlu0 %1221 }
 0x416   : > { %11385 = vst [vmem:[#allocation96_spill] sm:$0xff] %v5709_v8  ;;  %v5715_v35 = vpop.permute.xlu1 %1603  ;;  %v11414_v8 = vld [vmem:[#allocation13_spill] sm:$0xff] }
 0x417   : > { %1408 = vrot.lane.b32.xlu0 %v5233_v46, %s4335_s28  ;;  %11386 = vst [vmem:[#allocation97_spill] sm:$0xff] %v5715_v35 }
 0x418   : > { %1442 = vrot.lane.b32.xlu1 %v5537_v25, %s4335_s28 }
 0x419   : > { %v5717_v41 = vpop.permute.xlu0 %1223 }
 0x41a   : > { %11387 = vst [vmem:[#allocation98_spill] sm:$0xff] %v5717_v41  ;;  %v5723_v59 = vpop.permute.xlu1 %1414 }
 0x41b   : > { %1601 = vrot.lane.b32.xlu0 %v5233_v46, %s4336_s29  ;;  %11388 = vst [vmem:[#allocation99_spill] sm:$0xff] %v5723_v59 }
 0x41c   : > { %1635 = vrot.lane.b32.xlu1 %v5537_v25, %s4336_s29 }
 0x41d   : > { %v5725_v53 = vpop.permute.xlu0 %1225 }
 0x41e   : > { %11389 = vst [vmem:[#allocation100_spill] sm:$0xff] %v5725_v53  ;;  %v5731_v31 = vpop.permute.xlu1 %1607 }
 0x41f   : > { %1412 = vrot.lane.b32.xlu0 %v5243_v38, %s4335_s28  ;;  %11390 = vst [vmem:[#allocation101_spill] sm:$0xff] %v5731_v31 }
 0x420   : > { %1446 = vrot.lane.b32.xlu1 %v5549_v48, %s4335_s28 }
 0x421   : > { %v5733_v35 = vpop.permute.xlu0 %1227 }
 0x422   : > { %11391 = vst [vmem:[#allocation102_spill] sm:$0xff] %v5733_v35  ;;  %v5739_v46 = vpop.permute.xlu1 %1418 }
 0x423   : > { %1605 = vrot.lane.b32.xlu0 %v5243_v38, %s4336_s29  ;;  %11392 = vst [vmem:[#allocation103_spill] sm:$0xff] %v5739_v46 }
 0x424   : > { %1639 = vrot.lane.b32.xlu1 %v5549_v48, %s4336_s29 }
 0x425   : > { %v5741_v41 = vpop.permute.xlu0 %1229 }
 0x426   : > { %11393 = vst [vmem:[#allocation104_spill] sm:$0xff] %v5741_v41  ;;  %v5747_v59 = vpop.permute.xlu1 %1611  ;;  %v11411_v41 = vld [vmem:[#allocation12_spill] sm:$0xff] }
 0x427   : > { %1416 = vrot.lane.b32.xlu0 %v5251_v33, %s4335_s28  ;;  %11394 = vst [vmem:[#allocation105_spill] sm:$0xff] %v5747_v59 }
 0x428   : > { %1450 = vrot.lane.b32.xlu1 %v5561_v43, %s4335_s28 }
 0x429   : > { %v5749_v31 = vpop.permute.xlu0 %1231 }
 0x42a   : > { %11395 = vst [vmem:[#allocation106_spill] sm:$0xff] %v5749_v31  ;;  %v5755_v38 = vpop.permute.xlu1 %1422 }
 0x42b   : > { %1609 = vrot.lane.b32.xlu0 %v5251_v33, %s4336_s29  ;;  %11396 = vst [vmem:[#allocation107_spill] sm:$0xff] %v5755_v38 }
 0x42c   : > { %1643 = vrot.lane.b32.xlu1 %v5561_v43, %s4336_s29 }
 0x42d   : > { %v5757_v35 = vpop.permute.xlu0 %1233 }
 0x42e   : > { %11397 = vst [vmem:[#allocation108_spill] sm:$0xff] %v5757_v35  ;;  %v5763_v46 = vpop.permute.xlu1 %1615 }
 0x42f   : > { %1420 = vrot.lane.b32.xlu0 %v5263_v56, %s4335_s28  ;;  %11398 = vst [vmem:[#allocation109_spill] sm:$0xff] %v5763_v46 }
 0x430   : > { %1454 = vrot.lane.b32.xlu1 %v5573_v34, %s4335_s28 }
 0x431   : > { %v5765_v59 = vpop.permute.xlu0 %1364 }
 0x432   : > { %11399 = vst [vmem:[#allocation110_spill] sm:$0xff] %v5765_v59  ;;  %v5771_v33 = vpop.permute.xlu1 %1426 }
 0x433   : > { %1613 = vrot.lane.b32.xlu0 %v5263_v56, %s4336_s29  ;;  %11400 = vst [vmem:[#allocation111_spill] sm:$0xff] %v5771_v33  ;;  %v5791_v33 = vmul.f32 %v5336_v42, %v4959_v22 }
 0x434   : > { %1647 = vrot.lane.b32.xlu1 %v5573_v34, %s4336_s29 }
 0x435   : > { %v5773_v31 = vpop.permute.xlu0 %1368  ;;  %11404 = vst [vmem:[#allocation115_spill] sm:$0xff] %v5791_v33 }
 0x436   : > { %11401 = vst [vmem:[#allocation112_spill] sm:$0xff] %v5773_v31  ;;  %v5779_v38 = vpop.permute.xlu1 %1619 }
 0x437   : > { %1424 = vrot.lane.b32.xlu0 %v5271_v55, %s4335_s28  ;;  %11402 = vst [vmem:[#allocation113_spill] sm:$0xff] %v5779_v38 }
 0x438   : > { %1458 = vrot.lane.b32.xlu1 %v5585_v57, %s4335_s28 }
 0x439   : > { %v5781_v46 = vpop.permute.xlu0 %1372 }
 0x43a   : > { %11403 = vst [vmem:[#allocation114_spill] sm:$0xff] %v5781_v46  ;;  %v5787_v56 = vpop.permute.xlu1 %1245 }
 0x43b   : > { %1617 = vrot.lane.b32.xlu0 %v5271_v55, %s4336_s29  ;;  %v11407_v55 = vld [vmem:[#allocation11_spill] sm:$0xff] }
 0x43c   : > { %1651 = vrot.lane.b32.xlu1 %v5585_v57, %s4336_s29 }
 0x43d   : > { %v5793_v31 = vpop.permute.xlu0 %1376 }
 0x43e   : > { %11405 = vst [vmem:[#allocation116_spill] sm:$0xff] %v5793_v31  ;;  %v5799_v38 = vpop.permute.xlu1 %1249  ;;  %v5811_v31 = vmul.f32 %v5336_v42, %v11407_v55 }
 0x43f   : > { %1235 = vrot.lane.b32.xlu0 %v5791_v33, %s4334_s24 }
 0x440   : > { %1462 = vrot.lane.b32.xlu1 %v5357_v19, %s4335_s28  ;;  %11408 = vst [vmem:[#allocation11_spill] sm:$0xff] %v5811_v31 }
 0x441   : > { %v5801_v46 = vpop.permute.xlu0 %1557 }
 0x442   : > { %11406 = vst [vmem:[#allocation117_spill] sm:$0xff] %v5801_v46  ;;  %v5807_v22 = vpop.permute.xlu1 %1253 }
 0x443   : > { %1237 = vrot.lane.b32.xlu0 %v5661_v2, %s4334_s24  ;;  %v5843_v2 = vmul.f32 %v5336_v42, %v11414_v8 }
 0x444   : > { %1655 = vrot.lane.b32.xlu1 %v5357_v19, %s4336_s29 }
 0x445   : > { %v5813_v59 = vpop.permute.xlu0 %1561  ;;  %11415 = vst [vmem:[#allocation13_spill] sm:$0xff] %v5843_v2 }
 0x446   : > { %11409 = vst [vmem:[#allocation118_spill] sm:$0xff] %v5813_v59  ;;  %v5819_v46 = vpop.permute.xlu1 %1257  ;;  %v5831_v59 = vmul.f32 %v5336_v42, %v11411_v41 }
 0x447   : > { %1239 = vrot.lane.b32.xlu0 %v5811_v31, %s4334_s24 }
 0x448   : > { %1466 = vrot.lane.b32.xlu1 %v5365_v17, %s4335_s28  ;;  %11412 = vst [vmem:[#allocation12_spill] sm:$0xff] %v5831_v59 }
 0x449   : > { %v5821_v35 = vpop.permute.xlu0 %1565 }
 0x44a   : > { %11410 = vst [vmem:[#allocation119_spill] sm:$0xff] %v5821_v35  ;;  %v5827_v55 = vpop.permute.xlu1 %1261 }
 0x44b   : > { %1241 = vrot.lane.b32.xlu0 %v5673_v10, %s4334_s24 }
 0x44c   : > { %1659 = vrot.lane.b32.xlu1 %v5365_v17, %s4336_s29 }
 0x44d   : > { %v5833_v53 = vpop.permute.xlu0 %1569 }
 0x44e   : > { %11413 = vst [vmem:[#allocation120_spill] sm:$0xff] %v5833_v53  ;;  %v5839_v35 = vpop.permute.xlu1 %1265  ;;  %v11417_v53 = vld [vmem:[#allocation14_spill] sm:$0xff] }
 0x44f   : > { %1243 = vrot.lane.b32.xlu0 %v5831_v59, %s4334_s24  ;;  %v5855_v18 = vmul.f32 %v5336_v42, %v11417_v53 }
 0x450   : > { %1470 = vrot.lane.b32.xlu1 %v5373_v47, %s4335_s28 }
 0x451   : > { %v5845_v10 = vpop.permute.xlu0 %1380  ;;  %11418 = vst [vmem:[#allocation14_spill] sm:$0xff] %v5855_v18 }
 0x452   : > { %11416 = vst [vmem:[#allocation121_spill] sm:$0xff] %v5845_v10  ;;  %v5851_v41 = vpop.permute.xlu1 %1269  ;;  %v11421_v10 = vld [vmem:[#allocation15_spill] sm:$0xff] }
 0x453   : > { %1247 = vrot.lane.b32.xlu0 %v5843_v2, %s4334_s24  ;;  %v5867_v54 = vmul.f32 %v5336_v42, %v11421_v10 }
 0x454   : > { %1663 = vrot.lane.b32.xlu1 %v5373_v47, %s4336_s29 }
 0x455   : > { %v5857_v17 = vpop.permute.xlu0 %1573  ;;  %11422 = vst [vmem:[#allocation15_spill] sm:$0xff] %v5867_v54 }
 0x456   : > { %11419 = vst [vmem:[#allocation122_spill] sm:$0xff] %v5857_v17  ;;  %v5863_v8 = vpop.permute.xlu1 %1273  ;;  %v11425_v17 = vld [vmem:[#allocation16_spill] sm:$0xff] }
 0x457   : > { %1251 = vrot.lane.b32.xlu0 %v5855_v18, %s4334_s24  ;;  %11420 = vst [vmem:[#allocation123_spill] sm:$0xff] %v5863_v8  ;;  %v5879_v47 = vmul.f32 %v5336_v42, %v11425_v17 }
 0x458   : > { %1474 = vrot.lane.b32.xlu1 %v5381_v28, %s4335_s28 }
 0x459   : > { %v5869_v19 = vpop.permute.xlu0 %1384  ;;  %11426 = vst [vmem:[#allocation16_spill] sm:$0xff] %v5879_v47 }
 0x45a   : > { %11423 = vst [vmem:[#allocation124_spill] sm:$0xff] %v5869_v19  ;;  %v5875_v53 = vpop.permute.xlu1 %1277  ;;  %v11428_v19 = vld [vmem:[#allocation17_spill] sm:$0xff] }
 0x45b   : > { %1255 = vrot.lane.b32.xlu0 %v5867_v54, %s4334_s24  ;;  %11424 = vst [vmem:[#allocation125_spill] sm:$0xff] %v5875_v53  ;;  %v5891_v8 = vmul.f32 %v5336_v42, %v11428_v19 }
 0x45c   : > { %1667 = vrot.lane.b32.xlu1 %v5381_v28, %s4336_s29 }
 0x45d   : > { %v5881_v13 = vpop.permute.xlu0 %1577  ;;  %11429 = vst [vmem:[#allocation17_spill] sm:$0xff] %v5891_v8 }
 0x45e   : > { %11427 = vst [vmem:[#allocation126_spill] sm:$0xff] %v5881_v13  ;;  %v5887_v10 = vpop.permute.xlu1 %1281  ;;  %v11432_v13 = vld [vmem:[#allocation18_spill] sm:$0xff] }
 0x45f   : > { %1259 = vrot.lane.b32.xlu0 %v5879_v47, %s4334_s24  ;;  %v5903_v28 = vmul.f32 %v5336_v42, %v11432_v13 }
 0x460   : > { %1478 = vrot.lane.b32.xlu1 %v5389_v49, %s4335_s28 }
 0x461   : > { %v5893_v4 = vpop.permute.xlu0 %1388  ;;  %11433 = vst [vmem:[#allocation18_spill] sm:$0xff] %v5903_v28 }
 0x462   : > { %11430 = vst [vmem:[#allocation127_spill] sm:$0xff] %v5893_v4  ;;  %v5899_v17 = vpop.permute.xlu1 %1285 }
 0x463   : > { %1263 = vrot.lane.b32.xlu0 %v5891_v8, %s4334_s24  ;;  %11431 = vst [vmem:[#allocation128_spill] sm:$0xff] %v5899_v17 }
 0x464   : > { %1671 = vrot.lane.b32.xlu1 %v5389_v49, %s4336_s29 }
 0x465   : > { %v5905_v53 = vpop.permute.xlu0 %1581 }
 0x466   : > { %11434 = vst [vmem:[#allocation129_spill] sm:$0xff] %v5905_v53  ;;  %v5911_v19 = vpop.permute.xlu1 %1289 }
 0x467   : > { %1267 = vrot.lane.b32.xlu0 %v5903_v28, %s4334_s24  ;;  %11435 = vst [vmem:[#allocation130_spill] sm:$0xff] %v5911_v19 }
 0x468   : > { %1482 = vrot.lane.b32.xlu1 %v5399_v23, %s4335_s28 }
 0x469   : > { %v5913_v4 = vpop.permute.xlu0 %1392 }
 0x46a   : > { %11436 = vst [vmem:[#allocation131_spill] sm:$0xff] %v5913_v4  ;;  %v5919_v42 = vpop.permute.xlu1 %1293  ;;  %v10685_v4 = vlaneseq }
 0x46b   : > { %1271 = vrot.lane.b32.xlu0 %v5361_v62, %s4334_s24  ;;  %11437 = vst [vmem:[#allocation132_spill] sm:$0xff] %v5919_v42 }
 0x46c   : > { %1675 = vrot.lane.b32.xlu1 %v5399_v23, %s4336_s29 }
 0x46d   : > { %v5921_v13 = vpop.permute.xlu0 %1585 }
 0x46e   : > { %11438 = vst [vmem:[#allocation133_spill] sm:$0xff] %v5921_v13  ;;  %v5927_v53 = vpop.permute.xlu1 %1297  ;;  %v5942_v13 = vand.u32 127, %v10685_v4 }
 0x46f   : > { %1275 = vrot.lane.b32.xlu0 %v5369_v7, %s4334_s24  ;;  %11439 = vst [vmem:[#allocation134_spill] sm:$0xff] %v5927_v53 }
 0x470   : > { %1486 = vrot.lane.b32.xlu1 %v5406_v60, %s4335_s28  ;;  %vm1167_vm1 = vcmp.lt.s32.totalorder %v5942_v13, 16  ;;  %vm1492_vm2 = vcmp.lt.s32.totalorder %v5942_v13, 127  ;;  %vm1299_vm3 = vcmp.lt.s32.totalorder %v5942_v13, 1  ;;  %vm2401_vm8 = vcmp.lt.s32.totalorder %v5942_v13, 112 }
 0x471   : > { %v5929_v49 = vpop.permute.xlu0 %1396  ;;  %vm3648_vm11 = vcmp.lt.s32.totalorder %v5942_v13, 111  ;;  %vm3667_vm14 = vcmp.lt.s32.totalorder %v5942_v13, 113 }
 0x472   : > { %11440 = vst [vmem:[#allocation135_spill] sm:$0xff] %v5929_v49  ;;  %v1431_v42 = vpop.permute.xlu1 %1430 }
 0x473   : > { %1279 = vrot.lane.b32.xlu0 %v5377_v21, %s4334_s24 }
 0x474   : > { %1679 = vrot.lane.b32.xlu1 %v5406_v60, %s4336_s29 }
 0x475   : > { %v5935_v19 = vpop.permute.xlu0 %1589 }
 0x476   : > { %11441 = vst [vmem:[#allocation136_spill] sm:$0xff] %v5935_v19  ;;  %v1435_v49 = vpop.permute.xlu1 %1434 }
 0x477   : > { %1283 = vrot.lane.b32.xlu0 %v5385_v11, %s4334_s24 }
 0x478   : > { %1490 = vrot.lane.b32.xlu1 %v5341_v36, %s4335_s28 }
 0x479   : > { %v5944_v7 = vpop.permute.xlu0 %1400 }
 0x47a   : > { %11442 = vst [vmem:[#allocation137_spill] sm:$0xff] %v5944_v7  ;;  %v1624_v19 = vpop.permute.xlu1 %1623 }
 0x47b   : > { %1287 = vrot.lane.b32.xlu0 %v5393_v51, %s4334_s24  ;;  %v5955_v11 = vsel %vm1167_vm1, %v1624_v19, %v5539_v12  ;;  %v5962_v7 = vsel %vm1167_vm1, %v5539_v12, %v1624_v19  ;;  %v5969_v51 = vsel %vm1492_vm2, %v5499_v58, %v1431_v42  ;;  %v5981_v12 = vsel %vm1492_vm2, %v5507_v1, %v1435_v49 }
 0x47c   : > { %11443 = vst [vmem:[#allocation138_spill] sm:$0xff] %v5955_v11  ;;  %11445 = vst [vmem:[#allocation140_spill] sm:$0xff] %v5962_v7  ;;  %1683 = vrot.lane.b32.xlu1 %v5341_v36, %s4336_s29  ;;  %v3398_v19 = vsub.f32 %v5955_v11, %v5969_v51  ;;  %v5988_v36 = vsel %vm1492_vm2, %v1435_v49, %v5507_v1 }
 0x47d   : > { %v5957_v4 = vpop.permute.xlu0 %1593  ;;  %11446 = vst [vmem:[#allocation141_spill] sm:$0xff] %v5981_v12  ;;  %11447 = vst [vmem:[#allocation142_spill] sm:$0xff] %v5988_v36 }
 0x47e   : > { %11444 = vst [vmem:[#allocation139_spill] sm:$0xff] %v5957_v4  ;;  %v5976_v4 = vsel %vm1492_vm2, %v1431_v42, %v5499_v58  ;;  %v1628_v21 = vpop.permute.xlu1 %1627 }
 0x47f   : > { %1291 = vrot.lane.b32.xlu0 %v5403_v52, %s4334_s24  ;;  %v3399_v52 = vsub.f32 %v5962_v7, %v5976_v4  ;;  %v5995_v58 = vsel %vm1167_vm1, %v5551_v14, %v1628_v21  ;;  %v6000_v42 = vsel %vm1167_vm1, %v1628_v21, %v5551_v14 }
 0x480   : > { %11448 = vst [vmem:[#allocation143_spill] sm:$0xff] %v5995_v58  ;;  %11449 = vst [vmem:[#allocation144_spill] sm:$0xff] %v6000_v42  ;;  %v3402_v53 = vsub.f32 %v6000_v42, %v5981_v12  ;;  %v3403_v49 = vsub.f32 %v5995_v58, %v5988_v36 }
 0x481   : > { %v6002_v60 = vpop.permute.xlu0 %1404 }
 0x482   : > { %11450 = vst [vmem:[#allocation145_spill] sm:$0xff] %v6002_v60  ;;  %v1439_v1 = vpop.permute.xlu1 %1438  ;;  %4282 = vmaxabs.init.f32.vacc2 %v3398_v19, %v3402_v53  ;;  %4265 = vmaxabs.init.f32.vacc1 %v3399_v52, %v3403_v49 }
 0x483   : > { %1295 = vrot.lane.b32.xlu0 %v5409_v16, %s4334_s24  ;;  %v6029_v52 = vsel %vm1492_vm2, %v5515_v20, %v1439_v1  ;;  %v6034_v53 = vsel %vm1492_vm2, %v1439_v1, %v5515_v20 }
 0x484   : > { %11455 = vst [vmem:[#allocation150_spill] sm:$0xff] %v6029_v52  ;;  %11456 = vst [vmem:[#allocation151_spill] sm:$0xff] %v6034_v53 }
 0x485   : > { %v6010_v23 = vpop.permute.xlu0 %1597 }
 0x486   : > { %11451 = vst [vmem:[#allocation146_spill] sm:$0xff] %v6010_v23  ;;  %v1632_v14 = vpop.permute.xlu1 %1631 }
 0x487   : > { %1428 = vrot.lane.b32.xlu0 %v5791_v33, %s4335_s28  ;;  %v6017_v21 = vsel %vm1167_vm1, %v5563_v37, %v1632_v14  ;;  %v6022_v60 = vsel %vm1167_vm1, %v1632_v14, %v5563_v37 }
 0x488   : > { %11452 = vst [vmem:[#allocation147_spill] sm:$0xff] %v6017_v21  ;;  %11453 = vst [vmem:[#allocation148_spill] sm:$0xff] %v6022_v60  ;;  %v3406_v19 = vsub.f32 %v6022_v60, %v6029_v52  ;;  %v3407_v49 = vsub.f32 %v6017_v21, %v6034_v53 }
 0x489   : > { %v6024_v16 = vpop.permute.xlu0 %1408 }
 0x48a   : > { %11454 = vst [vmem:[#allocation149_spill] sm:$0xff] %v6024_v16  ;;  %v1443_v37 = vpop.permute.xlu1 %1442 }
 0x48b   : > { %1432 = vrot.lane.b32.xlu0 %v5811_v31, %s4335_s28  ;;  %v6066_v53 = vsel %vm1492_vm2, %v1443_v37, %v5527_v29 }
 0x48c   : > { %11462 = vst [vmem:[#allocation157_spill] sm:$0xff] %v6066_v53 }
 0x48d   : > { %v6042_v14 = vpop.permute.xlu0 %1601 }
 0x48e   : > { %11457 = vst [vmem:[#allocation152_spill] sm:$0xff] %v6042_v14  ;;  %v1636_v16 = vpop.permute.xlu1 %1635  ;;  %v6061_v14 = vsel %vm1492_vm2, %v5527_v29, %v1443_v37 }
 0x48f   : > { %1621 = vrot.lane.b32.xlu0 %v5791_v33, %s4336_s29  ;;  %v6049_v20 = vsel %vm1167_vm1, %v5575_v27, %v1636_v16  ;;  %v6054_v1 = vsel %vm1167_vm1, %v1636_v16, %v5575_v27  ;;  %11461 = vst [vmem:[#allocation156_spill] sm:$0xff] %v6061_v14  ;;  %v1143_v33 = vand.u32 15, %v5942_v13 }
 0x490   : > { %11458 = vst [vmem:[#allocation153_spill] sm:$0xff] %v6049_v20  ;;  %11459 = vst [vmem:[#allocation154_spill] sm:$0xff] %v6054_v1  ;;  %v3410_v52 = vsub.f32 %v6054_v1, %v6061_v14  ;;  %v3411_v36 = vsub.f32 %v6049_v20, %v6066_v53 }
 0x491   : > { %v6056_v23 = vpop.permute.xlu0 %1412  ;;  %vm6271_vm4 = vcmp.eq.s32.totalorder %v1143_v33, 0  ;;  %vm6376_vm6 = vcmp.eq.s32.totalorder %v1143_v33, 15 }
 0x492   : > { %11460 = vst [vmem:[#allocation155_spill] sm:$0xff] %v6056_v23  ;;  %v1447_v27 = vpop.permute.xlu1 %1446  ;;  %4283 = vmaxabs.f32.vacc2 %v3406_v19, %v3410_v52  ;;  %4266 = vmaxabs.f32.vacc1 %v3407_v49, %v3411_v36  ;;  %vm9390_vm10 = vmor %vm1167_vm1, %vm6271_vm4 }
 0x493   : > { %1625 = vrot.lane.b32.xlu0 %v5811_v31, %s4336_s29  ;;  %v6093_v36 = vsel %vm1492_vm2, %v5587_v6, %v1447_v27  ;;  %v6098_v52 = vsel %vm1492_vm2, %v1447_v27, %v5587_v6  ;;  %vm9790_vm13 = vmor %vm1167_vm1, %vm6376_vm6 }
 0x494   : > { %11467 = vst [vmem:[#allocation162_spill] sm:$0xff] %v6093_v36  ;;  %11468 = vst [vmem:[#allocation163_spill] sm:$0xff] %v6098_v52 }
 0x495   : > { %v6074_v16 = vpop.permute.xlu0 %1605 }
 0x496   : > { %11463 = vst [vmem:[#allocation158_spill] sm:$0xff] %v6074_v16  ;;  %v1640_v23 = vpop.permute.xlu1 %1639 }
 0x497   : > { %1436 = vrot.lane.b32.xlu0 %v5831_v59, %s4335_s28  ;;  %v6081_v29 = vsel %vm1167_vm1, %v5595_v24, %v1640_v23  ;;  %v6086_v37 = vsel %vm1167_vm1, %v1640_v23, %v5595_v24 }
 0x498   : > { %11464 = vst [vmem:[#allocation159_spill] sm:$0xff] %v6081_v29  ;;  %11465 = vst [vmem:[#allocation160_spill] sm:$0xff] %v6086_v37  ;;  %v3414_v19 = vsub.f32 %v6086_v37, %v6093_v36  ;;  %v3415_v49 = vsub.f32 %v6081_v29, %v6098_v52 }
 0x499   : > { %v6088_v53 = vpop.permute.xlu0 %1416 }
 0x49a   : > { %11466 = vst [vmem:[#allocation161_spill] sm:$0xff] %v6088_v53  ;;  %v1451_v23 = vpop.permute.xlu1 %1450 }
 0x49b   : > { %1629 = vrot.lane.b32.xlu0 %v5831_v59, %s4336_s29  ;;  %v6130_v52 = vsel %vm1492_vm2, %v1451_v23, %v5603_v32 }
 0x49c   : > { %11474 = vst [vmem:[#allocation169_spill] sm:$0xff] %v6130_v52 }
 0x49d   : > { %v6106_v24 = vpop.permute.xlu0 %1609 }
 0x49e   : > { %11469 = vst [vmem:[#allocation164_spill] sm:$0xff] %v6106_v24  ;;  %v1644_v53 = vpop.permute.xlu1 %1643  ;;  %v6125_v24 = vsel %vm1492_vm2, %v5603_v32, %v1451_v23  ;;  %v6147_v23 = vsel %vm1299_vm3, %v5553_v15, %v5799_v38 }
 0x49f   : > { %1440 = vrot.lane.b32.xlu0 %v5843_v2, %s4335_s28  ;;  %v6113_v6 = vsel %vm1167_vm1, %v5611_v3, %v1644_v53  ;;  %v6118_v27 = vsel %vm1167_vm1, %v1644_v53, %v5611_v3  ;;  %11473 = vst [vmem:[#allocation168_spill] sm:$0xff] %v6125_v24 }
 0x4a0   : > { %11470 = vst [vmem:[#allocation165_spill] sm:$0xff] %v6113_v6  ;;  %11471 = vst [vmem:[#allocation166_spill] sm:$0xff] %v6118_v27  ;;  %v3418_v36 = vsub.f32 %v6118_v27, %v6125_v24  ;;  %v3419_v14 = vsub.f32 %v6113_v6, %v6130_v52  ;;  %v6197_v52 = vsel %vm1299_vm3, %v5597_v40, %v5819_v46 }
 0x4a1   : > { %v6120_v16 = vpop.permute.xlu0 %1420 }
 0x4a2   : > { %11472 = vst [vmem:[#allocation167_spill] sm:$0xff] %v6120_v16  ;;  %v1455_v3 = vpop.permute.xlu1 %1454  ;;  %4284 = vmaxabs.f32.vacc2 %v3414_v19, %v3418_v36  ;;  %4267 = vmaxabs.f32.vacc1 %v3415_v49, %v3419_v14 }
 0x4a3   : > { %1633 = vrot.lane.b32.xlu0 %v5843_v2, %s4336_s29  ;;  %v6164_v19 = vsel %vm1492_vm2, %v5619_v9, %v1455_v3  ;;  %v6169_v49 = vsel %vm1492_vm2, %v1455_v3, %v5619_v9  ;;  %v2805_v9 = vsub.f32 %v6147_v23, %v5537_v25  ;;  %v2813_v25 = vsub.f32 %v6197_v52, %v5561_v43 }
 0x4a4   : > { %11479 = vst [vmem:[#allocation174_spill] sm:$0xff] %v6164_v19  ;;  %11480 = vst [vmem:[#allocation175_spill] sm:$0xff] %v6169_v49  ;;  %v6210_v2 = vadd.s32 128, %v5942_v13  ;;  %v6229_v43 = vsel %vm1299_vm3, %v5621_v5, %v5839_v35  ;;  %v12467_v13 = vld [vmem:[#allocation45_spill] sm:$0xff] }
 0x4a5   : > { %v6138_v53 = vpop.permute.xlu0 %1613  ;;  %v2869_v49 = vand.u32 2147483647, %v2805_v9 }
 0x4a6   : > { %11475 = vst [vmem:[#allocation170_spill] sm:$0xff] %v6138_v53  ;;  %v1648_v32 = vpop.permute.xlu1 %1647  ;;  %v6175_v53 = vsel %vm1299_vm3, %v5529_v30, %v5787_v56  ;;  %11483 = vst [vmem:[#allocation178_spill] sm:$0xff] %v6210_v2 }
 0x4a7   : > { %1444 = vrot.lane.b32.xlu0 %v5855_v18, %s4335_s28  ;;  %v6152_v16 = vsel %vm1167_vm1, %v5627_v0, %v1648_v32  ;;  %v6157_v14 = vsel %vm1167_vm1, %v1648_v32, %v5627_v0  ;;  %v6181_v0 = vsel %vm1299_vm3, %v5577_v44, %v5807_v22 }
 0x4a8   : > { %11476 = vst [vmem:[#allocation171_spill] sm:$0xff] %v6152_v16  ;;  %11477 = vst [vmem:[#allocation172_spill] sm:$0xff] %v6157_v14  ;;  %v3422_v32 = vsub.f32 %v6157_v14, %v6164_v19  ;;  %v2801_v19 = vsub.f32 %v6175_v53, %v5525_v26 }
 0x4a9   : > { %v6159_v36 = vpop.permute.xlu0 %1424 }
 0x4aa   : > { %11478 = vst [vmem:[#allocation173_spill] sm:$0xff] %v6159_v36  ;;  %v6191_v3 = vpop.permute.xlu1 %1458  ;;  %v2809_v36 = vsub.f32 %v6181_v0, %v5549_v48  ;;  %v2865_v9 = vand.u32 2147483647, %v2801_v19 }
 0x4ab   : > { %1637 = vrot.lane.b32.xlu0 %v5855_v18, %s4336_s29  ;;  %11481 = vst [vmem:[#allocation176_spill] sm:$0xff] %v6191_v3  ;;  %v6235_v59 = vsel %vm1492_vm2, %v5635_v61, %v6191_v3 }
 0x4ac   : > { %v2873_v12 = vand.u32 2147483647, %v2809_v36  ;;  %11486 = vst [vmem:[#allocation181_spill] sm:$0xff] %v6235_v59  ;;  %v6246_v36 = vsel %vm1299_vm3, %v5799_v38, %v5553_v15  ;;  %v2958_v19 = vmax.f32.f32 %v2869_v49, %v2865_v9  ;;  %v6267_v49 = vsel %vm1299_vm3, %v5807_v22, %v5577_v44 }
 0x4ad   : > { %v6199_v24 = vpop.permute.xlu0 %1617  ;;  %v3208_v15 = vsub.f32 %v6054_v1, %v6246_v36  ;;  %v6279_v1 = vsel %vm1299_vm3, %v5819_v46, %v5597_v40  ;;  %v3209_v44 = vsub.f32 %v6049_v20, %v6147_v23  ;;  %v3212_v46 = vsub.f32 %v6086_v37, %v6267_v49 }
 0x4ae   : > { %11482 = vst [vmem:[#allocation177_spill] sm:$0xff] %v6199_v24  ;;  %v1652_v18 = vpop.permute.xlu1 %1651  ;;  %v6216_v24 = vsel %vm1299_vm3, %v5613_v50, %v5827_v55  ;;  %v2960_v9 = vmax.f32.f32 %v2958_v19, %v2873_v12  ;;  %v6291_v12 = vsel %vm1299_vm3, %v5827_v55, %v5613_v50  ;;  %v6311_v50 = vsel %vm1299_vm3, %v5637_v45, %v5851_v41 }
 0x4af   : > { %1448 = vrot.lane.b32.xlu0 %v5867_v54, %s4335_s28  ;;  %v6221_v48 = vsel %vm1167_vm1, %v1652_v18, %v5643_v63  ;;  %v2817_v3 = vsub.f32 %v6216_v24, %v5573_v34  ;;  %11491 = vst [vmem:[#allocation184_spill] sm:$0xff] %v6311_v50  ;;  %v3216_v55 = vsub.f32 %v6118_v27, %v6279_v1 }
 0x4b0   : > { %11484 = vst [vmem:[#allocation179_spill] sm:$0xff] %v6221_v48  ;;  %v3426_v31 = vsub.f32 %v6221_v48, %v6235_v59  ;;  %v6256_v59 = vsel %vm1299_vm3, %v5787_v56, %v5529_v30  ;;  %v11488_v56 = vmov 0  ;;  %v3220_v27 = vsub.f32 %v6157_v14, %v6291_v12 }
 0x4b1   : > { %v6223_v26 = vpop.permute.xlu0 %1235  ;;  %v3204_v30 = vsub.f32 %v6022_v60, %v6256_v59  ;;  %v11489_v56 = vsel %vm6271_vm4, 4294967295, %v11488_v56  ;;  %v2881_v19 = vand.u32 2147483647, %v2817_v3  ;;  %v3221_v37 = vsub.f32 %v6152_v16, %v6216_v24  ;;  %v11526_v60 = vld [vmem:[#allocation67_spill] sm:$0xff] }
 0x4b2   : > { %11485 = vst [vmem:[#allocation180_spill] sm:$0xff] %v6223_v26  ;;  %v2877_v26 = vand.u32 2147483647, %v2813_v25  ;;  %v6250_v61 = vpop.permute.xlu1 %1462  ;;  %v1150_v25 = vand.u32 15, %v6210_v2  ;;  %11490 = vst [vmem:[#allocation183_spill] sm:$0xff] %v11489_v56  ;;  %v3205_v2 = vsub.f32 %v6017_v21, %v6175_v53  ;;  %4285 = vmaxabs.f32.vacc2 %v3422_v32, %v3426_v31 }
 0x4b3   : > { %1641 = vrot.lane.b32.xlu0 %v5867_v54, %s4336_s29  ;;  %11487 = vst [vmem:[#allocation182_spill] sm:$0xff] %v6250_v61  ;;  %v2821_v54 = vsub.f32 %v6229_v43, %v5585_v57  ;;  %v6299_v31 = vsel %vm1299_vm3, %v5839_v35, %v5621_v5  ;;  %v11493_v35 = vld [vmem:[#allocation82_spill] sm:$0xff]  ;;  %4299 = vmaxabs.init.f32.vacc3 %v3208_v15, %v3204_v30  ;;  %v11499_v15 = vmov 0 }
 0x4b4   : > { %v2962_v22 = vmax.f32.f32 %v2960_v9, %v2877_v26  ;;  %v3213_v26 = vsub.f32 %v6081_v29, %v6181_v0  ;;  %v6326_v3 = vsel %vm1492_vm2, %v11493_v35, %v6250_v61  ;;  %v6335_v29 = vsel %vm1167_vm1, %v5643_v63, %v1652_v18  ;;  %v11496_v61 = vld [vmem:[#allocation65_spill] sm:$0xff] }
 0x4b5   : > { %v1238_v38 = vpop.permute.xlu0 %1237  ;;  %v6301_v32 = vand.u32 2147483647, %v2821_v54  ;;  %v3217_v54 = vsub.f32 %v6113_v6, %v6197_v52  ;;  %11494 = vst [vmem:[#allocation186_spill] sm:$0xff] %v6326_v3  ;;  %11495 = vst [vmem:[#allocation187_spill] sm:$0xff] %v6335_v29  ;;  %v3224_v14 = vsub.f32 %v6221_v48, %v6299_v31  ;;  %vm6353_vm5 = vcmp.eq.s32.totalorder %v1150_v25, 0 }
 0x4b6   : > { %v1656_v40 = vpop.permute.xlu1 %1655  ;;  %v1333_v35 = vsel %vm1299_vm3, %v1238_v38, %v11496_v61  ;;  %v11500_v15 = vsel %vm6353_vm5, 4294967295, %v11499_v15  ;;  %v6361_v30 = vsel %vm1299_vm3, %v5851_v41, %v5637_v45  ;;  %4248 = vmaxabs.init.f32.vacc0 %v3205_v2, %v3209_v44 }
 0x4b7   : > { %1452 = vrot.lane.b32.xlu0 %v5879_v47, %s4335_s28  ;;  %v6318_v5 = vsel %vm1167_vm1, %v1656_v40, %v5663_v39  ;;  %v6349_v18 = vsel %vm1167_vm1, %v5663_v39, %v1656_v40  ;;  %11501 = vst [vmem:[#allocation189_spill] sm:$0xff] %v11500_v15  ;;  %v3225_v6 = vsub.f32 %v6335_v29, %v6229_v43  ;;  %v11502_v39 = vld [vmem:[#allocation22_spill] sm:$0xff]  ;;  %vm6380_vm7 = vcmp.eq.s32.totalorder %v1150_v25, 15  ;;  %v11511_v25 = vld [vmem:[#allocation83_spill] sm:$0xff] }
 0x4b8   : > { %11492 = vst [vmem:[#allocation185_spill] sm:$0xff] %v6318_v5  ;;  %11497 = vst [vmem:[#allocation65_spill] sm:$0xff] %v6349_v18  ;;  %v1755_v40 = vsel %vm6271_vm4, %v11502_v39, %v1333_v35  ;;  %v3229_v3 = vsub.f32 %v6349_v18, %v6311_v50  ;;  %v2964_v45 = vmax.f32.f32 %v2962_v22, %v2881_v19  ;;  %v11506_v41 = vmov 0  ;;  %v11509_v22 = vld [vmem:[#allocation48_spill] sm:$0xff] }
 0x4b9   : > { %v6305_v9 = vpop.permute.xlu0 %1239  ;;  %4300 = vmaxabs.f32.vacc3 %v3212_v46, %v3216_v55  ;;  %v11507_v41 = vsel %vm6380_vm7, 4294967295, %v11506_v41  ;;  %4249 = vmaxabs.f32.vacc0 %v3213_v26, %v3217_v54  ;;  %v1301_v44 = vsel %vm1299_vm3, %v11496_v61, %v1238_v38  ;;  %v11510_v46 = vld [vmem:[#allocation123_spill] sm:$0xff] }
 0x4ba   : > { %v6351_v63 = vpop.permute.xlu1 %1466  ;;  %11508 = vst [vmem:[#allocation191_spill] sm:$0xff] %v11507_v41  ;;  %v2966_v33 = vmax.f32.f32 %v2964_v45, %v6301_v32  ;;  %v2825_v19 = vsub.f32 %v6311_v50, %v11509_v22  ;;  %v6397_v55 = vsel %vm1299_vm3, %v11511_v25, %v11510_v46  ;;  %v6403_v61 = vsel %vm1299_vm3, %v11510_v46, %v11511_v25  ;;  %v11529_v22 = vld [vmem:[#allocation96_spill] sm:$0xff] }
 0x4bb   : > { %1645 = vrot.lane.b32.xlu0 %v5879_v47, %s4336_s29  ;;  %11498 = vst [vmem:[#allocation188_spill] sm:$0xff] %v6351_v63  ;;  %v3228_v63 = vsub.f32 %v6318_v5, %v6361_v30  ;;  %v1887_v5 = vadd.f32 %v1755_v40, %v11502_v39  ;;  %11512 = vst [vmem:[#allocation123_spill] sm:$0xff] %v6397_v55  ;;  %v1823_v32 = vsel %vm6376_vm6, %v11502_v39, %v5969_v51  ;;  %v11518_v51 = vld [vmem:[#allocation50_spill] sm:$0xff]  ;;  %v12340_v2 = vlaneseq }
 0x4bc   : > { %4301 = vmaxabs.f32.vacc3 %v3220_v27, %v3224_v14  ;;  %v3196_v54 = vsub.f32 %v5955_v11, %v1333_v35  ;;  %v3197_v40 = vsub.f32 %v5962_v7, %v1301_v44  ;;  %4250 = vmaxabs.f32.vacc0 %v3221_v37, %v3225_v6  ;;  %v11519_v14 = vld [vmem:[#allocation125_spill] sm:$0xff]  ;;  %v11520_v37 = vld [vmem:[#allocation88_spill] sm:$0xff] }
 0x4bd   : > { %v1242_v47 = vpop.permute.xlu0 %1241  ;;  %v6413_v45 = vadd.f32 %v1887_v5, %v1823_v32  ;;  %v2829_v27 = vsub.f32 %v6397_v55, %v11518_v51  ;;  %v6433_v6 = vsel %vm1299_vm3, %v11520_v37, %v11519_v14  ;;  %v11522_v5 = vld [vmem:[#allocation92_spill] sm:$0xff]  ;;  %v2792_v20 = vsub.f32 %v1333_v35, %v11502_v39  ;;  %v11528_v39 = vld [vmem:[#allocation54_spill] sm:$0xff] }
 0x4be   : > { %v1660_v26 = vpop.permute.xlu1 %1659  ;;  %11521 = vst [vmem:[#allocation125_spill] sm:$0xff] %v6433_v6  ;;  %v6439_v32 = vsel %vm1299_vm3, %v11522_v5, %v5887_v10  ;;  %v6457_v7 = vsel %vm1299_vm3, %v11526_v60, %v1242_v47  ;;  %v6462_v11 = vsel %vm1299_vm3, %v1242_v47, %v11526_v60  ;;  %v11527_v51 = vld [vmem:[#allocation52_spill] sm:$0xff]  ;;  %v6475_v50 = vsel %vm1299_vm3, %v11529_v22, %v5899_v17 }
 0x4bf   : > { %1456 = vrot.lane.b32.xlu0 %v5891_v8, %s4335_s28  ;;  %11514 = vst [vmem:[#allocation192_spill] sm:$0xff] %v6413_v45  ;;  %11523 = vst [vmem:[#allocation88_spill] sm:$0xff] %v6439_v32  ;;  %2015 = vrot.lane.b32.xlu1 %v6413_v45, %s4336_s29  ;;  %v2833_v35 = vsub.f32 %v6433_v6, %v11527_v51  ;;  %4302 = vmaxabs.f32.vacc3 %v3228_v63, %v3196_v54  ;;  %v11537_v51 = vld [vmem:[#allocation130_spill] sm:$0xff]  ;;  %v11538_v6 = vld [vmem:[#allocation100_spill] sm:$0xff] }
 0x4c0   : > { %11530 = vst [vmem:[#allocation67_spill] sm:$0xff] %v6475_v50  ;;  %4251 = vmaxabs.f32.vacc0 %v3229_v3, %v3197_v40  ;;  %v3200_v3 = vsub.f32 %v6000_v42, %v6462_v11  ;;  %v11541_v17 = vld [vmem:[#allocation56_spill] sm:$0xff] }
 0x4c1   : > { %v6374_v48 = vpop.permute.xlu0 %1243 }
 0x4c2   : > { %11503 = vst [vmem:[#allocation190_spill] sm:$0xff] %v6374_v48 }
 0x4c3   : > { %1649 = vrot.lane.b32.xlu0 %v5891_v8, %s4336_s29  ;;  %v11515_v8 = vld [vmem:[#allocation89_spill] sm:$0xff] }
 0x4c4   : > { %v6418_v46 = vsel %vm1167_vm1, %v11515_v8, %v1660_v26  ;;  %v6423_v25 = vsel %vm1167_vm1, %v1660_v26, %v11515_v8  ;;  %v11524_v8 = vld [vmem:[#allocation84_spill] sm:$0xff] }
 0x4c5   : > { %v6405_v38 = vpop.permute.xlu0 %1247  ;;  %11516 = vst [vmem:[#allocation89_spill] sm:$0xff] %v6418_v46  ;;  %11517 = vst [vmem:[#allocation193_spill] sm:$0xff] %v6423_v25  ;;  %v1756_v26 = vsel %vm6353_vm5, %v11524_v8, %v1301_v44  ;;  %v3232_v18 = vsub.f32 %v6423_v25, %v6403_v61  ;;  %v3233_v29 = vsub.f32 %v6418_v46, %v6397_v55  ;;  %v2889_v46 = vand.u32 2147483647, %v2825_v19 }
 0x4c6   : > { %11513 = vst [vmem:[#allocation83_spill] sm:$0xff] %v6405_v38  ;;  %v2793_v21 = vsub.f32 %v1301_v44, %v11524_v8  ;;  %v2893_v25 = vand.u32 2147483647, %v2829_v27  ;;  %v1888_v44 = vadd.f32 %v1756_v26, %v11524_v8  ;;  %v2837_v55 = vsub.f32 %v6439_v32, %v11528_v39  ;;  %v11533_v27 = vld [vmem:[#allocation9_spill] sm:$0xff] }
 0x4c7   : > { %1460 = vrot.lane.b32.xlu0 %v5903_v28, %s4335_s28  ;;  %v1824_v60 = vsel %vm6380_vm7, %v11524_v8, %v5976_v4  ;;  %v6483_v19 = vand.u32 2147483647, %v2792_v20  ;;  %v2796_v26 = vsub.f32 %v6462_v11, %v11533_v27  ;;  %v3201_v4 = vsub.f32 %v5995_v58, %v6457_v7 }
 0x4c8   : > { %v6489_v32 = vand.u32 2147483647, %v2793_v21  ;;  %v6499_v20 = vadd.f32 %v1888_v44, %v1824_v60  ;;  %v2968_v40 = vmax.f32.f32 %v2966_v33, %v2889_v46  ;;  %v2897_v8 = vand.u32 2147483647, %v2833_v35  ;;  %v11542_v33 = vld [vmem:[#allocation132_spill] sm:$0xff]  ;;  %v11545_v44 = vld [vmem:[#allocation66_spill] sm:$0xff] }
 0x4c9   : > { %v6450_v16 = vpop.permute.xlu0 %1251  ;;  %11532 = vst [vmem:[#allocation194_spill] sm:$0xff] %v6483_v19  ;;  %v6495_v63 = vand.u32 2147483647, %v2796_v26  ;;  %v6505_v21 = vsel %vm1299_vm3, %v11538_v6, %v11537_v51  ;;  %v2841_v26 = vsub.f32 %v6475_v50, %v11541_v17  ;;  %v11543_v46 = vld [vmem:[#allocation104_spill] sm:$0xff]  ;;  %v6526_v60 = vsel %vm1299_vm3, %v11545_v44, %v6305_v9  ;;  %v11548_v17 = vld [vmem:[#allocation134_spill] sm:$0xff] }
 0x4ca   : > { %11525 = vst [vmem:[#allocation92_spill] sm:$0xff] %v6450_v16  ;;  %11536 = vst [vmem:[#allocation196_spill] sm:$0xff] %v6499_v20  ;;  %2079 = vrot.lane.b32.xlu1 %v6499_v20, %s4336_s29  ;;  %v6520_v35 = vsel %vm1299_vm3, %v11543_v46, %v11542_v33  ;;  %4303 = vmaxabs.f32.vacc3 %v3232_v18, %v3200_v3  ;;  %4252 = vmaxabs.f32.vacc0 %v3233_v29, %v3201_v4  ;;  %v11551_v19 = vld [vmem:[#allocation180_spill] sm:$0xff]  ;;  %v11552_v33 = vld [vmem:[#allocation63_spill] sm:$0xff] }
 0x4cb   : > { %1653 = vrot.lane.b32.xlu0 %v5903_v28, %s4336_s29  ;;  %v11534_v28 = vld [vmem:[#allocation86_spill] sm:$0xff]  ;;  %11535 = vst [vmem:[#allocation195_spill] sm:$0xff] %v6495_v63  ;;  %11539 = vst [vmem:[#allocation130_spill] sm:$0xff] %v6505_v21  ;;  %v6542_v18 = vsel %vm1299_vm3, %v11552_v33, %v11551_v19  ;;  %v11556_v29 = vld [vmem:[#allocation11_spill] sm:$0xff] }
 0x4cc   : > { %v2797_v39 = vsub.f32 %v6457_v7, %v11534_v28  ;;  %11544 = vst [vmem:[#allocation104_spill] sm:$0xff] %v6520_v35  ;;  %11546 = vst [vmem:[#allocation66_spill] sm:$0xff] %v6526_v60  ;;  %v2795_v4 = vsub.f32 %v6526_v60, %v11556_v29  ;;  %v11558_v33 = vld [vmem:[#allocation45_spill] sm:$0xff]  ;;  %v11586_v60 = vld [vmem:[#allocation142_spill] sm:$0xff] }
 0x4cd   : > { %v6477_v47 = vpop.permute.xlu0 %1255 }
 0x4ce   : > { %11531 = vst [vmem:[#allocation96_spill] sm:$0xff] %v6477_v47  ;;  %v2861_v54 = vand.u32 2147483647, %v2797_v39  ;;  %v11547_v39 = vld [vmem:[#allocation58_spill] sm:$0xff]  ;;  %2275 = vrot.lane.b32.xlu1 %v6413_v45, %s4337_s30  ;;  %v2859_v29 = vand.u32 2147483647, %v2795_v4 }
 0x4cf   : > { %1464 = vrot.lane.b32.xlu0 %v5361_v62, %s4335_s28  ;;  %v2845_v50 = vsub.f32 %v6505_v21, %v11547_v39  ;;  %v11557_v21 = vld [vmem:[#allocation51_spill] sm:$0xff] }
 0x4d0   : > { %v2956_v58 = vmax.f32.f32 %v6489_v32, %v2861_v54  ;;  %v2970_v32 = vmax.f32.f32 %v2968_v40, %v2893_v25  ;;  %v2901_v54 = vand.u32 2147483647, %v2837_v55  ;;  %v2905_v55 = vand.u32 2147483647, %v2841_v26  ;;  %v11555_v40 = vld [vmem:[#allocation60_spill] sm:$0xff] }
 0x4d1   : > { %v6507_v42 = vpop.permute.xlu0 %1259  ;;  %v2909_v19 = vand.u32 2147483647, %v2845_v50 }
 0x4d2   : > { %11540 = vst [vmem:[#allocation100_spill] sm:$0xff] %v6507_v42  ;;  %v11549_v42 = vld [vmem:[#allocation108_spill] sm:$0xff]  ;;  %v2957_v25 = vmax.f32.f32 %v2897_v8, %v2970_v32  ;;  %v11559_v8 = vld [vmem:[#allocation115_spill] sm:$0xff]  ;;  %2339 = vrot.lane.b32.xlu1 %v6499_v20, %s4337_s30 }
 0x4d3   : > { %1657 = vrot.lane.b32.xlu0 %v5361_v62, %s4336_s29  ;;  %v6536_v63 = vsel %vm1299_vm3, %v11549_v42, %v11548_v17  ;;  %11553 = vst [vmem:[#allocation108_spill] sm:$0xff] %v6542_v18  ;;  %v2849_v62 = vsub.f32 %v6520_v35, %v11555_v40  ;;  %v2791_v26 = vsub.f32 %v6542_v18, %v11559_v8 }
 0x4d4   : > { %11550 = vst [vmem:[#allocation134_spill] sm:$0xff] %v6536_v63  ;;  %v2959_v39 = vmax.f32.f32 %v2957_v25, %v2901_v54  ;;  %v1759_v25 = vsel %vm6271_vm4, %v11533_v27, %v6462_v11  ;;  %v11566_v11 = vld [vmem:[#allocation53_spill] sm:$0xff] }
 0x4d5   : > { %v6544_v3 = vpop.permute.xlu0 %1263  ;;  %v2913_v35 = vand.u32 2147483647, %v2849_v62  ;;  %v2855_v50 = vand.u32 2147483647, %v2791_v26  ;;  %v1891_v20 = vadd.f32 %v1759_v25, %v11533_v27  ;;  %v11567_v26 = vld [vmem:[#allocation12_spill] sm:$0xff] }
 0x4d6   : > { %11554 = vst [vmem:[#allocation197_spill] sm:$0xff] %v6544_v3  ;;  %v2853_v3 = vsub.f32 %v6536_v63, %v11558_v33  ;;  %v2961_v40 = vmax.f32.f32 %v2959_v39, %v2905_v55  ;;  %v11561_v33 = vld [vmem:[#allocation68_spill] sm:$0xff] }
 0x4d7   : > { %1468 = vrot.lane.b32.xlu0 %v11557_v21, %s4335_s28  ;;  %v6572_v62 = vsel %vm1299_vm3, %v11561_v33, %v6374_v48  ;;  %v2955_v4 = vmax.f32.f32 %v2855_v50, %v2859_v29  ;;  %v11571_v29 = vld [vmem:[#allocation141_spill] sm:$0xff] }
 0x4d8   : > { %v2963_v45 = vmax.f32.f32 %v2961_v40, %v2909_v19  ;;  %v2917_v54 = vand.u32 2147483647, %v2853_v3  ;;  %11562 = vst [vmem:[#allocation199_spill] sm:$0xff] %v6572_v62  ;;  %v11564_v19 = vld [vmem:[#allocation71_spill] sm:$0xff]  ;;  %v2799_v63 = vsub.f32 %v6572_v62, %v11567_v26  ;;  %v1827_v50 = vsel %vm6376_vm6, %v11533_v27, %v11571_v29  ;;  %v11575_v29 = vld [vmem:[#allocation14_spill] sm:$0xff] }
 0x4d9   : > { %v6558_v32 = vpop.permute.xlu0 %1267  ;;  %v6581_v3 = vsel %vm1299_vm3, %v11564_v19, %v6405_v38  ;;  %v6603_v38 = vadd.f32 %v1891_v20, %v1827_v50 }
 0x4da   : > { %11560 = vst [vmem:[#allocation198_spill] sm:$0xff] %v6558_v32  ;;  %v2965_v55 = vmax.f32.f32 %v2963_v45, %v2913_v35  ;;  %11565 = vst [vmem:[#allocation201_spill] sm:$0xff] %v6581_v3 }
 0x4db   : > { %1661 = vrot.lane.b32.xlu0 %v11557_v21, %s4336_s29  ;;  %v11568_v21 = vld [vmem:[#allocation74_spill] sm:$0xff]  ;;  %11574 = vst [vmem:[#allocation141_spill] sm:$0xff] %v6603_v38  ;;  %2019 = vrot.lane.b32.xlu1 %v6603_v38, %s4336_s29 }
 0x4dc   : > { %v2967_v40 = vmax.f32.f32 %v2965_v55, %v2917_v54  ;;  %v6591_v45 = vsel %vm1299_vm3, %v11568_v21, %v6450_v16  ;;  %v11573_v55 = vld [vmem:[#allocation41_spill] sm:$0xff]  ;;  %v2863_v21 = vand.u32 2147483647, %v2799_v63 }
 0x4dd   : > { %v6574_v39 = vpop.permute.xlu0 %1271  ;;  %11569 = vst [vmem:[#allocation202_spill] sm:$0xff] %v6591_v45  ;;  %v2804_v32 = vsub.f32 %v6246_v36, %v11573_v55 }
 0x4de   : > { %11563 = vst [vmem:[#allocation200_spill] sm:$0xff] %v6574_v39  ;;  %v2969_v25 = vmax.f32.f32 %v2967_v40, %v2955_v4  ;;  %v11572_v39 = vld [vmem:[#allocation13_spill] sm:$0xff]  ;;  %v2807_v4 = vsub.f32 %v6591_v45, %v11575_v29  ;;  %v11576_v40 = vld [vmem:[#allocation40_spill] sm:$0xff]  ;;  %v11582_v45 = vld [vmem:[#allocation47_spill] sm:$0xff] }
 0x4df   : > { %1472 = vrot.lane.b32.xlu0 %v11566_v11, %s4335_s28  ;;  %v2803_v54 = vsub.f32 %v6581_v3, %v11572_v39  ;;  %v2800_v39 = vsub.f32 %v6256_v59, %v11576_v40  ;;  %v11577_v3 = vld [vmem:[#allocation44_spill] sm:$0xff]  ;;  %v2868_v19 = vand.u32 2147483647, %v2804_v32  ;;  %v1763_v29 = vsel %vm6271_vm4, %v11576_v40, %v6256_v59 }
 0x4e0   : > { %v2971_v16 = vmax.f32.f32 %v2969_v25, %v2956_v58  ;;  %v2808_v20 = vsub.f32 %v6267_v49, %v11577_v3  ;;  %v11579_v58 = vld [vmem:[#allocation77_spill] sm:$0xff]  ;;  %v11581_v25 = vld [vmem:[#allocation55_spill] sm:$0xff]  ;;  %v11585_v59 = vld [vmem:[#allocation24_spill] sm:$0xff]  ;;  %v1895_v18 = vadd.f32 %v1763_v29, %v11576_v40 }
 0x4e1   : > { %v6593_v35 = vpop.permute.xlu0 %1275  ;;  %v6626_v63 = vsel %vm1299_vm3, %v11579_v58, %v6477_v47  ;;  %v2864_v47 = vand.u32 2147483647, %v2800_v39  ;;  %v1767_v58 = vsel %vm6271_vm4, %v11573_v55, %v6246_v36  ;;  %v2816_v33 = vsub.f32 %v6291_v12, %v11585_v59  ;;  %v11588_v39 = vld [vmem:[#allocation70_spill] sm:$0xff] }
 0x4e2   : > { %11570 = vst [vmem:[#allocation203_spill] sm:$0xff] %v6593_v35  ;;  %v1760_v35 = vsel %vm6353_vm5, %v11534_v28, %v6457_v7  ;;  %11580 = vst [vmem:[#allocation205_spill] sm:$0xff] %v6626_v63  ;;  %v2973_v32 = vmax.f32.f32 %v2971_v16, %v2863_v21  ;;  %v2872_v62 = vand.u32 2147483647, %v2808_v20  ;;  %v1828_v16 = vsel %vm6380_vm7, %v11534_v28, %v11586_v60 }
 0x4e3   : > { %1665 = vrot.lane.b32.xlu0 %v11566_v11, %s4336_s29  ;;  %v2867_v11 = vand.u32 2147483647, %v2803_v54  ;;  %v1892_v7 = vadd.f32 %v1760_v35, %v11534_v28  ;;  %v2812_v54 = vsub.f32 %v6279_v1, %v11582_v45  ;;  %v11583_v35 = vld [vmem:[#allocation69_spill] sm:$0xff]  ;;  %v1768_v36 = vsel %vm6353_vm5, %v11588_v39, %v6147_v23 }
 0x4e4   : > { %v1764_v26 = vsel %vm6353_vm5, %v11583_v35, %v6175_v53  ;;  %v2921_v20 = vmax.f32.f32 %v2868_v19, %v2864_v47  ;;  %v11591_v47 = vld [vmem:[#allocation72_spill] sm:$0xff]  ;;  %v1775_v19 = vsel %vm6271_vm4, %v11582_v45, %v6279_v1  ;;  %v2880_v29 = vand.u32 2147483647, %v2816_v33  ;;  %v11596_v33 = vld [vmem:[#allocation57_spill] sm:$0xff] }
 0x4e5   : > { %v6619_v50 = vpop.permute.xlu0 %1279  ;;  %v2975_v21 = vmax.f32.f32 %v2973_v32, %v2867_v11  ;;  %v6662_v8 = vadd.f32 %v1892_v7, %v1828_v16  ;;  %v2876_v60 = vand.u32 2147483647, %v2812_v54  ;;  %v11590_v11 = vld [vmem:[#allocation26_spill] sm:$0xff]  ;;  %v6670_v23 = vadd.f32 %v1764_v26, %v11583_v35  ;;  %v11593_v54 = vld [vmem:[#allocation20_spill] sm:$0xff] }
 0x4e6   : > { %11578 = vst [vmem:[#allocation204_spill] sm:$0xff] %v6619_v50  ;;  %v2871_v50 = vand.u32 2147483647, %v2807_v4  ;;  %v11587_v4 = vld [vmem:[#allocation15_spill] sm:$0xff]  ;;  %v2820_v32 = vsub.f32 %v6299_v31, %v11590_v11  ;;  %v2923_v7 = vmax.f32.f32 %v2921_v20, %v2872_v62  ;;  %v2824_v26 = vsub.f32 %v6361_v30, %v11593_v54 }
 0x4e7   : > { %1476 = vrot.lane.b32.xlu0 %v11581_v25, %s4335_s28  ;;  %v2811_v53 = vsub.f32 %v6626_v63, %v11587_v4  ;;  %11589 = vst [vmem:[#allocation142_spill] sm:$0xff] %v6662_v8  ;;  %2083 = vrot.lane.b32.xlu1 %v6662_v8, %s4336_s29  ;;  %v6701_v62 = vsel %vm1299_vm3, %v11519_v14, %v11520_v37 }
 0x4e8   : > { %v2977_v4 = vmax.f32.f32 %v2975_v21, %v2871_v50  ;;  %v6689_v21 = vadd.f32 %v1767_v58, %v11573_v55  ;;  %11595 = vst [vmem:[#allocation209_spill] sm:$0xff] %v6701_v62  ;;  %v1779_v14 = vsel %vm6271_vm4, %v11585_v59, %v6291_v12 }
 0x4e9   : > { %v6644_v48 = vpop.permute.xlu0 %1283  ;;  %v2875_v63 = vand.u32 2147483647, %v2811_v53  ;;  %v2884_v53 = vand.u32 2147483647, %v2820_v32 }
 0x4ea   : > { %11584 = vst [vmem:[#allocation206_spill] sm:$0xff] %v6644_v48  ;;  %v1771_v48 = vsel %vm6271_vm4, %v11577_v3, %v6267_v49  ;;  %v1772_v49 = vsel %vm6353_vm5, %v11591_v47, %v6181_v0  ;;  %v6692_v0 = vadd.f32 %v1768_v36, %v11588_v39  ;;  %v11598_v36 = vld [vmem:[#allocation28_spill] sm:$0xff] }
 0x4eb   : > { %1669 = vrot.lane.b32.xlu0 %v11581_v25, %s4336_s29  ;;  %v6686_v16 = vmax.f32.f32 %v2977_v4, %v2875_v63  ;;  %v6695_v1 = vadd.f32 %v1771_v48, %v11577_v3  ;;  %v11597_v63 = vld [vmem:[#allocation73_spill] sm:$0xff]  ;;  %v2925_v4 = vmax.f32.f32 %v2923_v7, %v2876_v60  ;;  %v2828_v48 = vsub.f32 %v6403_v61, %v11598_v36 }
 0x4ec   : > { %v1776_v58 = vsel %vm6353_vm5, %v11597_v63, %v6197_v52  ;;  %v6712_v20 = vadd.f32 %v1772_v49, %v11591_v47  ;;  %v6725_v52 = vsel %vm1299_vm3, %v5887_v10, %v11522_v5  ;;  %2279 = vrot.lane.b32.xlu1 %v6603_v38, %s4337_s30  ;;  %v1780_v60 = vsel %vm6353_vm5, %v5573_v34, %v6216_v24  ;;  %v11602_v24 = vld [vmem:[#allocation128_spill] sm:$0xff] }
 0x4ed   : > { %v6682_v50 = vpop.permute.xlu0 %1287  ;;  %11594 = vst [vmem:[#allocation208_spill] sm:$0xff] %v6686_v16  ;;  %11599 = vst [vmem:[#allocation210_spill] sm:$0xff] %v6725_v52  ;;  %v2927_v32 = vmax.f32.f32 %v2925_v4, %v2880_v29  ;;  %v2888_v49 = vand.u32 2147483647, %v2824_v26  ;;  %v6738_v7 = vadd.f32 %v1776_v58, %v11597_v63  ;;  %v1783_v10 = vsel %vm6271_vm4, %v11590_v11, %v6299_v31  ;;  %v11604_v4 = vld [vmem:[#allocation32_spill] sm:$0xff]  ;;  %v11605_v31 = vld [vmem:[#allocation150_spill] sm:$0xff] }
 0x4ee   : > { %11592 = vst [vmem:[#allocation207_spill] sm:$0xff] %v6682_v50  ;;  %v6715_v50 = vadd.f32 %v1775_v19, %v11582_v45  ;;  %v11601_v19 = vld [vmem:[#allocation30_spill] sm:$0xff]  ;;  %v1784_v5 = vsel %vm6353_vm5, %v5585_v57, %v6229_v43  ;;  %v6752_v29 = vsel %vm1299_vm3, %v11602_v24, %v11529_v22  ;;  %v2892_v58 = vand.u32 2147483647, %v2828_v48  ;;  %v11607_v48 = vld [vmem:[#allocation48_spill] sm:$0xff] }
 0x4ef   : > { %1480 = vrot.lane.b32.xlu0 %v11596_v33, %s4335_s28  ;;  %v2832_v12 = vsub.f32 %v6701_v62, %v11601_v19  ;;  %11603 = vst [vmem:[#allocation128_spill] sm:$0xff] %v6752_v29  ;;  %v2929_v26 = vmax.f32.f32 %v2927_v32, %v2884_v53  ;;  %v2836_v38 = vsub.f32 %v6725_v52, %v11604_v4  ;;  %v11606_v53 = vld [vmem:[#allocation184_spill] sm:$0xff] }
 0x4f0   : > { %v6763_v43 = vadd.f32 %v1779_v14, %v11585_v59  ;;  %v6766_v25 = vadd.f32 %v1780_v60, %v5573_v34  ;;  %v1787_v22 = vsel %vm6271_vm4, %v11593_v54, %v6361_v30  ;;  %v1788_v32 = vsel %vm6353_vm5, %v11607_v48, %v11606_v53  ;;  %2343 = vrot.lane.b32.xlu1 %v6662_v8, %s4337_s30  ;;  %v11611_v8 = vld [vmem:[#allocation132_spill] sm:$0xff] }
 0x4f1   : > { %v6729_v37 = vpop.permute.xlu0 %1291  ;;  %v2931_v14 = vmax.f32.f32 %v2929_v26, %v2888_v49  ;;  %v6786_v30 = vsel %vm1299_vm3, %v11537_v51, %v11538_v6  ;;  %v6789_v16 = vadd.f32 %v1783_v10, %v11590_v11  ;;  %v6792_v53 = vadd.f32 %v1784_v5, %v5585_v57  ;;  %v11614_v26 = vld [vmem:[#allocation59_spill] sm:$0xff]  ;;  %v11880_v56 = vld [vmem:[#allocation204_spill] sm:$0xff] }
 0x4f2   : > { %11600 = vst [vmem:[#allocation211_spill] sm:$0xff] %v6729_v37  ;;  %v1831_v37 = vsel %vm6376_vm6, %v11576_v40, %v11605_v31  ;;  %v2896_v31 = vand.u32 2147483647, %v2832_v12  ;;  %11610 = vst [vmem:[#allocation184_spill] sm:$0xff] %v6786_v30  ;;  %v6798_v49 = vsel %vm1299_vm3, %v11611_v8, %v11543_v46  ;;  %v6805_v51 = vadd.f32 %v1787_v22, %v11593_v54  ;;  %v11619_v8 = vld [vmem:[#allocation50_spill] sm:$0xff] }
 0x4f3   : > { %1673 = vrot.lane.b32.xlu0 %v11596_v33, %s4336_s29  ;;  %v11609_v33 = vld [vmem:[#allocation34_spill] sm:$0xff]  ;;  %11612 = vst [vmem:[#allocation132_spill] sm:$0xff] %v6798_v49  ;;  %v6800_v12 = vadd.f32 %v1895_v18, %v1831_v37  ;;  %v2933_v6 = vmax.f32.f32 %v2931_v14, %v2892_v58  ;;  %v2900_v10 = vand.u32 2147483647, %v2836_v38  ;;  %v1791_v46 = vsel %vm6271_vm4, %v11598_v36, %v6403_v61  ;;  %v11618_v18 = vld [vmem:[#allocation123_spill] sm:$0xff]  ;;  %v11620_v58 = vld [vmem:[#allocation36_spill] sm:$0xff] }
 0x4f4   : > { %v2840_v60 = vsub.f32 %v6752_v29, %v11609_v33  ;;  %11615 = vst [vmem:[#allocation213_spill] sm:$0xff] %v6805_v51  ;;  %v6812_v29 = vadd.f32 %v1788_v32, %v11607_v48  ;;  %v1792_v37 = vsel %vm6353_vm5, %v11619_v8, %v11618_v18  ;;  %v2844_v38 = vsub.f32 %v6786_v30, %v11620_v58  ;;  %v11622_v14 = vld [vmem:[#allocation38_spill] sm:$0xff]  ;;  %v11624_v58 = vld [vmem:[#allocation144_spill] sm:$0xff] }
 0x4f5   : > { %v6778_v24 = vpop.permute.xlu0 %1295  ;;  %11613 = vst [vmem:[#allocation212_spill] sm:$0xff] %v6800_v12  ;;  %2023 = vrot.lane.b32.xlu1 %v6800_v12, %s4336_s29  ;;  %v1795_v32 = vsel %vm6271_vm4, %v11601_v19, %v6701_v62  ;;  %v2848_v33 = vsub.f32 %v6798_v49, %v11622_v14  ;;  %v6838_v18 = vsel %vm1299_vm3, %v11548_v17, %v11549_v42  ;;  %v11629_v42 = vld [vmem:[#allocation125_spill] sm:$0xff]  ;;  %v11633_v14 = vld [vmem:[#allocation84_spill] sm:$0xff] }
 0x4f6   : > { %11608 = vst [vmem:[#allocation150_spill] sm:$0xff] %v6778_v24  ;;  %v11616_v24 = vld [vmem:[#allocation151_spill] sm:$0xff]  ;;  %v2904_v61 = vand.u32 2147483647, %v2840_v60  ;;  %11623 = vst [vmem:[#allocation214_spill] sm:$0xff] %v6838_v18  ;;  %v2998_v30 = vsub.f32 %v11624_v58, %v11533_v27  ;;  %v6852_v60 = vadd.f32 %v1791_v46, %v11598_v36  ;;  %v6855_v17 = vadd.f32 %v1792_v37, %v11619_v8  ;;  %v11634_v49 = vld [vmem:[#allocation140_spill] sm:$0xff] }
 0x4f7   : > { %1484 = vrot.lane.b32.xlu0 %v11614_v26, %s4335_s28  ;;  %v1832_v5 = vsel %vm6380_vm7, %v11583_v35, %v11616_v24  ;;  %11617 = vst [vmem:[#allocation151_spill] sm:$0xff] %v6812_v29  ;;  %v2920_v24 = vmax.f32.f32 %v2896_v31, %v2933_v6  ;;  %v6847_v31 = vpop.permute.xlu1 %1470  ;;  %v11630_v6 = vld [vmem:[#allocation52_spill] sm:$0xff]  ;;  %v2995_v62 = vsub.f32 %v11634_v49, %v11633_v14 }
 0x4f8   : > { %v6845_v51 = vadd.f32 %v6670_v23, %v1832_v5  ;;  %11628 = vst [vmem:[#allocation215_spill] sm:$0xff] %v6855_v17  ;;  %v1796_v58 = vsel %vm6353_vm5, %v11630_v6, %v11629_v42  ;;  %v11631_v23 = vld [vmem:[#allocation22_spill] sm:$0xff]  ;;  %v3062_v49 = vand.u32 2147483647, %v2998_v30  ;;  %v11641_v17 = vld [vmem:[#allocation61_spill] sm:$0xff] }
 0x4f9   : > { %v6826_v22 = vpop.permute.xlu0 %1428  ;;  %v11632_v5 = vld [vmem:[#allocation138_spill] sm:$0xff] }
 0x4fa   : > { %11621 = vst [vmem:[#allocation123_spill] sm:$0xff] %v6826_v22  ;;  %v11625_v22 = vld [vmem:[#allocation143_spill] sm:$0xff]  ;;  %11626 = vst [vmem:[#allocation144_spill] sm:$0xff] %v6845_v51  ;;  %v2994_v27 = vsub.f32 %v11632_v5, %v11631_v23  ;;  %2087 = vrot.lane.b32.xlu1 %v6845_v51, %s4336_s29  ;;  %v2912_v23 = vand.u32 2147483647, %v2848_v33 }
 0x4fb   : > { %v2999_v29 = vsub.f32 %v11625_v22, %v11534_v28  ;;  %11627 = vst [vmem:[#allocation143_spill] sm:$0xff] %v6847_v31  ;;  %1677 = vrot.lane.b32.xlu0 %v11614_v26, %s4336_s29  ;;  %v2922_v22 = vmax.f32.f32 %v2920_v24, %v2900_v10  ;;  %v2908_v28 = vand.u32 2147483647, %v2844_v38  ;;  %v11635_v26 = vld [vmem:[#allocation148_spill] sm:$0xff]  ;;  %v6872_v31 = vadd.f32 %v1795_v32, %v11601_v19  ;;  %v11638_v10 = vld [vmem:[#allocation19_spill] sm:$0xff] }
 0x4fc   : > { %v3002_v46 = vsub.f32 %v11635_v26, %v11576_v40  ;;  %v2852_v38 = vsub.f32 %v6838_v18, %v11638_v10  ;;  %v11639_v24 = vld [vmem:[#allocation147_spill] sm:$0xff]  ;;  %v11640_v26 = vld [vmem:[#allocation154_spill] sm:$0xff]  ;;  %v1799_v32 = vsel %vm6271_vm4, %v11604_v4, %v6725_v52  ;;  %v6895_v18 = vpop.permute.xlu1 %1663 }
 0x4fd   : > { %v6869_v37 = vpop.permute.xlu0 %1432  ;;  %11637 = vst [vmem:[#allocation140_spill] sm:$0xff] %v6872_v31  ;;  %v2924_v42 = vmax.f32.f32 %v2922_v22, %v2904_v61  ;;  %v3003_v5 = vsub.f32 %v11639_v24, %v11583_v35  ;;  %v3063_v14 = vand.u32 2147483647, %v2999_v29  ;;  %v3006_v40 = vsub.f32 %v11640_v26, %v11573_v55  ;;  %v11643_v61 = vld [vmem:[#allocation88_spill] sm:$0xff]  ;;  %v11644_v22 = vld [vmem:[#allocation54_spill] sm:$0xff]  ;;  %v11645_v29 = vld [vmem:[#allocation153_spill] sm:$0xff] }
 0x4fe   : > { %11636 = vst [vmem:[#allocation138_spill] sm:$0xff] %v6869_v37  ;;  %v6883_v37 = vadd.f32 %v1796_v58, %v11630_v6  ;;  %v1800_v33 = vsel %vm6353_vm5, %v11644_v22, %v11643_v61  ;;  %v3007_v30 = vsub.f32 %v11645_v29, %v11588_v39  ;;  %v3058_v26 = vand.u32 2147483647, %v2994_v27  ;;  %2283 = vrot.lane.b32.xlu1 %v6800_v12, %s4337_s30  ;;  %v11646_v31 = vld [vmem:[#allocation160_spill] sm:$0xff]  ;;  %v11647_v6 = vld [vmem:[#allocation159_spill] sm:$0xff] }
 0x4ff   : > { %1488 = vrot.lane.b32.xlu0 %v11641_v17, %s4335_s28  ;;  %v2926_v24 = vmax.f32.f32 %v2924_v42, %v2908_v28  ;;  %v3059_v35 = vand.u32 2147483647, %v2995_v62  ;;  %v3066_v10 = vand.u32 2147483647, %v3002_v46  ;;  %v6901_v52 = vand.u32 2147483647, %v2852_v38 }
 0x500   : > { %11642 = vst [vmem:[#allocation148_spill] sm:$0xff] %v6883_v37  ;;  %v3067_v37 = vand.u32 2147483647, %v3003_v5  ;;  %v3010_v61 = vsub.f32 %v11646_v31, %v11577_v3  ;;  %v3011_v29 = vsub.f32 %v11647_v6, %v11591_v47  ;;  %v3121_v27 = vmax.f32.f32 %v3058_v26, %v3062_v49  ;;  %v11648_v46 = vld [vmem:[#allocation156_spill] sm:$0xff]  ;;  %v11649_v5 = vld [vmem:[#allocation157_spill] sm:$0xff]  ;;  %v11650_v6 = vld [vmem:[#allocation166_spill] sm:$0xff] }
 0x501   : > { %v6899_v58 = vpop.permute.xlu0 %1621  ;;  %v6907_v28 = vmax.f32.f32 %v2926_v24, %v2912_v23  ;;  %v3158_v62 = vmax.f32.f32 %v3059_v35, %v3063_v14  ;;  %v3070_v42 = vand.u32 2147483647, %v3006_v40  ;;  %v1835_v38 = vsel %vm6376_vm6, %v11573_v55, %v11648_v46  ;;  %v11651_v49 = vld [vmem:[#allocation165_spill] sm:$0xff] }
 0x502   : > { %v1836_v31 = vsel %vm6380_vm7, %v11588_v39, %v11649_v5  ;;  %v3071_v12 = vand.u32 2147483647, %v3007_v30  ;;  %v3014_v23 = vsub.f32 %v11650_v6, %v11582_v45  ;;  %v6922_v35 = vadd.f32 %v1799_v32, %v11604_v4  ;;  %2347 = vrot.lane.b32.xlu1 %v6845_v51, %s4337_s30  ;;  %v6945_v39 = vpop.permute.xlu1 %1474  ;;  %v11655_v51 = vld [vmem:[#allocation163_spill] sm:$0xff]  ;;  %v11662_v30 = vld [vmem:[#allocation176_spill] sm:$0xff] }
 0x503   : > { %1681 = vrot.lane.b32.xlu0 %v11641_v17, %s4336_s29  ;;  %v6925_v40 = vadd.f32 %v1800_v33, %v11644_v22  ;;  %v3123_v14 = vmax.f32.f32 %v3121_v27, %v3066_v10  ;;  %v3015_v24 = vsub.f32 %v11651_v49, %v11597_v63  ;;  %v3160_v46 = vmax.f32.f32 %v3158_v62, %v3067_v37  ;;  %v11654_v27 = vld [vmem:[#allocation162_spill] sm:$0xff] }
 0x504   : > { %v3074_v5 = vand.u32 2147483647, %v3010_v61  ;;  %v3075_v6 = vand.u32 2147483647, %v3011_v29  ;;  %v6936_v32 = vadd.f32 %v6689_v21, %v1835_v38  ;;  %v6939_v33 = vadd.f32 %v6692_v0, %v1836_v31  ;;  %v11656_v61 = vld [vmem:[#allocation168_spill] sm:$0xff]  ;;  %v11657_v29 = vld [vmem:[#allocation169_spill] sm:$0xff] }
 0x505   : > { %v6931_v26 = vpop.permute.xlu0 %1625  ;;  %v3125_v10 = vmax.f32.f32 %v3123_v14, %v3070_v42  ;;  %v1839_v49 = vsel %vm6376_vm6, %v11577_v3, %v11654_v27  ;;  %v3162_v55 = vmax.f32.f32 %v3160_v46, %v3071_v12  ;;  %v1840_v37 = vsel %vm6380_vm7, %v11591_v47, %v11655_v51  ;;  %v11658_v38 = vld [vmem:[#allocation172_spill] sm:$0xff]  ;;  %v11659_v31 = vld [vmem:[#allocation171_spill] sm:$0xff] }
 0x506   : > { %11652 = vst [vmem:[#allocation147_spill] sm:$0xff] %v6936_v32  ;;  %11653 = vst [vmem:[#allocation154_spill] sm:$0xff] %v6939_v33  ;;  %v1843_v21 = vsel %vm6376_vm6, %v11582_v45, %v11656_v61  ;;  %v3078_v0 = vand.u32 2147483647, %v3014_v23  ;;  %v1844_v62 = vsel %vm6380_vm7, %v11597_v63, %v11657_v29  ;;  %v3079_v42 = vand.u32 2147483647, %v3015_v24  ;;  %2027 = vrot.lane.b32.xlu1 %v6936_v32, %s4336_s29 }
 0x507   : > { %v3018_v12 = vsub.f32 %v11658_v38, %v11585_v59  ;;  %v3019_v14 = vsub.f32 %v11659_v31, %v5573_v34  ;;  %v6968_v46 = vadd.f32 %v6695_v1, %v1839_v49  ;;  %v3127_v23 = vmax.f32.f32 %v3125_v10, %v3074_v5  ;;  %v11661_v61 = vld [vmem:[#allocation80_spill] sm:$0xff]  ;;  %v11663_v29 = vld [vmem:[#allocation174_spill] sm:$0xff]  ;;  %v11664_v63 = vld [vmem:[#allocation179_spill] sm:$0xff] }
 0x508   : > { %v3164_v27 = vmax.f32.f32 %v3162_v55, %v3075_v6  ;;  %v1540_v24 = vsel %vm1492_vm2, %v11662_v30, %v11661_v61  ;;  %v1847_v38 = vsel %vm6376_vm6, %v11585_v59, %v11663_v29  ;;  %v3022_v45 = vsub.f32 %v11664_v63, %v11590_v11  ;;  %v11665_v47 = vld [vmem:[#allocation187_spill] sm:$0xff]  ;;  %v6996_v59 = vpop.permute.xlu1 %1667 }
 0x509   : > { %v6965_v51 = vpop.permute.xlu0 %1436  ;;  %11660 = vst [vmem:[#allocation153_spill] sm:$0xff] %v6968_v46  ;;  %v3023_v3 = vsub.f32 %v11665_v47, %v5585_v57  ;;  %v3427_v1 = vsub.f32 %v11665_v47, %v1540_v24  ;;  %v6984_v55 = vadd.f32 %v6712_v20, %v1840_v37  ;;  %v6987_v5 = vadd.f32 %v6715_v50, %v1843_v21  ;;  %v11669_v49 = vld [vmem:[#allocation175_spill] sm:$0xff]  ;;  %v11671_v20 = vld [vmem:[#allocation181_spill] sm:$0xff] }
 0x50a   : > { %v6990_v30 = vadd.f32 %v6738_v7, %v1844_v62  ;;  %v3129_v6 = vmax.f32.f32 %v3127_v23, %v3078_v0  ;;  %v3166_v10 = vmax.f32.f32 %v3164_v27, %v3079_v42  ;;  %v1848_v63 = vsel %vm6380_vm7, %v5573_v34, %v11669_v49  ;;  %2091 = vrot.lane.b32.xlu1 %v6939_v33, %s4336_s29  ;;  %v11673_v42 = vld [vmem:[#allocation63_spill] sm:$0xff]  ;;  %v11677_v23 = vld [vmem:[#allocation82_spill] sm:$0xff] }
 0x50b   : > { %11666 = vst [vmem:[#allocation160_spill] sm:$0xff] %v6984_v55  ;;  %11667 = vst [vmem:[#allocation159_spill] sm:$0xff] %v6987_v5  ;;  %v3082_v61 = vand.u32 2147483647, %v3018_v12  ;;  %v3083_v29 = vand.u32 2147483647, %v3019_v14  ;;  %v7003_v50 = vadd.f32 %v6763_v43, %v1847_v38  ;;  %v1851_v7 = vsel %vm6376_vm6, %v11590_v11, %v11671_v20 }
 0x50c   : > { %11668 = vst [vmem:[#allocation156_spill] sm:$0xff] %v6990_v30  ;;  %v1852_v37 = vsel %vm6380_vm7, %v5585_v57, %v1540_v24  ;;  %v7016_v21 = vsel %vm1299_vm3, %v6305_v9, %v11545_v44  ;;  %v3086_v0 = vand.u32 2147483647, %v3022_v45  ;;  %v3087_v62 = vand.u32 2147483647, %v3023_v3  ;;  %v11674_v43 = vld [vmem:[#allocation180_spill] sm:$0xff] }
 0x50d   : > { %v7000_v47 = vpop.permute.xlu0 %1629  ;;  %11670 = vst [vmem:[#allocation157_spill] sm:$0xff] %v7003_v50  ;;  %11672 = vst [vmem:[#allocation166_spill] sm:$0xff] %v7016_v21  ;;  %v7022_v12 = vsel %vm1299_vm3, %v11674_v43, %v11673_v42  ;;  %v7025_v14 = vadd.f32 %v6766_v25, %v1848_v63  ;;  %v11678_v27 = vld [vmem:[#allocation182_spill] sm:$0xff]  ;;  %v11679_v9 = vld [vmem:[#allocation185_spill] sm:$0xff]  ;;  %v3131_v38 = vmax.f32.f32 %v3129_v6, %v3082_v61 }
 0x50e   : > { %11675 = vst [vmem:[#allocation165_spill] sm:$0xff] %v7022_v12  ;;  %v7031_v24 = vsel %vm1492_vm2, %v11678_v27, %v11677_v23  ;;  %v3026_v44 = vsub.f32 %v11679_v9, %v11593_v54  ;;  %v11680_v3 = vld [vmem:[#allocation65_spill] sm:$0xff]  ;;  %v3168_v20 = vmax.f32.f32 %v3166_v10, %v3083_v29  ;;  %v11681_v43 = vld [vmem:[#allocation8_spill] sm:$0xff]  ;;  %2287 = vrot.lane.b32.xlu1 %v6936_v32, %s4337_s30  ;;  %v11685_v57 = vld [vmem:[#allocation186_spill] sm:$0xff] }
 0x50f   : > { %11676 = vst [vmem:[#allocation162_spill] sm:$0xff] %v7025_v14  ;;  %v3027_v45 = vsub.f32 %v11680_v3, %v11607_v48  ;;  %v2794_v25 = vsub.f32 %v7016_v21, %v11681_v43  ;;  %v7046_v23 = vadd.f32 %v6789_v16, %v1851_v7  ;;  %v7049_v27 = vadd.f32 %v6792_v53, %v1852_v37  ;;  %v11686_v10 = vld [vmem:[#allocation21_spill] sm:$0xff]  ;;  %v7064_v53 = vpop.permute.xlu1 %1478  ;;  %v11688_v37 = vld [vmem:[#allocation108_spill] sm:$0xff] }
 0x510   : > { %v1855_v6 = vsel %vm6376_vm6, %v11593_v54, %v11685_v57  ;;  %v1753_v61 = vsel %vm6271_vm4, %v11686_v10, %v7022_v12  ;;  %v3133_v29 = vmax.f32.f32 %v3131_v38, %v3086_v0  ;;  %v3170_v42 = vmax.f32.f32 %v3168_v20, %v3087_v62  ;;  %v11689_v54 = vld [vmem:[#allocation115_spill] sm:$0xff]  ;;  %v11690_v20 = vld [vmem:[#allocation213_spill] sm:$0xff] }
 0x511   : > { %v7043_v63 = vpop.permute.xlu0 %1440  ;;  %11683 = vst [vmem:[#allocation168_spill] sm:$0xff] %v7046_v23  ;;  %11684 = vst [vmem:[#allocation169_spill] sm:$0xff] %v7049_v27  ;;  %v11687_v11 = vsub.f32 %v11659_v31, %v11669_v49  ;;  %v2790_v16 = vsub.f32 %v7022_v12, %v11686_v10  ;;  %v1856_v7 = vsel %vm6380_vm7, %v11607_v48, %v7031_v24  ;;  %v3090_v62 = vand.u32 2147483647, %v3026_v44 }
 0x512   : > { %11682 = vst [vmem:[#allocation163_spill] sm:$0xff] %v7043_v63  ;;  %v1754_v0 = vsel %vm6353_vm5, %v11689_v54, %v11688_v37  ;;  %v3091_v38 = vand.u32 2147483647, %v3027_v45  ;;  %v7075_v31 = vadd.f32 %v11690_v20, %v1855_v6  ;;  %v2858_v34 = vand.u32 2147483647, %v2794_v25  ;;  %2351 = vrot.lane.b32.xlu1 %v6939_v33, %s4337_s30  ;;  %v11695_v45 = vld [vmem:[#allocation193_spill] sm:$0xff] }
 0x513   : > { %4268 = vmaxabs.f32.vacc1 %v11687_v11, %v3427_v1  ;;  %v11692_v11 = vld [vmem:[#allocation188_spill] sm:$0xff]  ;;  %v11693_v1 = vld [vmem:[#allocation87_spill] sm:$0xff]  ;;  %v7086_v32 = vadd.f32 %v1753_v61, %v11686_v10  ;;  %v3030_v6 = vsub.f32 %v11695_v45, %v11598_v36  ;;  %v11696_v20 = vld [vmem:[#allocation89_spill] sm:$0xff]  ;;  %v7100_v33 = vadd.f32 %v1754_v0, %v11689_v54 }
 0x514   : > { %11691 = vst [vmem:[#allocation172_spill] sm:$0xff] %v7075_v31  ;;  %v1512_v49 = vsel %vm1492_vm2, %v11693_v1, %v11692_v11  ;;  %v1544_v44 = vsel %vm1492_vm2, %v11692_v11, %v11693_v1  ;;  %v3031_v17 = vsub.f32 %v11696_v20, %v11619_v8  ;;  %v11697_v25 = vld [vmem:[#allocation151_spill] sm:$0xff]  ;;  %v3135_v12 = vmax.f32.f32 %v3133_v29, %v3090_v62 }
 0x515   : > { %v7083_v48 = vpop.permute.xlu0 %1633  ;;  %v7097_v37 = vadd.f32 %v11697_v25, %v1856_v7  ;;  %v3434_v61 = vsub.f32 %v11695_v45, %v1512_v49  ;;  %v3172_v31 = vmax.f32.f32 %v3170_v42, %v3091_v38  ;;  %v1859_v11 = vsel %vm6376_vm6, %v11598_v36, %v1512_v49  ;;  %v11699_v7 = vld [vmem:[#allocation66_spill] sm:$0xff]  ;;  %v11700_v25 = vld [vmem:[#allocation11_spill] sm:$0xff]  ;;  %v11702_v49 = vld [vmem:[#allocation68_spill] sm:$0xff] }
 0x516   : > { %11694 = vst [vmem:[#allocation171_spill] sm:$0xff] %v7083_v48  ;;  %v2854_v48 = vand.u32 2147483647, %v2790_v16  ;;  %v3435_v1 = vsub.f32 %v11696_v20, %v1544_v44  ;;  %v1860_v63 = vsel %vm6380_vm7, %v11619_v8, %v1544_v44  ;;  %v1758_v0 = vsel %vm6353_vm5, %v11700_v25, %v11699_v7  ;;  %2031 = vrot.lane.b32.xlu1 %v6968_v46, %s4336_s29  ;;  %v11703_v44 = vld [vmem:[#allocation190_spill] sm:$0xff] }
 0x517   : > { %11698 = vst [vmem:[#allocation80_spill] sm:$0xff] %v7097_v37  ;;  %v7114_v37 = vpop.permute.xlu1 %1671  ;;  %v1757_v29 = vsel %vm6271_vm4, %v11681_v43, %v7016_v21  ;;  %v3094_v62 = vand.u32 2147483647, %v3030_v6  ;;  %v3095_v38 = vand.u32 2147483647, %v3031_v17  ;;  %v7128_v45 = vsel %vm1299_vm3, %v11703_v44, %v11702_v49  ;;  %v11707_v6 = vld [vmem:[#allocation215_spill] sm:$0xff] }
 0x518   : > { %v2918_v16 = vmax.f32.f32 %v2854_v48, %v2858_v34  ;;  %11704 = vst [vmem:[#allocation174_spill] sm:$0xff] %v7128_v45  ;;  %v7131_v34 = vadd.f32 %v6852_v60, %v1859_v11  ;;  %v11706_v48 = vld [vmem:[#allocation93_spill] sm:$0xff]  ;;  %v7146_v8 = vadd.f32 %v11707_v6, %v1860_v63  ;;  %v11709_v49 = vld [vmem:[#allocation143_spill] sm:$0xff]  ;;  %v7161_v36 = vadd.f32 %v1757_v29, %v11681_v43  ;;  %v11712_v6 = vld [vmem:[#allocation10_spill] sm:$0xff] }
 0x519   : > { %v7118_v42 = vpop.permute.xlu0 %1444  ;;  %v7137_v20 = vsel %vm1167_vm1, %v11706_v48, %v6895_v18  ;;  %v7143_v17 = vsel %vm1167_vm1, %v6895_v18, %v11706_v48  ;;  %v11710_v44 = vld [vmem:[#allocation91_spill] sm:$0xff]  ;;  %v7164_v18 = vadd.f32 %v1758_v0, %v11700_v25  ;;  %v11711_v63 = vmax.f32.f32 %v6907_v28, %v6901_v52 }
 0x51a   : > { %11701 = vst [vmem:[#allocation176_spill] sm:$0xff] %v7118_v42  ;;  %11705 = vst [vmem:[#allocation179_spill] sm:$0xff] %v7131_v34  ;;  %v7152_v60 = vsel %vm1492_vm2, %v11710_v44, %v11709_v49  ;;  %v7158_v11 = vsel %vm1492_vm2, %v11709_v49, %v11710_v44  ;;  %2095 = vrot.lane.b32.xlu1 %v6984_v55, %s4336_s29  ;;  %v3137_v49 = vmax.f32.f32 %v3135_v12, %v3094_v62  ;;  %v11714_v42 = vld [vmem:[#allocation52_spill] sm:$0xff] }
 0x51b   : > { %11708 = vst [vmem:[#allocation187_spill] sm:$0xff] %v7146_v8  ;;  %v2932_v48 = vmax.f32.f32 %v11711_v63, %v2918_v16  ;;  %v2798_v8 = vsub.f32 %v7128_v45, %v11712_v6  ;;  %v3174_v44 = vmax.f32.f32 %v3172_v31, %v3095_v38  ;;  %v3034_v29 = vsub.f32 %v7143_v17, %v11601_v19  ;;  %v11716_v31 = vld [vmem:[#allocation209_spill] sm:$0xff]  ;;  %v7192_v62 = vpop.permute.xlu1 %1482  ;;  %v11722_v16 = vld [vmem:[#allocation199_spill] sm:$0xff] }
 0x51c   : > { %v3035_v0 = vsub.f32 %v7137_v20, %v11714_v42  ;;  %v11715_v52 = vsub.f32 %v11679_v9, %v11685_v57  ;;  %v1863_v28 = vsel %vm6376_vm6, %v11601_v19, %v7152_v60  ;;  %v1864_v12 = vsel %vm6380_vm7, %v11714_v42, %v7158_v11  ;;  %v11718_v57 = vld [vmem:[#allocation194_spill] sm:$0xff]  ;;  %v11719_v9 = vld [vmem:[#allocation195_spill] sm:$0xff]  ;;  %v11721_v42 = vld [vmem:[#allocation125_spill] sm:$0xff] }
 0x51d   : > { %v7173_v34 = vpop.permute.xlu0 %1637  ;;  %v11717_v38 = vsub.f32 %v11680_v3, %v7031_v24  ;;  %v2862_v24 = vand.u32 2147483647, %v2798_v8  ;;  %v3098_v19 = vand.u32 2147483647, %v3034_v29  ;;  %v11729_v3 = vld [vmem:[#allocation123_spill] sm:$0xff] }
 0x51e   : > { %11713 = vst [vmem:[#allocation175_spill] sm:$0xff] %v7173_v34  ;;  %4286 = vmaxabs.f32.vacc2 %v11715_v52, %v3434_v61  ;;  %v11720_v61 = vmax.f32.f32 %v11718_v57, %v11719_v9  ;;  %v1761_v52 = vsel %vm6271_vm4, %v11712_v6, %v7128_v45  ;;  %v11723_v34 = vld [vmem:[#allocation12_spill] sm:$0xff]  ;;  %2291 = vrot.lane.b32.xlu1 %v6968_v46, %s4337_s30  ;;  %v11730_v45 = vld [vmem:[#allocation110_spill] sm:$0xff] }
 0x51f   : > { %4269 = vmaxabs.f32.vacc1 %v11717_v38, %v3435_v1  ;;  %v1762_v7 = vsel %vm6353_vm5, %v11723_v34, %v11722_v16  ;;  %v11725_v38 = vld [vmem:[#allocation140_spill] sm:$0xff]  ;;  %v3099_v16 = vand.u32 2147483647, %v3035_v0  ;;  %v7227_v8 = vadd.f32 %v1761_v52, %v11712_v6 }
 0x520   : > { %v7200_v63 = vmax.f32.f32 %v2932_v48, %v11720_v61  ;;  %v7221_v57 = vadd.f32 %v11725_v38, %v1863_v28  ;;  %v11727_v9 = vld [vmem:[#allocation148_spill] sm:$0xff]  ;;  %v1493_v1 = vsel %vm1492_vm2, %v11730_v45, %v11729_v3  ;;  %v1525_v46 = vsel %vm1492_vm2, %v11729_v3, %v11730_v45  ;;  %v11732_v38 = vld [vmem:[#allocation83_spill] sm:$0xff] }
 0x521   : > { %v7218_v48 = vpop.permute.xlu0 %1448  ;;  %v7224_v61 = vadd.f32 %v11727_v9, %v1864_v12  ;;  %v7238_v28 = vadd.f32 %v1762_v7, %v11723_v34  ;;  %v11731_v12 = vld [vmem:[#allocation71_spill] sm:$0xff]  ;;  %v1821_v0 = vsel %vm6376_vm6, %v11686_v10, %v1493_v1  ;;  %v7250_v9 = vpop.permute.xlu1 %1675  ;;  %v7259_v45 = vmax.f32.f32 %v3137_v49, %v3098_v19  ;;  %v11739_v19 = vld [vmem:[#allocation13_spill] sm:$0xff] }
 0x522   : > { %11724 = vst [vmem:[#allocation181_spill] sm:$0xff] %v7218_v48  ;;  %11726 = vst [vmem:[#allocation63_spill] sm:$0xff] %v7221_v57  ;;  %v7244_v29 = vsel %vm1299_vm3, %v11732_v38, %v11731_v12  ;;  %v2936_v52 = vmax.f32.f32 %v7200_v63, %v2862_v24  ;;  %2355 = vrot.lane.b32.xlu1 %v6984_v55, %s4337_s30  ;;  %v7261_v3 = vmax.f32.f32 %v3174_v44, %v3099_v16  ;;  %v11736_v12 = vld [vmem:[#allocation95_spill] sm:$0xff]  ;;  %v11737_v63 = vld [vmem:[#allocation42_spill] sm:$0xff] }
 0x523   : > { %11728 = vst [vmem:[#allocation180_spill] sm:$0xff] %v7224_v61  ;;  %11733 = vst [vmem:[#allocation82_spill] sm:$0xff] %v7244_v29  ;;  %v7253_v61 = vadd.f32 %v7086_v32, %v1821_v0  ;;  %v7267_v38 = vsel %vm1492_vm2, %v11736_v12, %v6945_v39  ;;  %v1822_v32 = vsel %vm6380_vm7, %v11689_v54, %v1525_v46  ;;  %v11738_v0 = vld [vmem:[#allocation201_spill] sm:$0xff] }
 0x524   : > { %v1765_v24 = vsel %vm6271_vm4, %v11737_v63, %v7244_v29  ;;  %v1766_v49 = vsel %vm6353_vm5, %v11739_v19, %v11738_v0  ;;  %v11740_v44 = vld [vmem:[#allocation117_spill] sm:$0xff]  ;;  %v2802_v55 = vsub.f32 %v7244_v29, %v11737_v63  ;;  %v7294_v57 = vsel %vm1492_vm2, %v6945_v39, %v11736_v12 }
 0x525   : > { %11734 = vst [vmem:[#allocation182_spill] sm:$0xff] %v7253_v61  ;;  %v7257_v7 = vpop.permute.xlu0 %1641  ;;  %v7284_v16 = vsel %vm1167_vm1, %v6899_v58, %v11740_v44  ;;  %2013 = vrot.lane.b32.xlu0 %v7253_v61, %s4336_s29  ;;  %v7300_v10 = vsel %vm1167_vm1, %v11740_v44, %v6899_v58  ;;  %v7307_v48 = vadd.f32 %v7100_v33, %v1822_v32  ;;  %v11747_v44 = vld [vmem:[#allocation118_spill] sm:$0xff] }
 0x526   : > { %11735 = vst [vmem:[#allocation185_spill] sm:$0xff] %v7257_v7  ;;  %11741 = vst [vmem:[#allocation65_spill] sm:$0xff] %v7284_v16  ;;  %v1867_v7 = vsel %vm6376_vm6, %v11604_v4, %v7267_v38  ;;  %2035 = vrot.lane.b32.xlu1 %v6987_v5, %s4336_s29  ;;  %v7314_v39 = vadd.f32 %v1765_v24, %v11737_v63  ;;  %v7317_v12 = vadd.f32 %v1766_v49, %v11739_v19  ;;  %v11749_v32 = vld [vmem:[#allocation74_spill] sm:$0xff]  ;;  %v7336_v49 = vpop.permute.xlu1 %1486 }
 0x527   : > { %11742 = vst [vmem:[#allocation186_spill] sm:$0xff] %v7300_v10  ;;  %11743 = vst [vmem:[#allocation213_spill] sm:$0xff] %v7307_v48  ;;  %v3396_v58 = vsub.f32 %v7284_v16, %v1493_v1  ;;  %v7324_v0 = vsel %vm1167_vm1, %v11747_v44, %v6931_v26  ;;  %v1868_v33 = vsel %vm6380_vm7, %v11644_v22, %v7294_v57  ;;  %v2866_v16 = vand.u32 2147483647, %v2802_v55 }
 0x528   : > { %11745 = vst [vmem:[#allocation87_spill] sm:$0xff] %v7314_v39  ;;  %11746 = vst [vmem:[#allocation193_spill] sm:$0xff] %v7317_v12  ;;  %v3397_v1 = vsub.f32 %v7300_v10, %v1525_v46  ;;  %v7343_v29 = vsel %vm1167_vm1, %v6931_v26, %v11747_v44  ;;  %v7348_v21 = vadd.f32 %v6922_v35, %v1867_v7  ;;  %v11755_v12 = vld [vmem:[#allocation138_spill] sm:$0xff]  ;;  %v11757_v26 = vld [vmem:[#allocation97_spill] sm:$0xff] }
 0x529   : > { %v7311_v54 = vpop.permute.xlu0 %1452  ;;  %11748 = vst [vmem:[#allocation89_spill] sm:$0xff] %v7324_v0  ;;  %11752 = vst [vmem:[#allocation68_spill] sm:$0xff] %v7336_v49  ;;  %2077 = vrot.lane.b32.xlu0 %v7307_v48, %s4336_s29  ;;  %v1708_v44 = vsel %vm1167_vm1, %v11757_v26, %v6996_v59  ;;  %v7366_v35 = vsel %vm1167_vm1, %v6996_v59, %v11757_v26  ;;  %v11761_v26 = vld [vmem:[#allocation202_spill] sm:$0xff]  ;;  %v11764_v39 = vld [vmem:[#allocation88_spill] sm:$0xff] }
 0x52a   : > { %11744 = vst [vmem:[#allocation188_spill] sm:$0xff] %v7311_v54  ;;  %v11750_v54 = vld [vmem:[#allocation92_spill] sm:$0xff]  ;;  %11753 = vst [vmem:[#allocation190_spill] sm:$0xff] %v7343_v29  ;;  %2099 = vrot.lane.b32.xlu1 %v6990_v30, %s4336_s29  ;;  %v3241_v63 = vsub.f32 %v1708_v44, %v11764_v39  ;;  %v7400_v49 = vpop.permute.xlu1 %1679 }
 0x52b   : > { %v7334_v24 = vsel %vm1299_vm3, %v11750_v54, %v11749_v32  ;;  %11754 = vst [vmem:[#allocation93_spill] sm:$0xff] %v7348_v21  ;;  %v11756_v54 = vld [vmem:[#allocation112_spill] sm:$0xff] }
 0x52c   : > { %11751 = vst [vmem:[#allocation151_spill] sm:$0xff] %v7334_v24  ;;  %v1495_v32 = vsel %vm1492_vm2, %v11756_v54, %v11755_v12  ;;  %v1527_v46 = vsel %vm1492_vm2, %v11755_v12, %v11756_v54  ;;  %v7375_v12 = vadd.f32 %v6925_v40, %v1868_v33  ;;  %v11760_v54 = vld [vmem:[#allocation43_spill] sm:$0xff]  ;;  %v3038_v40 = vsub.f32 %v7366_v35, %v11604_v4 }
 0x52d   : > { %v3400_v55 = vsub.f32 %v7343_v29, %v1495_v32  ;;  %v3401_v7 = vsub.f32 %v7324_v0, %v1527_v46  ;;  %v7372_v21 = vpop.permute.xlu0 %1645  ;;  %v1769_v10 = vsel %vm6271_vm4, %v11760_v54, %v7334_v24  ;;  %v2806_v59 = vsub.f32 %v7334_v24, %v11760_v54  ;;  %v11762_v29 = vld [vmem:[#allocation14_spill] sm:$0xff]  ;;  %2273 = vrot.lane.b32.xlu0 %v7253_v61, %s4337_s30 }
 0x52e   : > { %11758 = vst [vmem:[#allocation215_spill] sm:$0xff] %v7372_v21  ;;  %11759 = vst [vmem:[#allocation143_spill] sm:$0xff] %v7375_v12  ;;  %v1770_v0 = vsel %vm6353_vm5, %v11762_v29, %v11761_v26  ;;  %v7389_v21 = vmax.f32.f32 %v2936_v52, %v2866_v16  ;;  %v3039_v33 = vsub.f32 %v1708_v44, %v11644_v22  ;;  %v11763_v12 = vld [vmem:[#allocation210_spill] sm:$0xff]  ;;  %2295 = vrot.lane.b32.xlu1 %v6987_v5, %s4337_s30  ;;  %v11768_v22 = vld [vmem:[#allocation119_spill] sm:$0xff] }
 0x52f   : > { %v3240_v19 = vsub.f32 %v7366_v35, %v11763_v12  ;;  %v7397_v24 = vadd.f32 %v1769_v10, %v11760_v54  ;;  %v11765_v61 = vsub.f32 %v7143_v17, %v7152_v60  ;;  %v11766_v52 = vsub.f32 %v7137_v20, %v7158_v11  ;;  %v11774_v11 = vld [vmem:[#allocation78_spill] sm:$0xff] }
 0x530   : > { %v7413_v10 = vadd.f32 %v1770_v0, %v11762_v29  ;;  %v2870_v12 = vand.u32 2147483647, %v2806_v59  ;;  %v1825_v39 = vsel %vm6376_vm6, %v11681_v43, %v1495_v32  ;;  %v7422_v60 = vsel %vm1167_vm1, %v7000_v47, %v11768_v22  ;;  %v11772_v59 = vld [vmem:[#allocation114_spill] sm:$0xff] }
 0x531   : > { %4287 = vmaxabs.f32.vacc2 %v11765_v61, %v3396_v58  ;;  %4270 = vmaxabs.f32.vacc1 %v11766_v52, %v3397_v1  ;;  %v7410_v16 = vpop.permute.xlu0 %1456  ;;  %11769 = vst [vmem:[#allocation209_spill] sm:$0xff] %v7422_v60  ;;  %v3443_v61 = vsub.f32 %v1708_v44, %v7294_v57  ;;  %v11770_v58 = vld [vmem:[#allocation77_spill] sm:$0xff]  ;;  %v11771_v1 = vld [vmem:[#allocation96_spill] sm:$0xff]  ;;  %v7437_v32 = vsel %vm1492_vm2, %v11772_v59, %v6965_v51 }
 0x532   : > { %11767 = vst [vmem:[#allocation91_spill] sm:$0xff] %v7410_v16  ;;  %v7431_v0 = vsel %vm1299_vm3, %v11771_v1, %v11770_v58  ;;  %2337 = vrot.lane.b32.xlu0 %v7307_v48, %s4337_s30  ;;  %v3102_v52 = vand.u32 2147483647, %v3038_v40  ;;  %v3103_v4 = vand.u32 2147483647, %v3039_v33  ;;  %v3404_v57 = vsub.f32 %v7422_v60, %v7437_v32  ;;  %v11773_v44 = vld [vmem:[#allocation100_spill] sm:$0xff]  ;;  %2359 = vrot.lane.b32.xlu1 %v6990_v30, %s4337_s30 }
 0x533   : > { %v7447_v58 = vsel %vm1299_vm3, %v11774_v11, %v11773_v44  ;;  %v7453_v1 = vsel %vm1299_vm3, %v11773_v44, %v11774_v11  ;;  %v7456_v5 = vadd.f32 %v7161_v36, %v1825_v39  ;;  %v2940_v33 = vmax.f32.f32 %v7389_v21, %v2870_v12  ;;  %v11779_v48 = vld [vmem:[#allocation46_spill] sm:$0xff]  ;;  %v11780_v11 = vld [vmem:[#allocation101_spill] sm:$0xff]  ;;  %v7480_v21 = vpop.permute.xlu1 %1490  ;;  %v11782_v30 = vld [vmem:[#allocation16_spill] sm:$0xff] }
 0x534   : > { %11775 = vst [vmem:[#allocation194_spill] sm:$0xff] %v7447_v58  ;;  %11776 = vst [vmem:[#allocation195_spill] sm:$0xff] %v7453_v1  ;;  %v2810_v43 = vsub.f32 %v7431_v0, %v11779_v48  ;;  %v1826_v16 = vsel %vm6380_vm7, %v11700_v25, %v1527_v46  ;;  %v7472_v36 = vsel %vm1167_vm1, %v11780_v11, %v7114_v37  ;;  %v11781_v46 = vld [vmem:[#allocation62_spill] sm:$0xff] }
 0x535   : > { %11777 = vst [vmem:[#allocation125_spill] sm:$0xff] %v7456_v5  ;;  %v7460_v40 = vpop.permute.xlu0 %1649  ;;  %v7478_v39 = vsel %vm1167_vm1, %v7114_v37, %v11780_v11  ;;  %v3141_v12 = vmax.f32.f32 %v7259_v45, %v3102_v52  ;;  %v2814_v44 = vsub.f32 %v7453_v1, %v11781_v46  ;;  %4288 = vmaxabs.f32.vacc2 %v3400_v55, %v3404_v57  ;;  %v11791_v55 = vld [vmem:[#allocation99_spill] sm:$0xff] }
 0x536   : > { %11778 = vst [vmem:[#allocation140_spill] sm:$0xff] %v7460_v40  ;;  %2017 = vrot.lane.b32.xlu0 %v7456_v5, %s4336_s29  ;;  %v2815_v40 = vsub.f32 %v7447_v58, %v11782_v30  ;;  %v3178_v25 = vmax.f32.f32 %v7261_v3, %v3103_v4  ;;  %v11783_v37 = vsub.f32 %v7143_v17, %v11716_v31  ;;  %v2874_v3 = vand.u32 2147483647, %v2810_v43  ;;  %v11787_v17 = vld [vmem:[#allocation34_spill] sm:$0xff] }
 0x537   : > { %v11784_v11 = vsub.f32 %v7137_v20, %v11721_v42  ;;  %v7497_v26 = vadd.f32 %v7164_v18, %v1826_v16  ;;  %2039 = vrot.lane.b32.xlu1 %v7003_v50, %s4336_s29  ;;  %v1773_v4 = vsel %vm6271_vm4, %v11779_v48, %v7431_v0  ;;  %v3042_v31 = vsub.f32 %v7478_v39, %v11787_v17  ;;  %v11789_v20 = vld [vmem:[#allocation205_spill] sm:$0xff]  ;;  %v11790_v18 = vld [vmem:[#allocation15_spill] sm:$0xff] }
 0x538   : > { %4304 = vmaxabs.f32.vacc3 %v11783_v37, %v3240_v19  ;;  %v11788_v19 = vld [vmem:[#allocation56_spill] sm:$0xff]  ;;  %4271 = vmaxabs.f32.vacc1 %v3401_v7, %v3443_v61  ;;  %v7519_v16 = vsel %vm1492_vm2, %v11791_v55, %v7064_v53  ;;  %v1777_v43 = vsel %vm6271_vm4, %v11781_v46, %v7453_v1  ;;  %v7544_v1 = vpop.permute.xlu1 %1683 }
 0x539   : > { %4253 = vmaxabs.f32.vacc0 %v11784_v11, %v3241_v63  ;;  %11785 = vst [vmem:[#allocation148_spill] sm:$0xff] %v7497_v26  ;;  %v7501_v45 = vpop.permute.xlu0 %1460  ;;  %v3043_v42 = vsub.f32 %v7472_v36, %v11788_v19  ;;  %v1774_v63 = vsel %vm6353_vm5, %v11790_v18, %v11789_v20  ;;  %11792 = vst [vmem:[#allocation110_spill] sm:$0xff] %v7519_v16  ;;  %v7531_v61 = vand.u32 2147483647, %v2814_v44  ;;  %v11794_v37 = vld [vmem:[#allocation128_spill] sm:$0xff]  ;;  %v11795_v19 = vld [vmem:[#allocation67_spill] sm:$0xff] }
 0x53a   : > { %11786 = vst [vmem:[#allocation123_spill] sm:$0xff] %v7501_v45  ;;  %2081 = vrot.lane.b32.xlu0 %v7497_v26, %s4336_s29  ;;  %v1778_v7 = vsel %vm6353_vm5, %v11782_v30, %v7447_v58  ;;  %v7533_v52 = vand.u32 2147483647, %v2815_v40  ;;  %v7536_v57 = vadd.f32 %v1773_v4, %v11779_v48  ;;  %v3446_v45 = vsub.f32 %v7478_v39, %v7519_v16  ;;  %v11796_v20 = vld [vmem:[#allocation64_spill] sm:$0xff]  ;;  %v11797_v4 = vld [vmem:[#allocation197_spill] sm:$0xff] }
 0x53b   : > { %2103 = vrot.lane.b32.xlu1 %v7025_v14, %s4336_s29  ;;  %v2942_v44 = vmax.f32.f32 %v2940_v33, %v2874_v3  ;;  %v3106_v40 = vand.u32 2147483647, %v3042_v31  ;;  %v3107_v58 = vand.u32 2147483647, %v3043_v42  ;;  %v7557_v17 = vadd.f32 %v1774_v63, %v11790_v18  ;;  %v11801_v42 = vld [vmem:[#allocation208_spill] sm:$0xff] }
 0x53c   : > { %11793 = vst [vmem:[#allocation71_spill] sm:$0xff] %v7536_v57  ;;  %v7552_v57 = vsel %vm1299_vm3, %v11797_v4, %v11796_v20  ;;  %v7563_v16 = vsel %vm1492_vm2, %v7064_v53, %v11791_v55  ;;  %v7566_v33 = vadd.f32 %v1777_v43, %v11781_v46  ;;  %v7569_v3 = vadd.f32 %v1778_v7, %v11782_v30  ;;  %v11802_v55 = vld [vmem:[#allocation25_spill] sm:$0xff]  ;;  %v7590_v7 = vpop.permute.xlu1 %2015 }
 0x53d   : > { %v7554_v11 = vpop.permute.xlu0 %1653  ;;  %11799 = vst [vmem:[#allocation95_spill] sm:$0xff] %v7563_v16  ;;  %v2944_v31 = vmax.f32.f32 %v2942_v44, %v7531_v61  ;;  %v2981_v63 = vmax.f32.f32 %v11801_v42, %v7533_v52  ;;  %v7582_v53 = vsel %vm1299_vm3, %v11796_v20, %v11797_v4  ;;  %v1781_v43 = vsel %vm6271_vm4, %v11802_v55, %v7552_v57  ;;  %v11806_v4 = vld [vmem:[#allocation198_spill] sm:$0xff]  ;;  %v11807_v42 = vld [vmem:[#allocation79_spill] sm:$0xff] }
 0x53e   : > { %11798 = vst [vmem:[#allocation83_spill] sm:$0xff] %v7554_v11  ;;  %11800 = vst [vmem:[#allocation117_spill] sm:$0xff] %v7569_v3  ;;  %2277 = vrot.lane.b32.xlu0 %v7456_v5, %s4337_s30  ;;  %v7592_v61 = vmax.f32.f32 %v3141_v12, %v3106_v40  ;;  %v7594_v52 = vmax.f32.f32 %v3178_v25, %v3107_v58  ;;  %v2818_v44 = vsub.f32 %v7552_v57, %v11802_v55  ;;  %v11809_v58 = vld [vmem:[#allocation105_spill] sm:$0xff] }
 0x53f   : > { %2299 = vrot.lane.b32.xlu1 %v7003_v50, %s4337_s30  ;;  %11803 = vst [vmem:[#allocation118_spill] sm:$0xff] %v7590_v7  ;;  %v1829_v20 = vsel %vm6376_vm6, %v11712_v6, %v7437_v32  ;;  %v7606_v11 = vsel %vm1299_vm3, %v11807_v42, %v11806_v4  ;;  %v7612_v25 = vsel %vm1299_vm3, %v11806_v4, %v11807_v42  ;;  %v11810_v40 = vld [vmem:[#allocation17_spill] sm:$0xff]  ;;  %v11816_v50 = vld [vmem:[#allocation18_spill] sm:$0xff] }
 0x540   : > { %11804 = vst [vmem:[#allocation74_spill] sm:$0xff] %v7592_v61  ;;  %11805 = vst [vmem:[#allocation92_spill] sm:$0xff] %v7594_v52  ;;  %v1712_v12 = vsel %vm1167_vm1, %v11809_v58, %v7250_v9  ;;  %v7622_v32 = vsel %vm1492_vm2, %v6965_v51, %v11772_v59  ;;  %v1782_v4 = vsel %vm6353_vm5, %v11810_v40, %v7582_v53  ;;  %v11855_v52 = vld [vmem:[#allocation42_spill] sm:$0xff] }
 0x541   : > { %11808 = vst [vmem:[#allocation138_spill] sm:$0xff] %v7612_v25  ;;  %v2819_v42 = vsub.f32 %v7582_v53, %v11810_v40  ;;  %v7636_v5 = vsel %vm1167_vm1, %v7250_v9, %v11809_v58  ;;  %v7638_v7 = vpop.permute.xlu0 %1464  ;;  %v11813_v51 = vsub.f32 %v7366_v35, %v7267_v38  ;;  %v7644_v59 = vadd.f32 %v7227_v8, %v1829_v20  ;;  %v11817_v9 = vld [vmem:[#allocation58_spill] sm:$0xff] }
 0x542   : > { %2341 = vrot.lane.b32.xlu0 %v7497_v26, %s4337_s30  ;;  %11811 = vst [vmem:[#allocation112_spill] sm:$0xff] %v7636_v5  ;;  %11812 = vst [vmem:[#allocation97_spill] sm:$0xff] %v7638_v7  ;;  %v11815_v26 = vld [vmem:[#allocation27_spill] sm:$0xff]  ;;  %v2823_v6 = vsub.f32 %v7606_v11, %v11816_v50  ;;  %v3047_v58 = vsub.f32 %v1712_v12, %v11817_v9  ;;  %v1830_v38 = vsel %vm6380_vm7, %v11723_v34, %v7622_v32  ;;  %v7670_v9 = vpop.permute.xlu1 %2079 }
 0x543   : > { %4289 = vmaxabs.f32.vacc2 %v11813_v51, %v3446_v45  ;;  %11814 = vst [vmem:[#allocation210_spill] sm:$0xff] %v7644_v59  ;;  %2363 = vrot.lane.b32.xlu1 %v7025_v14, %s4337_s30  ;;  %v2822_v61 = vsub.f32 %v7612_v25, %v11815_v26  ;;  %v7658_v35 = vadd.f32 %v1781_v43, %v11802_v55  ;;  %v2882_v8 = vand.u32 2147483647, %v2818_v44  ;;  %v11819_v45 = vld [vmem:[#allocation103_spill] sm:$0xff]  ;;  %v11821_v51 = vld [vmem:[#allocation184_spill] sm:$0xff]  ;;  %v11824_v44 = vld [vmem:[#allocation130_spill] sm:$0xff] }
 0x544   : > { %v7664_v20 = vsel %vm1492_vm2, %v11819_v45, %v7192_v62  ;;  %v3248_v14 = vsub.f32 %v7636_v5, %v11821_v51  ;;  %11822 = vst [vmem:[#allocation77_spill] sm:$0xff] %v7670_v9  ;;  %v2883_v7 = vand.u32 2147483647, %v2819_v42  ;;  %v7676_v43 = vsel %vm1492_vm2, %v7192_v62, %v11819_v45 }
 0x545   : > { %11818 = vst [vmem:[#allocation88_spill] sm:$0xff] %v7658_v35  ;;  %11820 = vst [vmem:[#allocation119_spill] sm:$0xff] %v7664_v20  ;;  %v3249_v35 = vsub.f32 %v1712_v12, %v11824_v44  ;;  %v1785_v51 = vsel %vm6271_vm4, %v11815_v26, %v7612_v25  ;;  %v3451_v3 = vsub.f32 %v1712_v12, %v7676_v43  ;;  %v7695_v45 = vand.u32 2147483647, %v2822_v61  ;;  %v7701_v44 = vpop.permute.xlu0 %1657 }
 0x546   : > { %2021 = vrot.lane.b32.xlu0 %v7644_v59, %s4336_s29  ;;  %11823 = vst [vmem:[#allocation96_spill] sm:$0xff] %v7676_v43  ;;  %v7687_v42 = vadd.f32 %v7238_v28, %v1830_v38  ;;  %v1786_v62 = vsel %vm6353_vm5, %v11816_v50, %v7606_v11  ;;  %v7697_v55 = vand.u32 2147483647, %v2823_v6  ;;  %v7699_v9 = vand.u32 2147483647, %v3047_v58  ;;  %v11830_v38 = vld [vmem:[#allocation200_spill] sm:$0xff] }
 0x547   : > { %2043 = vrot.lane.b32.xlu1 %v7046_v23, %s4336_s29  ;;  %11826 = vst [vmem:[#allocation100_spill] sm:$0xff] %v7695_v45  ;;  %v7704_v12 = vadd.f32 %v1782_v4, %v11810_v40  ;;  %v7706_v28 = vmax.f32.f32 %v2882_v8, %v2944_v31  ;;  %v11831_v43 = vld [vmem:[#allocation81_spill] sm:$0xff]  ;;  %v2972_v6 = vmax.f32.f32 %v2883_v7, %v2981_v63  ;;  %v11838_v8 = vld [vmem:[#allocation23_spill] sm:$0xff] }
 0x548   : > { %11825 = vst [vmem:[#allocation114_spill] sm:$0xff] %v7687_v42  ;;  %11827 = vst [vmem:[#allocation78_spill] sm:$0xff] %v7699_v9  ;;  %v7712_v25 = vsel %vm1299_vm3, %v11831_v43, %v11830_v38  ;;  %v7720_v61 = vsel %vm1299_vm3, %v11830_v38, %v11831_v43  ;;  %v7723_v4 = vadd.f32 %v1785_v51, %v11815_v26  ;;  %v11836_v43 = vld [vmem:[#allocation49_spill] sm:$0xff]  ;;  %v11839_v63 = vld [vmem:[#allocation203_spill] sm:$0xff] }
 0x549   : > { %11828 = vst [vmem:[#allocation101_spill] sm:$0xff] %v7704_v12  ;;  %11829 = vst [vmem:[#allocation99_spill] sm:$0xff] %v7706_v28  ;;  %v7726_v31 = vadd.f32 %v1786_v62, %v11816_v50  ;;  %v7732_v12 = vpop.permute.xlu1 %2275  ;;  %v2974_v7 = vmax.f32.f32 %v2972_v6, %v7697_v55  ;;  %v1790_v62 = vsel %vm6353_vm5, %v11836_v43, %v7712_v25  ;;  %v11840_v45 = vld [vmem:[#allocation85_spill] sm:$0xff]  ;;  %v11842_v6 = vld [vmem:[#allocation163_spill] sm:$0xff]  ;;  %v7775_v58 = vpop.permute.xlu0 %1468 }
 0x54a   : > { %2085 = vrot.lane.b32.xlu0 %v7687_v42, %s4336_s29  ;;  %11832 = vst [vmem:[#allocation64_spill] sm:$0xff] %v7723_v4  ;;  %11835 = vst [vmem:[#allocation208_spill] sm:$0xff] %v7732_v12  ;;  %v11837_v38 = vsub.f32 %v7478_v39, %v11794_v37  ;;  %v1789_v12 = vsel %vm6271_vm4, %v11838_v8, %v7720_v61  ;;  %v7754_v55 = vsel %vm1299_vm3, %v11840_v45, %v11839_v63  ;;  %v11843_v51 = vld [vmem:[#allocation116_spill] sm:$0xff]  ;;  %v11881_v50 = vld [vmem:[#allocation90_spill] sm:$0xff] }
 0x54b   : > { %11833 = vst [vmem:[#allocation197_spill] sm:$0xff] %v7726_v31  ;;  %2107 = vrot.lane.b32.xlu1 %v7049_v27, %s4336_s29  ;;  %11841 = vst [vmem:[#allocation198_spill] sm:$0xff] %v7754_v55  ;;  %v7760_v28 = vsel %vm1492_vm2, %v11843_v51, %v11842_v6  ;;  %v2826_v39 = vsub.f32 %v7720_v61, %v11838_v8  ;;  %v11847_v9 = vsub.f32 %v7472_v36, %v7563_v16  ;;  %v11900_v26 = vld [vmem:[#allocation66_spill] sm:$0xff] }
 0x54c   : > { %4305 = vmaxabs.f32.vacc3 %v11837_v38, %v3248_v14  ;;  %v11844_v14 = vsub.f32 %v7472_v36, %v11795_v19  ;;  %v11845_v38 = vld [vmem:[#allocation109_spill] sm:$0xff]  ;;  %v7794_v19 = vadd.f32 %v1789_v12, %v11838_v8  ;;  %v11851_v36 = vld [vmem:[#allocation68_spill] sm:$0xff] }
 0x54d   : > { %v7773_v37 = vsel %vm1167_vm1, %v7400_v49, %v11845_v38  ;;  %4272 = vmaxabs.f32.vacc1 %v11847_v9, %v3451_v3  ;;  %v11852_v3 = vld [vmem:[#allocation107_spill] sm:$0xff]  ;;  %v11861_v8 = vld [vmem:[#allocation104_spill] sm:$0xff] }
 0x54e   : > { %2281 = vrot.lane.b32.xlu0 %v7644_v59, %s4337_s30  ;;  %4254 = vmaxabs.f32.vacc0 %v11844_v14, %v3249_v35  ;;  %11846 = vst [vmem:[#allocation79_spill] sm:$0xff] %v7773_v37  ;;  %v7781_v59 = vadd.f32 %v1790_v62, %v11836_v43  ;;  %v2827_v35 = vsub.f32 %v7712_v25, %v11836_v43  ;;  %11850 = vst [vmem:[#allocation200_spill] sm:$0xff] %v7794_v19  ;;  %v11854_v62 = vld [vmem:[#allocation51_spill] sm:$0xff] }
 0x54f   : > { %v7789_v14 = vsel %vm1167_vm1, %v11845_v38, %v7400_v49  ;;  %2303 = vrot.lane.b32.xlu1 %v7046_v23, %s4337_s30  ;;  %v7800_v9 = vsel %vm1492_vm2, %v11852_v3, %v11851_v36  ;;  %v2831_v16 = vsub.f32 %v7754_v55, %v11854_v62  ;;  %v1833_v49 = vsel %vm6376_vm6, %v11855_v52, %v7760_v28  ;;  %v11858_v23 = vld [vmem:[#allocation132_spill] sm:$0xff] }
 0x550   : > { %11848 = vst [vmem:[#allocation105_spill] sm:$0xff] %v7781_v59  ;;  %11849 = vst [vmem:[#allocation103_spill] sm:$0xff] %v7789_v14  ;;  %v7812_v12 = vsel %vm1492_vm2, %v11851_v36, %v11852_v3  ;;  %v7818_v38 = vsel %vm1299_vm3, %v11839_v63, %v11840_v45  ;;  %v7826_v19 = vsel %vm1492_vm2, %v11842_v6, %v11843_v51  ;;  %v7830_v36 = vpop.permute.xlu1 %2339  ;;  %v7832_v3 = vand.u32 2147483647, %v2826_v39  ;;  %v11862_v59 = vld [vmem:[#allocation113_spill] sm:$0xff]  ;;  %v11902_v62 = vld [vmem:[#allocation176_spill] sm:$0xff] }
 0x551   : > { %11853 = vst [vmem:[#allocation81_spill] sm:$0xff] %v7800_v9  ;;  %11856 = vst [vmem:[#allocation203_spill] sm:$0xff] %v7812_v12  ;;  %v3253_v45 = vsub.f32 %v7789_v14, %v11861_v8  ;;  %v3454_v63 = vsub.f32 %v7773_v37, %v7800_v9  ;;  %v7842_v52 = vsel %vm1167_vm1, %v11862_v59, %v7544_v1  ;;  %v2891_v51 = vand.u32 2147483647, %v2827_v35  ;;  %v11867_v8 = vld [vmem:[#allocation29_spill] sm:$0xff] }
 0x552   : > { %11857 = vst [vmem:[#allocation85_spill] sm:$0xff] %v7818_v38  ;;  %2345 = vrot.lane.b32.xlu0 %v7687_v42, %s4337_s30  ;;  %11859 = vst [vmem:[#allocation163_spill] sm:$0xff] %v7830_v36  ;;  %v3455_v6 = vsub.f32 %v7789_v14, %v7812_v12  ;;  %v7850_v39 = vsel %vm1167_vm1, %v7544_v1, %v11862_v59  ;;  %v11865_v42 = vld [vmem:[#allocation87_spill] sm:$0xff]  ;;  %v2830_v12 = vsub.f32 %v7818_v38, %v11867_v8  ;;  %v7869_v59 = vpop.permute.xlu0 %1661 }
 0x553   : > { %11860 = vst [vmem:[#allocation116_spill] sm:$0xff] %v7832_v3  ;;  %11863 = vst [vmem:[#allocation109_spill] sm:$0xff] %v7842_v52  ;;  %v7853_v36 = vadd.f32 %v11865_v42, %v1833_v49  ;;  %2367 = vrot.lane.b32.xlu1 %v7049_v27, %s4337_s30  ;;  %v7863_v9 = vand.u32 2147483647, %v2831_v16  ;;  %v11869_v3 = vld [vmem:[#allocation13_spill] sm:$0xff]  ;;  %v11870_v42 = vld [vmem:[#allocation111_spill] sm:$0xff]  ;;  %v7891_v43 = vmax.f32.f32 %v2974_v7, %v2891_v51 }
 0x554   : > { %11864 = vst [vmem:[#allocation68_spill] sm:$0xff] %v7850_v39  ;;  %v1834_v1 = vsel %vm6380_vm7, %v11869_v3, %v7826_v19  ;;  %v7875_v49 = vsel %vm1492_vm2, %v11870_v42, %v7480_v21  ;;  %v7881_v35 = vsel %vm1492_vm2, %v7480_v21, %v11870_v42  ;;  %v11873_v16 = vld [vmem:[#allocation134_spill] sm:$0xff]  ;;  %v11875_v42 = vld [vmem:[#allocation193_spill] sm:$0xff]  ;;  %v7902_v31 = vpop.permute.xlu1 %2019  ;;  %v7904_v4 = vand.u32 2147483647, %v2830_v12 }
 0x555   : > { %11866 = vst [vmem:[#allocation107_spill] sm:$0xff] %v7853_v36  ;;  %11868 = vst [vmem:[#allocation113_spill] sm:$0xff] %v7863_v9  ;;  %v3257_v27 = vsub.f32 %v7842_v52, %v11873_v16  ;;  %v3459_v8 = vsub.f32 %v7842_v52, %v7881_v35  ;;  %v7898_v14 = vadd.f32 %v11875_v42, %v1834_v1  ;;  %v11877_v16 = vld [vmem:[#allocation172_spill] sm:$0xff]  ;;  %v11883_v51 = vld [vmem:[#allocation206_spill] sm:$0xff] }
 0x556   : > { %11871 = vst [vmem:[#allocation87_spill] sm:$0xff] %v7875_v49  ;;  %11872 = vst [vmem:[#allocation111_spill] sm:$0xff] %v7881_v35  ;;  %2025 = vrot.lane.b32.xlu0 %v7853_v36, %s4336_s29  ;;  %v7910_v7 = vsel %vm1299_vm3, %v11881_v50, %v11880_v56  ;;  %v11884_v35 = vld [vmem:[#allocation94_spill] sm:$0xff]  ;;  %v7926_v12 = vsel %vm1299_vm3, %v11880_v56, %v11881_v50  ;;  %v7933_v15 = vpop.permute.xlu0 %1472  ;;  %v11892_v52 = vld [vmem:[#allocation80_spill] sm:$0xff] }
 0x557   : > { %11874 = vst [vmem:[#allocation216_spill] sm:$0xff] %v7891_v43  ;;  %11876 = vst [vmem:[#allocation193_spill] sm:$0xff] %v7898_v14  ;;  %2047 = vrot.lane.b32.xlu1 %v11877_v16, %s4336_s29  ;;  %v7916_v21 = vsel %vm1299_vm3, %v11884_v35, %v11883_v51  ;;  %v11893_v9 = vld [vmem:[#allocation207_spill] sm:$0xff]  ;;  %v11897_v42 = vld [vmem:[#allocation190_spill] sm:$0xff]  ;;  %4255 = vmaxabs.f32.vacc0 %v3253_v45, %v3257_v27  ;;  %4273 = vmaxabs.f32.vacc1 %v3455_v6, %v3459_v8 }
 0x558   : > { %11878 = vst [vmem:[#allocation217_spill] sm:$0xff] %v7902_v31  ;;  %11879 = vst [vmem:[#allocation218_spill] sm:$0xff] %v7904_v4  ;;  %v11888_v4 = vsub.f32 %v7636_v5, %v7664_v20  ;;  %v7941_v31 = vsel %vm1299_vm3, %v11883_v51, %v11884_v35  ;;  %v11894_v20 = vld [vmem:[#allocation98_spill] sm:$0xff]  ;;  %v7959_v35 = vsel %vm1167_vm1, %v11768_v22, %v7000_v47  ;;  %v11898_v51 = vld [vmem:[#allocation165_spill] sm:$0xff] }
 0x559   : > { %11882 = vst [vmem:[#allocation204_spill] sm:$0xff] %v7910_v7  ;;  %11885 = vst [vmem:[#allocation90_spill] sm:$0xff] %v7916_v21  ;;  %v11899_v50 = vld [vmem:[#allocation65_spill] sm:$0xff]  ;;  %v7979_v22 = vsel %vm1299_vm3, %v11893_v9, %v11894_v20  ;;  %v11906_v47 = vld [vmem:[#allocation174_spill] sm:$0xff] }
 0x55a   : > { %11887 = vst [vmem:[#allocation206_spill] sm:$0xff] %v7926_v12  ;;  %2089 = vrot.lane.b32.xlu0 %v7898_v14, %s4336_s29  ;;  %4290 = vmaxabs.f32.vacc2 %v11888_v4, %v3454_v63  ;;  %11890 = vst [vmem:[#allocation94_spill] sm:$0xff] %v7941_v31  ;;  %v7951_v4 = vsel %vm1299_vm3, %v11894_v20, %v11893_v9  ;;  %v11896_v63 = vld [vmem:[#allocation166_spill] sm:$0xff]  ;;  %v3194_v43 = vsub.f32 %v11899_v50, %v11898_v51  ;;  %v11901_v1 = vld [vmem:[#allocation89_spill] sm:$0xff] }
 0x55b   : > { %2111 = vrot.lane.b32.xlu1 %v11892_v52, %s4336_s29  ;;  %11895 = vst [vmem:[#allocation207_spill] sm:$0xff] %v7951_v4  ;;  %v3198_v5 = vsub.f32 %v11897_v42, %v11896_v63  ;;  %v3199_v56 = vsub.f32 %v11901_v1, %v11900_v26  ;;  %v11903_v3 = vld [vmem:[#allocation121_spill] sm:$0xff]  ;;  %v7973_v63 = vpop.permute.xlu1 %2083  ;;  %11905 = vst [vmem:[#allocation166_spill] sm:$0xff] %v7979_v22  ;;  %v3202_v27 = vsub.f32 %v7422_v60, %v11906_v47  ;;  %v11907_v26 = vld [vmem:[#allocation108_spill] sm:$0xff] }
 0x55c   : > { %v7969_v31 = vsel %vm1492_vm2, %v11903_v3, %v11902_v62  ;;  %11904 = vst [vmem:[#allocation98_spill] sm:$0xff] %v7973_v63  ;;  %v11908_v45 = vld [vmem:[#allocation186_spill] sm:$0xff]  ;;  %v11909_v50 = vld [vmem:[#allocation199_spill] sm:$0xff]  ;;  %v8029_v60 = vsel %vm1492_vm2, %v11902_v62, %v11903_v3  ;;  %v11922_v22 = vld [vmem:[#allocation201_spill] sm:$0xff] }
 0x55d   : > { %v3195_v51 = vsub.f32 %v11908_v45, %v11907_v26  ;;  %v3203_v42 = vsub.f32 %v7959_v35, %v11909_v50  ;;  %v11910_v12 = vld [vmem:[#allocation171_spill] sm:$0xff]  ;;  %v11914_v6 = vld [vmem:[#allocation102_spill] sm:$0xff]  ;;  %v12093_v41 = vld [vmem:[#allocation105_spill] sm:$0xff] }
 0x55e   : > { %2285 = vrot.lane.b32.xlu0 %v7853_v36, %s4337_s30  ;;  %v11911_v36 = vld [vmem:[#allocation120_spill] sm:$0xff]  ;;  %v11913_v9 = vld [vmem:[#allocation211_spill] sm:$0xff]  ;;  %v11917_v26 = vld [vmem:[#allocation150_spill] sm:$0xff] }
 0x55f   : > { %v7991_v8 = vsel %vm1167_vm1, %v11911_v36, %v11910_v12  ;;  %v7997_v20 = vsel %vm1167_vm1, %v11910_v12, %v11911_v36  ;;  %2307 = vrot.lane.b32.xlu1 %v11877_v16, %s4337_s30  ;;  %v8005_v50 = vsel %vm1299_vm3, %v11914_v6, %v11913_v9  ;;  %v8011_v47 = vsel %vm1299_vm3, %v11913_v9, %v11914_v6  ;;  %v8017_v12 = vpop.permute.xlu0 %1665  ;;  %v11918_v63 = vld [vmem:[#allocation106_spill] sm:$0xff]  ;;  %v8033_v9 = vpop.permute.xlu1 %2279  ;;  %v11927_v3 = vld [vmem:[#allocation175_spill] sm:$0xff] }
 0x560   : > { %11912 = vst [vmem:[#allocation165_spill] sm:$0xff] %v7997_v20  ;;  %11915 = vst [vmem:[#allocation66_spill] sm:$0xff] %v8005_v50  ;;  %v1837_v36 = vsel %vm6376_vm6, %v11760_v54, %v7969_v31  ;;  %v8023_v16 = vsel %vm1299_vm3, %v11918_v63, %v11917_v26  ;;  %v3405_v6 = vsub.f32 %v7959_v35, %v7622_v32  ;;  %v11921_v54 = vld [vmem:[#allocation82_spill] sm:$0xff] }
 0x561   : > { %11916 = vst [vmem:[#allocation89_spill] sm:$0xff] %v8011_v47  ;;  %11919 = vst [vmem:[#allocation176_spill] sm:$0xff] %v8023_v16  ;;  %v3206_v47 = vsub.f32 %v7997_v20, %v11921_v54  ;;  %v3207_v16 = vsub.f32 %v7991_v8, %v11922_v22  ;;  %v3408_v38 = vsub.f32 %v7997_v20, %v7760_v28 }
 0x562   : > { %2349 = vrot.lane.b32.xlu0 %v7898_v14, %s4337_s30  ;;  %11920 = vst [vmem:[#allocation121_spill] sm:$0xff] %v8033_v9  ;;  %v8044_v62 = vadd.f32 %v7397_v24, %v1837_v36  ;;  %v8052_v32 = vsel %vm1299_vm3, %v11917_v26, %v11918_v63  ;;  %v11925_v54 = vsub.f32 %v7773_v37, %v11858_v23  ;;  %v11926_v24 = vld [vmem:[#allocation122_spill] sm:$0xff]  ;;  %v11929_v36 = vld [vmem:[#allocation115_spill] sm:$0xff]  ;;  %v11935_v23 = vld [vmem:[#allocation181_spill] sm:$0xff] }
 0x563   : > { %2371 = vrot.lane.b32.xlu1 %v11892_v52, %s4337_s30  ;;  %11924 = vst [vmem:[#allocation108_spill] sm:$0xff] %v8052_v32  ;;  %v1838_v28 = vsel %vm6380_vm7, %v11762_v29, %v8029_v60  ;;  %v8065_v22 = vsel %vm1167_vm1, %v11927_v3, %v11926_v24  ;;  %4256 = vmaxabs.f32.vacc0 %v3199_v56, %v3195_v51  ;;  %v8079_v26 = vpop.permute.xlu1 %2343  ;;  %v11932_v56 = vld [vmem:[#allocation151_spill] sm:$0xff]  ;;  %v11934_v9 = vld [vmem:[#allocation202_spill] sm:$0xff]  ;;  %v11940_v37 = vld [vmem:[#allocation185_spill] sm:$0xff] }
 0x564   : > { %11923 = vst [vmem:[#allocation174_spill] sm:$0xff] %v8044_v62  ;;  %4306 = vmaxabs.f32.vacc3 %v11925_v54, %v3198_v5  ;;  %11928 = vst [vmem:[#allocation186_spill] sm:$0xff] %v8065_v22  ;;  %v3409_v63 = vsub.f32 %v7991_v8, %v7826_v19  ;;  %v8075_v5 = vsel %vm1167_vm1, %v11926_v24, %v11927_v3  ;;  %v8081_v54 = vpop.permute.xlu0 %1476  ;;  %v11933_v51 = vld [vmem:[#allocation179_spill] sm:$0xff]  ;;  %v11939_v52 = vld [vmem:[#allocation126_spill] sm:$0xff] }
 0x565   : > { %11930 = vst [vmem:[#allocation199_spill] sm:$0xff] %v8079_v26  ;;  %v8084_v14 = vadd.f32 %v7413_v10, %v1838_v28  ;;  %v3210_v19 = vsub.f32 %v8065_v22, %v11932_v56  ;;  %v3211_v24 = vsub.f32 %v8075_v5, %v11934_v9  ;;  %v3412_v3 = vsub.f32 %v8065_v22, %v7969_v31  ;;  %v11936_v26 = vld [vmem:[#allocation124_spill] sm:$0xff]  ;;  %v11944_v28 = vld [vmem:[#allocation129_spill] sm:$0xff]  ;;  %v11954_v22 = vld [vmem:[#allocation127_spill] sm:$0xff] }
 0x566   : > { %2029 = vrot.lane.b32.xlu0 %v8044_v62, %s4336_s29  ;;  %4307 = vmaxabs.f32.vacc3 %v3194_v43, %v3202_v27  ;;  %v1503_v43 = vsel %vm1492_vm2, %v11936_v26, %v11935_v23  ;;  %v1535_v10 = vsel %vm1492_vm2, %v11935_v23, %v11936_v26  ;;  %v11937_v27 = vld [vmem:[#allocation11_spill] sm:$0xff]  ;;  %v3413_v9 = vsub.f32 %v8075_v5, %v8029_v60 }
 0x567   : > { %11931 = vst [vmem:[#allocation171_spill] sm:$0xff] %v8084_v14  ;;  %2051 = vrot.lane.b32.xlu1 %v11933_v51, %s4336_s29  ;;  %v8110_v31 = vpop.permute.xlu1 %2023  ;;  %4257 = vmaxabs.f32.vacc0 %v3203_v42, %v3207_v16  ;;  %v8116_v23 = vsel %vm1167_vm1, %v11940_v37, %v11939_v52  ;;  %v1841_v26 = vsel %vm6376_vm6, %v11779_v48, %v1503_v43  ;;  %v11942_v16 = vld [vmem:[#allocation187_spill] sm:$0xff] }
 0x568   : > { %11938 = vst [vmem:[#allocation120_spill] sm:$0xff] %v8110_v31  ;;  %11941 = vst [vmem:[#allocation211_spill] sm:$0xff] %v8116_v23  ;;  %v1842_v60 = vsel %vm6380_vm7, %v11790_v18, %v1535_v10  ;;  %v8128_v56 = vsel %vm1167_vm1, %v11939_v52, %v11940_v37  ;;  %v11943_v42 = vsub.f32 %v7850_v39, %v7875_v49  ;;  %v11945_v31 = vld [vmem:[#allocation215_spill] sm:$0xff]  ;;  %v8141_v51 = vpop.permute.xlu0 %1669 }
 0x569   : > { %v8139_v48 = vsel %vm1167_vm1, %v11945_v31, %v11944_v28  ;;  %4274 = vmaxabs.f32.vacc1 %v3405_v6, %v3409_v63  ;;  %v3214_v37 = vsub.f32 %v8116_v23, %v7431_v0  ;;  %v8149_v52 = vsel %vm1167_vm1, %v11944_v28, %v11945_v31  ;;  %v11952_v6 = vld [vmem:[#allocation205_spill] sm:$0xff]  ;;  %v11953_v31 = vld [vmem:[#allocation188_spill] sm:$0xff] }
 0x56a   : > { %2093 = vrot.lane.b32.xlu0 %v8084_v14, %s4336_s29  ;;  %4291 = vmaxabs.f32.vacc2 %v11943_v42, %v3408_v38  ;;  %11946 = vst [vmem:[#allocation102_spill] sm:$0xff] %v8139_v48  ;;  %11947 = vst [vmem:[#allocation150_spill] sm:$0xff] %v8149_v52  ;;  %v11949_v42 = vld [vmem:[#allocation71_spill] sm:$0xff]  ;;  %v3215_v0 = vsub.f32 %v8128_v56, %v11952_v6  ;;  %v3416_v63 = vsub.f32 %v8116_v23, %v1503_v43  ;;  %v11958_v43 = vld [vmem:[#allocation140_spill] sm:$0xff] }
 0x56b   : > { %2115 = vrot.lane.b32.xlu1 %v11942_v16, %s4336_s29  ;;  %v8156_v49 = vadd.f32 %v11949_v42, %v1841_v26  ;;  %v8159_v16 = vadd.f32 %v7557_v17, %v1842_v60  ;;  %4308 = vmaxabs.f32.vacc3 %v3206_v47, %v3210_v19  ;;  %v3417_v28 = vsub.f32 %v8128_v56, %v1535_v10  ;;  %v11956_v42 = vld [vmem:[#allocation194_spill] sm:$0xff]  ;;  %v11957_v19 = vld [vmem:[#allocation133_spill] sm:$0xff]  ;;  %v11963_v23 = vld [vmem:[#allocation131_spill] sm:$0xff] }
 0x56c   : > { %v8153_v38 = vpop.permute.xlu1 %2087  ;;  %v3219_v17 = vsub.f32 %v8149_v52, %v11956_v42  ;;  %v1537_v47 = vsel %vm1492_vm2, %v11953_v31, %v11954_v22  ;;  %v8182_v10 = vsel %vm1167_vm1, %v11958_v43, %v11957_v19  ;;  %4258 = vmaxabs.f32.vacc0 %v3211_v24, %v3215_v0  ;;  %v11969_v0 = vld [vmem:[#allocation139_spill] sm:$0xff] }
 0x56d   : > { %11948 = vst [vmem:[#allocation106_spill] sm:$0xff] %v8153_v38  ;;  %11950 = vst [vmem:[#allocation82_spill] sm:$0xff] %v8156_v49  ;;  %v11955_v38 = vld [vmem:[#allocation195_spill] sm:$0xff]  ;;  %v3421_v42 = vsub.f32 %v8149_v52, %v1537_v47  ;;  %4292 = vmaxabs.f32.vacc2 %v3412_v3, %v3416_v63  ;;  %4275 = vmaxabs.f32.vacc1 %v3413_v9, %v3417_v28 }
 0x56e   : > { %2289 = vrot.lane.b32.xlu0 %v8044_v62, %s4337_s30  ;;  %11951 = vst [vmem:[#allocation201_spill] sm:$0xff] %v8159_v16  ;;  %v1505_v62 = vsel %vm1492_vm2, %v11954_v22, %v11953_v31  ;;  %v3218_v26 = vsub.f32 %v8139_v48, %v11955_v38  ;;  %11959 = vst [vmem:[#allocation122_spill] sm:$0xff] %v8182_v10  ;;  %v8195_v22 = vsel %vm1167_vm1, %v11957_v19, %v11958_v43  ;;  %v8197_v31 = vpop.permute.xlu0 %1480  ;;  %v11972_v63 = vld [vmem:[#allocation135_spill] sm:$0xff] }
 0x56f   : > { %v3420_v60 = vsub.f32 %v8139_v48, %v1505_v62  ;;  %v1845_v6 = vsel %vm6376_vm6, %v11781_v46, %v1505_v62  ;;  %11961 = vst [vmem:[#allocation151_spill] sm:$0xff] %v8195_v22  ;;  %v11962_v48 = vld [vmem:[#allocation91_spill] sm:$0xff]  ;;  %v3222_v19 = vsub.f32 %v8182_v10, %v7552_v57  ;;  %v3223_v43 = vsub.f32 %v8195_v22, %v7582_v53 }
 0x570   : > { %v8186_v38 = vpop.permute.xlu1 %2283  ;;  %v8210_v62 = vsel %vm1492_vm2, %v11962_v48, %v11963_v23  ;;  %v8228_v57 = vadd.f32 %v7566_v33, %v1845_v6  ;;  %4309 = vmaxabs.f32.vacc3 %v3214_v37, %v3218_v26  ;;  %v11966_v53 = vld [vmem:[#allocation83_spill] sm:$0xff]  ;;  %v8246_v33 = vsel %vm1167_vm1, %v11969_v0, %v7701_v44 }
 0x571   : > { %11960 = vst [vmem:[#allocation175_spill] sm:$0xff] %v8186_v38  ;;  %v3425_v46 = vsub.f32 %v8195_v22, %v8210_v62  ;;  %v11971_v37 = vld [vmem:[#allocation123_spill] sm:$0xff]  ;;  %v8270_v6 = vsel %vm1167_vm1, %v7701_v44, %v11969_v0  ;;  %v11976_v22 = vld [vmem:[#allocation97_spill] sm:$0xff]  ;;  %v3231_v44 = vsub.f32 %v8246_v33, %v7712_v25  ;;  %4259 = vmaxabs.f32.vacc0 %v3219_v17, %v3223_v43 }
 0x572   : > { %2353 = vrot.lane.b32.xlu0 %v8084_v14, %s4337_s30  ;;  %v8204_v14 = vsel %vm1492_vm2, %v11963_v23, %v11962_v48  ;;  %v1846_v48 = vsel %vm6380_vm7, %v11782_v30, %v1537_v47  ;;  %11965 = vst [vmem:[#allocation181_spill] sm:$0xff] %v8228_v57  ;;  %v11967_v23 = vld [vmem:[#allocation136_spill] sm:$0xff]  ;;  %v1674_v3 = vpop.permute.xlu0 %1673  ;;  %v8256_v28 = vsel %vm1492_vm2, %v11972_v63, %v11971_v37 }
 0x573   : > { %v3424_v38 = vsub.f32 %v8182_v10, %v8204_v14  ;;  %v8234_v10 = vsel %vm1167_vm1, %v11967_v23, %v11966_v53  ;;  %v8240_v24 = vsel %vm1167_vm1, %v11966_v53, %v11967_v23  ;;  %v8262_v26 = vsel %vm1492_vm2, %v11971_v37, %v11972_v63  ;;  %v11973_v53 = vld [vmem:[#allocation138_spill] sm:$0xff]  ;;  %v11974_v37 = vld [vmem:[#allocation117_spill] sm:$0xff] }
 0x574   : > { %v8222_v20 = vpop.permute.xlu1 %2347  ;;  %11968 = vst [vmem:[#allocation124_spill] sm:$0xff] %v8240_v24  ;;  %v3227_v47 = vsub.f32 %v8234_v10, %v7606_v11  ;;  %v3226_v23 = vsub.f32 %v8240_v24, %v11973_v53  ;;  %v8279_v63 = vadd.f32 %v11974_v37, %v1846_v48  ;;  %v11977_v11 = vld [vmem:[#allocation137_spill] sm:$0xff]  ;;  %4276 = vmaxabs.f32.vacc1 %v3421_v42, %v3425_v46  ;;  %v11980_v37 = vld [vmem:[#allocation146_spill] sm:$0xff] }
 0x575   : > { %11964 = vst [vmem:[#allocation202_spill] sm:$0xff] %v8222_v20  ;;  %v3428_v20 = vsub.f32 %v8240_v24, %v8256_v28  ;;  %v8285_v52 = vsel %vm1492_vm2, %v11977_v11, %v11976_v22  ;;  %4293 = vmaxabs.f32.vacc2 %v3420_v60, %v3424_v38  ;;  %v8299_v53 = vsel %vm1492_vm2, %v11976_v22, %v11977_v11  ;;  %v11981_v22 = vld [vmem:[#allocation145_spill] sm:$0xff]  ;;  %v12002_v24 = vld [vmem:[#allocation170_spill] sm:$0xff] }
 0x576   : > { %2033 = vrot.lane.b32.xlu0 %v8156_v49, %s4336_s29  ;;  %11975 = vst [vmem:[#allocation185_spill] sm:$0xff] %v8279_v63  ;;  %v3432_v0 = vsub.f32 %v8270_v6, %v8285_v52  ;;  %11979 = vst [vmem:[#allocation215_spill] sm:$0xff] %v8299_v53  ;;  %v8305_v25 = vsel %vm1167_vm1, %v11980_v37, %v7869_v59  ;;  %v8311_v46 = vsel %vm1167_vm1, %v7869_v59, %v11980_v37  ;;  %v1485_v17 = vpop.permute.xlu0 %1484  ;;  %v11984_v37 = vld [vmem:[#allocation152_spill] sm:$0xff] }
 0x577   : > { %v3433_v60 = vsub.f32 %v8246_v33, %v8299_v53  ;;  %v8321_v42 = vsel %vm1492_vm2, %v11981_v22, %v7775_v58  ;;  %v8327_v43 = vsel %vm1492_vm2, %v7775_v58, %v11981_v22  ;;  %v3235_v59 = vsub.f32 %v8305_v25, %v7754_v55  ;;  %v11987_v58 = vld [vmem:[#allocation25_spill] sm:$0xff]  ;;  %v11988_v55 = vld [vmem:[#allocation158_spill] sm:$0xff] }
 0x578   : > { %v8250_v9 = vpop.permute.xlu1 %2027  ;;  %11982 = vst [vmem:[#allocation71_spill] sm:$0xff] %v8321_v42  ;;  %11983 = vst [vmem:[#allocation205_spill] sm:$0xff] %v8327_v43  ;;  %v3436_v11 = vsub.f32 %v8311_v46, %v8321_v42  ;;  %v8337_v38 = vsel %vm1167_vm1, %v11984_v37, %v8017_v12  ;;  %v1849_v22 = vsel %vm6376_vm6, %v11987_v58, %v8204_v14 }
 0x579   : > { %11970 = vst [vmem:[#allocation126_spill] sm:$0xff] %v8250_v9  ;;  %v3429_v9 = vsub.f32 %v8234_v10, %v8262_v26  ;;  %11985 = vst [vmem:[#allocation188_spill] sm:$0xff] %v8337_v38  ;;  %v3437_v42 = vsub.f32 %v8305_v25, %v8327_v43  ;;  %4310 = vmaxabs.f32.vacc3 %v3222_v19, %v3226_v23 }
 0x57a   : > { %2097 = vrot.lane.b32.xlu0 %v8159_v16, %s4336_s29  ;;  %4260 = vmaxabs.f32.vacc0 %v3227_v47, %v3231_v44  ;;  %v1678_v14 = vpop.permute.xlu0 %1677  ;;  %4294 = vmaxabs.f32.vacc2 %v3428_v20, %v3432_v0  ;;  %v11991_v47 = vld [vmem:[#allocation149_spill] sm:$0xff]  ;;  %v8387_v23 = vsel %vm1167_vm1, %v8141_v51, %v11988_v55 }
 0x57b   : > { %v8381_v20 = vsel %vm1492_vm2, %v7933_v15, %v11991_v47  ;;  %4277 = vmaxabs.f32.vacc1 %v3429_v9, %v3433_v60 }
 0x57c   : > { %v8293_v48 = vpop.permute.xlu1 %2091  ;;  %11993 = vst [vmem:[#allocation140_spill] sm:$0xff] %v8381_v20  ;;  %v3441_v0 = vsub.f32 %v8337_v38, %v8381_v20 }
 0x57d   : > { %11978 = vst [vmem:[#allocation129_spill] sm:$0xff] %v8293_v48 }
 0x57e   : > { %2293 = vrot.lane.b32.xlu0 %v8156_v49, %s4337_s30  ;;  %v1850_v49 = vsel %vm6380_vm7, %v11810_v40, %v8210_v62  ;;  %v8365_v62 = vsel %vm1167_vm1, %v11988_v55, %v8141_v51  ;;  %4278 = vmaxabs.f32.vacc1 %v3437_v42, %v3441_v0  ;;  %v12016_v42 = vld [vmem:[#allocation173_spill] sm:$0xff] }
 0x57f   : > { %11989 = vst [vmem:[#allocation195_spill] sm:$0xff] %v8365_v62  ;;  %v3243_v51 = vsub.f32 %v8365_v62, %v7916_v21 }
 0x580   : > { %v8341_v48 = vpop.permute.xlu1 %2287 }
 0x581   : > { %11986 = vst [vmem:[#allocation127_spill] sm:$0xff] %v8341_v48  ;;  %v8357_v48 = vsel %vm1167_vm1, %v8017_v12, %v11984_v37  ;;  %v8375_v12 = vsel %vm1492_vm2, %v11991_v47, %v7933_v15  ;;  %v11994_v37 = vld [vmem:[#allocation164_spill] sm:$0xff]  ;;  %v11996_v15 = vld [vmem:[#allocation155_spill] sm:$0xff] }
 0x582   : > { %2357 = vrot.lane.b32.xlu0 %v8159_v16, %s4337_s30  ;;  %v3239_v16 = vsub.f32 %v8337_v38, %v7910_v7  ;;  %11992 = vst [vmem:[#allocation133_spill] sm:$0xff] %v8375_v12  ;;  %v3440_v44 = vsub.f32 %v8357_v48, %v8375_v12  ;;  %v8402_v47 = vsel %vm1492_vm2, %v11996_v15, %v8081_v54  ;;  %v12000_v12 = vld [vmem:[#allocation161_spill] sm:$0xff] }
 0x583   : > { %11997 = vst [vmem:[#allocation131_spill] sm:$0xff] %v8402_v47  ;;  %v8408_v55 = vsel %vm1492_vm2, %v8081_v54, %v11996_v15  ;;  %v3444_v9 = vsub.f32 %v8387_v23, %v8402_v47  ;;  %v8424_v54 = vsel %vm1492_vm2, %v8197_v31, %v12000_v12  ;;  %v8429_v15 = vsel %vm1167_vm1, %v1674_v3, %v11994_v37 }
 0x584   : > { %v8369_v19 = vpop.permute.xlu1 %2351  ;;  %11998 = vst [vmem:[#allocation83_spill] sm:$0xff] %v8408_v55  ;;  %v3445_v60 = vsub.f32 %v8365_v62, %v8408_v55  ;;  %12001 = vst [vmem:[#allocation139_spill] sm:$0xff] %v8424_v54  ;;  %v1489_v55 = vpop.permute.xlu0 %1488  ;;  %4261 = vmaxabs.f32.vacc0 %v3235_v59, %v3239_v16  ;;  %v8444_v58 = vsel %vm1492_vm2, %v12000_v12, %v8197_v31  ;;  %v12014_v62 = vld [vmem:[#allocation206_spill] sm:$0xff] }
 0x585   : > { %11990 = vst [vmem:[#allocation194_spill] sm:$0xff] %v8369_v19  ;;  %v8396_v19 = vsel %vm1167_vm1, %v11994_v37, %v1674_v3  ;;  %12003 = vst [vmem:[#allocation123_spill] sm:$0xff] %v8444_v58  ;;  %v8449_v3 = vsel %vm1167_vm1, %v1678_v14, %v12002_v24  ;;  %v3448_v37 = vsub.f32 %v8429_v15, %v8444_v58 }
 0x586   : > { %2037 = vrot.lane.b32.xlu0 %v8228_v57, %s4336_s29  ;;  %11995 = vst [vmem:[#allocation91_spill] sm:$0xff] %v8396_v19  ;;  %v3247_v47 = vsub.f32 %v8396_v19, %v7951_v4  ;;  %v3449_v43 = vsub.f32 %v8396_v19, %v8424_v54  ;;  %12004 = vst [vmem:[#allocation135_spill] sm:$0xff] %v8449_v3  ;;  %v12005_v54 = vld [vmem:[#allocation167_spill] sm:$0xff]  ;;  %4295 = vmaxabs.f32.vacc2 %v3436_v11, %v3440_v44 }
 0x587   : > { %v8456_v19 = vsel %vm1492_vm2, %v1485_v17, %v12005_v54  ;;  %v8465_v31 = vsel %vm1492_vm2, %v12005_v54, %v1485_v17  ;;  %v12013_v17 = vld [vmem:[#allocation85_spill] sm:$0xff]  ;;  %v3238_v38 = vsub.f32 %v8357_v48, %v12014_v62  ;;  %v8500_v44 = vsel %vm1492_vm2, %v12016_v42, %v1489_v55 }
 0x588   : > { %v8418_v20 = vpop.permute.xlu1 %2031  ;;  %12006 = vst [vmem:[#allocation138_spill] sm:$0xff] %v8456_v19  ;;  %12008 = vst [vmem:[#allocation97_spill] sm:$0xff] %v8465_v31  ;;  %v3452_v58 = vsub.f32 %v8449_v3, %v8465_v31  ;;  %v1682_v53 = vpop.permute.xlu0 %1681  ;;  %v3234_v54 = vsub.f32 %v8311_v46, %v12013_v17  ;;  %4262 = vmaxabs.f32.vacc0 %v3243_v51, %v3247_v47  ;;  %v12027_v31 = vld [vmem:[#allocation13_spill] sm:$0xff] }
 0x589   : > { %11999 = vst [vmem:[#allocation136_spill] sm:$0xff] %v8418_v20  ;;  %v8438_v20 = vsel %vm1167_vm1, %v12002_v24, %v1678_v14  ;;  %v12009_v14 = vld [vmem:[#allocation88_spill] sm:$0xff]  ;;  %4279 = vmaxabs.f32.vacc1 %v3445_v60, %v3449_v43  ;;  %12019 = vst [vmem:[#allocation158_spill] sm:$0xff] %v8500_v44  ;;  %v12022_v60 = vld [vmem:[#allocation94_spill] sm:$0xff]  ;;  %4296 = vmaxabs.f32.vacc2 %v3444_v9, %v3448_v37 }
 0x58a   : > { %2101 = vrot.lane.b32.xlu0 %v8279_v63, %s4336_s29  ;;  %v3251_v24 = vsub.f32 %v8438_v20, %v8005_v50  ;;  %v3453_v59 = vsub.f32 %v8438_v20, %v8456_v19  ;;  %v8472_v12 = vadd.f32 %v12009_v14, %v1849_v22  ;;  %v12021_v43 = vld [vmem:[#allocation176_spill] sm:$0xff]  ;;  %v3242_v14 = vsub.f32 %v8387_v23, %v12022_v60 }
 0x58b   : > { %v3005_v9 = vsub.f32 %v7991_v8, %v12027_v31  ;;  %v12028_v37 = vsub.f32 %v8270_v6, %v7720_v61  ;;  %v12031_v8 = vsub.f32 %v7959_v35, %v11723_v34  ;;  %v12035_v35 = vld [vmem:[#allocation8_spill] sm:$0xff] }
 0x58c   : > { %v8460_v16 = vpop.permute.xlu1 %2095  ;;  %12010 = vst [vmem:[#allocation137_spill] sm:$0xff] %v8472_v12 }
 0x58d   : > { %12007 = vst [vmem:[#allocation117_spill] sm:$0xff] %v8460_v16  ;;  %4311 = vmaxabs.f32.vacc3 %v12028_v37, %v3234_v54 }
 0x58e   : > { %2297 = vrot.lane.b32.xlu0 %v8228_v57, %s4337_s30  ;;  %v12011_v57 = vld [vmem:[#allocation101_spill] sm:$0xff] }
 0x58f   : > { %v8477_v16 = vadd.f32 %v12011_v57, %v1850_v49  ;;  %v8490_v49 = vsel %vm1492_vm2, %v1489_v55, %v12016_v42  ;;  %v12018_v57 = vld [vmem:[#allocation177_spill] sm:$0xff]  ;;  %4312 = vmaxabs.f32.vacc3 %v3238_v38, %v3242_v14 }
 0x590   : > { %v8485_v22 = vpop.permute.xlu1 %2291  ;;  %12017 = vst [vmem:[#allocation152_spill] sm:$0xff] %v8490_v49  ;;  %v8495_v11 = vsel %vm1167_vm1, %v12018_v57, %v1682_v53  ;;  %v8505_v0 = vsel %vm1167_vm1, %v1682_v53, %v12018_v57  ;;  %v12024_v53 = vld [vmem:[#allocation166_spill] sm:$0xff] }
 0x591   : > { %12012 = vst [vmem:[#allocation146_spill] sm:$0xff] %v8477_v16  ;;  %12015 = vst [vmem:[#allocation145_spill] sm:$0xff] %v8485_v22  ;;  %v3255_v47 = vsub.f32 %v8495_v11, %v12021_v43  ;;  %v3457_v51 = vsub.f32 %v8495_v11, %v8490_v49  ;;  %v3456_v22 = vsub.f32 %v8505_v0, %v8500_v44  ;;  %v12029_v44 = vld [vmem:[#allocation89_spill] sm:$0xff] }
 0x592   : > { %2361 = vrot.lane.b32.xlu0 %v8279_v63, %s4337_s30  ;;  %12020 = vst [vmem:[#allocation149_spill] sm:$0xff] %v8505_v0  ;;  %v3246_v42 = vsub.f32 %v8429_v15, %v12024_v53  ;;  %v12026_v49 = vsub.f32 %v11901_v1, %v11937_v27  ;;  %v12030_v1 = vsub.f32 %v11908_v45, %v11929_v36  ;;  %v3069_v27 = vand.u32 2147483647, %v3005_v9 }
 0x593   : > { %4263 = vmaxabs.f32.vacc0 %v3251_v24, %v3255_v47  ;;  %4280 = vmaxabs.f32.vacc1 %v3453_v59, %v3457_v51  ;;  %4297 = vmaxabs.f32.vacc2 %v3452_v58, %v3456_v22  ;;  %v3065_v24 = vand.u32 2147483647, %v12031_v8  ;;  %v12033_v22 = vld [vmem:[#allocation53_spill] sm:$0xff]  ;;  %v12036_v8 = vld [vmem:[#allocation190_spill] sm:$0xff] }
 0x594   : > { %v8517_v55 = vpop.permute.xlu1 %2355  ;;  %v3061_v19 = vand.u32 2147483647, %v12026_v49  ;;  %v3057_v49 = vand.u32 2147483647, %v12030_v1  ;;  %v3254_v61 = vsub.f32 %v8505_v0, %v8052_v32  ;;  %v12034_v51 = vsub.f32 %v7910_v7, %v12033_v22  ;;  %v12053_v32 = vld [vmem:[#allocation197_spill] sm:$0xff] }
 0x595   : > { %12023 = vst [vmem:[#allocation164_spill] sm:$0xff] %v8517_v55  ;;  %v3250_v55 = vsub.f32 %v8449_v3, %v12029_v44  ;;  %v4264_v59 = vmovacc.low.even.vacc0  ;;  %v4281_v47 = vmovacc.low.even.vacc1  ;;  %v8543_v54 = vmovacc.low.even.vacc2 }
 0x596   : > { %2041 = vrot.lane.b32.xlu0 %v8472_v12, %s4336_s29  ;;  %v8550_v37 = vand.u32 2147483647, %v12034_v51  ;;  %v3157_v45 = vmax.f32.f32 %v3057_v49, %v3061_v19  ;;  %v2996_v34 = vsub.f32 %v12036_v8, %v12035_v35  ;;  %v12039_v51 = vld [vmem:[#allocation57_spill] sm:$0xff]  ;;  %v3009_v0 = vsub.f32 %v8075_v5, %v11762_v29  ;;  %v12040_v8 = vld [vmem:[#allocation214_spill] sm:$0xff]  ;;  %v12043_v35 = vld [vmem:[#allocation27_spill] sm:$0xff] }
 0x597   : > { %v8521_v57 = vpop.permute.xlu0 %2013  ;;  %v3390_v1 = vrot.slane %v4264_v59, 4  ;;  %v3592_v31 = vrot.slane %v4281_v47, 4  ;;  %v12041_v9 = vsub.f32 %v7850_v39, %v12040_v8  ;;  %v12044_v5 = vld [vmem:[#allocation21_spill] sm:$0xff] }
 0x598   : > { %12025 = vst [vmem:[#allocation155_spill] sm:$0xff] %v8521_v57  ;;  %v2036_v57 = vpop.permute.xlu1 %2035  ;;  %v3159_v49 = vmax.f32.f32 %v3157_v45, %v3065_v24  ;;  %v1853_v24 = vsel %vm6376_vm6, %v12043_v35, %v8256_v28  ;;  %v12045_v29 = vld [vmem:[#allocation65_spill] sm:$0xff]  ;;  %v8581_v8 = vand.u32 2147483647, %v2996_v34 }
 0x599   : > { %4313 = vmaxabs.f32.vacc3 %v12041_v9, %v3246_v42  ;;  %v3593_v45 = vmax.f32 %v4281_v47, %v3592_v31  ;;  %v3391_v19 = vmax.f32 %v4264_v59, %v3390_v1  ;;  %v3073_v47 = vand.u32 2147483647, %v3009_v0 }
 0x59a   : > { %2105 = vrot.lane.b32.xlu0 %v8477_v16, %s4336_s29  ;;  %v3161_v42 = vmax.f32.f32 %v3159_v49, %v3069_v27 }
 0x59b   : > { %v8545_v58 = vpop.permute.xlu0 %2077  ;;  %v3594_v31 = vrot.slane %v3593_v45, 2  ;;  %v3392_v59 = vrot.slane %v3391_v19, 2  ;;  %4314 = vmaxabs.f32.vacc3 %v3250_v55, %v3254_v61 }
 0x59c   : > { %12032 = vst [vmem:[#allocation161_spill] sm:$0xff] %v8545_v58  ;;  %v2100_v36 = vpop.permute.xlu1 %2099  ;;  %v12037_v58 = vld [vmem:[#allocation55_spill] sm:$0xff] }
 0x59d   : > { %v12038_v63 = vsub.f32 %v7916_v21, %v12037_v58  ;;  %v2184_v14 = vsel %vm1167_vm1, %v2100_v36, %v2036_v57  ;;  %v2992_v21 = vsub.f32 %v12045_v29, %v12044_v5  ;;  %v12048_v29 = vld [vmem:[#allocation64_spill] sm:$0xff]  ;;  %v2152_v27 = vsel %vm1167_vm1, %v2036_v57, %v2100_v36  ;;  %v12051_v5 = vld [vmem:[#allocation150_spill] sm:$0xff] }
 0x59e   : > { %2301 = vrot.lane.b32.xlu0 %v8472_v12, %s4337_s30  ;;  %v8593_v34 = vadd.f32 %v12048_v29, %v1853_v24  ;;  %v3393_v12 = vmax.f32 %v3391_v19, %v3392_v59  ;;  %v12055_v24 = vld [vmem:[#allocation178_spill] sm:$0xff]  ;;  %v12056_v57 = vld [vmem:[#allocation156_spill] sm:$0xff] }
 0x59f   : > { %v8560_v7 = vand.u32 2147483647, %v12038_v63  ;;  %v8569_v38 = vpop.permute.xlu0 %2273  ;;  %v3013_v63 = vsub.f32 %v8128_v56, %v11790_v18  ;;  %v12047_v18 = vld [vmem:[#allocation159_spill] sm:$0xff]  ;;  %vm1170_vm9 = vcmp.ge.s32.totalorder %v12055_v24, 240  ;;  %v2557_v61 = vadd.f32 %v2152_v27, %v12056_v57 }
 0x5a0   : > { %12042 = vst [vmem:[#allocation170_spill] sm:$0xff] %v8569_v38  ;;  %v2296_v9 = vpop.permute.xlu1 %2295  ;;  %v12046_v38 = vld [vmem:[#allocation18_spill] sm:$0xff]  ;;  %v2231_v28 = vsel %vm1167_vm1, %v12047_v18, %v2184_v14  ;;  %12049 = vst [vmem:[#allocation167_spill] sm:$0xff] %v8593_v34  ;;  %v12052_v14 = vld [vmem:[#allocation151_spill] sm:$0xff]  ;;  %v3394_v27 = vrot.slane %v3393_v12, 1 }
 0x5a1   : > { %v1854_v56 = vsel %vm6380_vm7, %v12046_v38, %v8262_v26  ;;  %v3077_v49 = vand.u32 2147483647, %v3013_v63  ;;  %v3017_v26 = vsub.f32 %v12051_v5, %v11782_v30  ;;  %v3021_v39 = vsub.f32 %v12052_v14, %v11810_v40  ;;  %v12060_v14 = vld [vmem:[#allocation60_spill] sm:$0xff]  ;;  %v12061_v40 = vld [vmem:[#allocation103_spill] sm:$0xff]  ;;  %v12063_v30 = vld [vmem:[#allocation209_spill] sm:$0xff] }
 0x5a2   : > { %2365 = vrot.lane.b32.xlu0 %v8477_v16, %s4337_s30  ;;  %v3595_v16 = vmax.f32 %v3593_v45, %v3594_v31  ;;  %v8604_v0 = vadd.f32 %v12053_v32, %v1854_v56  ;;  %v2556_v36 = vadd.f32 %v2231_v28, %v12047_v18  ;;  %v4315_v5 = vmovacc.low.even.vacc3  ;;  %vm9773_vm12 = vmor %vm1170_vm9, %vm6380_vm7 }
 0x5a3   : > { %v3555_v32 = vrot.slane %v8543_v54, 4  ;;  %v3163_v28 = vmax.f32.f32 %v3161_v42, %v3073_v47  ;;  %v3081_v3 = vand.u32 2147483647, %v3017_v26  ;;  %v12064_v42 = vld [vmem:[#allocation216_spill] sm:$0xff]  ;;  %v12065_v47 = vld [vmem:[#allocation113_spill] sm:$0xff]  ;;  %vm9811_vm15 = vmor %vm1170_vm9, %vm6353_vm5 }
 0x5a4   : > { %v8597_v1 = vpop.permute.xlu0 %2337  ;;  %12054 = vst [vmem:[#allocation101_spill] sm:$0xff] %v8604_v0  ;;  %v2360_v55 = vpop.permute.xlu1 %2359  ;;  %v3596_v45 = vrot.slane %v3595_v16, 1  ;;  %v12069_v26 = vld [vmem:[#allocation49_spill] sm:$0xff] }
 0x5a5   : > { %12050 = vst [vmem:[#allocation88_spill] sm:$0xff] %v8597_v1  ;;  %v2413_v63 = vsel %vm2401_vm8, %v2296_v9, %v2360_v55  ;;  %v2445_v19 = vsel %vm2401_vm8, %v2360_v55, %v2296_v9  ;;  %v12062_v55 = vld [vmem:[#allocation10_spill] sm:$0xff]  ;;  %v3353_v9 = vrot.slane %v4315_v5, 4 }
 0x5a6   : > { %2045 = vrot.lane.b32.xlu0 %v8593_v34, %s4336_s29  ;;  %v2493_v31 = vsel %vm1170_vm9, %v12056_v57, %v2445_v19  ;;  %v8621_v18 = vadd.f32 %v2556_v36, %v2413_v63  ;;  %v3597_v29 = vmax.f32 %v3595_v16, %v3596_v45  ;;  %v3000_v1 = vsub.f32 %v12063_v30, %v12062_v55  ;;  %v12068_v63 = vld [vmem:[#allocation109_spill] sm:$0xff] }
 0x5a7   : > { %v8623_v59 = vadd.f32 %v2557_v61, %v2493_v31  ;;  %v12066_v57 = vmax.f32.f32 %v12064_v42, %v12065_v47  ;;  %v12067_v61 = vld [vmem:[#allocation45_spill] sm:$0xff]  ;;  %v3056_v45 = vand.u32 2147483647, %v2992_v21  ;;  %v3165_v31 = vmax.f32.f32 %v3163_v28, %v3077_v49 }
 0x5a8   : > { %v8616_v56 = vpop.permute.xlu0 %2017  ;;  %12058 = vst [vmem:[#allocation206_spill] sm:$0xff] %v8621_v18  ;;  %3606 = vrot.lane.b32.xlu1 %v3597_v29, %s4334_s24  ;;  %v3085_v30 = vand.u32 2147483647, %v3021_v39  ;;  %v3556_v55 = vmax.f32 %v8543_v54, %v3555_v32  ;;  %v12071_v42 = vsub.f32 %v7951_v4, %v12039_v51  ;;  %v3395_v49 = vmax.f32 %v3393_v12, %v3394_v27  ;;  %v12073_v32 = vld [vmem:[#allocation42_spill] sm:$0xff]  ;;  %v12074_v19 = vld [vmem:[#allocation165_spill] sm:$0xff]  ;;  %v12089_v4 = vld [vmem:[#allocation211_spill] sm:$0xff] }
 0x5a9   : > { %12057 = vst [vmem:[#allocation85_spill] sm:$0xff] %v8616_v56  ;;  %12059 = vst [vmem:[#allocation173_spill] sm:$0xff] %v8623_v59  ;;  %v3025_v56 = vsub.f32 %v8234_v10, %v12046_v38  ;;  %v2040_v36 = vpop.permute.xlu1 %2039  ;;  %v8637_v16 = vmax.f32.f32 %v12066_v57, %v8550_v37  ;;  %v3029_v10 = vsub.f32 %v8246_v33, %v12069_v26  ;;  %v3064_v39 = vand.u32 2147483647, %v3000_v1  ;;  %v12072_v33 = vld [vmem:[#allocation51_spill] sm:$0xff]  ;;  %v12076_v18 = vld [vmem:[#allocation186_spill] sm:$0xff] }
 0x5aa   : > { %2109 = vrot.lane.b32.xlu0 %v8604_v0, %s4336_s29  ;;  %v8652_v47 = vand.u32 2147483647, %v12071_v42  ;;  %v3120_v21 = vmax.f32.f32 %v3056_v45, %v8581_v8  ;;  %v3167_v28 = vmax.f32.f32 %v3165_v31, %v3081_v3  ;;  %v3033_v57 = vsub.f32 %v8305_v25, %v12072_v33  ;;  %v12075_v59 = vld [vmem:[#allocation43_spill] sm:$0xff]  ;;  %v12079_v31 = vld [vmem:[#allocation61_spill] sm:$0xff] }
 0x5ab   : > { %v3089_v29 = vand.u32 2147483647, %v3025_v56  ;;  %v3004_v37 = vsub.f32 %v12074_v19, %v12073_v32  ;;  %v3008_v42 = vsub.f32 %v12076_v18, %v12075_v59  ;;  %v3093_v25 = vand.u32 2147483647, %v3029_v10  ;;  %v12078_v45 = vld [vmem:[#allocation59_spill] sm:$0xff]  ;;  %v12081_v32 = vld [vmem:[#allocation188_spill] sm:$0xff] }
 0x5ac   : > { %v8644_v38 = vpop.permute.xlu0 %2081  ;;  %3600 = vrot.lane.b32.xlu1 %v3395_v49, %s4335_s28  ;;  %v3169_v8 = vmax.f32.f32 %v3167_v28, %v3085_v30  ;;  %v3557_v56 = vrot.slane %v3556_v55, 2  ;;  %v3354_v27 = vmax.f32 %v4315_v5, %v3353_v9  ;;  %v2847_v19 = vsub.f32 %v8005_v50, %v12078_v45  ;;  %v12080_v49 = vld [vmem:[#allocation23_spill] sm:$0xff]  ;;  %v12084_v50 = vld [vmem:[#allocation157_spill] sm:$0xff] }
 0x5ad   : > { %12070 = vst [vmem:[#allocation177_spill] sm:$0xff] %v8644_v38  ;;  %v2104_v54 = vpop.permute.xlu1 %2103  ;;  %v2851_v18 = vsub.f32 %v12021_v43, %v12079_v31  ;;  %v1857_v59 = vsel %vm6376_vm6, %v12080_v49, %v8285_v52  ;;  %v3122_v30 = vmax.f32.f32 %v3120_v21, %v3064_v39  ;;  %v3097_v28 = vand.u32 2147483647, %v3033_v57  ;;  %v12083_v43 = vld [vmem:[#allocation215_spill] sm:$0xff] }
 0x5ae   : > { %2305 = vrot.lane.b32.xlu0 %v8593_v34, %s4337_s30  ;;  %v2154_v12 = vsel %vm1167_vm1, %v2040_v36, %v2104_v54  ;;  %v2186_v3 = vsel %vm1167_vm1, %v2104_v54, %v2040_v36  ;;  %v3037_v36 = vsub.f32 %v12081_v32, %v12033_v22  ;;  %v3171_v10 = vmax.f32.f32 %v3169_v8, %v3089_v29  ;;  %v12082_v54 = vld [vmem:[#allocation195_spill] sm:$0xff]  ;;  %v12086_v29 = vld [vmem:[#allocation200_spill] sm:$0xff] }
 0x5af   : > { %v3041_v5 = vsub.f32 %v12082_v54, %v12037_v58  ;;  %v3072_v38 = vand.u32 2147483647, %v3008_v42  ;;  %v1858_v52 = vsel %vm6380_vm7, %v12069_v26, %v12083_v43  ;;  %v2235_v21 = vsel %vm1167_vm1, %v12084_v50, %v2186_v3  ;;  %v12085_v39 = vld [vmem:[#allocation179_spill] sm:$0xff]  ;;  %v12088_v54 = vld [vmem:[#allocation46_spill] sm:$0xff] }
 0x5b0   : > { %v8668_v1 = vpop.permute.xlu0 %2277  ;;  %2311 = vrot.lane.b32.xlu1 %v12085_v39, %s4337_s30  ;;  %v8694_v57 = vadd.f32 %v12086_v29, %v1857_v59  ;;  %v3173_v32 = vmax.f32.f32 %v3171_v10, %v3093_v25  ;;  %v3355_v42 = vrot.slane %v3354_v27, 2  ;;  %v3012_v58 = vsub.f32 %v12089_v4, %v12088_v54  ;;  %v12091_v43 = vld [vmem:[#allocation102_spill] sm:$0xff]  ;;  %v12092_v3 = vld [vmem:[#allocation91_spill] sm:$0xff] }
 0x5b1   : > { %12077 = vst [vmem:[#allocation94_spill] sm:$0xff] %v8668_v1  ;;  %v2300_v9 = vpop.permute.xlu1 %2299  ;;  %v3068_v1 = vand.u32 2147483647, %v3004_v37  ;;  %v3558_v37 = vmax.f32 %v3556_v55, %v3557_v56  ;;  %v3101_v34 = vand.u32 2147483647, %v3037_v36  ;;  %v3045_v22 = vsub.f32 %v12092_v3, %v12039_v51  ;;  %v12094_v56 = vld [vmem:[#allocation162_spill] sm:$0xff] }
 0x5b2   : > { %2369 = vrot.lane.b32.xlu0 %v8604_v0, %s4337_s30  ;;  %v12090_v0 = vld [vmem:[#allocation62_spill] sm:$0xff]  ;;  %v8705_v39 = vadd.f32 %v12093_v41, %v1858_v52  ;;  %v3175_v59 = vmax.f32.f32 %v3173_v32, %v3097_v28  ;;  %v3105_v29 = vand.u32 2147483647, %v3041_v5  ;;  %v2560_v55 = vadd.f32 %v2235_v21, %v12084_v50  ;;  %v12095_v36 = vld [vmem:[#allocation187_spill] sm:$0xff] }
 0x5b3   : > { %v3016_v26 = vsub.f32 %v12091_v43, %v12090_v0  ;;  %v3049_v4 = vsub.f32 %v8438_v20, %v12078_v45  ;;  %v2561_v10 = vadd.f32 %v2154_v12, %v12094_v56  ;;  %v3559_v20 = vrot.slane %v3558_v37, 1 }
 0x5b4   : > { %v8696_v8 = vpop.permute.xlu0 %2341  ;;  %2375 = vrot.lane.b32.xlu1 %v12095_v36, %s4337_s30  ;;  %v3356_v21 = vmax.f32 %v3354_v27, %v3355_v42  ;;  %v3177_v12 = vmax.f32.f32 %v3175_v59, %v3101_v34  ;;  %v3109_v32 = vand.u32 2147483647, %v3045_v22  ;;  %v3053_v43 = vsub.f32 %v8495_v11, %v12079_v31 }
 0x5b5   : > { %12087 = vst [vmem:[#allocation166_spill] sm:$0xff] %v8696_v8  ;;  %v2364_v25 = vpop.permute.xlu1 %2363  ;;  %v2911_v0 = vand.u32 2147483647, %v2847_v19  ;;  %v3124_v54 = vmax.f32.f32 %v3122_v30, %v3068_v1  ;;  %v12101_v27 = vsub.f32 %v12061_v40, %v12060_v14  ;;  %v12102_v11 = vmax.f32.f32 %v8637_v16, %v8560_v7  ;;  %v12105_v40 = vld [vmem:[#allocation124_spill] sm:$0xff] }
 0x5b6   : > { %2049 = vrot.lane.b32.xlu0 %v8694_v57, %s4336_s29  ;;  %v2415_v41 = vsel %vm2401_vm8, %v2300_v9, %v2364_v25  ;;  %v2447_v28 = vsel %vm2401_vm8, %v2364_v25, %v2300_v9  ;;  %v3076_v9 = vand.u32 2147483647, %v3012_v58  ;;  %v12099_v25 = vld [vmem:[#allocation25_spill] sm:$0xff]  ;;  %v3179_v42 = vmax.f32.f32 %v3177_v12, %v3105_v29  ;;  %v12103_v58 = vld [vmem:[#allocation63_spill] sm:$0xff] }
 0x5b7   : > { %v2497_v50 = vsel %vm1170_vm9, %v12094_v56, %v2447_v28  ;;  %v8724_v52 = vadd.f32 %v2560_v55, %v2415_v41  ;;  %v3115_v34 = vand.u32 2147483647, %v12101_v27  ;;  %v2984_v22 = vmax.f32.f32 %v12102_v11, %v8652_v47 }
 0x5b8   : > { %v8719_v5 = vpop.permute.xlu0 %2021  ;;  %v8728_v3 = vadd.f32 %v2561_v10, %v2497_v50  ;;  %v3113_v19 = vand.u32 2147483647, %v3049_v4  ;;  %2055 = vrot.lane.b32.xlu1 %v12103_v58, %s4336_s29  ;;  %v2915_v1 = vand.u32 2147483647, %v2851_v18  ;;  %v3126_v30 = vmax.f32.f32 %v3124_v54, %v3072_v38 }
 0x5b9   : > { %12096 = vst [vmem:[#allocation89_spill] sm:$0xff] %v8719_v5  ;;  %12097 = vst [vmem:[#allocation190_spill] sm:$0xff] %v8724_v52  ;;  %v12100_v5 = vld [vmem:[#allocation122_spill] sm:$0xff]  ;;  %v2044_v55 = vpop.permute.xlu1 %2043  ;;  %v3560_v56 = vmax.f32 %v3558_v37, %v3559_v20  ;;  %v3357_v10 = vrot.slane %v3356_v21, 1  ;;  %v3080_v41 = vand.u32 2147483647, %v3016_v26  ;;  %v3024_v28 = vsub.f32 %v12105_v40, %v12043_v35 }
 0x5ba   : > { %12098 = vst [vmem:[#allocation65_spill] sm:$0xff] %v8728_v3  ;;  %v3020_v8 = vsub.f32 %v12100_v5, %v12099_v25  ;;  %2113 = vrot.lane.b32.xlu0 %v8705_v39, %s4336_s29  ;;  %v3181_v5 = vmax.f32.f32 %v3179_v42, %v3109_v32  ;;  %v3117_v50 = vand.u32 2147483647, %v3053_v43  ;;  %v12106_v7 = vsub.f32 %v12068_v63, %v12067_v61  ;;  %v12107_v26 = vld [vmem:[#allocation180_spill] sm:$0xff]  ;;  %v12111_v32 = vld [vmem:[#allocation31_spill] sm:$0xff]  ;;  %v12145_v52 = vld [vmem:[#allocation205_spill] sm:$0xff] }
 0x5bb   : > { %v2983_v47 = vmax.f32.f32 %v2911_v0, %v2984_v22  ;;  %v3128_v29 = vmax.f32.f32 %v3126_v30, %v3076_v9  ;;  %v3028_v18 = vsub.f32 %v8270_v6, %v12080_v49  ;;  %v12108_v20 = vld [vmem:[#allocation92_spill] sm:$0xff]  ;;  %v12109_v0 = vld [vmem:[#allocation78_spill] sm:$0xff]  ;;  %v2834_v43 = vsub.f32 %v12014_v62, %v12111_v32  ;;  %v12112_v9 = vld [vmem:[#allocation33_spill] sm:$0xff] }
 0x5bc   : > { %v8743_v59 = vpop.permute.xlu0 %2085  ;;  %v3119_v16 = vand.u32 2147483647, %v12106_v7  ;;  %v3084_v4 = vand.u32 2147483647, %v3020_v8  ;;  %v3183_v37 = vmax.f32.f32 %v3181_v5, %v3113_v19  ;;  %2119 = vrot.lane.b32.xlu1 %v12107_v26, %s4336_s29  ;;  %v12110_v12 = vmax.f32.f32 %v12108_v20, %v12109_v0  ;;  %v12115_v40 = vld [vmem:[#allocation36_spill] sm:$0xff]  ;;  %v12137_v35 = vld [vmem:[#allocation135_spill] sm:$0xff] }
 0x5bd   : > { %12104 = vst [vmem:[#allocation159_spill] sm:$0xff] %v8743_v59  ;;  %v2108_v38 = vpop.permute.xlu1 %2107  ;;  %v2838_v6 = vsub.f32 %v12022_v60, %v12112_v9  ;;  %v3358_v11 = vmax.f32 %v3356_v21, %v3357_v10  ;;  %v2985_v22 = vmax.f32.f32 %v2983_v47, %v2915_v1  ;;  %v3130_v42 = vmax.f32.f32 %v3128_v29, %v3080_v41  ;;  %v12117_v7 = vld [vmem:[#allocation116_spill] sm:$0xff]  ;;  %v12357_v49 = vld [vmem:[#allocation17_spill] sm:$0xff] }
 0x5be   : > { %3604 = vrot.lane.b32.xlu0 %v3560_v56, %s4334_s24  ;;  %v2156_v54 = vsel %vm1167_vm1, %v2044_v55, %v2108_v38  ;;  %v2188_v63 = vsel %vm1167_vm1, %v2108_v38, %v2044_v55  ;;  %v3184_v8 = vmax.f32.f32 %v12110_v12, %v3115_v34  ;;  %v3088_v19 = vand.u32 2147483647, %v3024_v28  ;;  %v12114_v56 = vld [vmem:[#allocation112_spill] sm:$0xff]  ;;  %v12118_v34 = vld [vmem:[#allocation99_spill] sm:$0xff]  ;;  %v12121_v12 = vld [vmem:[#allocation29_spill] sm:$0xff] }
 0x5bf   : > { %v3185_v30 = vmax.f32.f32 %v3183_v37, %v3117_v50  ;;  %v12116_v55 = vsub.f32 %v12114_v56, %v12115_v40  ;;  %v12119_v38 = vld [vmem:[#allocation100_spill] sm:$0xff]  ;;  %v12123_v21 = vsel %vm6271_vm4, %v12121_v12, %v12013_v17  ;;  %v3032_v10 = vsub.f32 %v8311_v46, %v12121_v12  ;;  %v12126_v17 = vld [vmem:[#allocation198_spill] sm:$0xff] }
 0x5c0   : > { %v8766_v27 = vpop.permute.xlu0 %2281  ;;  %v12120_v20 = vmax.f32.f32 %v12118_v34, %v12119_v38  ;;  %v1925_v1 = vadd.f32 %v12123_v21, %v12121_v12  ;;  %v3186_v28 = vmax.f32.f32 %v3184_v8, %v3119_v16  ;;  %v3132_v50 = vmax.f32.f32 %v3130_v42, %v3084_v4  ;;  %v12124_v29 = vld [vmem:[#allocation168_spill] sm:$0xff]  ;;  %2315 = vrot.lane.b32.xlu1 %v12103_v58, %s4337_s30  ;;  %v12130_v38 = vld [vmem:[#allocation35_spill] sm:$0xff] }
 0x5c1   : > { %12113 = vst [vmem:[#allocation64_spill] sm:$0xff] %v8766_v27  ;;  %v8771_v5 = vand.u32 2147483647, %v12116_v55  ;;  %v2304_v41 = vpop.permute.xlu1 %2303  ;;  %v3092_v47 = vand.u32 2147483647, %v3028_v18  ;;  %v2239_v37 = vsel %vm1167_vm1, %v12124_v29, %v2188_v63  ;;  %v12127_v55 = vsel %vm6353_vm5, %v12072_v33, %v12126_v17 }
 0x5c2   : > { %v2939_v0 = vmax.f32.f32 %v12120_v20, %v12117_v7  ;;  %3598 = vrot.lane.b32.xlu0 %v3358_v11, %s4335_s28  ;;  %v1926_v46 = vadd.f32 %v12127_v55, %v12072_v33  ;;  %v12128_v7 = vld [vmem:[#allocation218_spill] sm:$0xff]  ;;  %v2898_v34 = vand.u32 2147483647, %v2834_v43  ;;  %v3036_v16 = vsub.f32 %v8357_v48, %v12111_v32  ;;  %v12131_v55 = vld [vmem:[#allocation169_spill] sm:$0xff] }
 0x5c3   : > { %v2902_v18 = vand.u32 2147483647, %v2838_v6  ;;  %v2986_v63 = vrot.slane %v2985_v22, 4  ;;  %v3134_v8 = vmax.f32.f32 %v3132_v50, %v3088_v19  ;;  %v3187_v42 = vmax.f32.f32 %v3185_v30, %v3186_v28  ;;  %v12134_v50 = vld [vmem:[#allocation71_spill] sm:$0xff] }
 0x5c4   : > { %v2941_v11 = vmax.f32.f32 %v2939_v0, %v12128_v7  ;;  %v8800_v4 = vpop.permute.xlu0 %2345  ;;  %v2842_v20 = vsub.f32 %v12024_v53, %v12130_v38  ;;  %v3096_v21 = vand.u32 2147483647, %v3032_v10  ;;  %v3040_v17 = vsub.f32 %v8387_v23, %v12112_v9  ;;  %2379 = vrot.lane.b32.xlu1 %v12107_v26, %s4337_s30 }
 0x5c5   : > { %12129 = vst [vmem:[#allocation150_spill] sm:$0xff] %v8800_v4  ;;  %v2564_v43 = vadd.f32 %v2239_v37, %v12124_v29  ;;  %v2368_v0 = vpop.permute.xlu1 %2367  ;;  %v3136_v48 = vmax.f32.f32 %v3134_v8, %v3092_v47  ;;  %v2565_v7 = vadd.f32 %v2156_v54, %v12131_v55  ;;  %v3100_v30 = vand.u32 2147483647, %v3036_v16  ;;  %v12136_v16 = vld [vmem:[#allocation37_spill] sm:$0xff]  ;;  %v12148_v4 = vld [vmem:[#allocation68_spill] sm:$0xff] }
 0x5c6   : > { %2309 = vrot.lane.b32.xlu0 %v8694_v57, %s4337_s30  ;;  %v2417_v6 = vsel %vm2401_vm8, %v2304_v41, %v2368_v0  ;;  %v2449_v19 = vsel %vm2401_vm8, %v2368_v0, %v2304_v41  ;;  %v3044_v23 = vsub.f32 %v8429_v15, %v12130_v38  ;;  %v1861_v47 = vsel %vm6376_vm6, %v12121_v12, %v12134_v50 }
 0x5c7   : > { %v2501_v28 = vsel %vm1170_vm9, %v12131_v55, %v2449_v19  ;;  %v8823_v54 = vadd.f32 %v2564_v43, %v2417_v6  ;;  %v3188_v29 = vrot.slane %v3187_v42, 4  ;;  %v2987_v41 = vmax.f32 %v2985_v22, %v2986_v63  ;;  %v12138_v55 = vld [vmem:[#allocation38_spill] sm:$0xff]  ;;  %v12139_v6 = vld [vmem:[#allocation79_spill] sm:$0xff]  ;;  %v12142_v63 = vld [vmem:[#allocation93_spill] sm:$0xff] }
 0x5c8   : > { %v8818_v10 = vpop.permute.xlu0 %2025  ;;  %v8829_v37 = vadd.f32 %v2565_v7, %v2501_v28  ;;  %v2846_v15 = vsub.f32 %v12029_v44, %v12136_v16  ;;  %v3138_v8 = vmax.f32.f32 %v3136_v48, %v3096_v21  ;;  %v3104_v0 = vand.u32 2147483647, %v3040_v17  ;;  %v12140_v7 = vld [vmem:[#allocation39_spill] sm:$0xff]  ;;  %v12141_v28 = vld [vmem:[#allocation108_spill] sm:$0xff]  ;;  %2059 = vrot.lane.b32.xlu1 %v12142_v63, %s4336_s29 }
 0x5c9   : > { %12132 = vst [vmem:[#allocation151_spill] sm:$0xff] %v8818_v10  ;;  %12133 = vst [vmem:[#allocation197_spill] sm:$0xff] %v8823_v54  ;;  %v3048_v25 = vsub.f32 %v12137_v35, %v12136_v16  ;;  %v2048_v43 = vpop.permute.xlu1 %2047  ;;  %v3050_v19 = vsub.f32 %v12139_v6, %v12138_v55  ;;  %v2943_v50 = vmax.f32.f32 %v2941_v11, %v2898_v34  ;;  %v2906_v12 = vand.u32 2147483647, %v2842_v20  ;;  %v12143_v35 = vld [vmem:[#allocation149_spill] sm:$0xff]  ;;  %v12147_v10 = vld [vmem:[#allocation19_spill] sm:$0xff] }
 0x5ca   : > { %12135 = vst [vmem:[#allocation156_spill] sm:$0xff] %v8829_v37  ;;  %2373 = vrot.lane.b32.xlu0 %v8705_v39, %s4337_s30  ;;  %v2850_v22 = vsub.f32 %v12141_v28, %v12140_v7  ;;  %v8843_v21 = vadd.f32 %v1925_v1, %v1861_v47  ;;  %v3140_v17 = vmax.f32.f32 %v3138_v8, %v3100_v30  ;;  %v3108_v48 = vand.u32 2147483647, %v3044_v23 }
 0x5cb   : > { %v3052_v37 = vsub.f32 %v12143_v35, %v12140_v7  ;;  %v2945_v3 = vmax.f32.f32 %v2943_v50, %v2902_v18  ;;  %v1862_v34 = vsel %vm6380_vm7, %v12072_v33, %v12145_v52  ;;  %v2988_v20 = vrot.slane %v2987_v41, 2  ;;  %v12149_v18 = vld [vmem:[#allocation143_spill] sm:$0xff] }
 0x5cc   : > { %v8847_v54 = vpop.permute.xlu0 %2089  ;;  %v3189_v6 = vmax.f32 %v3187_v42, %v3188_v29  ;;  %v3054_v27 = vsub.f32 %v12148_v4, %v12147_v10  ;;  %v2910_v1 = vand.u32 2147483647, %v2846_v15  ;;  %v3142_v47 = vmax.f32.f32 %v3140_v17, %v3104_v0  ;;  %2123 = vrot.lane.b32.xlu1 %v12149_v18, %s4336_s29 }
 0x5cd   : > { %12144 = vst [vmem:[#allocation103_spill] sm:$0xff] %v8847_v54  ;;  %v3112_v30 = vand.u32 2147483647, %v3048_v25  ;;  %v2112_v23 = vpop.permute.xlu1 %2111  ;;  %v3114_v8 = vand.u32 2147483647, %v3050_v19  ;;  %v2947_v35 = vmax.f32.f32 %v2945_v3, %v2906_v12  ;;  %v8863_v4 = vadd.f32 %v1926_v46, %v1862_v34  ;;  %v12150_v3 = vld [vmem:[#allocation74_spill] sm:$0xff] }
 0x5ce   : > { %2053 = vrot.lane.b32.xlu0 %v8843_v21, %s4336_s29  ;;  %v2158_v52 = vsel %vm1167_vm1, %v2048_v43, %v2112_v23  ;;  %v2190_v42 = vsel %vm1167_vm1, %v2112_v23, %v2048_v43  ;;  %v2914_v29 = vand.u32 2147483647, %v2850_v22  ;;  %v3144_v15 = vmax.f32.f32 %v3142_v47, %v3108_v48  ;;  %v12151_v43 = vld [vmem:[#allocation172_spill] sm:$0xff] }
 0x5cf   : > { %v3116_v25 = vand.u32 2147483647, %v3052_v37  ;;  %v2989_v50 = vmax.f32 %v2987_v41, %v2988_v20  ;;  %v3190_v17 = vrot.slane %v3189_v6, 2  ;;  %v3145_v12 = vmax.f32.f32 %v12150_v3, %v8771_v5 }
 0x5d0   : > { %v8865_v0 = vpop.permute.xlu0 %2285  ;;  %v3118_v19 = vand.u32 2147483647, %v3054_v27  ;;  %v2946_v33 = vmax.f32.f32 %v2910_v1, %v2947_v35  ;;  %v3146_v54 = vmax.f32.f32 %v3144_v15, %v3112_v30  ;;  %v2243_v46 = vsel %vm1167_vm1, %v12151_v43, %v2190_v42  ;;  %2319 = vrot.lane.b32.xlu1 %v12142_v63, %s4337_s30  ;;  %v12152_v30 = vld [vmem:[#allocation80_spill] sm:$0xff] }
 0x5d1   : > { %v2308_v59 = vpop.permute.xlu1 %2307  ;;  %v3147_v37 = vmax.f32.f32 %v3145_v12, %v3114_v8  ;;  %v2990_v5 = vrot.slane %v2989_v50, 1  ;;  %v3191_v27 = vmax.f32 %v3189_v6, %v3190_v17  ;;  %v2568_v20 = vadd.f32 %v2243_v46, %v12151_v43  ;;  %v12156_v12 = vld [vmem:[#allocation204_spill] sm:$0xff] }
 0x5d2   : > { %2117 = vrot.lane.b32.xlu0 %v8863_v4, %s4336_s29  ;;  %v2948_v41 = vmax.f32.f32 %v2946_v33, %v2914_v29  ;;  %v3148_v22 = vmax.f32.f32 %v3146_v54, %v3116_v25  ;;  %v1797_v47 = vsel %vm6271_vm4, %v12111_v32, %v12014_v62  ;;  %v2569_v23 = vadd.f32 %v2158_v52, %v12152_v30  ;;  %v12154_v52 = vld [vmem:[#allocation133_spill] sm:$0xff] }
 0x5d3   : > { %v3149_v34 = vmax.f32.f32 %v3147_v37, %v3118_v19  ;;  %v1865_v29 = vsel %vm6376_vm6, %v12111_v32, %v12154_v52  ;;  %v8905_v25 = vmax.f32 %v2989_v50, %v2990_v5  ;;  %v1929_v17 = vadd.f32 %v1797_v47, %v12111_v32  ;;  %v12157_v19 = vld [vmem:[#allocation53_spill] sm:$0xff]  ;;  %v12158_v5 = vld [vmem:[#allocation140_spill] sm:$0xff] }
 0x5d4   : > { %v8876_v48 = vpop.permute.xlu0 %2349  ;;  %2383 = vrot.lane.b32.xlu1 %v12149_v18, %s4337_s30  ;;  %v2949_v6 = vrot.slane %v2948_v41, 4  ;;  %v1798_v43 = vsel %vm6353_vm5, %v12157_v19, %v12156_v12 }
 0x5d5   : > { %v2372_v1 = vpop.permute.xlu1 %2371  ;;  %v3150_v8 = vmax.f32.f32 %v3148_v22, %v3149_v34  ;;  %v8916_v46 = vadd.f32 %v1929_v17, %v1865_v29  ;;  %v1866_v34 = vsel %vm6380_vm7, %v12157_v19, %v12158_v5  ;;  %v12161_v5 = vld [vmem:[#allocation82_spill] sm:$0xff] }
 0x5d6   : > { %2313 = vrot.lane.b32.xlu0 %v8843_v21, %s4337_s30  ;;  %v2419_v33 = vsel %vm2401_vm8, %v2308_v59, %v2372_v1  ;;  %v2451_v54 = vsel %vm2401_vm8, %v2372_v1, %v2308_v59  ;;  %v3192_v59 = vrot.slane %v3191_v27, 1  ;;  %v2950_v22 = vmax.f32 %v2948_v41, %v2949_v6 }
 0x5d7   : > { %v2505_v42 = vsel %vm1170_vm9, %v12152_v30, %v2451_v54  ;;  %v8897_v62 = vadd.f32 %v2568_v20, %v2419_v33  ;;  %v3151_v37 = vrot.slane %v3150_v8, 4  ;;  %v1930_v1 = vadd.f32 %v1798_v43, %v12157_v19  ;;  %v12165_v19 = vld [vmem:[#allocation181_spill] sm:$0xff] }
 0x5d8   : > { %v8892_v35 = vpop.permute.xlu0 %2029  ;;  %v8903_v15 = vadd.f32 %v2569_v23, %v2505_v42  ;;  %3614 = vrot.lane.b32.xlu1 %v8905_v25, %s4335_s28  ;;  %v8924_v20 = vmax.f32 %v3191_v27, %v3192_v59  ;;  %v2951_v33 = vrot.slane %v2950_v22, 2 }
 0x5d9   : > { %12153 = vst [vmem:[#allocation209_spill] sm:$0xff] %v8897_v62  ;;  %v2052_v3 = vpop.permute.xlu1 %2051  ;;  %v8939_v23 = vadd.f32 %v1930_v1, %v1866_v34  ;;  %v3152_v54 = vmax.f32 %v3150_v8, %v3151_v37 }
 0x5da   : > { %12155 = vst [vmem:[#allocation216_spill] sm:$0xff] %v8903_v15  ;;  %2377 = vrot.lane.b32.xlu0 %v8863_v4, %s4337_s30  ;;  %v2952_v42 = vmax.f32 %v2950_v22, %v2951_v33 }
 0x5db   : > { %v3153_v52 = vrot.slane %v3152_v54, 2 }
 0x5dc   : > { %v8918_v50 = vpop.permute.xlu0 %2093  ;;  %3628 = vrot.lane.b32.xlu1 %v8924_v20, %s4337_s30  ;;  %v2953_v59 = vrot.slane %v2952_v42, 1 }
 0x5dd   : > { %v2116_v47 = vpop.permute.xlu1 %2115  ;;  %v3154_v17 = vmax.f32 %v3152_v54, %v3153_v52  ;;  %v12162_v54 = vld [vmem:[#allocation201_spill] sm:$0xff] }
 0x5de   : > { %2057 = vrot.lane.b32.xlu0 %v8916_v46, %s4336_s29  ;;  %v8933_v30 = vsel %vm1167_vm1, %v2052_v3, %v2116_v47  ;;  %v8937_v41 = vsel %vm1167_vm1, %v2116_v47, %v2052_v3  ;;  %v8951_v12 = vmax.f32 %v2952_v42, %v2953_v59 }
 0x5df   : > { %v3155_v8 = vrot.slane %v3154_v17, 1 }
 0x5e0   : > { %v8941_v27 = vpop.permute.xlu0 %2289 }
 0x5e1   : > { %12159 = vst [vmem:[#allocation113_spill] sm:$0xff] %v8941_v27  ;;  %v8957_v22 = vmax.f32 %v3154_v17, %v3155_v8 }
 0x5e2   : > { %2121 = vrot.lane.b32.xlu0 %v8939_v23, %s4336_s29 }
 0x5e4   : > { %v8945_v6 = vpop.permute.xlu0 %2353 }
 0x5e5   : > { %12160 = vst [vmem:[#allocation109_spill] sm:$0xff] %v8945_v6 }
 0x5e6   : > { %2317 = vrot.lane.b32.xlu0 %v8916_v46, %s4337_s30 }
 0x5e8   : > { %v2034_v29 = vpop.permute.xlu0 %2033 }
 0x5ea   : > { %2381 = vrot.lane.b32.xlu0 %v8939_v23, %s4337_s30 }
 0x5ec   : > { %v2098_v3 = vpop.permute.xlu0 %2097 }
 0x5ed   : > { %v2183_v43 = vsel %vm1167_vm1, %v2098_v3, %v2034_v29  ;;  %v2151_v1 = vsel %vm1167_vm1, %v2034_v29, %v2098_v3 }
 0x5ee   : > { %3612 = vrot.lane.b32.xlu0 %v8951_v12, %s4335_s28  ;;  %v2229_v34 = vsel %vm1167_vm1, %v12161_v5, %v2183_v43  ;;  %v2555_v42 = vadd.f32 %v2151_v1, %v12162_v54 }
 0x5ef   : > { %v2554_v47 = vadd.f32 %v2229_v34, %v12161_v5 }
 0x5f0   : > { %v2294_v37 = vpop.permute.xlu0 %2293 }
 0x5f2   : > { %3626 = vrot.lane.b32.xlu0 %v8957_v22, %s4337_s30 }
 0x5f4   : > { %v2358_v33 = vpop.permute.xlu0 %2357 }
 0x5f5   : > { %v2412_v52 = vsel %vm2401_vm8, %v2294_v37, %v2358_v33  ;;  %v2444_v59 = vsel %vm2401_vm8, %v2358_v33, %v2294_v37 }
 0x5f6   : > { %v2491_v17 = vsel %vm1170_vm9, %v12162_v54, %v2444_v59  ;;  %v8975_v8 = vadd.f32 %v2554_v47, %v2412_v52  ;;  %v12166_v47 = vld [vmem:[#allocation185_spill] sm:$0xff] }
 0x5f7   : > { %v8977_v29 = vadd.f32 %v2555_v42, %v2491_v17 }
 0x5f8   : > { %12163 = vst [vmem:[#allocation165_spill] sm:$0xff] %v8975_v8  ;;  %v2038_v3 = vpop.permute.xlu0 %2037  ;;  %v12173_v8 = vld [vmem:[#allocation167_spill] sm:$0xff] }
 0x5f9   : > { %12164 = vst [vmem:[#allocation186_spill] sm:$0xff] %v8977_v29  ;;  %v12169_v29 = vld [vmem:[#allocation137_spill] sm:$0xff] }
 0x5fc   : > { %v2102_v43 = vpop.permute.xlu0 %2101 }
 0x5fd   : > { %v2153_v5 = vsel %vm1167_vm1, %v2038_v3, %v2102_v43  ;;  %v2185_v34 = vsel %vm1167_vm1, %v2102_v43, %v2038_v3 }
 0x5fe   : > { %v2233_v37 = vsel %vm1167_vm1, %v12165_v19, %v2185_v34  ;;  %v2559_v52 = vadd.f32 %v2153_v5, %v12166_v47 }
 0x5ff   : > { %v2558_v33 = vadd.f32 %v2233_v37, %v12165_v19 }
 0x600   : > { %v2298_v1 = vpop.permute.xlu0 %2297  ;;  %v12350_v11 = vld [vmem:[#allocation186_spill] sm:$0xff] }
 0x604   : > { %v2362_v54 = vpop.permute.xlu0 %2361 }
 0x605   : > { %v2414_v42 = vsel %vm2401_vm8, %v2298_v1, %v2362_v54  ;;  %v2446_v59 = vsel %vm2401_vm8, %v2362_v54, %v2298_v1 }
 0x606   : > { %v2495_v17 = vsel %vm1170_vm9, %v12166_v47, %v2446_v59  ;;  %v8995_v3 = vadd.f32 %v2558_v33, %v2414_v42  ;;  %v12170_v33 = vld [vmem:[#allocation146_spill] sm:$0xff] }
 0x607   : > { %v8997_v43 = vadd.f32 %v2559_v52, %v2495_v17 }
 0x608   : > { %12167 = vst [vmem:[#allocation188_spill] sm:$0xff] %v8995_v3  ;;  %v2042_v34 = vpop.permute.xlu0 %2041 }
 0x609   : > { %12168 = vst [vmem:[#allocation195_spill] sm:$0xff] %v8997_v43 }
 0x60c   : > { %v2106_v32 = vpop.permute.xlu0 %2105 }
 0x60d   : > { %v2155_v19 = vsel %vm1167_vm1, %v2042_v34, %v2106_v32  ;;  %v2187_v5 = vsel %vm1167_vm1, %v2106_v32, %v2042_v34 }
 0x60e   : > { %v2237_v1 = vsel %vm1167_vm1, %v12169_v29, %v2187_v5  ;;  %v2563_v42 = vadd.f32 %v2155_v19, %v12170_v33 }
 0x60f   : > { %v2562_v54 = vadd.f32 %v2237_v1, %v12169_v29 }
 0x610   : > { %v2302_v37 = vpop.permute.xlu0 %2301 }
 0x614   : > { %v2366_v47 = vpop.permute.xlu0 %2365 }
 0x615   : > { %v2416_v52 = vsel %vm2401_vm8, %v2302_v37, %v2366_v47  ;;  %v2448_v59 = vsel %vm2401_vm8, %v2366_v47, %v2302_v37 }
 0x616   : > { %v2499_v32 = vsel %vm1170_vm9, %v12170_v33, %v2448_v59  ;;  %v9015_v17 = vadd.f32 %v2562_v54, %v2416_v52 }
 0x617   : > { %v9017_v34 = vadd.f32 %v2563_v42, %v2499_v32  ;;  %v12174_v42 = vld [vmem:[#allocation101_spill] sm:$0xff] }
 0x618   : > { %12171 = vst [vmem:[#allocation215_spill] sm:$0xff] %v9015_v17  ;;  %v2046_v5 = vpop.permute.xlu0 %2045 }
 0x619   : > { %12172 = vst [vmem:[#allocation157_spill] sm:$0xff] %v9017_v34 }
 0x61a   : > { %v3607_v29 = vpop.permute.xlu1 %3606 }
 0x61c   : > { %v2110_v43 = vpop.permute.xlu0 %2109 }
 0x61d   : > { %v2157_v19 = vsel %vm1167_vm1, %v2046_v5, %v2110_v43  ;;  %v2189_v1 = vsel %vm1167_vm1, %v2110_v43, %v2046_v5  ;;  %v12175_v43 = vld [vmem:[#allocation179_spill] sm:$0xff] }
 0x61e   : > { %v2241_v37 = vsel %vm1167_vm1, %v12173_v8, %v2189_v1  ;;  %v3601_v47 = vpop.permute.xlu1 %3600  ;;  %v2567_v52 = vadd.f32 %v2157_v19, %v12174_v42  ;;  %v2247_v5 = vsel %vm1167_vm1, %v12175_v43, %v8937_v41 }
 0x61f   : > { %v2566_v54 = vadd.f32 %v2241_v37, %v12173_v8  ;;  %v2572_v17 = vadd.f32 %v2247_v5, %v12175_v43 }
 0x620   : > { %v2306_v3 = vpop.permute.xlu0 %2305 }
 0x622   : > { %v2312_v59 = vpop.permute.xlu1 %2311 }
 0x624   : > { %v2370_v33 = vpop.permute.xlu0 %2369 }
 0x625   : > { %v2418_v32 = vsel %vm2401_vm8, %v2306_v3, %v2370_v33  ;;  %v2450_v34 = vsel %vm2401_vm8, %v2370_v33, %v2306_v3  ;;  %v2573_v3 = vadd.f32 %v8933_v30, %v12095_v36 }
 0x626   : > { %v2503_v1 = vsel %vm1170_vm9, %v12174_v42, %v2450_v34  ;;  %v9039_v8 = vadd.f32 %v2566_v54, %v2418_v32  ;;  %v2376_v15 = vpop.permute.xlu1 %2375 }
 0x627   : > { %v9041_v37 = vadd.f32 %v2567_v52, %v2503_v1  ;;  %v2421_v33 = vsel %vm2401_vm8, %v2312_v59, %v2376_v15  ;;  %v2453_v41 = vsel %vm2401_vm8, %v2376_v15, %v2312_v59  ;;  %v12180_v1 = vld [vmem:[#allocation128_spill] sm:$0xff] }
 0x628   : > { %12176 = vst [vmem:[#allocation200_spill] sm:$0xff] %v9039_v8  ;;  %v2050_v19 = vpop.permute.xlu0 %2049  ;;  %v2509_v34 = vsel %vm1170_vm9, %v12095_v36, %v2453_v41  ;;  %v9053_v54 = vadd.f32 %v2572_v17, %v2421_v33  ;;  %v1801_v33 = vsel %vm6271_vm4, %v12112_v9, %v12022_v60  ;;  %v12182_v41 = vld [vmem:[#allocation67_spill] sm:$0xff] }
 0x629   : > { %12177 = vst [vmem:[#allocation211_spill] sm:$0xff] %v9041_v37  ;;  %v9055_v42 = vadd.f32 %v2573_v3, %v2509_v34  ;;  %v12181_v37 = vld [vmem:[#allocation34_spill] sm:$0xff]  ;;  %v12183_v34 = vld [vmem:[#allocation56_spill] sm:$0xff]  ;;  %v12189_v8 = vld [vmem:[#allocation55_spill] sm:$0xff] }
 0x62a   : > { %12178 = vst [vmem:[#allocation102_spill] sm:$0xff] %v9053_v54  ;;  %v2056_v32 = vpop.permute.xlu1 %2055  ;;  %v1803_v15 = vsel %vm6271_vm4, %v12181_v37, %v12180_v1  ;;  %v12184_v1 = vld [vmem:[#allocation110_spill] sm:$0xff] }
 0x62b   : > { %12179 = vst [vmem:[#allocation91_spill] sm:$0xff] %v9055_v42 }
 0x62c   : > { %v2114_v52 = vpop.permute.xlu0 %2113 }
 0x62d   : > { %v2159_v43 = vsel %vm1167_vm1, %v2050_v19, %v2114_v52  ;;  %v2191_v30 = vsel %vm1167_vm1, %v2114_v52, %v2050_v19  ;;  %v1935_v52 = vadd.f32 %v1803_v15, %v12181_v37  ;;  %v12188_v15 = vld [vmem:[#allocation90_spill] sm:$0xff] }
 0x62e   : > { %v2120_v59 = vpop.permute.xlu1 %2119  ;;  %v1802_v62 = vsel %vm6353_vm5, %v12189_v8, %v12188_v15 }
 0x62f   : > { %v2162_v3 = vsel %vm1167_vm1, %v2056_v32, %v2120_v59  ;;  %v2194_v19 = vsel %vm1167_vm1, %v2120_v59, %v2056_v32  ;;  %v1871_v32 = vsel %vm6376_vm6, %v12181_v37, %v12184_v1  ;;  %v12185_v59 = vld [vmem:[#allocation131_spill] sm:$0xff]  ;;  %v1933_v1 = vadd.f32 %v1801_v33, %v12112_v9 }
 0x630   : > { %v3605_v5 = vpop.permute.xlu0 %3604  ;;  %v1869_v42 = vsel %vm6376_vm6, %v12112_v9, %v12185_v59  ;;  %v2251_v59 = vsel %vm1167_vm1, %v12103_v58, %v2194_v19  ;;  %v9119_v6 = vadd.f32 %v1935_v52, %v1871_v32  ;;  %v1934_v9 = vadd.f32 %v1802_v62, %v12189_v8  ;;  %v12192_v19 = vld [vmem:[#allocation83_spill] sm:$0xff] }
 0x631   : > { %v9067_v36 = vsel %vm1299_vm3, %v3605_v5, %v3607_v29  ;;  %v9071_v17 = vsel %vm1299_vm3, %v3607_v29, %v3605_v5  ;;  %v1804_v29 = vsel %vm6353_vm5, %v12183_v34, %v12182_v41  ;;  %v9121_v15 = vadd.f32 %v1933_v1, %v1869_v42 }
 0x632   : > { %3644 = vrot.lane.b32.xlu0 %v9071_v17, %s4338_s5  ;;  %3646 = vrot.lane.b32.xlu1 %v9067_v36, %s4338_s5  ;;  %v2316_v54 = vpop.permute.xlu1 %2315  ;;  %v1936_v37 = vadd.f32 %v1804_v29, %v12183_v34  ;;  %v2245_v29 = vsel %vm1167_vm1, %v8694_v57, %v2191_v30  ;;  %v2577_v52 = vadd.f32 %v2162_v3, %v12107_v26 }
 0x633   : > { %12191 = vst [vmem:[#allocation187_spill] sm:$0xff] %v9121_v15 }
 0x634   : > { %v3599_v5 = vpop.permute.xlu0 %3598 }
 0x635   : > { %v9098_v60 = vsel %vm1492_vm2, %v3599_v5, %v3601_v47  ;;  %v9102_v41 = vsel %vm1492_vm2, %v3601_v47, %v3599_v5  ;;  %v12190_v47 = vld [vmem:[#allocation95_spill] sm:$0xff] }
 0x636   : > { %12186 = vst [vmem:[#allocation105_spill] sm:$0xff] %v9098_v60  ;;  %12187 = vst [vmem:[#allocation162_spill] sm:$0xff] %v9102_v41  ;;  %3665 = vrot.lane.b32.xlu1 %v9102_v41, %s4339_s6  ;;  %3663 = vrot.lane.b32.xlu0 %v9098_v60, %s4339_s6  ;;  %v1872_v5 = vsel %vm6380_vm7, %v12183_v34, %v12190_v47  ;;  %v1870_v41 = vsel %vm6380_vm7, %v12189_v8, %v12192_v19  ;;  %v2380_v27 = vpop.permute.xlu1 %2379 }
 0x637   : > { %v2576_v60 = vadd.f32 %v2251_v59, %v12103_v58  ;;  %v2423_v42 = vsel %vm2401_vm8, %v2316_v54, %v2380_v27  ;;  %v2455_v62 = vsel %vm2401_vm8, %v2380_v27, %v2316_v54  ;;  %v9146_v32 = vadd.f32 %v1936_v37, %v1872_v5 }
 0x638   : > { %v2310_v33 = vpop.permute.xlu0 %2309  ;;  %v2513_v30 = vsel %vm1170_vm9, %v12107_v26, %v2455_v62  ;;  %v9148_v3 = vadd.f32 %v1934_v9, %v1870_v41  ;;  %v2570_v27 = vadd.f32 %v2245_v29, %v8694_v57  ;;  %v2571_v59 = vadd.f32 %v2159_v43, %v8705_v39 }
 0x639   : > { %v9144_v58 = vadd.f32 %v2576_v60, %v2423_v42  ;;  %12193 = vst [vmem:[#allocation122_spill] sm:$0xff] %v9146_v32  ;;  %v9150_v1 = vadd.f32 %v2577_v52, %v2513_v30  ;;  %v12195_v60 = vld [vmem:[#allocation184_spill] sm:$0xff]  ;;  %v1805_v29 = vsel %vm6271_vm4, %v12130_v38, %v12024_v53  ;;  %v12196_v52 = vld [vmem:[#allocation130_spill] sm:$0xff] }
 0x63a   : > { %2063 = vrot.lane.b32.xlu1 %v9119_v6, %s4336_s29  ;;  %2061 = vrot.lane.b32.xlu0 %v9121_v15, %s4336_s29  ;;  %12194 = vst [vmem:[#allocation63_spill] sm:$0xff] %v9148_v3  ;;  %v2060_v47 = vpop.permute.xlu1 %2059  ;;  %v1807_v41 = vsel %vm6271_vm4, %v12115_v40, %v12195_v60  ;;  %v12197_v42 = vld [vmem:[#allocation58_spill] sm:$0xff]  ;;  %v12200_v60 = vld [vmem:[#allocation207_spill] sm:$0xff] }
 0x63b   : > { %v1808_v62 = vsel %vm6353_vm5, %v12197_v42, %v12196_v52  ;;  %v1939_v30 = vadd.f32 %v1807_v41, %v12115_v40  ;;  %v1806_v41 = vsel %vm6353_vm5, %v12039_v51, %v12200_v60 }
 0x63c   : > { %v2374_v54 = vpop.permute.xlu0 %2373 }
 0x63d   : > { %v2420_v19 = vsel %vm2401_vm8, %v2310_v33, %v2374_v54  ;;  %v2452_v26 = vsel %vm2401_vm8, %v2374_v54, %v2310_v33  ;;  %v12198_v54 = vld [vmem:[#allocation119_spill] sm:$0xff] }
 0x63e   : > { %v2507_v37 = vsel %vm1170_vm9, %v8705_v39, %v2452_v26  ;;  %v9161_v9 = vadd.f32 %v2570_v27, %v2420_v19  ;;  %2127 = vrot.lane.b32.xlu1 %v9146_v32, %s4336_s29  ;;  %2125 = vrot.lane.b32.xlu0 %v9148_v3, %s4336_s29  ;;  %v2124_v5 = vpop.permute.xlu1 %2123 }
 0x63f   : > { %v9167_v57 = vadd.f32 %v2571_v59, %v2507_v37  ;;  %v2164_v39 = vsel %vm1167_vm1, %v2060_v47, %v2124_v5  ;;  %v2196_v33 = vsel %vm1167_vm1, %v2124_v5, %v2060_v47  ;;  %v1875_v59 = vsel %vm6376_vm6, %v12115_v40, %v12198_v54  ;;  %v12199_v47 = vld [vmem:[#allocation123_spill] sm:$0xff] }
 0x640   : > { %v2054_v43 = vpop.permute.xlu0 %2053  ;;  %v1873_v19 = vsel %vm6376_vm6, %v12130_v38, %v12199_v47  ;;  %v1937_v5 = vadd.f32 %v1805_v29, %v12130_v38  ;;  %v2255_v52 = vsel %vm1167_vm1, %v12142_v63, %v2196_v33  ;;  %v1940_v54 = vadd.f32 %v1808_v62, %v12197_v42  ;;  %v12204_v38 = vld [vmem:[#allocation139_spill] sm:$0xff] }
 0x641   : > { %v9219_v47 = vadd.f32 %v1939_v30, %v1875_v59  ;;  %v1938_v33 = vadd.f32 %v1806_v41, %v12039_v51  ;;  %v1874_v40 = vsel %vm6380_vm7, %v12039_v51, %v12204_v38  ;;  %v2580_v8 = vadd.f32 %v2255_v52, %v12142_v63 }
 0x642   : > { %2323 = vrot.lane.b32.xlu1 %v9119_v6, %s4337_s30  ;;  %2321 = vrot.lane.b32.xlu0 %v9121_v15, %s4337_s30  ;;  %v2320_v26 = vpop.permute.xlu1 %2319  ;;  %v9221_v29 = vadd.f32 %v1937_v5, %v1873_v19  ;;  %v2581_v30 = vadd.f32 %v2164_v39, %v12149_v18 }
 0x643   : > { %12202 = vst [vmem:[#allocation124_spill] sm:$0xff] %v9219_v47  ;;  %v9248_v39 = vadd.f32 %v1938_v33, %v1874_v40 }
 0x644   : > { %v2118_v27 = vpop.permute.xlu0 %2117  ;;  %12203 = vst [vmem:[#allocation180_spill] sm:$0xff] %v9221_v29 }
 0x645   : > { %v2161_v53 = vsel %vm1167_vm1, %v2054_v43, %v2118_v27  ;;  %v2193_v37 = vsel %vm1167_vm1, %v2118_v27, %v2054_v43  ;;  %v12201_v43 = vld [vmem:[#allocation96_spill] sm:$0xff]  ;;  %12206 = vst [vmem:[#allocation78_spill] sm:$0xff] %v9248_v39 }
 0x646   : > { %2387 = vrot.lane.b32.xlu1 %v9146_v32, %s4337_s30  ;;  %2385 = vrot.lane.b32.xlu0 %v9148_v3, %s4337_s30  ;;  %v1876_v27 = vsel %vm6380_vm7, %v12197_v42, %v12201_v43  ;;  %v2249_v62 = vsel %vm1167_vm1, %v8843_v21, %v2193_v37  ;;  %v2384_v34 = vpop.permute.xlu1 %2383  ;;  %v2575_v5 = vadd.f32 %v2161_v53, %v8863_v4  ;;  %v12209_v53 = vld [vmem:[#allocation132_spill] sm:$0xff]  ;;  %v12283_v32 = vld [vmem:[#allocation94_spill] sm:$0xff] }
 0x647   : > { %v2425_v59 = vsel %vm2401_vm8, %v2320_v26, %v2384_v34  ;;  %v2457_v19 = vsel %vm2401_vm8, %v2384_v34, %v2320_v26  ;;  %v9246_v37 = vadd.f32 %v1940_v54, %v1876_v27  ;;  %v2574_v34 = vadd.f32 %v2249_v62, %v8843_v21  ;;  %v12211_v62 = vld [vmem:[#allocation97_spill] sm:$0xff]  ;;  %v12260_v42 = vld [vmem:[#allocation144_spill] sm:$0xff] }
 0x648   : > { %v2314_v60 = vpop.permute.xlu0 %2313  ;;  %v2517_v38 = vsel %vm1170_vm9, %v12149_v18, %v2457_v19  ;;  %v9244_v63 = vadd.f32 %v2580_v8, %v2425_v59  ;;  %v1809_v54 = vsel %vm6271_vm4, %v12136_v16, %v12029_v44 }
 0x649   : > { %12205 = vst [vmem:[#allocation92_spill] sm:$0xff] %v9246_v37  ;;  %v9250_v41 = vadd.f32 %v2581_v30, %v2517_v38  ;;  %v1877_v30 = vsel %vm6376_vm6, %v12136_v16, %v12211_v62  ;;  %v1941_v44 = vadd.f32 %v1809_v54, %v12136_v16  ;;  %v12217_v54 = vld [vmem:[#allocation138_spill] sm:$0xff] }
 0x64a   : > { %2067 = vrot.lane.b32.xlu1 %v9219_v47, %s4336_s29  ;;  %2065 = vrot.lane.b32.xlu0 %v9221_v29, %s4336_s29  ;;  %v12253_v16 = vld [vmem:[#allocation202_spill] sm:$0xff] }
 0x64c   : > { %v2378_v26 = vpop.permute.xlu0 %2377 }
 0x64d   : > { %v2422_v52 = vsel %vm2401_vm8, %v2314_v60, %v2378_v26  ;;  %v2454_v43 = vsel %vm2401_vm8, %v2378_v26, %v2314_v60  ;;  %v12210_v60 = vld [vmem:[#allocation81_spill] sm:$0xff] }
 0x64e   : > { %v2511_v18 = vsel %vm1170_vm9, %v8863_v4, %v2454_v43  ;;  %v9261_v8 = vadd.f32 %v2574_v34, %v2422_v52  ;;  %2131 = vrot.lane.b32.xlu1 %v9246_v37, %s4336_s29  ;;  %2129 = vrot.lane.b32.xlu0 %v9248_v39, %s4336_s29  ;;  %v1811_v4 = vsel %vm6271_vm4, %v12138_v55, %v12209_v53  ;;  %v12212_v34 = vld [vmem:[#allocation104_spill] sm:$0xff]  ;;  %v12216_v53 = vld [vmem:[#allocation203_spill] sm:$0xff] }
 0x64f   : > { %v9267_v40 = vadd.f32 %v2575_v5, %v2511_v18  ;;  %v1879_v33 = vsel %vm6376_vm6, %v12138_v55, %v12210_v60  ;;  %v1943_v38 = vadd.f32 %v1811_v4, %v12138_v55  ;;  %v1812_v26 = vsel %vm6353_vm5, %v12060_v14, %v12212_v34  ;;  %v12213_v5 = vld [vmem:[#allocation66_spill] sm:$0xff] }
 0x650   : > { %12207 = vst [vmem:[#allocation112_spill] sm:$0xff] %v9261_v8  ;;  %v2058_v21 = vpop.permute.xlu0 %2057  ;;  %v1810_v52 = vsel %vm6353_vm5, %v12078_v45, %v12213_v5  ;;  %v9309_v18 = vadd.f32 %v1941_v44, %v1877_v30  ;;  %v1880_v4 = vsel %vm6380_vm7, %v12060_v14, %v12216_v53  ;;  %v12259_v55 = vld [vmem:[#allocation22_spill] sm:$0xff] }
 0x651   : > { %12208 = vst [vmem:[#allocation116_spill] sm:$0xff] %v9267_v40  ;;  %v9307_v43 = vadd.f32 %v1943_v38, %v1879_v33  ;;  %v1944_v33 = vadd.f32 %v1812_v26, %v12060_v14  ;;  %v1942_v62 = vadd.f32 %v1810_v52, %v12078_v45  ;;  %v3615_v52 = vpop.permute.xlu1 %3614  ;;  %v12317_v8 = vld [vmem:[#allocation174_spill] sm:$0xff] }
 0x652   : > { %2327 = vrot.lane.b32.xlu1 %v9219_v47, %s4337_s30  ;;  %2325 = vrot.lane.b32.xlu0 %v9221_v29, %s4337_s30  ;;  %12215 = vst [vmem:[#allocation100_spill] sm:$0xff] %v9309_v18  ;;  %v12282_v47 = vld [vmem:[#allocation125_spill] sm:$0xff] }
 0x653   : > { %12214 = vst [vmem:[#allocation99_spill] sm:$0xff] %v9307_v43  ;;  %v9328_v30 = vadd.f32 %v1944_v33, %v1880_v4 }
 0x654   : > { %v2122_v27 = vpop.permute.xlu0 %2121 }
 0x655   : > { %v2163_v59 = vsel %vm1167_vm1, %v2058_v21, %v2122_v27  ;;  %v2195_v19 = vsel %vm1167_vm1, %v2122_v27, %v2058_v21  ;;  %v1878_v27 = vsel %vm6380_vm7, %v12078_v45, %v12217_v54  ;;  %12218 = vst [vmem:[#allocation183_spill] sm:$0xff] %v9328_v30 }
 0x656   : > { %2391 = vrot.lane.b32.xlu1 %v9246_v37, %s4337_s30  ;;  %2389 = vrot.lane.b32.xlu0 %v9248_v39, %s4337_s30  ;;  %v2253_v60 = vsel %vm1167_vm1, %v8916_v46, %v2195_v19  ;;  %v9330_v38 = vadd.f32 %v1942_v62, %v1878_v27  ;;  %v2579_v5 = vadd.f32 %v2163_v59, %v8939_v23  ;;  %v3611_v27 = vsel %vm6353_vm5, 0.0, %v8905_v25  ;;  %v12222_v62 = vld [vmem:[#allocation214_spill] sm:$0xff] }
 0x657   : > { %v2578_v44 = vadd.f32 %v2253_v60, %v8916_v46  ;;  %v1813_v25 = vsel %vm6271_vm4, %v12140_v7, %v12141_v28  ;;  %v12277_v39 = vld [vmem:[#allocation70_spill] sm:$0xff] }
 0x658   : > { %v2318_v21 = vpop.permute.xlu0 %2317  ;;  %12219 = vst [vmem:[#allocation168_spill] sm:$0xff] %v9330_v38 }
 0x65a   : > { %2071 = vrot.lane.b32.xlu1 %v9307_v43, %s4336_s29  ;;  %2069 = vrot.lane.b32.xlu0 %v9309_v18, %s4336_s29 }
 0x65c   : > { %v2382_v34 = vpop.permute.xlu0 %2381 }
 0x65d   : > { %v2424_v19 = vsel %vm2401_vm8, %v2318_v21, %v2382_v34  ;;  %v2456_v26 = vsel %vm2401_vm8, %v2382_v34, %v2318_v21 }
 0x65e   : > { %v2515_v53 = vsel %vm1170_vm9, %v8939_v23, %v2456_v26  ;;  %v9341_v4 = vadd.f32 %v2578_v44, %v2424_v19  ;;  %2135 = vrot.lane.b32.xlu1 %v9328_v30, %s4336_s29  ;;  %2133 = vrot.lane.b32.xlu0 %v9330_v38, %s4336_s29  ;;  %v3610_v23 = vsel %vm6271_vm4, 0.0, %v8951_v12  ;;  %v1815_v12 = vsel %vm6271_vm4, %v12147_v10, %v12222_v62  ;;  %v12224_v26 = vld [vmem:[#allocation158_spill] sm:$0xff] }
 0x65f   : > { %v9347_v46 = vadd.f32 %v2579_v5, %v2515_v53  ;;  %v12223_v5 = vld [vmem:[#allocation87_spill] sm:$0xff]  ;;  %v3629_v53 = vpop.permute.xlu1 %3628 }
 0x660   : > { %12220 = vst [vmem:[#allocation189_spill] sm:$0xff] %v9341_v4  ;;  %v3613_v59 = vpop.permute.xlu0 %3612  ;;  %v1883_v19 = vsel %vm6376_vm6, %v12147_v10, %v12223_v5 }
 0x661   : > { %12221 = vst [vmem:[#allocation198_spill] sm:$0xff] %v9347_v46  ;;  %v3616_v54 = vsel %vm1492_vm2, %v3613_v59, %v3615_v52  ;;  %v3617_v21 = vsel %vm1492_vm2, %v3615_v52, %v3613_v59  ;;  %v1881_v52 = vsel %vm6376_vm6, %v12140_v7, %v12224_v26  ;;  %v3622_v59 = vsel %vm1167_vm1, 0.0, %v8957_v22  ;;  %v12298_v46 = vld [vmem:[#allocation115_spill] sm:$0xff] }
 0x662   : > { %v3618_v60 = vsel %vm6376_vm6, 0.0, %v3616_v54  ;;  %v3619_v33 = vsel %vm6380_vm7, 0.0, %v3617_v21  ;;  %2331 = vrot.lane.b32.xlu1 %v9307_v43, %s4337_s30  ;;  %2329 = vrot.lane.b32.xlu0 %v9309_v18, %s4337_s30  ;;  %v1947_v22 = vadd.f32 %v1815_v12, %v12147_v10  ;;  %v12248_v10 = vld [vmem:[#allocation126_spill] sm:$0xff] }
 0x663   : > { %v3620_v44 = vmax.f32 %v3610_v23, %v3618_v60  ;;  %v3621_v34 = vmax.f32 %v3611_v27, %v3619_v33  ;;  %v1945_v33 = vadd.f32 %v1813_v25, %v12140_v7  ;;  %v12245_v7 = vld [vmem:[#allocation199_spill] sm:$0xff]  ;;  %v12271_v18 = vld [vmem:[#allocation170_spill] sm:$0xff] }
 0x664   : > { %v3627_v54 = vpop.permute.xlu0 %3626  ;;  %v9415_v26 = vadd.f32 %v1947_v22, %v1883_v19  ;;  %v12236_v22 = vld [vmem:[#allocation77_spill] sm:$0xff] }
 0x665   : > { %v3624_v21 = vmax.f32 %v3620_v44, %v3622_v59  ;;  %v3625_v23 = vmax.f32 %v3621_v34, %v8924_v20  ;;  %v3630_v27 = vsel %vm2401_vm8, %v3627_v54, %v3629_v53  ;;  %v3631_v60 = vsel %vm2401_vm8, %v3629_v53, %v3627_v54  ;;  %v12227_v20 = vld [vmem:[#allocation134_spill] sm:$0xff]  ;;  %v12228_v34 = vld [vmem:[#allocation176_spill] sm:$0xff] }
 0x666   : > { %v3633_v62 = vsel %vm1170_vm9, 0.0, %v3631_v60  ;;  %2395 = vrot.lane.b32.xlu1 %v9328_v30, %s4337_s30  ;;  %2393 = vrot.lane.b32.xlu0 %v9330_v38, %s4337_s30  ;;  %v1816_v44 = vsel %vm6353_vm5, %v12067_v61, %v12227_v20  ;;  %v1814_v12 = vsel %vm6353_vm5, %v12079_v31, %v12228_v34  ;;  %12229 = vst [vmem:[#allocation218_spill] sm:$0xff] %v9415_v26  ;;  %v3638_v59 = vsel %vm9390_vm10, 0.0, %v9071_v17  ;;  %v12231_v60 = vld [vmem:[#allocation111_spill] sm:$0xff]  ;;  %v12232_v34 = vld [vmem:[#allocation152_spill] sm:$0xff]  ;;  %v12265_v30 = vld [vmem:[#allocation161_spill] sm:$0xff] }
 0x667   : > { %v3634_v25 = vmax.f32 %v3624_v21, %v3630_v27  ;;  %v3635_v5 = vmax.f32 %v3625_v23, %v3633_v62  ;;  %v9417_v53 = vadd.f32 %v1945_v33, %v1881_v52  ;;  %v3639_v54 = vsel %vm6353_vm5, 0.0, %v9067_v36  ;;  %v12235_v27 = vld [vmem:[#allocation118_spill] sm:$0xff]  ;;  %v12237_v62 = vld [vmem:[#allocation192_spill] sm:$0xff] }
 0x668   : > { %v1884_v20 = vsel %vm6380_vm7, %v12067_v61, %v12231_v60  ;;  %v1882_v19 = vsel %vm6380_vm7, %v12079_v31, %v12232_v34  ;;  %v1948_v17 = vadd.f32 %v1816_v44, %v12067_v61  ;;  %v1946_v28 = vadd.f32 %v1814_v12, %v12079_v31  ;;  %v12238_v12 = vld [vmem:[#allocation208_spill] sm:$0xff]  ;;  %v12241_v60 = vld [vmem:[#allocation98_spill] sm:$0xff]  ;;  %v12244_v61 = vld [vmem:[#allocation121_spill] sm:$0xff] }
 0x669   : > { %12230 = vst [vmem:[#allocation169_spill] sm:$0xff] %v9417_v53  ;;  %v9433_v52 = vmax.f32 %v3634_v25, %v3638_v59  ;;  %v9435_v21 = vmax.f32 %v3635_v5, %v3639_v54  ;;  %v2174_v33 = vsel %vm1167_vm1, %v12236_v22, %v12235_v27  ;;  %v12239_v25 = vld [vmem:[#allocation163_spill] sm:$0xff]  ;;  %v2142_v59 = vsel %vm1167_vm1, %v12235_v27, %v12236_v22  ;;  %v12240_v54 = vld [vmem:[#allocation217_spill] sm:$0xff] }
 0x66a   : > { %2075 = vrot.lane.b32.xlu1 %v9415_v26, %s4336_s29  ;;  %2073 = vrot.lane.b32.xlu0 %v9417_v53, %s4336_s29  ;;  %v9443_v36 = vadd.f32 %v1948_v17, %v1884_v20  ;;  %v9445_v23 = vadd.f32 %v1946_v28, %v1882_v19  ;;  %v2211_v44 = vsel %vm1167_vm1, %v12237_v62, %v2174_v33  ;;  %v12242_v17 = vld [vmem:[#allocation196_spill] sm:$0xff]  ;;  %v12243_v33 = vld [vmem:[#allocation141_spill] sm:$0xff] }
 0x66b   : > { %v2435_v5 = vsel %vm2401_vm8, %v12239_v25, %v12238_v12  ;;  %v2176_v20 = vsel %vm1167_vm1, %v12241_v60, %v12240_v54  ;;  %v2403_v34 = vsel %vm2401_vm8, %v12238_v12, %v12239_v25  ;;  %v2536_v19 = vadd.f32 %v2211_v44, %v12237_v62  ;;  %v12246_v44 = vld [vmem:[#allocation120_spill] sm:$0xff]  ;;  %v12247_v12 = vld [vmem:[#allocation106_spill] sm:$0xff] }
 0x66c   : > { %12233 = vst [vmem:[#allocation71_spill] sm:$0xff] %v9443_v36  ;;  %12234 = vst [vmem:[#allocation135_spill] sm:$0xff] %v9445_v23  ;;  %v2473_v28 = vsel %vm1170_vm9, %v12242_v17, %v2435_v5  ;;  %v2144_v27 = vsel %vm1167_vm1, %v12240_v54, %v12241_v60  ;;  %v2537_v22 = vadd.f32 %v2142_v59, %v12242_v17  ;;  %v12250_v60 = vld [vmem:[#allocation142_spill] sm:$0xff] }
 0x66d   : > { %v2215_v31 = vsel %vm1167_vm1, %v12243_v33, %v2176_v20  ;;  %v2437_v62 = vsel %vm2401_vm8, %v12245_v7, %v12244_v61  ;;  %v2178_v25 = vsel %vm1167_vm1, %v12247_v12, %v12246_v44  ;;  %v2600_v5 = vadd.f32 %v2536_v19, %v2403_v34  ;;  %v12251_v34 = vld [vmem:[#allocation212_spill] sm:$0xff] }
 0x66e   : > { %2139 = vrot.lane.b32.xlu1 %v9443_v36, %s4336_s29  ;;  %2137 = vrot.lane.b32.xlu0 %v9445_v23, %s4336_s29  ;;  %v2601_v54 = vadd.f32 %v2537_v22, %v2473_v28  ;;  %v2541_v17 = vadd.f32 %v2144_v27, %v12250_v60  ;;  %v2405_v20 = vsel %vm2401_vm8, %v12244_v61, %v12245_v7  ;;  %v12254_v7 = vld [vmem:[#allocation147_spill] sm:$0xff]  ;;  %v12256_v22 = vld [vmem:[#allocation194_spill] sm:$0xff] }
 0x66f   : > { %v2219_v19 = vsel %vm1167_vm1, %v12251_v34, %v2178_v25  ;;  %v2146_v61 = vsel %vm1167_vm1, %v12246_v44, %v12247_v12  ;;  %v12255_v27 = vld [vmem:[#allocation127_spill] sm:$0xff]  ;;  %v12258_v25 = vld [vmem:[#allocation117_spill] sm:$0xff]  ;;  %v2664_v45 = vsub.f32 %v2600_v5, %v12259_v55 }
 0x670   : > { %v2544_v51 = vadd.f32 %v2219_v19, %v12251_v34  ;;  %v2545_v5 = vadd.f32 %v2146_v61, %v12260_v42 }
 0x672   : > { %2335 = vrot.lane.b32.xlu1 %v9415_v26, %s4337_s30  ;;  %2333 = vrot.lane.b32.xlu0 %v9417_v53, %s4337_s30  ;;  %v2477_v53 = vsel %vm1170_vm9, %v12250_v60, %v2437_v62  ;;  %v12252_v26 = vld [vmem:[#allocation175_spill] sm:$0xff]  ;;  %v12257_v62 = vld [vmem:[#allocation136_spill] sm:$0xff] }
 0x673   : > { %v2439_v28 = vsel %vm2401_vm8, %v12253_v16, %v12252_v26  ;;  %v2182_v60 = vsel %vm1167_vm1, %v12258_v25, %v12257_v62  ;;  %v2407_v44 = vsel %vm2401_vm8, %v12252_v26, %v12253_v16  ;;  %v12261_v26 = vld [vmem:[#allocation154_spill] sm:$0xff] }
 0x674   : > { %v2481_v38 = vsel %vm1170_vm9, %v12260_v42, %v2439_v28  ;;  %v2608_v34 = vadd.f32 %v2544_v51, %v2407_v44  ;;  %v12264_v28 = vld [vmem:[#allocation155_spill] sm:$0xff]  ;;  %v9576_v51 = vmul.f32 0.125, %v2664_v45  ;;  %v12268_v44 = vld [vmem:[#allocation9_spill] sm:$0xff] }
 0x675   : > { %v2173_v42 = vsel %vm1167_vm1, %v12265_v30, %v12264_v28  ;;  %v2609_v61 = vadd.f32 %v2545_v5, %v2481_v38 }
 0x676   : > { %2399 = vrot.lane.b32.xlu1 %v9443_v36, %s4337_s30  ;;  %2397 = vrot.lane.b32.xlu0 %v9445_v23, %s4337_s30  ;;  %v12249_v23 = vld [vmem:[#allocation129_spill] sm:$0xff]  ;;  %v2540_v36 = vadd.f32 %v2215_v31, %v12243_v33  ;;  %v2441_v33 = vsel %vm2401_vm8, %v12256_v22, %v12255_v27 }
 0x677   : > { %v2180_v59 = vsel %vm1167_vm1, %v12249_v23, %v12248_v10  ;;  %v2148_v12 = vsel %vm1167_vm1, %v12248_v10, %v12249_v23  ;;  %v2485_v10 = vsel %vm1170_vm9, %v12261_v26, %v2441_v33 }
 0x678   : > { %v2223_v31 = vsel %vm1167_vm1, %v12254_v7, %v2180_v59  ;;  %v2604_v14 = vadd.f32 %v2540_v36, %v2405_v20  ;;  %v2605_v59 = vadd.f32 %v2541_v17, %v2477_v53  ;;  %v2409_v36 = vsel %vm2401_vm8, %v12255_v27, %v12256_v22  ;;  %v12262_v53 = vld [vmem:[#allocation153_spill] sm:$0xff]  ;;  %v12263_v17 = vld [vmem:[#allocation84_spill] sm:$0xff] }
 0x679   : > { %v2548_v16 = vadd.f32 %v2223_v31, %v12254_v7  ;;  %v2227_v23 = vsel %vm1167_vm1, %v12262_v53, %v2182_v60  ;;  %v2665_v20 = vsub.f32 %v2601_v54, %v12263_v17  ;;  %v2549_v19 = vadd.f32 %v2148_v12, %v12261_v26  ;;  %v12266_v31 = vld [vmem:[#allocation164_spill] sm:$0xff]  ;;  %v12267_v27 = vld [vmem:[#allocation145_spill] sm:$0xff] }
 0x67a   : > { %v2411_v22 = vsel %vm2401_vm8, %v12267_v27, %v12266_v31  ;;  %v2443_v54 = vsel %vm2401_vm8, %v12266_v31, %v12267_v27  ;;  %v2150_v60 = vsel %vm1167_vm1, %v12257_v62, %v12258_v25  ;;  %v2552_v38 = vadd.f32 %v2227_v23, %v12262_v53  ;;  %v12272_v31 = vld [vmem:[#allocation88_spill] sm:$0xff]  ;;  %v12276_v23 = vld [vmem:[#allocation41_spill] sm:$0xff] }
 0x67b   : > { %v2612_v7 = vadd.f32 %v2548_v16, %v2409_v36  ;;  %v2613_v33 = vadd.f32 %v2549_v19, %v2485_v10  ;;  %v2668_v12 = vsub.f32 %v2604_v14, %v12268_v44  ;;  %v12269_v36 = vld [vmem:[#allocation86_spill] sm:$0xff]  ;;  %v2434_v45 = vsel %vm2401_vm8, %v12272_v31, %v12271_v18  ;;  %v12273_v10 = vld [vmem:[#allocation40_spill] sm:$0xff] }
 0x67c   : > { %v2669_v5 = vsub.f32 %v2605_v59, %v12269_v36  ;;  %v12270_v16 = vld [vmem:[#allocation182_spill] sm:$0xff]  ;;  %v2672_v19 = vsub.f32 %v2608_v34, %v12273_v10  ;;  %v12274_v27 = vld [vmem:[#allocation160_spill] sm:$0xff]  ;;  %v2616_v25 = vadd.f32 %v2552_v38, %v2411_v22  ;;  %v2141_v14 = vsel %vm1167_vm1, %v12264_v28, %v12265_v30  ;;  %v12275_v59 = vld [vmem:[#allocation69_spill] sm:$0xff] }
 0x67d   : > { %v2209_v26 = vsel %vm1167_vm1, %v12270_v16, %v2173_v42  ;;  %v2489_v62 = vsel %vm1170_vm9, %v12274_v27, %v2443_v54  ;;  %v2673_v53 = vsub.f32 %v2609_v61, %v12275_v59  ;;  %v2676_v42 = vsub.f32 %v2612_v7, %v12276_v23  ;;  %v12278_v54 = vld [vmem:[#allocation213_spill] sm:$0xff] }
 0x67e   : > { %v2553_v43 = vadd.f32 %v2150_v60, %v12274_v27  ;;  %v2402_v34 = vsel %vm2401_vm8, %v12271_v18, %v12272_v31  ;;  %v2677_v37 = vsub.f32 %v2613_v33, %v12277_v39  ;;  %v2534_v22 = vadd.f32 %v2209_v26, %v12270_v16  ;;  %v12279_v30 = vld [vmem:[#allocation85_spill] sm:$0xff]  ;;  %v12281_v16 = vld [vmem:[#allocation44_spill] sm:$0xff] }
 0x67f   : > { %v2471_v38 = vsel %vm1170_vm9, %v12278_v54, %v2434_v45  ;;  %v12280_v28 = vld [vmem:[#allocation177_spill] sm:$0xff]  ;;  %v9616_v7 = vmul.f32 0.125, %v2665_v20  ;;  %v9618_v60 = vmul.f32 0.125, %v2668_v12  ;;  %v2535_v18 = vadd.f32 %v2141_v14, %v12278_v54  ;;  %v12284_v20 = vld [vmem:[#allocation166_spill] sm:$0xff]  ;;  %v12316_v39 = vld [vmem:[#allocation12_spill] sm:$0xff] }
 0x680   : > { %v2175_v61 = vsel %vm1167_vm1, %v12280_v28, %v12279_v30  ;;  %v2617_v27 = vadd.f32 %v2553_v43, %v2489_v62  ;;  %v9621_v31 = vmul.f32 0.125, %v2669_v5  ;;  %v9623_v33 = vmul.f32 0.125, %v2672_v19  ;;  %v12285_v43 = vld [vmem:[#allocation89_spill] sm:$0xff]  ;;  %v12286_v62 = vld [vmem:[#allocation159_spill] sm:$0xff] }
 0x681   : > { %v2680_v26 = vsub.f32 %v2616_v25, %v12281_v16  ;;  %v2598_v29 = vadd.f32 %v2534_v22, %v2402_v34  ;;  %v2599_v45 = vadd.f32 %v2535_v18, %v2471_v38  ;;  %v2213_v3 = vsel %vm1167_vm1, %v12282_v47, %v2175_v61  ;;  %v12289_v22 = vld [vmem:[#allocation72_spill] sm:$0xff]  ;;  %v12291_v18 = vld [vmem:[#allocation150_spill] sm:$0xff]  ;;  %v12297_v23 = vld [vmem:[#allocation21_spill] sm:$0xff] }
 0x682   : > { %v2436_v12 = vsel %vm2401_vm8, %v12284_v20, %v12283_v32  ;;  %v2177_v5 = vsel %vm1167_vm1, %v12286_v62, %v12285_v43  ;;  %v9637_v19 = vmul.f32 0.125, %v2673_v53  ;;  %v9639_v14 = vmul.f32 0.125, %v2676_v42  ;;  %v12290_v61 = vld [vmem:[#allocation64_spill] sm:$0xff]  ;;  %v12292_v42 = vld [vmem:[#allocation151_spill] sm:$0xff] }
 0x683   : > { %v9641_v25 = vmul.f32 0.125, %v2677_v37  ;;  %v2143_v34 = vsel %vm1167_vm1, %v12279_v30, %v12280_v28  ;;  %v2681_v54 = vsub.f32 %v2617_v27, %v12289_v22  ;;  %v2404_v38 = vsel %vm2401_vm8, %v12283_v32, %v12284_v20  ;;  %v12293_v37 = vld [vmem:[#allocation103_spill] sm:$0xff]  ;;  %v12294_v30 = vld [vmem:[#allocation148_spill] sm:$0xff]  ;;  %v12295_v27 = vld [vmem:[#allocation210_spill] sm:$0xff] }
 0x684   : > { %12287 = vst [vmem:[#allocation79_spill] sm:$0xff] %v9639_v14  ;;  %v2438_v53 = vsel %vm2401_vm8, %v12291_v18, %v12290_v61  ;;  %v2179_v16 = vsel %vm1167_vm1, %v12293_v37, %v12292_v42  ;;  %v2538_v14 = vadd.f32 %v2213_v3, %v12282_v47  ;;  %v2475_v28 = vsel %vm1170_vm9, %v12294_v30, %v2436_v12 }
 0x685   : > { %12288 = vst [vmem:[#allocation108_spill] sm:$0xff] %v9641_v25  ;;  %v2145_v32 = vsel %vm1167_vm1, %v12285_v43, %v12286_v62  ;;  %v2217_v20 = vsel %vm1167_vm1, %v12295_v27, %v2177_v5  ;;  %v9671_v22 = vmul.f32 0.125, %v2680_v26  ;;  %v2662_v15 = vsub.f32 %v2598_v29, %v12297_v23  ;;  %v12299_v25 = vld [vmem:[#allocation114_spill] sm:$0xff]  ;;  %v12300_v62 = vld [vmem:[#allocation107_spill] sm:$0xff] }
 0x686   : > { %v2663_v4 = vsub.f32 %v2599_v45, %v12298_v46  ;;  %v2539_v3 = vadd.f32 %v2143_v34, %v12294_v30  ;;  %v2602_v47 = vadd.f32 %v2538_v14, %v2404_v38  ;;  %v2406_v12 = vsel %vm2401_vm8, %v12290_v61, %v12291_v18  ;;  %v12301_v34 = vld [vmem:[#allocation47_spill] sm:$0xff]  ;;  %v12302_v38 = vld [vmem:[#allocation206_spill] sm:$0xff]  ;;  %v12303_v18 = vld [vmem:[#allocation73_spill] sm:$0xff] }
 0x687   : > { %12296 = vst [vmem:[#allocation93_spill] sm:$0xff] %v9671_v22  ;;  %v2479_v43 = vsel %vm1170_vm9, %v12299_v25, %v2438_v53  ;;  %v2221_v26 = vsel %vm1167_vm1, %v12300_v62, %v2179_v16  ;;  %v2543_v29 = vadd.f32 %v2145_v32, %v12299_v25  ;;  %v2542_v45 = vadd.f32 %v2217_v20, %v12295_v27  ;;  %v12304_v30 = vld [vmem:[#allocation173_spill] sm:$0xff]  ;;  %v12315_v22 = vld [vmem:[#allocation10_spill] sm:$0xff] }
 0x688   : > { %v2603_v5 = vadd.f32 %v2539_v3, %v2475_v28  ;;  %v2440_v14 = vsel %vm2401_vm8, %v8876_v48, %v8865_v0  ;;  %v2684_v61 = vsub.f32 %v12302_v38, %v12301_v34  ;;  %v2685_v53 = vsub.f32 %v12304_v30, %v12303_v18  ;;  %v12306_v38 = vld [vmem:[#allocation8_spill] sm:$0xff]  ;;  %v12307_v34 = vld [vmem:[#allocation193_spill] sm:$0xff] }
 0x689   : > { %v2147_v16 = vsel %vm1167_vm1, %v12292_v42, %v12293_v37  ;;  %v2408_v25 = vsel %vm2401_vm8, %v8865_v0, %v8876_v48  ;;  %v9704_v28 = vmul.f32 0.125, %v2681_v54  ;;  %v2606_v32 = vadd.f32 %v2542_v45, %v2406_v12  ;;  %v12308_v48 = vld [vmem:[#allocation11_spill] sm:$0xff]  ;;  %v12314_v45 = vld [vmem:[#allocation65_spill] sm:$0xff] }
 0x68a   : > { %v2607_v27 = vadd.f32 %v2543_v29, %v2479_v43  ;;  %v2546_v20 = vadd.f32 %v2221_v26, %v12300_v62  ;;  %v9707_v3 = vmul.f32 0.125, %v2662_v15  ;;  %v2666_v30 = vsub.f32 %v2602_v47, %v12306_v38  ;;  %v12311_v47 = vld [vmem:[#allocation24_spill] sm:$0xff]  ;;  %v12312_v62 = vld [vmem:[#allocation190_spill] sm:$0xff]  ;;  %v12313_v29 = vld [vmem:[#allocation75_spill] sm:$0xff] }
 0x68b   : > { %12305 = vst [vmem:[#allocation149_spill] sm:$0xff] %v9704_v28  ;;  %v2483_v18 = vsel %vm1170_vm9, %v12307_v34, %v2440_v14  ;;  %v2181_v42 = vsel %vm1167_vm1, %v8918_v50, %v8892_v35  ;;  %v9717_v0 = vmul.f32 0.125, %v2663_v4  ;;  %v2667_v54 = vsub.f32 %v2603_v5, %v12308_v48 }
 0x68c   : > { %v2547_v37 = vadd.f32 %v2147_v16, %v12307_v34  ;;  %v2610_v12 = vadd.f32 %v2546_v20, %v2408_v25  ;;  %v9721_v15 = vmul.f32 0.125, %v2684_v61  ;;  %v9723_v43 = vmul.f32 0.125, %v2685_v53  ;;  %v12318_v61 = vld [vmem:[#allocation26_spill] sm:$0xff]  ;;  %v12319_v53 = vld [vmem:[#allocation197_spill] sm:$0xff]  ;;  %v12320_v25 = vld [vmem:[#allocation76_spill] sm:$0xff] }
 0x68d   : > { %v2688_v26 = vsub.f32 %v12312_v62, %v12311_v47  ;;  %v2689_v14 = vsub.f32 %v12314_v45, %v12313_v29  ;;  %v2670_v28 = vsub.f32 %v2606_v32, %v12315_v22  ;;  %v2671_v4 = vsub.f32 %v2607_v27, %v12316_v39  ;;  %v12321_v20 = vld [vmem:[#allocation156_spill] sm:$0xff]  ;;  %v12322_v47 = vld [vmem:[#allocation113_spill] sm:$0xff] }
 0x68e   : > { %12309 = vst [vmem:[#allocation205_spill] sm:$0xff] %v9721_v15  ;;  %12310 = vst [vmem:[#allocation191_spill] sm:$0xff] %v9723_v43  ;;  %v2611_v40 = vadd.f32 %v2547_v37, %v2483_v18  ;;  %v2225_v5 = vsel %vm1167_vm1, %v12317_v8, %v2181_v42  ;;  %v9734_v34 = vmul.f32 0.125, %v2666_v30  ;;  %v2692_v16 = vsub.f32 %v12319_v53, %v12318_v61  ;;  %v12323_v15 = vld [vmem:[#allocation109_spill] sm:$0xff]  ;;  %v12324_v18 = vld [vmem:[#allocation42_spill] sm:$0xff] }
 0x68f   : > { %v2693_v62 = vsub.f32 %v12321_v20, %v12320_v25  ;;  %v2442_v32 = vsel %vm2401_vm8, %v12323_v15, %v12322_v47  ;;  %v9744_v45 = vmul.f32 0.125, %v2667_v54  ;;  %v2674_v27 = vsub.f32 %v2610_v12, %v12324_v18  ;;  %v12327_v61 = vld [vmem:[#allocation13_spill] sm:$0xff]  ;;  %v12347_v43 = vld [vmem:[#allocation46_spill] sm:$0xff] }
 0x690   : > { %v2149_v30 = vsel %vm1167_vm1, %v8892_v35, %v8918_v50  ;;  %v2410_v42 = vsel %vm2401_vm8, %v12322_v47, %v12323_v15  ;;  %v9755_v37 = vmul.f32 0.125, %v2688_v26  ;;  %v9757_v53 = vmul.f32 0.125, %v2689_v14  ;;  %v12328_v35 = vld [vmem:[#allocation171_spill] sm:$0xff]  ;;  %v12341_v15 = vld [vmem:[#allocation48_spill] sm:$0xff] }
 0x691   : > { %v2550_v20 = vadd.f32 %v2225_v5, %v12317_v8  ;;  %v9761_v54 = vmul.f32 0.125, %v2670_v28  ;;  %v9763_v12 = vmul.f32 0.125, %v2671_v4  ;;  %v2675_v25 = vsub.f32 %v2611_v40, %v12327_v61  ;;  %v12334_v5 = vld [vmem:[#allocation20_spill] sm:$0xff] }
 0x692   : > { %12325 = vst [vmem:[#allocation68_spill] sm:$0xff] %v9755_v37  ;;  %12326 = vst [vmem:[#allocation143_spill] sm:$0xff] %v9757_v53  ;;  %v2487_v50 = vsel %vm1170_vm9, %v12328_v35, %v2442_v32  ;;  %v9777_v8 = vmul.f32 0.125, %v2692_v16  ;;  %v9779_v28 = vmul.f32 0.125, %v2693_v62  ;;  %v2551_v47 = vadd.f32 %v2149_v30, %v12328_v35  ;;  %v12335_v32 = vld [vmem:[#allocation209_spill] sm:$0xff] }
 0x693   : > { %v2614_v26 = vadd.f32 %v2550_v20, %v2410_v42  ;;  %v9782_v4 = vmul.f32 0.125, %v2674_v27  ;;  %v2696_v37 = vsub.f32 %v12335_v32, %v12334_v5  ;;  %v9803_v20 = vmul.f32 0.125, %v2675_v25 }
 0x694   : > { %12331 = vst [vmem:[#allocation74_spill] sm:$0xff] %v9777_v8  ;;  %12332 = vst [vmem:[#allocation172_spill] sm:$0xff] %v9779_v28  ;;  %v2615_v30 = vadd.f32 %v2551_v47, %v2487_v50  ;;  %v3679_v47 = vshrl.u32 %v12340_v2, 7  ;;  %v12346_v2 = vld [vmem:[#allocation14_spill] sm:$0xff] }
 0x695   : > { %12333 = vst [vmem:[#allocation80_spill] sm:$0xff] %v9782_v4 }
 0x696   : > { %v2679_v24 = vsub.f32 %v2615_v30, %v12346_v2  ;;  %v12354_v30 = vld [vmem:[#allocation195_spill] sm:$0xff]  ;;  %v12355_v2 = vld [vmem:[#allocation25_spill] sm:$0xff] }
 0x6a4   : > { %v3647_v40 = vpop.permute.xlu1 %3646  ;;  %v3645_v14 = vpop.permute.xlu0 %3644 }
 0x6a5   : > { %v3649_v16 = vsel %vm3648_vm11, %v3645_v14, %v3647_v40  ;;  %v3650_v62 = vsel %vm3648_vm11, %v3647_v40, %v3645_v14  ;;  %v12342_v40 = vld [vmem:[#allocation216_spill] sm:$0xff] }
 0x6a6   : > { %v3651_v27 = vsel %vm6376_vm6, 0.0, %v3649_v16  ;;  %v3652_v42 = vsel %vm9773_vm12, 0.0, %v3650_v62  ;;  %v2697_v14 = vsub.f32 %v12342_v40, %v12341_v15  ;;  %v12343_v16 = vld [vmem:[#allocation43_spill] sm:$0xff]  ;;  %v12344_v62 = vld [vmem:[#allocation105_spill] sm:$0xff] }
 0x6a7   : > { %v3653_v35 = vmax.f32 %v9433_v52, %v3651_v27  ;;  %v3654_v32 = vmax.f32 %v9435_v21, %v3652_v42  ;;  %v2678_v25 = vsub.f32 %v2614_v26, %v12343_v16  ;;  %v3657_v52 = vsel %vm9790_vm13, 0.0, %v12344_v62  ;;  %v12345_v21 = vld [vmem:[#allocation162_spill] sm:$0xff]  ;;  %v12348_v40 = vld [vmem:[#allocation165_spill] sm:$0xff]  ;;  %v12349_v62 = vld [vmem:[#allocation15_spill] sm:$0xff] }
 0x6a8   : > { %v3658_v56 = vsel %vm6380_vm7, 0.0, %v12345_v21  ;;  %v3666_v27 = vpop.permute.xlu1 %3665  ;;  %v3664_v42 = vpop.permute.xlu0 %3663  ;;  %v2682_v15 = vsub.f32 %v12348_v40, %v12347_v43  ;;  %v2683_v21 = vsub.f32 %v12350_v11, %v12349_v62  ;;  %v3680_v16 = vsub.s32 0, %v3679_v47  ;;  %v12356_v40 = vld [vmem:[#allocation215_spill] sm:$0xff] }
 0x6a9   : > { %v3659_v5 = vmax.f32 %v3653_v35, %v3657_v52  ;;  %v3660_v8 = vmax.f32 %v3654_v32, %v3658_v56  ;;  %v3668_v28 = vsel %vm3667_vm14, %v3664_v42, %v3666_v27  ;;  %v3669_v29 = vsel %vm3667_vm14, %v3666_v27, %v3664_v42  ;;  %v12351_v32 = vld [vmem:[#allocation62_spill] sm:$0xff]  ;;  %v12352_v52 = vld [vmem:[#allocation188_spill] sm:$0xff] }
 0x6aa   : > { %v3670_v26 = vsel %vm6271_vm4, 0.0, %v3668_v28  ;;  %v3671_v53 = vsel %vm9811_vm15, 0.0, %v3669_v29  ;;  %v2686_v56 = vsub.f32 %v12352_v52, %v12351_v32  ;;  %v12353_v27 = vld [vmem:[#allocation16_spill] sm:$0xff]  ;;  %v2690_v43 = vsub.f32 %v12356_v40, %v12355_v2  ;;  %v12358_v28 = vld [vmem:[#allocation157_spill] sm:$0xff] }
 0x6ab   : > { %v3672_v4 = vmax.f32 %v3659_v5, %v3670_v26  ;;  %v3673_v35 = vmax.f32 %v3660_v8, %v3671_v53  ;;  %v2687_v42 = vsub.f32 %v12354_v30, %v12353_v27  ;;  %v2691_v18 = vsub.f32 %v12358_v28, %v12357_v49  ;;  %v12374_v49 = vld [vmem:[#allocation52_spill] sm:$0xff] }
 0x6ac   : > { %v9842_v50 = vpop.permute.xlu1 %2063  ;;  %v9844_v29 = vpop.permute.xlu0 %2061  ;;  %v9846_v11 = vmul.f32 0.125, %v2696_v37  ;;  %v9848_v5 = vmul.f32 0.125, %v2697_v14  ;;  %v9850_v8 = vmul.f32 0.125, %v2678_v25  ;;  %v9852_v47 = vmul.f32 0.125, %v2679_v24 }
 0x6ad   : > { %vm3674_vm0 = vcmp.gt.f32.partialorder %v3672_v4, 0.4  ;;  %vm3675_vm2 = vcmp.gt.f32.partialorder %v3673_v35, 0.4  ;;  %v12361_v26 = vmov 0   ;;  %v9856_v30 = vmul.f32 0.125, %v2682_v15 }
 0x6ae   : > { %12359 = vst [vmem:[#allocation133_spill] sm:$0xff] %v9846_v11  ;;  %12360 = vst [vmem:[#allocation204_spill] sm:$0xff] %v9848_v5  ;;  %v3676_v53 = vsel %vm3674_vm0, 1, %v12361_v26  ;;  %v3677_v52 = vsel %vm3675_vm2, 1, %v12361_v26  ;;  %v9858_v40 = vmul.f32 0.125, %v2683_v21  ;;  %v9864_v14 = vmul.f32 0.125, %v2686_v56 }
 0x6af   : > { %v9860_v28 = vrot.slane %v3676_v53, %v3680_v16  ;;  %v9862_v37 = vrot.slane %v3677_v52, %v3680_v16  ;;  %v9866_v4 = vmul.f32 0.125, %v2687_v42  ;;  %v9868_v25 = vmul.f32 0.125, %v2690_v43  ;;  %v12365_v15 = vld [vmem:[#allocation27_spill] sm:$0xff]  ;;  %v12366_v26 = vld [vmem:[#allocation200_spill] sm:$0xff]  ;;  %v12367_v5 = vld [vmem:[#allocation18_spill] sm:$0xff] }
 0x6b0   : > { %12362 = vst [vmem:[#allocation140_spill] sm:$0xff] %v9864_v14  ;;  %v9870_v24 = vmul.f32 0.125, %v2691_v18  ;;  %v9872_v35 = vpop.permute.xlu1 %2127  ;;  %v9874_v11 = vpop.permute.xlu0 %2125  ;;  %v2694_v21 = vsub.f32 %v12366_v26, %v12365_v15  ;;  %v12368_v53 = vld [vmem:[#allocation211_spill] sm:$0xff]  ;;  %v12369_v16 = vld [vmem:[#allocation28_spill] sm:$0xff]  ;;  %v12370_v56 = vld [vmem:[#allocation102_spill] sm:$0xff]  ;;  %v2705_v14 = vsub.f32 %v9150_v1, %v12374_v49 }
 0x6b1   : > { %12363 = vst [vmem:[#allocation82_spill] sm:$0xff] %v9868_v25  ;;  %v2695_v2 = vsub.f32 %v12368_v53, %v12367_v5  ;;  %vm3686_vm3 = vcmp.eq.s32.totalorder %v9860_v28, 1  ;;  %vm3687_vm4 = vcmp.eq.s32.totalorder %v9862_v37, 1  ;;  %v2700_v43 = vsub.f32 %v12370_v56, %v12369_v16  ;;  %v12371_v42 = vld [vmem:[#allocation50_spill] sm:$0xff]  ;;  %v12372_v18 = vld [vmem:[#allocation91_spill] sm:$0xff]  ;;  %v12376_v53 = vld [vmem:[#allocation49_spill] sm:$0xff] }
 0x6b2   : > { %12364 = vst [vmem:[#allocation201_spill] sm:$0xff] %v9870_v24  ;;  %v2701_v52 = vsub.f32 %v12372_v18, %v12371_v42  ;;  %v12373_v25 = vld [vmem:[#allocation30_spill] sm:$0xff]  ;;  %v12375_v26 = vld [vmem:[#allocation23_spill] sm:$0xff]  ;;  %v2699_v5 = vsub.f32 %v9167_v57, %v12376_v53  ;;  %v3689_v56 = vsel %vm3687_vm4, %v9717_v0, %v12298_v46  ;;  %v3691_v18 = vsel %vm3687_vm4, %v9616_v7, %v12263_v17 }
 0x6b3   : > { %v2704_v24 = vsub.f32 %v9144_v58, %v12373_v25  ;;  %v2698_v15 = vsub.f32 %v9161_v9, %v12375_v26  ;;  %v3954_v16 = vpack.c.bf16 %v3691_v18, %v3689_v56  ;;  %v3688_v1 = vsel %vm3686_vm3, %v9707_v3, %v12297_v23  ;;  %v12381_v56 = vld [vmem:[#allocation112_spill] sm:$0xff]  ;;  %v12394_v18 = vld [vmem:[#allocation41_spill] sm:$0xff] }
 0x6b4   : > { %v2324_v58 = vpop.permute.xlu1 %2323  ;;  %v2322_v25 = vpop.permute.xlu0 %2321  ;;  %v3690_v9 = vsel %vm3686_vm3, %v9576_v51, %v12259_v55  ;;  %v3693_v57 = vsel %vm3687_vm4, %v9744_v45, %v12308_v48  ;;  %v9914_v46 = vmul.f32 0.125, %v2694_v21  ;;  %v9916_v17 = vmul.f32 0.125, %v2695_v2 }
 0x6b5   : > { %v3956_v7 = vpack.c.bf16 %v3690_v9, %v3688_v1  ;;  %v3695_v23 = vsel %vm3687_vm4, %v9621_v31, %v12269_v36  ;;  %v2198_v55 = vsel %vm1167_vm1, %v9872_v35, %v9842_v50  ;;  %3955 = vmatprep.subr.bf16.mxu0 %v3954_v16  ;;  %v3692_v3 = vsel %vm3686_vm3, %v9734_v34, %v12306_v38  ;;  %v12378_v16 = vld [vmem:[#allocation32_spill] sm:$0xff]  ;;  %v12382_v1 = vld [vmem:[#allocation51_spill] sm:$0xff] }
 0x6b6   : > { %v3958_v51 = vpack.c.bf16 %v3695_v23, %v3693_v57  ;;  %v3694_v0 = vsel %vm3686_vm3, %v9618_v60, %v12268_v44  ;;  %v9934_v48 = vmul.f32 0.125, %v2700_v43  ;;  %v9936_v36 = vmul.f32 0.125, %v2701_v52  ;;  %v12380_v52 = vld [vmem:[#allocation29_spill] sm:$0xff]  ;;  %v12383_v9 = vld [vmem:[#allocation116_spill] sm:$0xff]  ;;  %v12384_v23 = vld [vmem:[#allocation70_spill] sm:$0xff] }
 0x6b7   : > { %3957 = vmatpush1.bf16.msra.mxu0 %v3956_v7  ;;  %v3697_v31 = vsel %vm3687_vm4, %v9763_v12, %v12316_v39  ;;  %v3699_v38 = vsel %vm3687_vm4, %v9637_v19, %v12275_v59  ;;  %v9946_v34 = vmul.f32 0.125, %v2704_v24  ;;  %v9948_v45 = vmul.f32 0.125, %v2705_v14  ;;  %v12379_v12 = vld [vmem:[#allocation54_spill] sm:$0xff] }
 0x6b8   : > { %v9950_v44 = vmul.f32 0.125, %v2698_v15  ;;  %v9952_v60 = vmul.f32 0.125, %v2699_v5  ;;  %3959 = vmatprep.subr.bf16.mxu0 %v3958_v51  ;;  %v2388_v2 = vpop.permute.xlu1 %2387  ;;  %v2386_v21 = vpop.permute.xlu0 %2385  ;;  %v2259_v39 = vsel %vm1167_vm1, %v9119_v6, %v2198_v55  ;;  %v2197_v59 = vsel %vm1167_vm1, %v9874_v11, %v9844_v29  ;;  %v12385_v55 = vld [vmem:[#allocation108_spill] sm:$0xff]  ;;  %v12387_v51 = vld [vmem:[#allocation189_spill] sm:$0xff]  ;;  %v12395_v5 = vld [vmem:[#allocation79_spill] sm:$0xff] }
 0x6b9   : > { %12377 = vst [vmem:[#allocation181_spill] sm:$0xff] %v9946_v34  ;;  %v3960_v19 = vpack.c.bf16 %v3694_v0, %v3692_v3  ;;  %v3962_v14 = vpack.c.bf16 %v3699_v38, %v3697_v31  ;;  %v3696_v24 = vsel %vm3686_vm3, %v9761_v54, %v12315_v22  ;;  %v3698_v15 = vsel %vm3686_vm3, %v9623_v33, %v12273_v10  ;;  %v12386_v54 = vld [vmem:[#allocation31_spill] sm:$0xff]  ;;  %v12388_v33 = vld [vmem:[#allocation53_spill] sm:$0xff]  ;;  %v12389_v3 = vld [vmem:[#allocation198_spill] sm:$0xff] }
 0x6ba   : > { %v3701_v7 = vsel %vm3687_vm4, %v9803_v20, %v12327_v61  ;;  %v3703_v22 = vsel %vm3687_vm4, %v12385_v55, %v12384_v23  ;;  %v12390_v31 = vld [vmem:[#allocation187_spill] sm:$0xff]  ;;  %v2427_v20 = vsel %vm2401_vm8, %v2324_v58, %v2388_v2  ;;  %v2459_v23 = vsel %vm2401_vm8, %v2388_v2, %v2324_v58  ;;  %v12396_v58 = vld [vmem:[#allocation14_spill] sm:$0xff] }
 0x6bb   : > { %3961 = vmatpush1.bf16.msra.mxu0 %v3960_v19  ;;  %v2257_v38 = vsel %vm1167_vm1, %v12390_v31, %v2197_v59  ;;  %v2584_v19 = vadd.f32 %v2259_v39, %v9119_v6  ;;  %v2426_v55 = vsel %vm2401_vm8, %v2322_v25, %v2386_v21  ;;  %v3964_v0 = vpack.c.bf16 %v3698_v15, %v3696_v24  ;;  %v12392_v6 = vld [vmem:[#allocation42_spill] sm:$0xff]  ;;  %v12393_v39 = vld [vmem:[#allocation80_spill] sm:$0xff]  ;;  %v12398_v15 = vld [vmem:[#allocation149_spill] sm:$0xff] }
 0x6bc   : > { %3963 = vmatprep.subr.bf16.mxu0 %v3962_v14  ;;  %v9993_v57 = vpop.permute.xlu1 %2067  ;;  %v9995_v61 = vpop.permute.xlu0 %2065  ;;  %v2458_v59 = vsel %vm2401_vm8, %v2386_v21, %v2322_v25  ;;  %v3966_v10 = vpack.c.bf16 %v3703_v22, %v3701_v7  ;;  %v3700_v14 = vsel %vm3686_vm3, %v12393_v39, %v12392_v6  ;;  %v3702_v43 = vsel %vm3686_vm3, %v12395_v5, %v12394_v18  ;;  %v12397_v24 = vld [vmem:[#allocation72_spill] sm:$0xff]  ;;  %v12399_v21 = vld [vmem:[#allocation43_spill] sm:$0xff]  ;;  %v12403_v39 = vld [vmem:[#allocation73_spill] sm:$0xff] }
 0x6bd   : > { %12391 = vst [vmem:[#allocation185_spill] sm:$0xff] %v9995_v61  ;;  %v3705_v2 = vsel %vm3687_vm4, %v9852_v47, %v12396_v58  ;;  %v3707_v25 = vsel %vm3687_vm4, %v12398_v15, %v12397_v24  ;;  %v3704_v7 = vsel %vm3686_vm3, %v9850_v8, %v12399_v21  ;;  %v3709_v5 = vsel %vm3687_vm4, %v9858_v40, %v12349_v62  ;;  %v12401_v47 = vld [vmem:[#allocation44_spill] sm:$0xff]  ;;  %v12404_v58 = vld [vmem:[#allocation191_spill] sm:$0xff]  ;;  %v12405_v24 = vld [vmem:[#allocation46_spill] sm:$0xff] }
 0x6be   : > { %v3711_v8 = vsel %vm3687_vm4, %v12404_v58, %v12403_v39  ;;  %v3708_v62 = vsel %vm3686_vm3, %v9856_v30, %v12405_v24  ;;  %v12406_v40 = vld [vmem:[#allocation47_spill] sm:$0xff]  ;;  %v2166_v21 = vsel %vm1167_vm1, %v9842_v50, %v9872_v35  ;;  %v3968_v39 = vpack.c.bf16 %v3702_v43, %v3700_v14  ;;  %v12408_v58 = vld [vmem:[#allocation122_spill] sm:$0xff] }
 0x6bf   : > { %3965 = vmatpush1.bf16.msra.mxu0 %v3964_v0  ;;  %v12402_v0 = vld [vmem:[#allocation93_spill] sm:$0xff]  ;;  %v2521_v24 = vsel %vm1170_vm9, %v12408_v58, %v2459_v23  ;;  %v10061_v34 = vadd.f32 %v2584_v19, %v2427_v20  ;;  %v3970_v61 = vpack.c.bf16 %v3707_v25, %v3705_v2  ;;  %v12412_v19 = vld [vmem:[#allocation143_spill] sm:$0xff]  ;;  %v12413_v23 = vld [vmem:[#allocation140_spill] sm:$0xff]  ;;  %v3824_v28 = vstv %s3823_s7 }
 0x6c0   : > { %3967 = vmatprep.subr.bf16.mxu0 %v3966_v10  ;;  %v10029_v18 = vpop.permute.xlu1 %2131  ;;  %v10031_v22 = vpop.permute.xlu0 %2129  ;;  %v3706_v6 = vsel %vm3686_vm3, %v12402_v0, %v12401_v47  ;;  %v12407_v10 = vld [vmem:[#allocation205_spill] sm:$0xff]  ;;  %v2165_v47 = vsel %vm1167_vm1, %v9844_v29, %v9874_v11  ;;  %v2582_v0 = vadd.f32 %v2257_v38, %v12390_v31  ;;  %v3713_v31 = vsel %vm3687_vm4, %v9866_v4, %v12353_v27  ;;  %v12411_v38 = vld [vmem:[#allocation75_spill] sm:$0xff]  ;;  %v12418_v4 = vld [vmem:[#allocation76_spill] sm:$0xff] }
 0x6c1   : > { %12400 = vst [vmem:[#allocation137_spill] sm:$0xff] %v10031_v22  ;;  %v3710_v15 = vsel %vm3686_vm3, %v12407_v10, %v12406_v40  ;;  %v12410_v40 = vld [vmem:[#allocation63_spill] sm:$0xff]  ;;  %v3972_v35 = vpack.c.bf16 %v3706_v6, %v3704_v7  ;;  %v3974_v22 = vpack.c.bf16 %v3711_v8, %v3709_v5  ;;  %v3715_v20 = vsel %vm3687_vm4, %v12412_v19, %v12411_v38  ;;  %v12416_v7 = vld [vmem:[#allocation17_spill] sm:$0xff]  ;;  %v12419_v6 = vld [vmem:[#allocation172_spill] sm:$0xff] }
 0x6c2   : > { %v2519_v10 = vsel %vm1170_vm9, %v12410_v40, %v2458_v59  ;;  %v10066_v50 = vadd.f32 %v2582_v0, %v2426_v55  ;;  %v3976_v29 = vpack.c.bf16 %v3710_v15, %v3708_v62  ;;  %v3712_v55 = vsel %vm3686_vm3, %v12413_v23, %v12351_v32  ;;  %v12415_v59 = vld [vmem:[#allocation68_spill] sm:$0xff]  ;;  %v12417_v5 = vld [vmem:[#allocation201_spill] sm:$0xff]  ;;  %v12421_v32 = vld [vmem:[#allocation82_spill] sm:$0xff] }
 0x6c3   : > { %3969 = vmatpush1.bf16.msra.mxu0 %v3968_v39  ;;  %v3978_v2 = vpack.c.bf16 %v3715_v20, %v3713_v31  ;;  %v3717_v27 = vsel %vm3687_vm4, %v12417_v5, %v12416_v7  ;;  %v3719_v8 = vsel %vm3687_vm4, %v12419_v6, %v12418_v4  ;;  %v12420_v15 = vld [vmem:[#allocation25_spill] sm:$0xff]  ;;  %v12422_v39 = vld [vmem:[#allocation26_spill] sm:$0xff]  ;;  %v12428_v5 = vld [vmem:[#allocation20_spill] sm:$0xff] }
 0x6c4   : > { %3971 = vmatprep.subr.bf16.mxu0 %v3970_v61  ;;  %v10068_v11 = vpop.permute.xlu1 %2327  ;;  %v10070_v43 = vpop.permute.xlu0 %2325  ;;  %v12414_v61 = vld [vmem:[#allocation24_spill] sm:$0xff]  ;;  %v3982_v62 = vpack.c.bf16 %v3719_v8, %v3717_v27  ;;  %v10100_v0 = vsel %vm3686_vm3, %v12421_v32, %v12420_v15  ;;  %v12423_v31 = vld [vmem:[#allocation74_spill] sm:$0xff]  ;;  %v12429_v27 = vld [vmem:[#allocation133_spill] sm:$0xff]  ;;  %v10148_v15 = vsel %vm3687_vm4, %v9936_v36, %v12371_v42  ;;  %v12433_v42 = vsub.f32 %v12383_v9, %v12382_v1 }
 0x6c5   : > { %v3714_v14 = vsel %vm3686_vm3, %v12415_v59, %v12414_v61  ;;  %v10106_v38 = vsel %vm3686_vm3, %v12423_v31, %v12422_v39  ;;  %v12424_v19 = vld [vmem:[#allocation18_spill] sm:$0xff]  ;;  %v12426_v61 = vld [vmem:[#allocation204_spill] sm:$0xff]  ;;  %v2585_v31 = vadd.f32 %v2166_v21, %v12408_v58  ;;  %v12437_v58 = vld [vmem:[#allocation33_spill] sm:$0xff] }
 0x6c6   : > { %v3980_v25 = vpack.c.bf16 %v3714_v14, %v3712_v55  ;;  %v10112_v20 = vsel %vm3687_vm4, %v9916_v17, %v12424_v19  ;;  %v3984_v23 = vpack.c.bf16 %v10106_v38, %v10100_v0  ;;  %v12425_v55 = vld [vmem:[#allocation48_spill] sm:$0xff]  ;;  %v12427_v14 = vld [vmem:[#allocation27_spill] sm:$0xff]  ;;  %v10132_v17 = vsel %vm3686_vm3, %v12429_v27, %v12428_v5  ;;  %v12436_v9 = vld [vmem:[#allocation34_spill] sm:$0xff] }
 0x6c7   : > { %3973 = vmatpush1.bf16.msra.mxu0 %v3972_v35  ;;  %v10120_v59 = vsel %vm3687_vm4, %v12426_v61, %v12425_v55  ;;  %v10126_v7 = vsel %vm3686_vm3, %v9914_v46, %v12427_v14  ;;  %v10142_v46 = vsel %vm3687_vm4, %v9952_v60, %v12376_v53  ;;  %v12431_v0 = vsub.f32 %v9250_v41, %v12379_v12  ;;  %v12441_v14 = vld [vmem:[#allocation30_spill] sm:$0xff]  ;;  %v12442_v5 = vld [vmem:[#allocation181_spill] sm:$0xff] }
 0x6c8   : > { %3975 = vmatprep.subr.bf16.mxu0 %v3974_v22  ;;  %v2392_v35 = vpop.permute.xlu1 %2391  ;;  %v2390_v4 = vpop.permute.xlu0 %2389  ;;  %v3986_v6 = vpack.c.bf16 %v10120_v59, %v10112_v20  ;;  %v3988_v8 = vpack.c.bf16 %v10132_v17, %v10126_v7  ;;  %v12430_v22 = vsub.f32 %v9244_v63, %v12378_v16  ;;  %v2583_v38 = vadd.f32 %v2165_v47, %v12410_v40 }
 0x6c9   : > { %v2773_v39 = vmul.f32 0.125, %v12431_v0  ;;  %v12432_v53 = vsub.f32 %v12381_v56, %v12380_v52  ;;  %v2767_v36 = vmul.f32 0.125, %v12433_v42  ;;  %v12434_v63 = vsub.f32 %v12387_v51, %v12386_v54 }
 0x6ca   : > { %v2772_v32 = vmul.f32 0.125, %v12430_v22  ;;  %v12435_v41 = vsub.f32 %v12389_v3, %v12388_v33  ;;  %v2649_v55 = vadd.f32 %v2585_v31, %v2521_v24  ;;  %v2647_v21 = vadd.f32 %v2583_v38, %v2519_v10  ;;  %v12438_v10 = vld [vmem:[#allocation28_spill] sm:$0xff] }
 0x6cb   : > { %v2766_v60 = vmul.f32 0.125, %v12432_v53  ;;  %v2770_v19 = vmul.f32 0.125, %v12434_v63  ;;  %3977 = vmatpush1.bf16.msra.mxu0 %v3976_v29  ;;  %v3990_v47 = vpack.c.bf16 %v10148_v15, %v10142_v46  ;;  %v10176_v56 = vsel %vm3686_vm3, %v9950_v44, %v12375_v26  ;;  %v12453_v46 = vld [vmem:[#allocation58_spill] sm:$0xff] }
 0x6cc   : > { %v2771_v20 = vmul.f32 0.125, %v12435_v41  ;;  %v2712_v51 = vsub.f32 %v10061_v34, %v12436_v9  ;;  %v2710_v40 = vsub.f32 %v10066_v50, %v12437_v58  ;;  %3979 = vmatprep.subr.bf16.mxu0 %v3978_v2  ;;  %v2072_v3 = vpop.permute.xlu1 %2071  ;;  %v2070_v24 = vpop.permute.xlu0 %2069  ;;  %v10186_v29 = vsel %vm3686_vm3, %v9934_v48, %v12438_v10  ;;  %v12440_v2 = vld [vmem:[#allocation185_spill] sm:$0xff]  ;;  %v12447_v41 = vld [vmem:[#allocation92_spill] sm:$0xff] }
 0x6cd   : > { %v10191_v26 = vsel %vm3687_vm4, %v2767_v36, %v12382_v1  ;;  %v2168_v34 = vsel %vm1167_vm1, %v9993_v57, %v10029_v18  ;;  %v2200_v44 = vsel %vm1167_vm1, %v10029_v18, %v9993_v57  ;;  %v3992_v50 = vpack.c.bf16 %v10186_v29, %v10176_v56  ;;  %v12439_v1 = vld [vmem:[#allocation137_spill] sm:$0xff]  ;;  %v12445_v36 = vld [vmem:[#allocation124_spill] sm:$0xff] }
 0x6ce   : > { %v10207_v48 = vsel %vm3687_vm4, %v9948_v45, %v12374_v49  ;;  %v2167_v61 = vsel %vm1167_vm1, %v12440_v2, %v12439_v1  ;;  %v2199_v59 = vsel %vm1167_vm1, %v12439_v1, %v12440_v2  ;;  %v10222_v18 = vsel %vm3686_vm3, %v2766_v60, %v12380_v52  ;;  %v12444_v60 = vld [vmem:[#allocation55_spill] sm:$0xff] }
 0x6cf   : > { %v3994_v57 = vpack.c.bf16 %v10207_v48, %v10191_v26  ;;  %v2461_v49 = vsel %vm2401_vm8, %v2392_v35, %v10068_v11  ;;  %v2460_v45 = vsel %vm2401_vm8, %v2390_v4, %v10070_v43  ;;  %3981 = vmatpush1.bf16.msra.mxu0 %v3980_v25  ;;  %v10234_v27 = vsel %vm3686_vm3, %v12442_v5, %v12441_v14  ;;  %v12460_v26 = vld [vmem:[#allocation37_spill] sm:$0xff] }
 0x6d0   : > { %v10239_v52 = vsel %vm3687_vm4, %v2771_v20, %v12388_v33  ;;  %3983 = vmatprep.subr.bf16.mxu0 %v3982_v62  ;;  %v2136_v22 = vpop.permute.xlu1 %2135  ;;  %v2134_v0 = vpop.permute.xlu0 %2133  ;;  %v3996_v31 = vpack.c.bf16 %v10234_v27, %v10222_v18  ;;  %v10246_v25 = vsel %vm3687_vm4, %v2773_v39, %v12379_v12  ;;  %v10251_v38 = vsel %vm3686_vm3, %v2770_v19, %v12386_v54  ;;  %v12443_v62 = vld [vmem:[#allocation56_spill] sm:$0xff]  ;;  %v12448_v19 = vld [vmem:[#allocation78_spill] sm:$0xff] }
 0x6d1   : > { %v10256_v33 = vsel %vm3686_vm3, %v2772_v32, %v12378_v16  ;;  %v2713_v53 = vsub.f32 %v2649_v55, %v12443_v62  ;;  %v2711_v42 = vsub.f32 %v2647_v21, %v12444_v60  ;;  %v2263_v63 = vsel %vm1167_vm1, %v12445_v36, %v2200_v44  ;;  %v12446_v12 = vld [vmem:[#allocation180_spill] sm:$0xff] }
 0x6d2   : > { %v2261_v39 = vsel %vm1167_vm1, %v12446_v12, %v2199_v59  ;;  %v2589_v54 = vadd.f32 %v2168_v34, %v12447_v41  ;;  %v2587_v20 = vadd.f32 %v2167_v61, %v12448_v19  ;;  %v2202_v16 = vsel %vm1167_vm1, %v2136_v22, %v2072_v3 }
 0x6d3   : > { %v2201_v32 = vsel %vm1167_vm1, %v2134_v0, %v2070_v24  ;;  %v2525_v55 = vsel %vm1170_vm9, %v12447_v41, %v2461_v49  ;;  %v2523_v21 = vsel %vm1170_vm9, %v12448_v19, %v2460_v45  ;;  %3985 = vmatpush1.bf16.msra.mxu0 %v3984_v23  ;;  %v3998_v10 = vpack.c.bf16 %v10246_v25, %v10239_v52  ;;  %v12449_v45 = vld [vmem:[#allocation99_spill] sm:$0xff] }
 0x6d4   : > { %v4000_v34 = vpack.c.bf16 %v10256_v33, %v10251_v38  ;;  %v2588_v44 = vadd.f32 %v2263_v63, %v12445_v36  ;;  %v2429_v1 = vsel %vm2401_vm8, %v10068_v11, %v2392_v35  ;;  %v2586_v2 = vadd.f32 %v2261_v39, %v12446_v12  ;;  %3987 = vmatprep.subr.bf16.mxu0 %v3986_v6  ;;  %v2332_v23 = vpop.permute.xlu1 %2331  ;;  %v2330_v59 = vpop.permute.xlu0 %2329  ;;  %v12450_v11 = vld [vmem:[#allocation100_spill] sm:$0xff] }
 0x6d5   : > { %v2428_v61 = vsel %vm2401_vm8, %v10070_v43, %v2390_v4  ;;  %v2170_v49 = vsel %vm1167_vm1, %v2072_v3, %v2136_v22  ;;  %v2267_v14 = vsel %vm1167_vm1, %v12449_v45, %v2202_v16  ;;  %v2169_v5 = vsel %vm1167_vm1, %v2070_v24, %v2134_v0  ;;  %v12451_v3 = vld [vmem:[#allocation183_spill] sm:$0xff]  ;;  %v12452_v39 = vld [vmem:[#allocation168_spill] sm:$0xff] }
 0x6d6   : > { %v2265_v35 = vsel %vm1167_vm1, %v12450_v11, %v2201_v32  ;;  %v2776_v52 = vmul.f32 0.125, %v2712_v51  ;;  %v2774_v25 = vmul.f32 0.125, %v2710_v40  ;;  %v2653_v43 = vadd.f32 %v2589_v54, %v2525_v55 }
 0x6d7   : > { %v2651_v4 = vadd.f32 %v2587_v20, %v2523_v21  ;;  %v2777_v6 = vmul.f32 0.125, %v2713_v53  ;;  %v2775_v36 = vmul.f32 0.125, %v2711_v42  ;;  %v2652_v63 = vadd.f32 %v2588_v44, %v2429_v1  ;;  %3989 = vmatpush1.bf16.msra.mxu0 %v3988_v8  ;;  %v12455_v21 = vld [vmem:[#allocation36_spill] sm:$0xff]  ;;  %v12456_v1 = vld [vmem:[#allocation35_spill] sm:$0xff] }
 0x6d8   : > { %v2650_v12 = vadd.f32 %v2586_v2, %v2428_v61  ;;  %v2593_v22 = vadd.f32 %v2170_v49, %v12451_v3  ;;  %v2591_v24 = vadd.f32 %v2169_v5, %v12452_v39  ;;  %3991 = vmatprep.subr.bf16.mxu0 %v3990_v47  ;;  %v2592_v51 = vadd.f32 %v2267_v14, %v12449_v45  ;;  %v2396_v40 = vpop.permute.xlu1 %2395  ;;  %v2394_v53 = vpop.permute.xlu0 %2393  ;;  %v12454_v47 = vld [vmem:[#allocation57_spill] sm:$0xff]  ;;  %v12458_v45 = vld [vmem:[#allocation59_spill] sm:$0xff] }
 0x6d9   : > { %v2590_v0 = vadd.f32 %v2265_v35, %v12450_v11  ;;  %v2431_v42 = vsel %vm2401_vm8, %v2332_v23, %v2396_v40  ;;  %v2463_v7 = vsel %vm2401_vm8, %v2396_v40, %v2332_v23  ;;  %v2430_v17 = vsel %vm2401_vm8, %v2330_v59, %v2394_v53 }
 0x6da   : > { %v2462_v8 = vsel %vm2401_vm8, %v2394_v53, %v2330_v59  ;;  %v2717_v15 = vsub.f32 %v2653_v43, %v12453_v46  ;;  %v2715_v41 = vsub.f32 %v2651_v4, %v12454_v47  ;;  %v2529_v54 = vsel %vm1170_vm9, %v12451_v3, %v2463_v7  ;;  %v12457_v59 = vld [vmem:[#allocation60_spill] sm:$0xff]  ;;  %v12463_v7 = vld [vmem:[#allocation71_spill] sm:$0xff] }
 0x6db   : > { %v2527_v19 = vsel %vm1170_vm9, %v12452_v39, %v2462_v8  ;;  %v2656_v20 = vadd.f32 %v2592_v51, %v2431_v42  ;;  %v2657_v16 = vadd.f32 %v2593_v22, %v2529_v54  ;;  %v2654_v32 = vadd.f32 %v2590_v0, %v2430_v17  ;;  %3993 = vmatpush1.bf16.msra.mxu0 %v3992_v50  ;;  %v12459_v50 = vld [vmem:[#allocation38_spill] sm:$0xff]  ;;  %v12462_v51 = vld [vmem:[#allocation169_spill] sm:$0xff] }
 0x6dc   : > { %v2655_v55 = vadd.f32 %v2591_v24, %v2527_v19  ;;  %v2716_v44 = vsub.f32 %v2652_v63, %v12455_v21  ;;  %v2714_v2 = vsub.f32 %v2650_v12, %v12456_v1  ;;  %3995 = vmatprep.subr.bf16.mxu0 %v3994_v57  ;;  %v2076_v61 = vpop.permute.xlu1 %2075  ;;  %v2074_v23 = vpop.permute.xlu0 %2073  ;;  %v2781_v5 = vmul.f32 0.125, %v2717_v15 }
 0x6dd   : > { %v2721_v49 = vsub.f32 %v2657_v16, %v12457_v59  ;;  %v2779_v11 = vmul.f32 0.125, %v2715_v41  ;;  %v3737_v56 = vsel %vm3687_vm4, %v2775_v36, %v12444_v60  ;;  %v3739_v29 = vsel %vm3687_vm4, %v2777_v6, %v12443_v62 }
 0x6de   : > { %v2719_v14 = vsub.f32 %v2655_v55, %v12458_v45  ;;  %v2720_v35 = vsub.f32 %v2656_v20, %v12459_v50  ;;  %v2718_v48 = vsub.f32 %v2654_v32, %v12460_v26  ;;  %v3736_v57 = vsel %vm3686_vm3, %v2774_v25, %v12437_v58 }
 0x6df   : > { %3997 = vmatpush1.bf16.msra.mxu0 %v3996_v31  ;;  %v3738_v60 = vsel %vm3686_vm3, %v2776_v52, %v12436_v9  ;;  %v2780_v43 = vmul.f32 0.125, %v2716_v44  ;;  %v2778_v4 = vmul.f32 0.125, %v2714_v2  ;;  %v2785_v36 = vmul.f32 0.125, %v2721_v49 }
 0x6e0   : > { %3999 = vmatprep.subr.bf16.mxu0 %v3998_v10  ;;  %v2140_v62 = vpop.permute.xlu1 %2139  ;;  %v2138_v6 = vpop.permute.xlu0 %2137  ;;  %v2783_v63 = vmul.f32 0.125, %v2719_v14  ;;  %v4002_v27 = vpack.c.bf16 %v3739_v29, %v3737_v56  ;;  %v4004_v31 = vpack.c.bf16 %v3738_v60, %v3736_v57  ;;  %v2784_v58 = vmul.f32 0.125, %v2720_v35  ;;  %v12465_v14 = vld [vmem:[#allocation19_spill] sm:$0xff] }
 0x6e1   : > { %v2204_v12 = vsel %vm1167_vm1, %v2140_v62, %v2076_v61  ;;  %v2203_v18 = vsel %vm1167_vm1, %v2138_v6, %v2074_v23  ;;  %v2782_v25 = vmul.f32 0.125, %v2718_v48  ;;  %v3741_v9 = vsel %vm3687_vm4, %v2779_v11, %v12454_v47  ;;  %v12464_v47 = vld [vmem:[#allocation135_spill] sm:$0xff] }
 0x6e2   : > { %v3743_v10 = vsel %vm3687_vm4, %v2781_v5, %v12453_v46  ;;  %v2172_v52 = vsel %vm1167_vm1, %v2076_v61, %v2140_v62  ;;  %v2171_v3 = vsel %vm1167_vm1, %v2074_v23, %v2138_v6  ;;  %v3740_v38 = vsel %vm3686_vm3, %v2778_v4, %v12456_v1  ;;  %v12466_v11 = vld [vmem:[#allocation39_spill] sm:$0xff] }
 0x6e3   : > { %4001 = vmatpush1.bf16.msra.mxu0 %v4000_v34  ;;  %v3742_v33 = vsel %vm3686_vm3, %v2780_v43, %v12455_v21  ;;  %v12461_v34 = vld [vmem:[#allocation218_spill] sm:$0xff]  ;;  %v2269_v40 = vsel %vm1167_vm1, %v12462_v51, %v2203_v18  ;;  %v3745_v0 = vsel %vm3687_vm4, %v2783_v63, %v12458_v45  ;;  %v3747_v53 = vsel %vm3687_vm4, %v2785_v36, %v12457_v59 }
 0x6e4   : > { %4003 = vmatprep.subr.bf16.mxu0 %v4002_v27  ;;  %v2336_v22 = vpop.permute.xlu1 %2335  ;;  %v2334_v39 = vpop.permute.xlu0 %2333  ;;  %v2271_v24 = vsel %vm1167_vm1, %v12461_v34, %v2204_v12  ;;  %v4006_v42 = vpack.c.bf16 %v3743_v10, %v3741_v9  ;;  %v2597_v17 = vadd.f32 %v2172_v52, %v12463_v7  ;;  %v4008_v8 = vpack.c.bf16 %v3742_v33, %v3740_v38  ;;  %v12469_v12 = vld [vmem:[#allocation7_spill] sm:$0xff]  ;;  %v12470_v18 = vld [vmem:[#allocation6_spill] sm:$0xff] }
 0x6e5   : > { %v3744_v46 = vsel %vm3686_vm3, %v2782_v25, %v12460_v26  ;;  %v3746_v15 = vsel %vm3686_vm3, %v2784_v58, %v12459_v50  ;;  %v2595_v41 = vadd.f32 %v2171_v3, %v12464_v47  ;;  %v2596_v54 = vadd.f32 %v2271_v24, %v12461_v34  ;;  %v12468_v50 = vld [vmem:[#allocation61_spill] sm:$0xff]  ;;  %v4198_v9 = vld [vmem:[%s4431_s10] sm:$0xff]  ;;  %v4199_v52 = vld [vmem:[%s4431_s10 + $0x8] sm:$0xff]  ;;  %s4340_s10 = smov [#allocation3]  }
 0x6e6   : > { %v2594_v20 = vadd.f32 %v2269_v40, %v12462_v51  ;;  %v4010_v32 = vpack.c.bf16 %v3747_v53, %v3745_v0  ;;  %v4012_v26 = vpack.c.bf16 %v3746_v15, %v3744_v46  ;;  %v309_v27 = vadd.f32 %v12470_v18, %v12469_v12  ;;  %s4204_s23 = sshll.u32 %s4340_s10, 4  ;;  %s4205_s23 = int_to_ptr.vmem [resolvable:$false] %s4204_s23 }
 0x6e7   : > { %4005 = vmatpush1.bf16.msra.mxu0 %v4004_v31  ;;  %s4206_s24 = scalar_lea.vmem %s4205_s23, 512  ;;  %p4207_p0 = scmp.lt.s32.totalorder %s10439_s13, %s4205_s23 }
 0x6e8   : > { %4007 = vmatprep.subr.bf16.mxu0 %v4006_v42  ;;  %v2400_v19 = vpop.permute.xlu1 %2399  ;;  %v2398_v16 = vpop.permute.xlu0 %2397  ;;  %p4208_p1 = scmp.lt.s32.totalorder %s4206_s24, %s4200_s21 }
 0x6e9   : > { %v2433_v55 = vsel %vm2401_vm8, %v2336_v22, %v2400_v19  ;;  %v2465_v21 = vsel %vm2401_vm8, %v2400_v19, %v2336_v22  ;;  %v2432_v44 = vsel %vm2401_vm8, %v2334_v39, %v2398_v16  ;;  %v2464_v1 = vsel %vm2401_vm8, %v2398_v16, %v2334_v39 }
 0x6ea   : > { %v2533_v2 = vsel %vm1170_vm9, %v12463_v7, %v2465_v21  ;;  %v2660_v61 = vadd.f32 %v2596_v54, %v2433_v55  ;;  %v2531_v23 = vsel %vm1170_vm9, %v12464_v47, %v2464_v1  ;;  %v2658_v59 = vadd.f32 %v2594_v20, %v2432_v44  ;;  %p4209_p2 = por %p4208_p1, %p4207_p0 }
 0x6eb   : > { %v2661_v49 = vadd.f32 %v2597_v17, %v2533_v2  ;;  %v2659_v45 = vadd.f32 %v2595_v41, %v2531_v23  ;;  %4009 = vmatpush1.bf16.msra.mxu0 %v4008_v8 }
 0x6ec   : > { %v2724_v5 = vsub.f32 %v2660_v61, %v12465_v14  ;;  %v2722_v56 = vsub.f32 %v2658_v59, %v12466_v11  ;;  %4011 = vmatprep.subr.bf16.mxu0 %v4010_v32  ;;  %p4210_p3 = pnand %p4209_p2, %p4203_p13 }
 0x6ed   : > { %v2725_v29 = vsub.f32 %v2661_v49, %v12467_v13  ;;  %v2723_v35 = vsub.f32 %v2659_v45, %v12468_v50 }
 0x6ee   : > { %v2788_v48 = vmul.f32 0.125, %v2724_v5  ;;  %v2786_v57 = vmul.f32 0.125, %v2722_v56 }
 0x6ef   : > { %v2789_v60 = vmul.f32 0.125, %v2725_v29  ;;  %v2787_v30 = vmul.f32 0.125, %v2723_v35  ;;  %4013 = vmatpush1.bf16.msra.mxu0 %v4012_v26 }
 0x6f0   : > { %v3748_v43 = vsel %vm3686_vm3, %v2786_v57, %v12466_v11  ;;  %v3750_v4 = vsel %vm3686_vm3, %v2788_v48, %v12465_v14 }
 0x6f1   : > { %v3749_v62 = vsel %vm3687_vm4, %v2787_v30, %v12468_v50  ;;  %v3751_v6 = vsel %vm3687_vm4, %v2789_v60, %v12467_v13  ;;  %v4016_v63 = vpack.c.bf16 %v3750_v4, %v3748_v43 }
 0x6f2   : > { %v4014_v36 = vpack.c.bf16 %v3751_v6, %v3749_v62 }
 0x6f4   : > { %4015 = vmatprep.subr.bf16.mxu0 %v4014_v36 }
 0x6f5   : > { %4017 = vmatpush1.bf16.msra.mxu0 %v4016_v63 }
 0x6f8   : > { %3817 = vmatmul.mubr.f32.vlgmr.msra.gmra.mrb[6].mxu0 %v309_v27 }
 0x7cb   : > { %v3818_v31 = vpop.f32.mrb[6].mxu0 }
 0x7cc   : > { %v3825_v58 = vmul.f32 %v3824_v28, %v3818_v31  ;;  %v3820_v25 = vpop.f32.mrb[7].mxu0 }
 0x7cd   : > { %v3826_v37 = vmul.f32 %v3824_v28, %v3820_v25 }
 0x7ce   : > { %v3827_v10 = vadd.f32 %v4198_v9, %v3825_v58 }
 0x7cf   : > { %v3828_v3 = vadd.f32 %v4199_v52, %v3826_v37 }
 0x7d0   : > { %3829 = vst [vmem:[%s191_s12] sm:$0xff] %v3827_v10 }
 0x7d1   : > { %3830 = vst [vmem:[%s191_s12 + $0x8] sm:$0xff] %v3828_v3 }
 0x7d2   : > { %4213 = shalt.err (!%p4210_p3)
}
 0x7d3   : > { %s4214_s28 = scalar_lea.hbm %s10437_s16, 256  ;;  %s4218_s5 = scalar_lea.hbm %s10483_s4, 512 }
 0x7d4   : > { %p4215_p4 = scmp.ne.s32.totalorder %s10437_s16, %s4214_s28  ;;  %p4219_p9 = scmp.lt.u32.totalorder %s10437_s16, %s10483_s4 }
 0x7d5   : > { %p4220_p10 = scmp.lt.u32.totalorder %s4218_s5, %s4214_s28  ;;  %p4222_p12 = scmp.lt.u32.totalorder %s4214_s28, %s10437_s16 }
 0x7d6   : > { %p4216_p7 = pnand %p4215_p4, %p4407_p5 }
 0x7d7   : > { %p4221_p11 = por %p4220_p10, %p4219_p9 }
 0x7d8   : > { %p4217_p8 = pneg %p4216_p7 }
 0x7d9   : > { %p4223_p13 = por %p4222_p12, %p4221_p11 }
 0x7db   : > { %p4224_p0 = pnand %p4223_p13, %p4217_p8 }
 0x7dd   : > { %4227 = shalt.err (!%p4224_p0)
}
 0x7de   : > { %4018 = dma.vmem_to_hbm [thread:$0]  (%p4407_p5), %s10439_s13, 256, %s10437_s16, %s3832_s3  }
 0x7df PF: > { %p4024_p1 = scmp.ge.s32.totalorder %s4330_s20, 2  ;;  %s3858_s8 = sand.u32 1, %s4318_s17  }
 0x7e0   : > { %s3859_s9 = scalar_lea.sflag [#allocation4], %s3858_s8 }
 0x7e1   : > { %p4021_p2 = pnand %p4024_p1, %p4411_p6 }
 0x7e3   : > { %4245 = dma.done.wait (!%p4021_p2), %s3859_s9, 256  }
 0x7e4   : > { %4247 = vsyncadd (!%p4021_p2), %s3859_s9, 4294967040  ;;  %p15_p3 = scmp.ge.s32.totalorder %s4394_s22, 4   ;;  %s12471_s17 = smov %s4322_s18 }
 0x7e5   : > { %s12472_s18 = smov %s4326_s19  ;;  %s12473_s19 = smov %s4405_s25 }
 0x7e6   : > { %s12474_s20 = smov %s4394_s22  ;;  %17 = sbr.rel (!%p15_p3) target bundleno = 5 (0x5), region = 71 }
 0x7ed   :  { %3864 = vsyncpa [#allocation4], 1 }
 0x7ee   :  { %3866 = vsyncpa [#allocation4 + $0x1], 1 }

</bundles_post_ra>
